<compile_context>
chip_gen: v7x
topology: tpu7x:2x2x1
jax: 0.10.0
libtpu: 0.0.40
codegen_flags: <defaults>
</compile_context>

<pallas_src>
import functools

import jax
import jax.numpy as jnp
from jax.experimental import pallas as pl
from jax.experimental.pallas import tpu as pltpu


# ----------------------------------------------------------------------------
# small helpers
# ----------------------------------------------------------------------------
def _cdiv(a, b):
    return -(-a // b)


def _round_up(x, m):
    return _cdiv(x, m) * m


def bn_fold(gamma, beta, mean, var, eps=1e-5):
    scale = gamma / jnp.sqrt(var + eps)
    shift = beta - mean * scale
    return scale, shift


# ----------------------------------------------------------------------------
# Tiled fused matmul kernel
#   o = [relu]((a @ b) * scale + shift [+ residual])
# bf16 MXU inputs, f32 VMEM accumulator, f32 epilogue, cast at final store.
# ----------------------------------------------------------------------------
def _fused_matmul_kernel(*refs, relu, has_residual):
    if has_residual:
        a_ref, b_ref, scale_ref, shift_ref, res_ref, o_ref, acc_ref = refs
    else:
        a_ref, b_ref, scale_ref, shift_ref, o_ref, acc_ref = refs
        res_ref = None
    k = pl.program_id(2)

    @pl.when(k == 0)
    def _():
        acc_ref[...] = jnp.zeros_like(acc_ref)

    acc_ref[...] += jnp.dot(a_ref[...], b_ref[...],
                            preferred_element_type=jnp.float32)

    @pl.when(k == pl.num_programs(2) - 1)
    def _():
        acc = acc_ref[...] * scale_ref[...] + shift_ref[...]
        if res_ref is not None:
            acc = acc + res_ref[...].astype(jnp.float32)
        if relu:
            acc = jnp.maximum(acc, 0.0)
        o_ref[...] = acc.astype(o_ref.dtype)


def fused_matmul(a, b, scale, shift, residual=None, relu=False,
                 out_dtype=jnp.float32, tm_max=256, tn_max=256, tk_max=512):
    """(M,K)@(K,N) with fused per-output-column affine (+residual) (+relu)."""
    M, K = a.shape
    K2, N = b.shape
    assert K == K2

    # Padded extents and tile sizes: biggest (8,128)-aligned tiles <= *_max that
    # evenly divide the padded dims with minimal zero padding.
    Mp, Np, Kp = _round_up(M, 8), _round_up(N, 128), _round_up(K, 128)
    nm, nn, nk = _cdiv(Mp, tm_max), _cdiv(Np, tn_max), _cdiv(Kp, tk_max)
    tm = _round_up(_cdiv(Mp, nm), 8)
    tn = _round_up(_cdiv(Np, nn), 128)
    tk = _round_up(_cdiv(Kp, nk), 128)
    Mp, Np, Kp = tm * nm, tn * nn, tk * nk

    a_p = jnp.pad(a.astype(jnp.bfloat16), ((0, Mp - M), (0, Kp - K)))
    b_p = jnp.pad(b.astype(jnp.bfloat16), ((0, Kp - K), (0, Np - N)))
    scale_p = jnp.pad(scale.astype(jnp.float32).reshape(1, -1),
                      ((0, 0), (0, Np - N)))
    shift_p = jnp.pad(shift.astype(jnp.float32).reshape(1, -1),
                      ((0, 0), (0, Np - N)))

    args = [a_p, b_p, scale_p, shift_p]
    in_specs = [
        pl.BlockSpec((tm, tk), lambda i, j, k: (i, k)),
        pl.BlockSpec((tk, tn), lambda i, j, k: (k, j)),
        pl.BlockSpec((1, tn), lambda i, j, k: (0, j)),
        pl.BlockSpec((1, tn), lambda i, j, k: (0, j)),
    ]
    if residual is not None:
        res_p = jnp.pad(residual.astype(jnp.bfloat16),
                        ((0, Mp - M), (0, Np - N)))
        args.append(res_p)
        in_specs.append(pl.BlockSpec((tm, tn), lambda i, j, k: (i, j)))

    kernel = functools.partial(_fused_matmul_kernel, relu=relu,
                               has_residual=residual is not None)
    out = pl.pallas_call(
        kernel,
        grid=(nm, nn, nk),
        in_specs=in_specs,
        out_specs=pl.BlockSpec((tm, tn), lambda i, j, k: (i, j)),
        out_shape=jax.ShapeDtypeStruct((Mp, Np), out_dtype),
        scratch_shapes=[pltpu.VMEM((tm, tn), jnp.float32)],
        compiler_params=pltpu.CompilerParams(
            dimension_semantics=("parallel", "parallel", "arbitrary")),
    )(*args)
    return out[:M, :N]


# ----------------------------------------------------------------------------
# Conv / pool wrappers (NHWC end-to-end)
# ----------------------------------------------------------------------------
def conv_bn(x, w, scale, shift, stride, padding, relu=True, residual=None,
            out_dtype=jnp.bfloat16):
    """Conv2d(bias=False) + folded BatchNorm2d (+residual) (+relu).
    x: NHWC activation, w: (O, C, kh, kw) torch layout."""
    o_ch, c, kh, kw = w.shape
    n, h, wd, _ = x.shape
    h_out = (h + 2 * padding - kh) // stride + 1
    w_out = (wd + 2 * padding - kw) // stride + 1
    if padding:
        x = jnp.pad(x, ((0, 0), (padding, padding), (padding, padding), (0, 0)))
    # im2col with tap-major / channel-minor K ordering (matches weight reshape).
    # TODO(synk): stream the kh*kw taps as an extra reduction grid axis
    # (Element-offset index_map or manual make_async_copy of shifted windows)
    # instead of materializing the kh*kw-expanded patches matrix in HBM.
    taps = [x[:, ki:ki + stride * h_out:stride, kj:kj + stride * w_out:stride, :]
            for ki in range(kh) for kj in range(kw)]
    patches = taps[0] if len(taps) == 1 else jnp.concatenate(taps, axis=-1)
    a = patches.reshape(n * h_out * w_out, kh * kw * c)
    wmat = w.transpose(2, 3, 1, 0).reshape(kh * kw * c, o_ch)
    res = None
    if residual is not None:
        res = residual.reshape(n * h_out * w_out, o_ch)
    out = fused_matmul(a, wmat, scale, shift, residual=res, relu=relu,
                       out_dtype=out_dtype)
    return out.reshape(n, h_out, w_out, o_ch)


def maxpool2d(x, k=3, stride=2, padding=1):
    """3x3 / stride-2 max pool in NHWC via a jnp.maximum tree (XLA fuses the
    shifted slices with the max: one HBM read + one write, no 9x intermediate).
    """
    # TODO(synk): could be a windowed Pallas kernel fused with the stem conv
    # epilogue; left to XLA fusion per perf review recommendation.
    n, h, w, c = x.shape
    h_out = (h + 2 * padding - k) // stride + 1
    w_out = (w + 2 * padding - k) // stride + 1
    x = jnp.pad(x, ((0, 0), (padding, padding), (padding, padding), (0, 0)),
                constant_values=-jnp.inf)
    out = None
    for ki in range(k):
        for kj in range(k):
            tap = x[:, ki:ki + stride * h_out:stride,
                    kj:kj + stride * w_out:stride, :]
            out = tap if out is None else jnp.maximum(out, tap)
    return out


# ----------------------------------------------------------------------------
# Fused head kernel: image_model.fc + feature_model + fusion fc in ONE kernel.
# All intermediates stay in VMEM; the concat is split into two partial matmuls.
# ----------------------------------------------------------------------------
def _fused_head_kernel(x_ref, f_ref,
                       iw1, is1, ih1, iw2, is2, ih2,
                       fw1, fs1, fh1, fw2, fs2, fh2,
                       cwx, cwf, cs1, ch1,
                       cw2, cs2, ch2, cw3, cs3, ch3, cw4, cs4, ch4,
                       o_ref):
    def layer(v, w_ref, s_ref, h_ref, relu=True):
        y = jnp.dot(v.astype(jnp.bfloat16), w_ref[...],
                    preferred_element_type=jnp.float32)
        y = y * s_ref[...] + h_ref[...]
        return jnp.maximum(y, 0.0) if relu else y

    x = layer(x_ref[...], iw1, is1, ih1)            # 512 -> 256
    x = layer(x, iw2, is2, ih2)                     # 256 -> 128
    f = layer(f_ref[...], fw1, fs1, fh1)            # nf  -> 128 (BN0 folded)
    f = layer(f, fw2, fs2, fh2)                     # 128 -> 64
    # concat(x, f) @ W1 == x @ W1[:128] + f @ W1[128:]  (avoids in-kernel concat)
    c = (jnp.dot(x.astype(jnp.bfloat16), cwx[...],
                 preferred_element_type=jnp.float32)
         + jnp.dot(f.astype(jnp.bfloat16), cwf[...],
                   preferred_element_type=jnp.float32))
    c = jnp.maximum(c * cs1[...] + ch1[...], 0.0)   # 192 -> 128
    c = layer(c, cw2, cs2, ch2)                     # 128 -> 64
    c = layer(c, cw3, cs3, ch3)                     # 64  -> 32
    c = layer(c, cw4, cs4, ch4, relu=False)         # 32  -> out (lane-padded 128)
    o_ref[...] = c


def _full_spec(shape):
    return pl.BlockSpec(shape, lambda i: (0,) * len(shape))


def fused_head(x512, feats, head_args):
    n = x512.shape[0]
    out_cols = head_args[-1].shape[1]
    args = [x512.astype(jnp.float32), feats.astype(jnp.float32)] + list(head_args)
    in_specs = [_full_spec(a.shape) for a in args]
    return pl.pallas_call(
        _fused_head_kernel,
        grid=(1,),
        in_specs=in_specs,
        out_specs=_full_spec((n, out_cols)),
        out_shape=jax.ShapeDtypeStruct((n, out_cols), jnp.float32),
    )(*args)


def _prep_linear(w, b, bn=None, pad_out=None):
    """torch Linear (w: (out,in)) + optional folded BatchNorm1d -> (Wt, scale, shift)."""
    if bn is not None:
        sc, sh = bn_fold(*bn)
        scale = sc
        shift = b * sc + sh
    else:
        scale = jnp.ones_like(b)
        shift = b
    wt = w.T.astype(jnp.bfloat16)
    scale = scale.reshape(1, -1).astype(jnp.float32)
    shift = shift.reshape(1, -1).astype(jnp.float32)
    if pad_out is not None and pad_out > wt.shape[1]:
        p = pad_out - wt.shape[1]
        wt = jnp.pad(wt, ((0, 0), (0, p)))
        scale = jnp.pad(scale, ((0, 0), (0, p)))
        shift = jnp.pad(shift, ((0, 0), (0, p)))
    return wt, scale, shift


def prep_head(params):
    ih, fm, fc = params['image_head'], params['feature_model'], params['fc']
    iw1, is1, ih1 = _prep_linear(*ih['l1'], bn=ih['bn1'])
    iw2, is2, ih2 = _prep_linear(*ih['l2'], bn=ih['bn2'])
    # fold leading BatchNorm1d(num_features) into the first feature Linear
    s0, t0 = bn_fold(*fm['bn0'])
    w1, b1 = fm['l1']
    fw1, fs1, fh1 = _prep_linear(w1 * s0[None, :], w1 @ t0 + b1, bn=fm['bn1'])
    fw2, fs2, fh2 = _prep_linear(*fm['l2'], bn=fm['bn2'])
    cw1, cs1, ch1 = _prep_linear(*fc['l1'], bn=fc['bn1'])
    cwx, cwf = cw1[:128, :], cw1[128:, :]
    cw2, cs2, ch2 = _prep_linear(*fc['l2'], bn=fc['bn2'])
    cw3, cs3, ch3 = _prep_linear(*fc['l3'], bn=fc['bn3'])
    cw4, cs4, ch4 = _prep_linear(*fc['l4'], bn=None, pad_out=128)  # lane-dense store
    return (iw1, is1, ih1, iw2, is2, ih2,
            fw1, fs1, fh1, fw2, fs2, fh2,
            cwx, cwf, cs1, ch1,
            cw2, cs2, ch2, cw3, cs3, ch3, cw4, cs4, ch4)


# ----------------------------------------------------------------------------
# Parameter construction (deterministic, shapes match the PyTorch module)
# ----------------------------------------------------------------------------
def init_conv(key, o, c, kh, kw):
    fan_in = c * kh * kw
    return jax.random.normal(key, (o, c, kh, kw), jnp.float32) * (2.0 / fan_in) ** 0.5


def init_linear(key, o, i):
    k1, k2 = jax.random.split(key)
    bound = 1.0 / (i ** 0.5)
    w = jax.random.uniform(k1, (o, i), jnp.float32, -bound, bound)
    b = jax.random.uniform(k2, (o,), jnp.float32, -bound, bound)
    return w, b


def init_bn(key, c):
    k1, k2, k3, k4 = jax.random.split(key, 4)
    gamma = 1.0 + 0.1 * jax.random.normal(k1, (c,), jnp.float32)
    beta = 0.1 * jax.random.normal(k2, (c,), jnp.float32)
    mean = 0.1 * jax.random.normal(k3, (c,), jnp.float32)
    var = 1.0 + 0.5 * jax.random.uniform(k4, (c,), jnp.float32)
    return (gamma, beta, mean, var)


def make_params(key, num_features, num_classes, task_type):
    ks = iter(jax.random.split(key, 128))
    p = {}
    p['conv1'] = init_conv(next(ks), 64, 3, 7, 7)
    p['bn1'] = init_bn(next(ks), 64)
    layers = []
    in_ch = 64
    for out_ch, stride in [(64, 1), (128, 2), (256, 2), (512, 2)]:
        blocks = []
        for bi in range(2):
            s = stride if bi == 0 else 1
            blk = {'stride': s,
                   'conv1': init_conv(next(ks), out_ch, in_ch, 3, 3),
                   'bn1': init_bn(next(ks), out_ch),
                   'conv2': init_conv(next(ks), out_ch, out_ch, 3, 3),
                   'bn2': init_bn(next(ks), out_ch)}
            if s != 1 or in_ch != out_ch:
                blk['down_conv'] = init_conv(next(ks), out_ch, in_ch, 1, 1)
                blk['down_bn'] = init_bn(next(ks), out_ch)
            blocks.append(blk)
            in_ch = out_ch
        layers.append(blocks)
    p['layers'] = layers
    p['image_head'] = {'l1': init_linear(next(ks), 256, 512), 'bn1': init_bn(next(ks), 256),
                       'l2': init_linear(next(ks), 128, 256), 'bn2': init_bn(next(ks), 128)}
    p['feature_model'] = {'bn0': init_bn(next(ks), num_features),
                          'l1': init_linear(next(ks), 128, num_features),
                          'bn1': init_bn(next(ks), 128),
                          'l2': init_linear(next(ks), 64, 128),
                          'bn2': init_bn(next(ks), 64)}
    out_dim = 1 if task_type == 'regression' else num_classes
    p['fc'] = {'l1': init_linear(next(ks), 128, 192), 'bn1': init_bn(next(ks), 128),
               'l2': init_linear(next(ks), 64, 128), 'bn2': init_bn(next(ks), 64),
               'l3': init_linear(next(ks), 32, 64), 'bn3': init_bn(next(ks), 32),
               'l4': init_linear(next(ks), out_dim, 32)}
    return p, out_dim


# ----------------------------------------------------------------------------
# Forward pass
# ----------------------------------------------------------------------------
def basic_block(x, blk):
    s = blk['stride']
    s1, t1 = bn_fold(*blk['bn1'])
    out = conv_bn(x, blk['conv1'], s1, t1, stride=s, padding=1, relu=True)
    if 'down_conv' in blk:
        # TODO(synk): fuse the 1x1 downsample into the conv2 pallas_call so the
        # residual never round-trips HBM.
        ds, dt = bn_fold(*blk['down_bn'])
        identity = conv_bn(x, blk['down_conv'], ds, dt, stride=s, padding=0,
                           relu=False)
    else:
        identity = x
    s2, t2 = bn_fold(*blk['bn2'])
    # residual add + final relu fused into the second conv's Pallas epilogue
    return conv_bn(out, blk['conv2'], s2, t2, stride=1, padding=1,
                   relu=True, residual=identity)


def combined_forward(params, head_args, out_dim, images_nchw, features):
    # eval-mode semantics: BatchNorm uses running stats, Dropout is identity.
    # NHWC layout throughout the trunk (channels on the 128-lane axis).
    x = jnp.transpose(images_nchw, (0, 2, 3, 1)).astype(jnp.bfloat16)
    s, t = bn_fold(*params['bn1'])
    x = conv_bn(x, params['conv1'], s, t, stride=2, padding=3, relu=True)
    x = maxpool2d(x, k=3, stride=2, padding=1)
    for blocks in params['layers']:
        for blk in blocks:
            x = basic_block(x, blk)
    x = jnp.mean(x.astype(jnp.float32), axis=(1, 2))      # avgpool(1,1) -> (N, 512)
    out = fused_head(x, features, head_args)               # (N, 128) lane-dense
    return out[:, :out_dim]


# ----------------------------------------------------------------------------
if __name__ == "__main__":
    num_features = 10
    num_classes = 3                 # unused for task_type='regression'
    task_type = "regression"

    key = jax.random.PRNGKey(0)
    pkey, ikey, fkey = jax.random.split(key, 3)
    params, out_dim = make_params(pkey, num_features, num_classes, task_type)
    head_args = prep_head(params)

    # small shapes: batch=2, 3x32x32 images, 10 tabular features
    images = jax.random.normal(ikey, (2, 3, 32, 32), jnp.float32)
    features = jax.random.normal(fkey, (2, num_features), jnp.float32)

    fwd = jax.jit(lambda im, ft: combined_forward(params, head_args, out_dim, im, ft))
    out = jax.block_until_ready(fwd(images, features))
    assert out.shape == (2, 1), out.shape
    assert bool(jnp.all(jnp.isfinite(out)))
    print("KERNEL_OK")
</pallas_src>

<mosaic_0001>
module attributes {stable_mosaic.version = 11 : i64} {
  func.func @_fused_matmul_kernel(%arg0: i32, %arg1: i32, %arg2: i32, %arg3: memref<256x256xbf16, #tpu.memory_space<vmem>>, %arg4: memref<256x128xbf16, #tpu.memory_space<vmem>>, %arg5: memref<1x128xf32, #tpu.memory_space<vmem>>, %arg6: memref<1x128xf32, #tpu.memory_space<vmem>>, %arg7: memref<256x128xbf16, #tpu.memory_space<vmem>>, %arg8: memref<256x128xf32, #tpu.memory_space<vmem>>) attributes {dimension_semantics = [#tpu.dimension_semantics<parallel>, #tpu.dimension_semantics<parallel>, #tpu.dimension_semantics<arbitrary>], iteration_bounds = array<i64: 2, 1, 1>, scalar_prefetch = 0 : i64, scratch_operands = 1 : i64, tpu.core_type = #tpu.core_type<tc>, window_params = [{transform_indices = @transform_0, window_bounds = array<i64: 256, 256>}, {transform_indices = @transform_1, window_bounds = array<i64: 256, 128>}, {transform_indices = @transform_2, window_bounds = array<i64: 1, 128>}, {transform_indices = @transform_3, window_bounds = array<i64: 1, 128>}, {transform_indices = @transform_4, window_bounds = array<i64: 256, 128>}]} {
    %c0_i32 = arith.constant 0 : i32
    %0 = arith.cmpi eq, %arg2, %c0_i32 : i32
    %1 = arith.extui %0 : i1 to i32
    %c0_i32_0 = arith.constant 0 : i32
    %2 = arith.cmpi ne, %1, %c0_i32_0 : i32
    scf.if %2 {
      %cst_10 = arith.constant 0.000000e+00 : f32
      %12 = vector.broadcast %cst_10 : f32 to vector<256x128xf32>
      %c0_11 = arith.constant 0 : index
      %c0_12 = arith.constant 0 : index
      %13 = vector.load %arg8[%c0_11, %c0_12] : memref<256x128xf32, #tpu.memory_space<vmem>>, vector<256x128xf32>
      tpu.vector_store %arg8[%c0_11, %c0_12], %12 {strides = array<i32>} : memref<256x128xf32, #tpu.memory_space<vmem>>, vector<256x128xf32>,
    } else {
    }
    %c0 = arith.constant 0 : index
    %c0_1 = arith.constant 0 : index
    %3 = vector.load %arg8[%c0, %c0_1] : memref<256x128xf32, #tpu.memory_space<vmem>>, vector<256x128xf32>
    %c0_2 = arith.constant 0 : index
    %c0_3 = arith.constant 0 : index
    %4 = vector.load %arg3[%c0_2, %c0_3] : memref<256x256xbf16, #tpu.memory_space<vmem>>, vector<256x256xbf16>
    %c0_4 = arith.constant 0 : index
    %c0_5 = arith.constant 0 : index
    %5 = vector.load %arg4[%c0_4, %c0_5] : memref<256x128xbf16, #tpu.memory_space<vmem>>, vector<256x128xbf16>
    %cst = arith.constant dense<0.000000e+00> : vector<256x128xf32>
    %6 = tpu.matmul %4, %5, %cst {dimension_numbers = #tpu.dot_dimension_numbers<[1], [0], [0], [1], [0, 0, 1, 1], [], []>} : vector<256x256xbf16>, vector<256x128xbf16>, vector<256x128xf32> -> vector<256x128xf32>
    %7 = arith.addf %3, %6 : vector<256x128xf32>
    %c0_6 = arith.constant 0 : index
    %c0_7 = arith.constant 0 : index
    %8 = vector.load %arg8[%c0_6, %c0_7] : memref<256x128xf32, #tpu.memory_space<vmem>>, vector<256x128xf32>
    tpu.vector_store %arg8[%c0_6, %c0_7], %7 {strides = array<i32>} : memref<256x128xf32, #tpu.memory_space<vmem>>, vector<256x128xf32>,
    %c0_i32_8 = arith.constant 0 : i32
    %9 = arith.cmpi eq, %arg2, %c0_i32_8 : i32
    %10 = arith.extui %9 : i1 to i32
    %c0_i32_9 = arith.constant 0 : i32
    %11 = arith.cmpi ne, %10, %c0_i32_9 : i32
    scf.if %11 {
      %c0_10 = arith.constant 0 : index
      %c0_11 = arith.constant 0 : index
      %12 = vector.load %arg8[%c0_10, %c0_11] : memref<256x128xf32, #tpu.memory_space<vmem>>, vector<256x128xf32>
      %c0_12 = arith.constant 0 : index
      %c0_13 = arith.constant 0 : index
      %13 = vector.load %arg5[%c0_12, %c0_13] : memref<1x128xf32, #tpu.memory_space<vmem>>, vector<1x128xf32>
      %14 = vector.broadcast %13 : vector<1x128xf32> to vector<256x128xf32>
      %15 = arith.mulf %12, %14 : vector<256x128xf32>
      %c0_14 = arith.constant 0 : index
      %c0_15 = arith.constant 0 : index
      %16 = vector.load %arg6[%c0_14, %c0_15] : memref<1x128xf32, #tpu.memory_space<vmem>>, vector<1x128xf32>
      %17 = vector.broadcast %16 : vector<1x128xf32> to vector<256x128xf32>
      %18 = arith.addf %15, %17 : vector<256x128xf32>
      %cst_16 = arith.constant 0.000000e+00 : f32
      %19 = vector.broadcast %cst_16 : f32 to vector<256x128xf32>
      %20 = arith.maximumf %18, %19 : vector<256x128xf32>
      %21 = arith.truncf %20 : vector<256x128xf32> to vector<256x128xbf16>
      %c0_17 = arith.constant 0 : index
      %c0_18 = arith.constant 0 : index
      %22 = vector.load %arg7[%c0_17, %c0_18] : memref<256x128xbf16, #tpu.memory_space<vmem>>, vector<256x128xbf16>
      tpu.vector_store %arg7[%c0_17, %c0_18], %21 {strides = array<i32>} : memref<256x128xbf16, #tpu.memory_space<vmem>>, vector<256x128xbf16>,
    } else {
    }
    return
  }
  func.func @transform_0(%arg0: i32, %arg1: i32, %arg2: i32) -> (i32, i32) {
    %c0_i32 = arith.constant 0 : i32
    return %arg0, %arg2 : i32, i32
  }
  func.func @transform_1(%arg0: i32, %arg1: i32, %arg2: i32) -> (i32, i32) {
    %c0_i32 = arith.constant 0 : i32
    return %arg2, %arg1 : i32, i32
  }
  func.func @transform_2(%arg0: i32, %arg1: i32, %arg2: i32) -> (i32, i32) {
    %c0_i32 = arith.constant 0 : i32
    %c0_i32_0 = arith.constant 0 : i32
    return %c0_i32, %arg1 : i32, i32
  }
  func.func @transform_3(%arg0: i32, %arg1: i32, %arg2: i32) -> (i32, i32) {
    %c0_i32 = arith.constant 0 : i32
    %c0_i32_0 = arith.constant 0 : i32
    return %c0_i32, %arg1 : i32, i32
  }
  func.func @transform_4(%arg0: i32, %arg1: i32, %arg2: i32) -> (i32, i32) {
    %c0_i32 = arith.constant 0 : i32
    return %arg0, %arg1 : i32, i32
  }
}

module attributes {stable_mosaic.version = 11 : i64} {
  func.func @_fused_matmul_kernel(%arg0: i32, %arg1: i32, %arg2: i32, %arg3: memref<128x384xbf16, #tpu.memory_space<vmem>>, %arg4: memref<384x128xbf16, #tpu.memory_space<vmem>>, %arg5: memref<1x128xf32, #tpu.memory_space<vmem>>, %arg6: memref<1x128xf32, #tpu.memory_space<vmem>>, %arg7: memref<128x128xbf16, #tpu.memory_space<vmem>>, %arg8: memref<128x128xf32, #tpu.memory_space<vmem>>) attributes {dimension_semantics = [#tpu.dimension_semantics<parallel>, #tpu.dimension_semantics<parallel>, #tpu.dimension_semantics<arbitrary>], iteration_bounds = array<i64: 1, 1, 2>, scalar_prefetch = 0 : i64, scratch_operands = 1 : i64, tpu.core_type = #tpu.core_type<tc>, window_params = [{transform_indices = @transform_0, window_bounds = array<i64: 128, 384>}, {transform_indices = @transform_1, window_bounds = array<i64: 384, 128>}, {transform_indices = @transform_2, window_bounds = array<i64: 1, 128>}, {transform_indices = @transform_3, window_bounds = array<i64: 1, 128>}, {transform_indices = @transform_4, window_bounds = array<i64: 128, 128>}]} {
    %c0_i32 = arith.constant 0 : i32
    %0 = arith.cmpi eq, %arg2, %c0_i32 : i32
    %1 = arith.extui %0 : i1 to i32
    %c0_i32_0 = arith.constant 0 : i32
    %2 = arith.cmpi ne, %1, %c0_i32_0 : i32
    scf.if %2 {
      %cst_9 = arith.constant 0.000000e+00 : f32
      %12 = vector.broadcast %cst_9 : f32 to vector<128x128xf32>
      %c0_10 = arith.constant 0 : index
      %c0_11 = arith.constant 0 : index
      %13 = vector.load %arg8[%c0_10, %c0_11] : memref<128x128xf32, #tpu.memory_space<vmem>>, vector<128x128xf32>
      tpu.vector_store %arg8[%c0_10, %c0_11], %12 {strides = array<i32>} : memref<128x128xf32, #tpu.memory_space<vmem>>, vector<128x128xf32>,
    } else {
    }
    %c0 = arith.constant 0 : index
    %c0_1 = arith.constant 0 : index
    %3 = vector.load %arg8[%c0, %c0_1] : memref<128x128xf32, #tpu.memory_space<vmem>>, vector<128x128xf32>
    %c0_2 = arith.constant 0 : index
    %c0_3 = arith.constant 0 : index
    %4 = vector.load %arg3[%c0_2, %c0_3] : memref<128x384xbf16, #tpu.memory_space<vmem>>, vector<128x384xbf16>
    %c0_4 = arith.constant 0 : index
    %c0_5 = arith.constant 0 : index
    %5 = vector.load %arg4[%c0_4, %c0_5] : memref<384x128xbf16, #tpu.memory_space<vmem>>, vector<384x128xbf16>
    %cst = arith.constant dense<0.000000e+00> : vector<128x128xf32>
    %6 = tpu.matmul %4, %5, %cst {dimension_numbers = #tpu.dot_dimension_numbers<[1], [0], [0], [1], [0, 0, 1, 1], [], []>} : vector<128x384xbf16>, vector<384x128xbf16>, vector<128x128xf32> -> vector<128x128xf32>
    %7 = arith.addf %3, %6 : vector<128x128xf32>
    %c0_6 = arith.constant 0 : index
    %c0_7 = arith.constant 0 : index
    %8 = vector.load %arg8[%c0_6, %c0_7] : memref<128x128xf32, #tpu.memory_space<vmem>>, vector<128x128xf32>
    tpu.vector_store %arg8[%c0_6, %c0_7], %7 {strides = array<i32>} : memref<128x128xf32, #tpu.memory_space<vmem>>, vector<128x128xf32>,
    %c1_i32 = arith.constant 1 : i32
    %9 = arith.cmpi eq, %arg2, %c1_i32 : i32
    %10 = arith.extui %9 : i1 to i32
    %c0_i32_8 = arith.constant 0 : i32
    %11 = arith.cmpi ne, %10, %c0_i32_8 : i32
    scf.if %11 {
      %c0_9 = arith.constant 0 : index
      %c0_10 = arith.constant 0 : index
      %12 = vector.load %arg8[%c0_9, %c0_10] : memref<128x128xf32, #tpu.memory_space<vmem>>, vector<128x128xf32>
      %c0_11 = arith.constant 0 : index
      %c0_12 = arith.constant 0 : index
      %13 = vector.load %arg5[%c0_11, %c0_12] : memref<1x128xf32, #tpu.memory_space<vmem>>, vector<1x128xf32>
      %14 = vector.broadcast %13 : vector<1x128xf32> to vector<128x128xf32>
      %15 = arith.mulf %12, %14 : vector<128x128xf32>
      %c0_13 = arith.constant 0 : index
      %c0_14 = arith.constant 0 : index
      %16 = vector.load %arg6[%c0_13, %c0_14] : memref<1x128xf32, #tpu.memory_space<vmem>>, vector<1x128xf32>
      %17 = vector.broadcast %16 : vector<1x128xf32> to vector<128x128xf32>
      %18 = arith.addf %15, %17 : vector<128x128xf32>
      %cst_15 = arith.constant 0.000000e+00 : f32
      %19 = vector.broadcast %cst_15 : f32 to vector<128x128xf32>
      %20 = arith.maximumf %18, %19 : vector<128x128xf32>
      %21 = arith.truncf %20 : vector<128x128xf32> to vector<128x128xbf16>
      %c0_16 = arith.constant 0 : index
      %c0_17 = arith.constant 0 : index
      %22 = vector.load %arg7[%c0_16, %c0_17] : memref<128x128xbf16, #tpu.memory_space<vmem>>, vector<128x128xbf16>
      tpu.vector_store %arg7[%c0_16, %c0_17], %21 {strides = array<i32>} : memref<128x128xbf16, #tpu.memory_space<vmem>>, vector<128x128xbf16>,
    } else {
    }
    return
  }
  func.func @transform_0(%arg0: i32, %arg1: i32, %arg2: i32) -> (i32, i32) {
    %c0_i32 = arith.constant 0 : i32
    return %arg0, %arg2 : i32, i32
  }
  func.func @transform_1(%arg0: i32, %arg1: i32, %arg2: i32) -> (i32, i32) {
    %c0_i32 = arith.constant 0 : i32
    return %arg2, %arg1 : i32, i32
  }
  func.func @transform_2(%arg0: i32, %arg1: i32, %arg2: i32) -> (i32, i32) {
    %c0_i32 = arith.constant 0 : i32
    %c0_i32_0 = arith.constant 0 : i32
    return %c0_i32, %arg1 : i32, i32
  }
  func.func @transform_3(%arg0: i32, %arg1: i32, %arg2: i32) -> (i32, i32) {
    %c0_i32 = arith.constant 0 : i32
    %c0_i32_0 = arith.constant 0 : i32
    return %c0_i32, %arg1 : i32, i32
  }
  func.func @transform_4(%arg0: i32, %arg1: i32, %arg2: i32) -> (i32, i32) {
    %c0_i32 = arith.constant 0 : i32
    return %arg0, %arg1 : i32, i32
  }
}

module attributes {stable_mosaic.version = 11 : i64} {
  func.func @_fused_matmul_kernel(%arg0: i32, %arg1: i32, %arg2: i32, %arg3: memref<128x384xbf16, #tpu.memory_space<vmem>>, %arg4: memref<384x128xbf16, #tpu.memory_space<vmem>>, %arg5: memref<1x128xf32, #tpu.memory_space<vmem>>, %arg6: memref<1x128xf32, #tpu.memory_space<vmem>>, %arg7: memref<128x128xbf16, #tpu.memory_space<vmem>>, %arg8: memref<128x128xbf16, #tpu.memory_space<vmem>>, %arg9: memref<128x128xf32, #tpu.memory_space<vmem>>) attributes {dimension_semantics = [#tpu.dimension_semantics<parallel>, #tpu.dimension_semantics<parallel>, #tpu.dimension_semantics<arbitrary>], iteration_bounds = array<i64: 1, 1, 2>, scalar_prefetch = 0 : i64, scratch_operands = 1 : i64, tpu.core_type = #tpu.core_type<tc>, window_params = [{transform_indices = @transform_0, window_bounds = array<i64: 128, 384>}, {transform_indices = @transform_1, window_bounds = array<i64: 384, 128>}, {transform_indices = @transform_2, window_bounds = array<i64: 1, 128>}, {transform_indices = @transform_3, window_bounds = array<i64: 1, 128>}, {transform_indices = @transform_4, window_bounds = array<i64: 128, 128>}, {transform_indices = @transform_5, window_bounds = array<i64: 128, 128>}]} {
    %c0_i32 = arith.constant 0 : i32
    %0 = arith.cmpi eq, %arg2, %c0_i32 : i32
    %1 = arith.extui %0 : i1 to i32
    %c0_i32_0 = arith.constant 0 : i32
    %2 = arith.cmpi ne, %1, %c0_i32_0 : i32
    scf.if %2 {
      %cst_9 = arith.constant 0.000000e+00 : f32
      %12 = vector.broadcast %cst_9 : f32 to vector<128x128xf32>
      %c0_10 = arith.constant 0 : index
      %c0_11 = arith.constant 0 : index
      %13 = vector.load %arg9[%c0_10, %c0_11] : memref<128x128xf32, #tpu.memory_space<vmem>>, vector<128x128xf32>
      tpu.vector_store %arg9[%c0_10, %c0_11], %12 {strides = array<i32>} : memref<128x128xf32, #tpu.memory_space<vmem>>, vector<128x128xf32>,
    } else {
    }
    %c0 = arith.constant 0 : index
    %c0_1 = arith.constant 0 : index
    %3 = vector.load %arg9[%c0, %c0_1] : memref<128x128xf32, #tpu.memory_space<vmem>>, vector<128x128xf32>
    %c0_2 = arith.constant 0 : index
    %c0_3 = arith.constant 0 : index
    %4 = vector.load %arg3[%c0_2, %c0_3] : memref<128x384xbf16, #tpu.memory_space<vmem>>, vector<128x384xbf16>
    %c0_4 = arith.constant 0 : index
    %c0_5 = arith.constant 0 : index
    %5 = vector.load %arg4[%c0_4, %c0_5] : memref<384x128xbf16, #tpu.memory_space<vmem>>, vector<384x128xbf16>
    %cst = arith.constant dense<0.000000e+00> : vector<128x128xf32>
    %6 = tpu.matmul %4, %5, %cst {dimension_numbers = #tpu.dot_dimension_numbers<[1], [0], [0], [1], [0, 0, 1, 1], [], []>} : vector<128x384xbf16>, vector<384x128xbf16>, vector<128x128xf32> -> vector<128x128xf32>
    %7 = arith.addf %3, %6 : vector<128x128xf32>
    %c0_6 = arith.constant 0 : index
    %c0_7 = arith.constant 0 : index
    %8 = vector.load %arg9[%c0_6, %c0_7] : memref<128x128xf32, #tpu.memory_space<vmem>>, vector<128x128xf32>
    tpu.vector_store %arg9[%c0_6, %c0_7], %7 {strides = array<i32>} : memref<128x128xf32, #tpu.memory_space<vmem>>, vector<128x128xf32>,
    %c1_i32 = arith.constant 1 : i32
    %9 = arith.cmpi eq, %arg2, %c1_i32 : i32
    %10 = arith.extui %9 : i1 to i32
    %c0_i32_8 = arith.constant 0 : i32
    %11 = arith.cmpi ne, %10, %c0_i32_8 : i32
    scf.if %11 {
      %c0_9 = arith.constant 0 : index
      %c0_10 = arith.constant 0 : index
      %12 = vector.load %arg9[%c0_9, %c0_10] : memref<128x128xf32, #tpu.memory_space<vmem>>, vector<128x128xf32>
      %c0_11 = arith.constant 0 : index
      %c0_12 = arith.constant 0 : index
      %13 = vector.load %arg5[%c0_11, %c0_12] : memref<1x128xf32, #tpu.memory_space<vmem>>, vector<1x128xf32>
      %14 = vector.broadcast %13 : vector<1x128xf32> to vector<128x128xf32>
      %15 = arith.mulf %12, %14 : vector<128x128xf32>
      %c0_13 = arith.constant 0 : index
      %c0_14 = arith.constant 0 : index
      %16 = vector.load %arg6[%c0_13, %c0_14] : memref<1x128xf32, #tpu.memory_space<vmem>>, vector<1x128xf32>
      %17 = vector.broadcast %16 : vector<1x128xf32> to vector<128x128xf32>
      %18 = arith.addf %15, %17 : vector<128x128xf32>
      %c0_15 = arith.constant 0 : index
      %c0_16 = arith.constant 0 : index
      %19 = vector.load %arg7[%c0_15, %c0_16] : memref<128x128xbf16, #tpu.memory_space<vmem>>, vector<128x128xbf16>
      %20 = arith.extf %19 : vector<128x128xbf16> to vector<128x128xf32>
      %21 = arith.addf %18, %20 : vector<128x128xf32>
      %cst_17 = arith.constant 0.000000e+00 : f32
      %22 = vector.broadcast %cst_17 : f32 to vector<128x128xf32>
      %23 = arith.maximumf %21, %22 : vector<128x128xf32>
      %24 = arith.truncf %23 : vector<128x128xf32> to vector<128x128xbf16>
      %c0_18 = arith.constant 0 : index
      %c0_19 = arith.constant 0 : index
      %25 = vector.load %arg8[%c0_18, %c0_19] : memref<128x128xbf16, #tpu.memory_space<vmem>>, vector<128x128xbf16>
      tpu.vector_store %arg8[%c0_18, %c0_19], %24 {strides = array<i32>} : memref<128x128xbf16, #tpu.memory_space<vmem>>, vector<128x128xbf16>,
    } else {
    }
    return
  }
  func.func @transform_0(%arg0: i32, %arg1: i32, %arg2: i32) -> (i32, i32) {
    %c0_i32 = arith.constant 0 : i32
    return %arg0, %arg2 : i32, i32
  }
  func.func @transform_1(%arg0: i32, %arg1: i32, %arg2: i32) -> (i32, i32) {
    %c0_i32 = arith.constant 0 : i32
    return %arg2, %arg1 : i32, i32
  }
  func.func @transform_2(%arg0: i32, %arg1: i32, %arg2: i32) -> (i32, i32) {
    %c0_i32 = arith.constant 0 : i32
    %c0_i32_0 = arith.constant 0 : i32
    return %c0_i32, %arg1 : i32, i32
  }
  func.func @transform_3(%arg0: i32, %arg1: i32, %arg2: i32) -> (i32, i32) {
    %c0_i32 = arith.constant 0 : i32
    %c0_i32_0 = arith.constant 0 : i32
    return %c0_i32, %arg1 : i32, i32
  }
  func.func @transform_4(%arg0: i32, %arg1: i32, %arg2: i32) -> (i32, i32) {
    %c0_i32 = arith.constant 0 : i32
    return %arg0, %arg1 : i32, i32
  }
  func.func @transform_5(%arg0: i32, %arg1: i32, %arg2: i32) -> (i32, i32) {
    %c0_i32 = arith.constant 0 : i32
    return %arg0, %arg1 : i32, i32
  }
}

module attributes {stable_mosaic.version = 11 : i64} {
  func.func @_fused_matmul_kernel(%arg0: i32, %arg1: i32, %arg2: i32, %arg3: memref<32x384xbf16, #tpu.memory_space<vmem>>, %arg4: memref<384x128xbf16, #tpu.memory_space<vmem>>, %arg5: memref<1x128xf32, #tpu.memory_space<vmem>>, %arg6: memref<1x128xf32, #tpu.memory_space<vmem>>, %arg7: memref<32x128xbf16, #tpu.memory_space<vmem>>, %arg8: memref<32x128xf32, #tpu.memory_space<vmem>>) attributes {dimension_semantics = [#tpu.dimension_semantics<parallel>, #tpu.dimension_semantics<parallel>, #tpu.dimension_semantics<arbitrary>], iteration_bounds = array<i64: 1, 1, 2>, scalar_prefetch = 0 : i64, scratch_operands = 1 : i64, tpu.core_type = #tpu.core_type<tc>, window_params = [{transform_indices = @transform_0, window_bounds = array<i64: 32, 384>}, {transform_indices = @transform_1, window_bounds = array<i64: 384, 128>}, {transform_indices = @transform_2, window_bounds = array<i64: 1, 128>}, {transform_indices = @transform_3, window_bounds = array<i64: 1, 128>}, {transform_indices = @transform_4, window_bounds = array<i64: 32, 128>}]} {
    %c0_i32 = arith.constant 0 : i32
    %0 = arith.cmpi eq, %arg2, %c0_i32 : i32
    %1 = arith.extui %0 : i1 to i32
    %c0_i32_0 = arith.constant 0 : i32
    %2 = arith.cmpi ne, %1, %c0_i32_0 : i32
    scf.if %2 {
      %cst_9 = arith.constant 0.000000e+00 : f32
      %12 = vector.broadcast %cst_9 : f32 to vector<32x128xf32>
      %c0_10 = arith.constant 0 : index
      %c0_11 = arith.constant 0 : index
      %13 = vector.load %arg8[%c0_10, %c0_11] : memref<32x128xf32, #tpu.memory_space<vmem>>, vector<32x128xf32>
      tpu.vector_store %arg8[%c0_10, %c0_11], %12 {strides = array<i32>} : memref<32x128xf32, #tpu.memory_space<vmem>>, vector<32x128xf32>,
    } else {
    }
    %c0 = arith.constant 0 : index
    %c0_1 = arith.constant 0 : index
    %3 = vector.load %arg8[%c0, %c0_1] : memref<32x128xf32, #tpu.memory_space<vmem>>, vector<32x128xf32>
    %c0_2 = arith.constant 0 : index
    %c0_3 = arith.constant 0 : index
    %4 = vector.load %arg3[%c0_2, %c0_3] : memref<32x384xbf16, #tpu.memory_space<vmem>>, vector<32x384xbf16>
    %c0_4 = arith.constant 0 : index
    %c0_5 = arith.constant 0 : index
    %5 = vector.load %arg4[%c0_4, %c0_5] : memref<384x128xbf16, #tpu.memory_space<vmem>>, vector<384x128xbf16>
    %cst = arith.constant dense<0.000000e+00> : vector<32x128xf32>
    %6 = tpu.matmul %4, %5, %cst {dimension_numbers = #tpu.dot_dimension_numbers<[1], [0], [0], [1], [0, 0, 1, 1], [], []>} : vector<32x384xbf16>, vector<384x128xbf16>, vector<32x128xf32> -> vector<32x128xf32>
    %7 = arith.addf %3, %6 : vector<32x128xf32>
    %c0_6 = arith.constant 0 : index
    %c0_7 = arith.constant 0 : index
    %8 = vector.load %arg8[%c0_6, %c0_7] : memref<32x128xf32, #tpu.memory_space<vmem>>, vector<32x128xf32>
    tpu.vector_store %arg8[%c0_6, %c0_7], %7 {strides = array<i32>} : memref<32x128xf32, #tpu.memory_space<vmem>>, vector<32x128xf32>,
    %c1_i32 = arith.constant 1 : i32
    %9 = arith.cmpi eq, %arg2, %c1_i32 : i32
    %10 = arith.extui %9 : i1 to i32
    %c0_i32_8 = arith.constant 0 : i32
    %11 = arith.cmpi ne, %10, %c0_i32_8 : i32
    scf.if %11 {
      %c0_9 = arith.constant 0 : index
      %c0_10 = arith.constant 0 : index
      %12 = vector.load %arg8[%c0_9, %c0_10] : memref<32x128xf32, #tpu.memory_space<vmem>>, vector<32x128xf32>
      %c0_11 = arith.constant 0 : index
      %c0_12 = arith.constant 0 : index
      %13 = vector.load %arg5[%c0_11, %c0_12] : memref<1x128xf32, #tpu.memory_space<vmem>>, vector<1x128xf32>
      %14 = vector.broadcast %13 : vector<1x128xf32> to vector<32x128xf32>
      %15 = arith.mulf %12, %14 : vector<32x128xf32>
      %c0_13 = arith.constant 0 : index
      %c0_14 = arith.constant 0 : index
      %16 = vector.load %arg6[%c0_13, %c0_14] : memref<1x128xf32, #tpu.memory_space<vmem>>, vector<1x128xf32>
      %17 = vector.broadcast %16 : vector<1x128xf32> to vector<32x128xf32>
      %18 = arith.addf %15, %17 : vector<32x128xf32>
      %cst_15 = arith.constant 0.000000e+00 : f32
      %19 = vector.broadcast %cst_15 : f32 to vector<32x128xf32>
      %20 = arith.maximumf %18, %19 : vector<32x128xf32>
      %21 = arith.truncf %20 : vector<32x128xf32> to vector<32x128xbf16>
      %c0_16 = arith.constant 0 : index
      %c0_17 = arith.constant 0 : index
      %22 = vector.load %arg7[%c0_16, %c0_17] : memref<32x128xbf16, #tpu.memory_space<vmem>>, vector<32x128xbf16>
      tpu.vector_store %arg7[%c0_16, %c0_17], %21 {strides = array<i32>} : memref<32x128xbf16, #tpu.memory_space<vmem>>, vector<32x128xbf16>,
    } else {
    }
    return
  }
  func.func @transform_0(%arg0: i32, %arg1: i32, %arg2: i32) -> (i32, i32) {
    %c0_i32 = arith.constant 0 : i32
    return %arg0, %arg2 : i32, i32
  }
  func.func @transform_1(%arg0: i32, %arg1: i32, %arg2: i32) -> (i32, i32) {
    %c0_i32 = arith.constant 0 : i32
    return %arg2, %arg1 : i32, i32
  }
  func.func @transform_2(%arg0: i32, %arg1: i32, %arg2: i32) -> (i32, i32) {
    %c0_i32 = arith.constant 0 : i32
    %c0_i32_0 = arith.constant 0 : i32
    return %c0_i32, %arg1 : i32, i32
  }
  func.func @transform_3(%arg0: i32, %arg1: i32, %arg2: i32) -> (i32, i32) {
    %c0_i32 = arith.constant 0 : i32
    %c0_i32_0 = arith.constant 0 : i32
    return %c0_i32, %arg1 : i32, i32
  }
  func.func @transform_4(%arg0: i32, %arg1: i32, %arg2: i32) -> (i32, i32) {
    %c0_i32 = arith.constant 0 : i32
    return %arg0, %arg1 : i32, i32
  }
}

module attributes {stable_mosaic.version = 11 : i64} {
  func.func @_fused_matmul_kernel(%arg0: i32, %arg1: i32, %arg2: i32, %arg3: memref<32x128xbf16, #tpu.memory_space<vmem>>, %arg4: memref<128x128xbf16, #tpu.memory_space<vmem>>, %arg5: memref<1x128xf32, #tpu.memory_space<vmem>>, %arg6: memref<1x128xf32, #tpu.memory_space<vmem>>, %arg7: memref<32x128xbf16, #tpu.memory_space<vmem>>, %arg8: memref<32x128xf32, #tpu.memory_space<vmem>>) attributes {dimension_semantics = [#tpu.dimension_semantics<parallel>, #tpu.dimension_semantics<parallel>, #tpu.dimension_semantics<arbitrary>], iteration_bounds = array<i64: 1, 1, 1>, scalar_prefetch = 0 : i64, scratch_operands = 1 : i64, tpu.core_type = #tpu.core_type<tc>, window_params = [{transform_indices = @transform_0, window_bounds = array<i64: 32, 128>}, {transform_indices = @transform_1, window_bounds = array<i64: 128, 128>}, {transform_indices = @transform_2, window_bounds = array<i64: 1, 128>}, {transform_indices = @transform_3, window_bounds = array<i64: 1, 128>}, {transform_indices = @transform_4, window_bounds = array<i64: 32, 128>}]} {
    %c0_i32 = arith.constant 0 : i32
    %0 = arith.cmpi eq, %arg2, %c0_i32 : i32
    %1 = arith.extui %0 : i1 to i32
    %c0_i32_0 = arith.constant 0 : i32
    %2 = arith.cmpi ne, %1, %c0_i32_0 : i32
    scf.if %2 {
      %cst_10 = arith.constant 0.000000e+00 : f32
      %12 = vector.broadcast %cst_10 : f32 to vector<32x128xf32>
      %c0_11 = arith.constant 0 : index
      %c0_12 = arith.constant 0 : index
      %13 = vector.load %arg8[%c0_11, %c0_12] : memref<32x128xf32, #tpu.memory_space<vmem>>, vector<32x128xf32>
      tpu.vector_store %arg8[%c0_11, %c0_12], %12 {strides = array<i32>} : memref<32x128xf32, #tpu.memory_space<vmem>>, vector<32x128xf32>,
    } else {
    }
    %c0 = arith.constant 0 : index
    %c0_1 = arith.constant 0 : index
    %3 = vector.load %arg8[%c0, %c0_1] : memref<32x128xf32, #tpu.memory_space<vmem>>, vector<32x128xf32>
    %c0_2 = arith.constant 0 : index
    %c0_3 = arith.constant 0 : index
    %4 = vector.load %arg3[%c0_2, %c0_3] : memref<32x128xbf16, #tpu.memory_space<vmem>>, vector<32x128xbf16>
    %c0_4 = arith.constant 0 : index
    %c0_5 = arith.constant 0 : index
    %5 = vector.load %arg4[%c0_4, %c0_5] : memref<128x128xbf16, #tpu.memory_space<vmem>>, vector<128x128xbf16>
    %cst = arith.constant dense<0.000000e+00> : vector<32x128xf32>
    %6 = tpu.matmul %4, %5, %cst {dimension_numbers = #tpu.dot_dimension_numbers<[1], [0], [0], [1], [0, 0, 1, 1], [], []>} : vector<32x128xbf16>, vector<128x128xbf16>, vector<32x128xf32> -> vector<32x128xf32>
    %7 = arith.addf %3, %6 : vector<32x128xf32>
    %c0_6 = arith.constant 0 : index
    %c0_7 = arith.constant 0 : index
    %8 = vector.load %arg8[%c0_6, %c0_7] : memref<32x128xf32, #tpu.memory_space<vmem>>, vector<32x128xf32>
    tpu.vector_store %arg8[%c0_6, %c0_7], %7 {strides = array<i32>} : memref<32x128xf32, #tpu.memory_space<vmem>>, vector<32x128xf32>,
    %c0_i32_8 = arith.constant 0 : i32
    %9 = arith.cmpi eq, %arg2, %c0_i32_8 : i32
    %10 = arith.extui %9 : i1 to i32
    %c0_i32_9 = arith.constant 0 : i32
    %11 = arith.cmpi ne, %10, %c0_i32_9 : i32
    scf.if %11 {
      %c0_10 = arith.constant 0 : index
      %c0_11 = arith.constant 0 : index
      %12 = vector.load %arg8[%c0_10, %c0_11] : memref<32x128xf32, #tpu.memory_space<vmem>>, vector<32x128xf32>
      %c0_12 = arith.constant 0 : index
      %c0_13 = arith.constant 0 : index
      %13 = vector.load %arg5[%c0_12, %c0_13] : memref<1x128xf32, #tpu.memory_space<vmem>>, vector<1x128xf32>
      %14 = vector.broadcast %13 : vector<1x128xf32> to vector<32x128xf32>
      %15 = arith.mulf %12, %14 : vector<32x128xf32>
      %c0_14 = arith.constant 0 : index
      %c0_15 = arith.constant 0 : index
      %16 = vector.load %arg6[%c0_14, %c0_15] : memref<1x128xf32, #tpu.memory_space<vmem>>, vector<1x128xf32>
      %17 = vector.broadcast %16 : vector<1x128xf32> to vector<32x128xf32>
      %18 = arith.addf %15, %17 : vector<32x128xf32>
      %19 = arith.truncf %18 : vector<32x128xf32> to vector<32x128xbf16>
      %c0_16 = arith.constant 0 : index
      %c0_17 = arith.constant 0 : index
      %20 = vector.load %arg7[%c0_16, %c0_17] : memref<32x128xbf16, #tpu.memory_space<vmem>>, vector<32x128xbf16>
      tpu.vector_store %arg7[%c0_16, %c0_17], %19 {strides = array<i32>} : memref<32x128xbf16, #tpu.memory_space<vmem>>, vector<32x128xbf16>,
    } else {
    }
    return
  }
  func.func @transform_0(%arg0: i32, %arg1: i32, %arg2: i32) -> (i32, i32) {
    %c0_i32 = arith.constant 0 : i32
    return %arg0, %arg2 : i32, i32
  }
  func.func @transform_1(%arg0: i32, %arg1: i32, %arg2: i32) -> (i32, i32) {
    %c0_i32 = arith.constant 0 : i32
    return %arg2, %arg1 : i32, i32
  }
  func.func @transform_2(%arg0: i32, %arg1: i32, %arg2: i32) -> (i32, i32) {
    %c0_i32 = arith.constant 0 : i32
    %c0_i32_0 = arith.constant 0 : i32
    return %c0_i32, %arg1 : i32, i32
  }
  func.func @transform_3(%arg0: i32, %arg1: i32, %arg2: i32) -> (i32, i32) {
    %c0_i32 = arith.constant 0 : i32
    %c0_i32_0 = arith.constant 0 : i32
    return %c0_i32, %arg1 : i32, i32
  }
  func.func @transform_4(%arg0: i32, %arg1: i32, %arg2: i32) -> (i32, i32) {
    %c0_i32 = arith.constant 0 : i32
    return %arg0, %arg1 : i32, i32
  }
}

module attributes {stable_mosaic.version = 11 : i64} {
  func.func @_fused_matmul_kernel(%arg0: i32, %arg1: i32, %arg2: i32, %arg3: memref<32x384xbf16, #tpu.memory_space<vmem>>, %arg4: memref<384x128xbf16, #tpu.memory_space<vmem>>, %arg5: memref<1x128xf32, #tpu.memory_space<vmem>>, %arg6: memref<1x128xf32, #tpu.memory_space<vmem>>, %arg7: memref<32x128xbf16, #tpu.memory_space<vmem>>, %arg8: memref<32x128xbf16, #tpu.memory_space<vmem>>, %arg9: memref<32x128xf32, #tpu.memory_space<vmem>>) attributes {dimension_semantics = [#tpu.dimension_semantics<parallel>, #tpu.dimension_semantics<parallel>, #tpu.dimension_semantics<arbitrary>], iteration_bounds = array<i64: 1, 1, 3>, scalar_prefetch = 0 : i64, scratch_operands = 1 : i64, tpu.core_type = #tpu.core_type<tc>, window_params = [{transform_indices = @transform_0, window_bounds = array<i64: 32, 384>}, {transform_indices = @transform_1, window_bounds = array<i64: 384, 128>}, {transform_indices = @transform_2, window_bounds = array<i64: 1, 128>}, {transform_indices = @transform_3, window_bounds = array<i64: 1, 128>}, {transform_indices = @transform_4, window_bounds = array<i64: 32, 128>}, {transform_indices = @transform_5, window_bounds = array<i64: 32, 128>}]} {
    %c0_i32 = arith.constant 0 : i32
    %0 = arith.cmpi eq, %arg2, %c0_i32 : i32
    %1 = arith.extui %0 : i1 to i32
    %c0_i32_0 = arith.constant 0 : i32
    %2 = arith.cmpi ne, %1, %c0_i32_0 : i32
    scf.if %2 {
      %cst_9 = arith.constant 0.000000e+00 : f32
      %12 = vector.broadcast %cst_9 : f32 to vector<32x128xf32>
      %c0_10 = arith.constant 0 : index
      %c0_11 = arith.constant 0 : index
      %13 = vector.load %arg9[%c0_10, %c0_11] : memref<32x128xf32, #tpu.memory_space<vmem>>, vector<32x128xf32>
      tpu.vector_store %arg9[%c0_10, %c0_11], %12 {strides = array<i32>} : memref<32x128xf32, #tpu.memory_space<vmem>>, vector<32x128xf32>,
    } else {
    }
    %c0 = arith.constant 0 : index
    %c0_1 = arith.constant 0 : index
    %3 = vector.load %arg9[%c0, %c0_1] : memref<32x128xf32, #tpu.memory_space<vmem>>, vector<32x128xf32>
    %c0_2 = arith.constant 0 : index
    %c0_3 = arith.constant 0 : index
    %4 = vector.load %arg3[%c0_2, %c0_3] : memref<32x384xbf16, #tpu.memory_space<vmem>>, vector<32x384xbf16>
    %c0_4 = arith.constant 0 : index
    %c0_5 = arith.constant 0 : index
    %5 = vector.load %arg4[%c0_4, %c0_5] : memref<384x128xbf16, #tpu.memory_space<vmem>>, vector<384x128xbf16>
    %cst = arith.constant dense<0.000000e+00> : vector<32x128xf32>
    %6 = tpu.matmul %4, %5, %cst {dimension_numbers = #tpu.dot_dimension_numbers<[1], [0], [0], [1], [0, 0, 1, 1], [], []>} : vector<32x384xbf16>, vector<384x128xbf16>, vector<32x128xf32> -> vector<32x128xf32>
    %7 = arith.addf %3, %6 : vector<32x128xf32>
    %c0_6 = arith.constant 0 : index
    %c0_7 = arith.constant 0 : index
    %8 = vector.load %arg9[%c0_6, %c0_7] : memref<32x128xf32, #tpu.memory_space<vmem>>, vector<32x128xf32>
    tpu.vector_store %arg9[%c0_6, %c0_7], %7 {strides = array<i32>} : memref<32x128xf32, #tpu.memory_space<vmem>>, vector<32x128xf32>,
    %c2_i32 = arith.constant 2 : i32
    %9 = arith.cmpi eq, %arg2, %c2_i32 : i32
    %10 = arith.extui %9 : i1 to i32
    %c0_i32_8 = arith.constant 0 : i32
    %11 = arith.cmpi ne, %10, %c0_i32_8 : i32
    scf.if %11 {
      %c0_9 = arith.constant 0 : index
      %c0_10 = arith.constant 0 : index
      %12 = vector.load %arg9[%c0_9, %c0_10] : memref<32x128xf32, #tpu.memory_space<vmem>>, vector<32x128xf32>
      %c0_11 = arith.constant 0 : index
      %c0_12 = arith.constant 0 : index
      %13 = vector.load %arg5[%c0_11, %c0_12] : memref<1x128xf32, #tpu.memory_space<vmem>>, vector<1x128xf32>
      %14 = vector.broadcast %13 : vector<1x128xf32> to vector<32x128xf32>
      %15 = arith.mulf %12, %14 : vector<32x128xf32>
      %c0_13 = arith.constant 0 : index
      %c0_14 = arith.constant 0 : index
      %16 = vector.load %arg6[%c0_13, %c0_14] : memref<1x128xf32, #tpu.memory_space<vmem>>, vector<1x128xf32>
      %17 = vector.broadcast %16 : vector<1x128xf32> to vector<32x128xf32>
      %18 = arith.addf %15, %17 : vector<32x128xf32>
      %c0_15 = arith.constant 0 : index
      %c0_16 = arith.constant 0 : index
      %19 = vector.load %arg7[%c0_15, %c0_16] : memref<32x128xbf16, #tpu.memory_space<vmem>>, vector<32x128xbf16>
      %20 = arith.extf %19 : vector<32x128xbf16> to vector<32x128xf32>
      %21 = arith.addf %18, %20 : vector<32x128xf32>
      %cst_17 = arith.constant 0.000000e+00 : f32
      %22 = vector.broadcast %cst_17 : f32 to vector<32x128xf32>
      %23 = arith.maximumf %21, %22 : vector<32x128xf32>
      %24 = arith.truncf %23 : vector<32x128xf32> to vector<32x128xbf16>
      %c0_18 = arith.constant 0 : index
      %c0_19 = arith.constant 0 : index
      %25 = vector.load %arg8[%c0_18, %c0_19] : memref<32x128xbf16, #tpu.memory_space<vmem>>, vector<32x128xbf16>
      tpu.vector_store %arg8[%c0_18, %c0_19], %24 {strides = array<i32>} : memref<32x128xbf16, #tpu.memory_space<vmem>>, vector<32x128xbf16>,
    } else {
    }
    return
  }
  func.func @transform_0(%arg0: i32, %arg1: i32, %arg2: i32) -> (i32, i32) {
    %c0_i32 = arith.constant 0 : i32
    return %arg0, %arg2 : i32, i32
  }
  func.func @transform_1(%arg0: i32, %arg1: i32, %arg2: i32) -> (i32, i32) {
    %c0_i32 = arith.constant 0 : i32
    return %arg2, %arg1 : i32, i32
  }
  func.func @transform_2(%arg0: i32, %arg1: i32, %arg2: i32) -> (i32, i32) {
    %c0_i32 = arith.constant 0 : i32
    %c0_i32_0 = arith.constant 0 : i32
    return %c0_i32, %arg1 : i32, i32
  }
  func.func @transform_3(%arg0: i32, %arg1: i32, %arg2: i32) -> (i32, i32) {
    %c0_i32 = arith.constant 0 : i32
    %c0_i32_0 = arith.constant 0 : i32
    return %c0_i32, %arg1 : i32, i32
  }
  func.func @transform_4(%arg0: i32, %arg1: i32, %arg2: i32) -> (i32, i32) {
    %c0_i32 = arith.constant 0 : i32
    return %arg0, %arg1 : i32, i32
  }
  func.func @transform_5(%arg0: i32, %arg1: i32, %arg2: i32) -> (i32, i32) {
    %c0_i32 = arith.constant 0 : i32
    return %arg0, %arg1 : i32, i32
  }
}

module attributes {stable_mosaic.version = 11 : i64} {
  func.func @_fused_matmul_kernel(%arg0: i32, %arg1: i32, %arg2: i32, %arg3: memref<32x384xbf16, #tpu.memory_space<vmem>>, %arg4: memref<384x128xbf16, #tpu.memory_space<vmem>>, %arg5: memref<1x128xf32, #tpu.memory_space<vmem>>, %arg6: memref<1x128xf32, #tpu.memory_space<vmem>>, %arg7: memref<32x128xbf16, #tpu.memory_space<vmem>>, %arg8: memref<32x128xf32, #tpu.memory_space<vmem>>) attributes {dimension_semantics = [#tpu.dimension_semantics<parallel>, #tpu.dimension_semantics<parallel>, #tpu.dimension_semantics<arbitrary>], iteration_bounds = array<i64: 1, 1, 3>, scalar_prefetch = 0 : i64, scratch_operands = 1 : i64, tpu.core_type = #tpu.core_type<tc>, window_params = [{transform_indices = @transform_0, window_bounds = array<i64: 32, 384>}, {transform_indices = @transform_1, window_bounds = array<i64: 384, 128>}, {transform_indices = @transform_2, window_bounds = array<i64: 1, 128>}, {transform_indices = @transform_3, window_bounds = array<i64: 1, 128>}, {transform_indices = @transform_4, window_bounds = array<i64: 32, 128>}]} {
    %c0_i32 = arith.constant 0 : i32
    %0 = arith.cmpi eq, %arg2, %c0_i32 : i32
    %1 = arith.extui %0 : i1 to i32
    %c0_i32_0 = arith.constant 0 : i32
    %2 = arith.cmpi ne, %1, %c0_i32_0 : i32
    scf.if %2 {
      %cst_9 = arith.constant 0.000000e+00 : f32
      %12 = vector.broadcast %cst_9 : f32 to vector<32x128xf32>
      %c0_10 = arith.constant 0 : index
      %c0_11 = arith.constant 0 : index
      %13 = vector.load %arg8[%c0_10, %c0_11] : memref<32x128xf32, #tpu.memory_space<vmem>>, vector<32x128xf32>
      tpu.vector_store %arg8[%c0_10, %c0_11], %12 {strides = array<i32>} : memref<32x128xf32, #tpu.memory_space<vmem>>, vector<32x128xf32>,
    } else {
    }
    %c0 = arith.constant 0 : index
    %c0_1 = arith.constant 0 : index
    %3 = vector.load %arg8[%c0, %c0_1] : memref<32x128xf32, #tpu.memory_space<vmem>>, vector<32x128xf32>
    %c0_2 = arith.constant 0 : index
    %c0_3 = arith.constant 0 : index
    %4 = vector.load %arg3[%c0_2, %c0_3] : memref<32x384xbf16, #tpu.memory_space<vmem>>, vector<32x384xbf16>
    %c0_4 = arith.constant 0 : index
    %c0_5 = arith.constant 0 : index
    %5 = vector.load %arg4[%c0_4, %c0_5] : memref<384x128xbf16, #tpu.memory_space<vmem>>, vector<384x128xbf16>
    %cst = arith.constant dense<0.000000e+00> : vector<32x128xf32>
    %6 = tpu.matmul %4, %5, %cst {dimension_numbers = #tpu.dot_dimension_numbers<[1], [0], [0], [1], [0, 0, 1, 1], [], []>} : vector<32x384xbf16>, vector<384x128xbf16>, vector<32x128xf32> -> vector<32x128xf32>
    %7 = arith.addf %3, %6 : vector<32x128xf32>
    %c0_6 = arith.constant 0 : index
    %c0_7 = arith.constant 0 : index
    %8 = vector.load %arg8[%c0_6, %c0_7] : memref<32x128xf32, #tpu.memory_space<vmem>>, vector<32x128xf32>
    tpu.vector_store %arg8[%c0_6, %c0_7], %7 {strides = array<i32>} : memref<32x128xf32, #tpu.memory_space<vmem>>, vector<32x128xf32>,
    %c2_i32 = arith.constant 2 : i32
    %9 = arith.cmpi eq, %arg2, %c2_i32 : i32
    %10 = arith.extui %9 : i1 to i32
    %c0_i32_8 = arith.constant 0 : i32
    %11 = arith.cmpi ne, %10, %c0_i32_8 : i32
    scf.if %11 {
      %c0_9 = arith.constant 0 : index
      %c0_10 = arith.constant 0 : index
      %12 = vector.load %arg8[%c0_9, %c0_10] : memref<32x128xf32, #tpu.memory_space<vmem>>, vector<32x128xf32>
      %c0_11 = arith.constant 0 : index
      %c0_12 = arith.constant 0 : index
      %13 = vector.load %arg5[%c0_11, %c0_12] : memref<1x128xf32, #tpu.memory_space<vmem>>, vector<1x128xf32>
      %14 = vector.broadcast %13 : vector<1x128xf32> to vector<32x128xf32>
      %15 = arith.mulf %12, %14 : vector<32x128xf32>
      %c0_13 = arith.constant 0 : index
      %c0_14 = arith.constant 0 : index
      %16 = vector.load %arg6[%c0_13, %c0_14] : memref<1x128xf32, #tpu.memory_space<vmem>>, vector<1x128xf32>
      %17 = vector.broadcast %16 : vector<1x128xf32> to vector<32x128xf32>
      %18 = arith.addf %15, %17 : vector<32x128xf32>
      %cst_15 = arith.constant 0.000000e+00 : f32
      %19 = vector.broadcast %cst_15 : f32 to vector<32x128xf32>
      %20 = arith.maximumf %18, %19 : vector<32x128xf32>
      %21 = arith.truncf %20 : vector<32x128xf32> to vector<32x128xbf16>
      %c0_16 = arith.constant 0 : index
      %c0_17 = arith.constant 0 : index
      %22 = vector.load %arg7[%c0_16, %c0_17] : memref<32x128xbf16, #tpu.memory_space<vmem>>, vector<32x128xbf16>
      tpu.vector_store %arg7[%c0_16, %c0_17], %21 {strides = array<i32>} : memref<32x128xbf16, #tpu.memory_space<vmem>>, vector<32x128xbf16>,
    } else {
    }
    return
  }
  func.func @transform_0(%arg0: i32, %arg1: i32, %arg2: i32) -> (i32, i32) {
    %c0_i32 = arith.constant 0 : i32
    return %arg0, %arg2 : i32, i32
  }
  func.func @transform_1(%arg0: i32, %arg1: i32, %arg2: i32) -> (i32, i32) {
    %c0_i32 = arith.constant 0 : i32
    return %arg2, %arg1 : i32, i32
  }
  func.func @transform_2(%arg0: i32, %arg1: i32, %arg2: i32) -> (i32, i32) {
    %c0_i32 = arith.constant 0 : i32
    %c0_i32_0 = arith.constant 0 : i32
    return %c0_i32, %arg1 : i32, i32
  }
  func.func @transform_3(%arg0: i32, %arg1: i32, %arg2: i32) -> (i32, i32) {
    %c0_i32 = arith.constant 0 : i32
    %c0_i32_0 = arith.constant 0 : i32
    return %c0_i32, %arg1 : i32, i32
  }
  func.func @transform_4(%arg0: i32, %arg1: i32, %arg2: i32) -> (i32, i32) {
    %c0_i32 = arith.constant 0 : i32
    return %arg0, %arg1 : i32, i32
  }
}

module attributes {stable_mosaic.version = 11 : i64} {
  func.func @_fused_matmul_kernel(%arg0: i32, %arg1: i32, %arg2: i32, %arg3: memref<8x384xbf16, #tpu.memory_space<vmem>>, %arg4: memref<384x256xbf16, #tpu.memory_space<vmem>>, %arg5: memref<1x256xf32, #tpu.memory_space<vmem>>, %arg6: memref<1x256xf32, #tpu.memory_space<vmem>>, %arg7: memref<8x256xbf16, #tpu.memory_space<vmem>>, %arg8: memref<8x256xf32, #tpu.memory_space<vmem>>) attributes {dimension_semantics = [#tpu.dimension_semantics<parallel>, #tpu.dimension_semantics<parallel>, #tpu.dimension_semantics<arbitrary>], iteration_bounds = array<i64: 1, 1, 3>, scalar_prefetch = 0 : i64, scratch_operands = 1 : i64, tpu.core_type = #tpu.core_type<tc>, window_params = [{transform_indices = @transform_0, window_bounds = array<i64: 8, 384>}, {transform_indices = @transform_1, window_bounds = array<i64: 384, 256>}, {transform_indices = @transform_2, window_bounds = array<i64: 1, 256>}, {transform_indices = @transform_3, window_bounds = array<i64: 1, 256>}, {transform_indices = @transform_4, window_bounds = array<i64: 8, 256>}]} {
    %c0_i32 = arith.constant 0 : i32
    %0 = arith.cmpi eq, %arg2, %c0_i32 : i32
    %1 = arith.extui %0 : i1 to i32
    %c0_i32_0 = arith.constant 0 : i32
    %2 = arith.cmpi ne, %1, %c0_i32_0 : i32
    scf.if %2 {
      %cst_9 = arith.constant 0.000000e+00 : f32
      %12 = vector.broadcast %cst_9 : f32 to vector<8x256xf32>
      %c0_10 = arith.constant 0 : index
      %c0_11 = arith.constant 0 : index
      %13 = vector.load %arg8[%c0_10, %c0_11] : memref<8x256xf32, #tpu.memory_space<vmem>>, vector<8x256xf32>
      tpu.vector_store %arg8[%c0_10, %c0_11], %12 {strides = array<i32>} : memref<8x256xf32, #tpu.memory_space<vmem>>, vector<8x256xf32>,
    } else {
    }
    %c0 = arith.constant 0 : index
    %c0_1 = arith.constant 0 : index
    %3 = vector.load %arg8[%c0, %c0_1] : memref<8x256xf32, #tpu.memory_space<vmem>>, vector<8x256xf32>
    %c0_2 = arith.constant 0 : index
    %c0_3 = arith.constant 0 : index
    %4 = vector.load %arg3[%c0_2, %c0_3] : memref<8x384xbf16, #tpu.memory_space<vmem>>, vector<8x384xbf16>
    %c0_4 = arith.constant 0 : index
    %c0_5 = arith.constant 0 : index
    %5 = vector.load %arg4[%c0_4, %c0_5] : memref<384x256xbf16, #tpu.memory_space<vmem>>, vector<384x256xbf16>
    %cst = arith.constant dense<0.000000e+00> : vector<8x256xf32>
    %6 = tpu.matmul %4, %5, %cst {dimension_numbers = #tpu.dot_dimension_numbers<[1], [0], [0], [1], [0, 0, 1, 1], [], []>} : vector<8x384xbf16>, vector<384x256xbf16>, vector<8x256xf32> -> vector<8x256xf32>
    %7 = arith.addf %3, %6 : vector<8x256xf32>
    %c0_6 = arith.constant 0 : index
    %c0_7 = arith.constant 0 : index
    %8 = vector.load %arg8[%c0_6, %c0_7] : memref<8x256xf32, #tpu.memory_space<vmem>>, vector<8x256xf32>
    tpu.vector_store %arg8[%c0_6, %c0_7], %7 {strides = array<i32>} : memref<8x256xf32, #tpu.memory_space<vmem>>, vector<8x256xf32>,
    %c2_i32 = arith.constant 2 : i32
    %9 = arith.cmpi eq, %arg2, %c2_i32 : i32
    %10 = arith.extui %9 : i1 to i32
    %c0_i32_8 = arith.constant 0 : i32
    %11 = arith.cmpi ne, %10, %c0_i32_8 : i32
    scf.if %11 {
      %c0_9 = arith.constant 0 : index
      %c0_10 = arith.constant 0 : index
      %12 = vector.load %arg8[%c0_9, %c0_10] : memref<8x256xf32, #tpu.memory_space<vmem>>, vector<8x256xf32>
      %c0_11 = arith.constant 0 : index
      %c0_12 = arith.constant 0 : index
      %13 = vector.load %arg5[%c0_11, %c0_12] : memref<1x256xf32, #tpu.memory_space<vmem>>, vector<1x256xf32>
      %14 = vector.broadcast %13 : vector<1x256xf32> to vector<8x256xf32>
      %15 = arith.mulf %12, %14 : vector<8x256xf32>
      %c0_13 = arith.constant 0 : index
      %c0_14 = arith.constant 0 : index
      %16 = vector.load %arg6[%c0_13, %c0_14] : memref<1x256xf32, #tpu.memory_space<vmem>>, vector<1x256xf32>
      %17 = vector.broadcast %16 : vector<1x256xf32> to vector<8x256xf32>
      %18 = arith.addf %15, %17 : vector<8x256xf32>
      %cst_15 = arith.constant 0.000000e+00 : f32
      %19 = vector.broadcast %cst_15 : f32 to vector<8x256xf32>
      %20 = arith.maximumf %18, %19 : vector<8x256xf32>
      %21 = arith.truncf %20 : vector<8x256xf32> to vector<8x256xbf16>
      %c0_16 = arith.constant 0 : index
      %c0_17 = arith.constant 0 : index
      %22 = vector.load %arg7[%c0_16, %c0_17] : memref<8x256xbf16, #tpu.memory_space<vmem>>, vector<8x256xbf16>
      tpu.vector_store %arg7[%c0_16, %c0_17], %21 {strides = array<i32>} : memref<8x256xbf16, #tpu.memory_space<vmem>>, vector<8x256xbf16>,
    } else {
    }
    return
  }
  func.func @transform_0(%arg0: i32, %arg1: i32, %arg2: i32) -> (i32, i32) {
    %c0_i32 = arith.constant 0 : i32
    return %arg0, %arg2 : i32, i32
  }
  func.func @transform_1(%arg0: i32, %arg1: i32, %arg2: i32) -> (i32, i32) {
    %c0_i32 = arith.constant 0 : i32
    return %arg2, %arg1 : i32, i32
  }
  func.func @transform_2(%arg0: i32, %arg1: i32, %arg2: i32) -> (i32, i32) {
    %c0_i32 = arith.constant 0 : i32
    %c0_i32_0 = arith.constant 0 : i32
    return %c0_i32, %arg1 : i32, i32
  }
  func.func @transform_3(%arg0: i32, %arg1: i32, %arg2: i32) -> (i32, i32) {
    %c0_i32 = arith.constant 0 : i32
    %c0_i32_0 = arith.constant 0 : i32
    return %c0_i32, %arg1 : i32, i32
  }
  func.func @transform_4(%arg0: i32, %arg1: i32, %arg2: i32) -> (i32, i32) {
    %c0_i32 = arith.constant 0 : i32
    return %arg0, %arg1 : i32, i32
  }
}

module attributes {stable_mosaic.version = 11 : i64} {
  func.func @_fused_matmul_kernel(%arg0: i32, %arg1: i32, %arg2: i32, %arg3: memref<8x128xbf16, #tpu.memory_space<vmem>>, %arg4: memref<128x256xbf16, #tpu.memory_space<vmem>>, %arg5: memref<1x256xf32, #tpu.memory_space<vmem>>, %arg6: memref<1x256xf32, #tpu.memory_space<vmem>>, %arg7: memref<8x256xbf16, #tpu.memory_space<vmem>>, %arg8: memref<8x256xf32, #tpu.memory_space<vmem>>) attributes {dimension_semantics = [#tpu.dimension_semantics<parallel>, #tpu.dimension_semantics<parallel>, #tpu.dimension_semantics<arbitrary>], iteration_bounds = array<i64: 1, 1, 1>, scalar_prefetch = 0 : i64, scratch_operands = 1 : i64, tpu.core_type = #tpu.core_type<tc>, window_params = [{transform_indices = @transform_0, window_bounds = array<i64: 8, 128>}, {transform_indices = @transform_1, window_bounds = array<i64: 128, 256>}, {transform_indices = @transform_2, window_bounds = array<i64: 1, 256>}, {transform_indices = @transform_3, window_bounds = array<i64: 1, 256>}, {transform_indices = @transform_4, window_bounds = array<i64: 8, 256>}]} {
    %c0_i32 = arith.constant 0 : i32
    %0 = arith.cmpi eq, %arg2, %c0_i32 : i32
    %1 = arith.extui %0 : i1 to i32
    %c0_i32_0 = arith.constant 0 : i32
    %2 = arith.cmpi ne, %1, %c0_i32_0 : i32
    scf.if %2 {
      %cst_10 = arith.constant 0.000000e+00 : f32
      %12 = vector.broadcast %cst_10 : f32 to vector<8x256xf32>
      %c0_11 = arith.constant 0 : index
      %c0_12 = arith.constant 0 : index
      %13 = vector.load %arg8[%c0_11, %c0_12] : memref<8x256xf32, #tpu.memory_space<vmem>>, vector<8x256xf32>
      tpu.vector_store %arg8[%c0_11, %c0_12], %12 {strides = array<i32>} : memref<8x256xf32, #tpu.memory_space<vmem>>, vector<8x256xf32>,
    } else {
    }
    %c0 = arith.constant 0 : index
    %c0_1 = arith.constant 0 : index
    %3 = vector.load %arg8[%c0, %c0_1] : memref<8x256xf32, #tpu.memory_space<vmem>>, vector<8x256xf32>
    %c0_2 = arith.constant 0 : index
    %c0_3 = arith.constant 0 : index
    %4 = vector.load %arg3[%c0_2, %c0_3] : memref<8x128xbf16, #tpu.memory_space<vmem>>, vector<8x128xbf16>
    %c0_4 = arith.constant 0 : index
    %c0_5 = arith.constant 0 : index
    %5 = vector.load %arg4[%c0_4, %c0_5] : memref<128x256xbf16, #tpu.memory_space<vmem>>, vector<128x256xbf16>
    %cst = arith.constant dense<0.000000e+00> : vector<8x256xf32>
    %6 = tpu.matmul %4, %5, %cst {dimension_numbers = #tpu.dot_dimension_numbers<[1], [0], [0], [1], [0, 0, 1, 1], [], []>} : vector<8x128xbf16>, vector<128x256xbf16>, vector<8x256xf32> -> vector<8x256xf32>
    %7 = arith.addf %3, %6 : vector<8x256xf32>
    %c0_6 = arith.constant 0 : index
    %c0_7 = arith.constant 0 : index
    %8 = vector.load %arg8[%c0_6, %c0_7] : memref<8x256xf32, #tpu.memory_space<vmem>>, vector<8x256xf32>
    tpu.vector_store %arg8[%c0_6, %c0_7], %7 {strides = array<i32>} : memref<8x256xf32, #tpu.memory_space<vmem>>, vector<8x256xf32>,
    %c0_i32_8 = arith.constant 0 : i32
    %9 = arith.cmpi eq, %arg2, %c0_i32_8 : i32
    %10 = arith.extui %9 : i1 to i32
    %c0_i32_9 = arith.constant 0 : i32
    %11 = arith.cmpi ne, %10, %c0_i32_9 : i32
    scf.if %11 {
      %c0_10 = arith.constant 0 : index
      %c0_11 = arith.constant 0 : index
      %12 = vector.load %arg8[%c0_10, %c0_11] : memref<8x256xf32, #tpu.memory_space<vmem>>, vector<8x256xf32>
      %c0_12 = arith.constant 0 : index
      %c0_13 = arith.constant 0 : index
      %13 = vector.load %arg5[%c0_12, %c0_13] : memref<1x256xf32, #tpu.memory_space<vmem>>, vector<1x256xf32>
      %14 = vector.broadcast %13 : vector<1x256xf32> to vector<8x256xf32>
      %15 = arith.mulf %12, %14 : vector<8x256xf32>
      %c0_14 = arith.constant 0 : index
      %c0_15 = arith.constant 0 : index
      %16 = vector.load %arg6[%c0_14, %c0_15] : memref<1x256xf32, #tpu.memory_space<vmem>>, vector<1x256xf32>
      %17 = vector.broadcast %16 : vector<1x256xf32> to vector<8x256xf32>
      %18 = arith.addf %15, %17 : vector<8x256xf32>
      %19 = arith.truncf %18 : vector<8x256xf32> to vector<8x256xbf16>
      %c0_16 = arith.constant 0 : index
      %c0_17 = arith.constant 0 : index
      %20 = vector.load %arg7[%c0_16, %c0_17] : memref<8x256xbf16, #tpu.memory_space<vmem>>, vector<8x256xbf16>
      tpu.vector_store %arg7[%c0_16, %c0_17], %19 {strides = array<i32>} : memref<8x256xbf16, #tpu.memory_space<vmem>>, vector<8x256xbf16>,
    } else {
    }
    return
  }
  func.func @transform_0(%arg0: i32, %arg1: i32, %arg2: i32) -> (i32, i32) {
    %c0_i32 = arith.constant 0 : i32
    return %arg0, %arg2 : i32, i32
  }
  func.func @transform_1(%arg0: i32, %arg1: i32, %arg2: i32) -> (i32, i32) {
    %c0_i32 = arith.constant 0 : i32
    return %arg2, %arg1 : i32, i32
  }
  func.func @transform_2(%arg0: i32, %arg1: i32, %arg2: i32) -> (i32, i32) {
    %c0_i32 = arith.constant 0 : i32
    %c0_i32_0 = arith.constant 0 : i32
    return %c0_i32, %arg1 : i32, i32
  }
  func.func @transform_3(%arg0: i32, %arg1: i32, %arg2: i32) -> (i32, i32) {
    %c0_i32 = arith.constant 0 : i32
    %c0_i32_0 = arith.constant 0 : i32
    return %c0_i32, %arg1 : i32, i32
  }
  func.func @transform_4(%arg0: i32, %arg1: i32, %arg2: i32) -> (i32, i32) {
    %c0_i32 = arith.constant 0 : i32
    return %arg0, %arg1 : i32, i32
  }
}

module attributes {stable_mosaic.version = 11 : i64} {
  func.func @_fused_matmul_kernel(%arg0: i32, %arg1: i32, %arg2: i32, %arg3: memref<8x512xbf16, #tpu.memory_space<vmem>>, %arg4: memref<512x256xbf16, #tpu.memory_space<vmem>>, %arg5: memref<1x256xf32, #tpu.memory_space<vmem>>, %arg6: memref<1x256xf32, #tpu.memory_space<vmem>>, %arg7: memref<8x256xbf16, #tpu.memory_space<vmem>>, %arg8: memref<8x256xbf16, #tpu.memory_space<vmem>>, %arg9: memref<8x256xf32, #tpu.memory_space<vmem>>) attributes {dimension_semantics = [#tpu.dimension_semantics<parallel>, #tpu.dimension_semantics<parallel>, #tpu.dimension_semantics<arbitrary>], iteration_bounds = array<i64: 1, 1, 5>, scalar_prefetch = 0 : i64, scratch_operands = 1 : i64, tpu.core_type = #tpu.core_type<tc>, window_params = [{transform_indices = @transform_0, window_bounds = array<i64: 8, 512>}, {transform_indices = @transform_1, window_bounds = array<i64: 512, 256>}, {transform_indices = @transform_2, window_bounds = array<i64: 1, 256>}, {transform_indices = @transform_3, window_bounds = array<i64: 1, 256>}, {transform_indices = @transform_4, window_bounds = array<i64: 8, 256>}, {transform_indices = @transform_5, window_bounds = array<i64: 8, 256>}]} {
    %c0_i32 = arith.constant 0 : i32
    %0 = arith.cmpi eq, %arg2, %c0_i32 : i32
    %1 = arith.extui %0 : i1 to i32
    %c0_i32_0 = arith.constant 0 : i32
    %2 = arith.cmpi ne, %1, %c0_i32_0 : i32
    scf.if %2 {
      %cst_9 = arith.constant 0.000000e+00 : f32
      %12 = vector.broadcast %cst_9 : f32 to vector<8x256xf32>
      %c0_10 = arith.constant 0 : index
      %c0_11 = arith.constant 0 : index
      %13 = vector.load %arg9[%c0_10, %c0_11] : memref<8x256xf32, #tpu.memory_space<vmem>>, vector<8x256xf32>
      tpu.vector_store %arg9[%c0_10, %c0_11], %12 {strides = array<i32>} : memref<8x256xf32, #tpu.memory_space<vmem>>, vector<8x256xf32>,
    } else {
    }
    %c0 = arith.constant 0 : index
    %c0_1 = arith.constant 0 : index
    %3 = vector.load %arg9[%c0, %c0_1] : memref<8x256xf32, #tpu.memory_space<vmem>>, vector<8x256xf32>
    %c0_2 = arith.constant 0 : index
    %c0_3 = arith.constant 0 : index
    %4 = vector.load %arg3[%c0_2, %c0_3] : memref<8x512xbf16, #tpu.memory_space<vmem>>, vector<8x512xbf16>
    %c0_4 = arith.constant 0 : index
    %c0_5 = arith.constant 0 : index
    %5 = vector.load %arg4[%c0_4, %c0_5] : memref<512x256xbf16, #tpu.memory_space<vmem>>, vector<512x256xbf16>
    %cst = arith.constant dense<0.000000e+00> : vector<8x256xf32>
    %6 = tpu.matmul %4, %5, %cst {dimension_numbers = #tpu.dot_dimension_numbers<[1], [0], [0], [1], [0, 0, 1, 1], [], []>} : vector<8x512xbf16>, vector<512x256xbf16>, vector<8x256xf32> -> vector<8x256xf32>
    %7 = arith.addf %3, %6 : vector<8x256xf32>
    %c0_6 = arith.constant 0 : index
    %c0_7 = arith.constant 0 : index
    %8 = vector.load %arg9[%c0_6, %c0_7] : memref<8x256xf32, #tpu.memory_space<vmem>>, vector<8x256xf32>
    tpu.vector_store %arg9[%c0_6, %c0_7], %7 {strides = array<i32>} : memref<8x256xf32, #tpu.memory_space<vmem>>, vector<8x256xf32>,
    %c4_i32 = arith.constant 4 : i32
    %9 = arith.cmpi eq, %arg2, %c4_i32 : i32
    %10 = arith.extui %9 : i1 to i32
    %c0_i32_8 = arith.constant 0 : i32
    %11 = arith.cmpi ne, %10, %c0_i32_8 : i32
    scf.if %11 {
      %c0_9 = arith.constant 0 : index
      %c0_10 = arith.constant 0 : index
      %12 = vector.load %arg9[%c0_9, %c0_10] : memref<8x256xf32, #tpu.memory_space<vmem>>, vector<8x256xf32>
      %c0_11 = arith.constant 0 : index
      %c0_12 = arith.constant 0 : index
      %13 = vector.load %arg5[%c0_11, %c0_12] : memref<1x256xf32, #tpu.memory_space<vmem>>, vector<1x256xf32>
      %14 = vector.broadcast %13 : vector<1x256xf32> to vector<8x256xf32>
      %15 = arith.mulf %12, %14 : vector<8x256xf32>
      %c0_13 = arith.constant 0 : index
      %c0_14 = arith.constant 0 : index
      %16 = vector.load %arg6[%c0_13, %c0_14] : memref<1x256xf32, #tpu.memory_space<vmem>>, vector<1x256xf32>
      %17 = vector.broadcast %16 : vector<1x256xf32> to vector<8x256xf32>
      %18 = arith.addf %15, %17 : vector<8x256xf32>
      %c0_15 = arith.constant 0 : index
      %c0_16 = arith.constant 0 : index
      %19 = vector.load %arg7[%c0_15, %c0_16] : memref<8x256xbf16, #tpu.memory_space<vmem>>, vector<8x256xbf16>
      %20 = arith.extf %19 : vector<8x256xbf16> to vector<8x256xf32>
      %21 = arith.addf %18, %20 : vector<8x256xf32>
      %cst_17 = arith.constant 0.000000e+00 : f32
      %22 = vector.broadcast %cst_17 : f32 to vector<8x256xf32>
      %23 = arith.maximumf %21, %22 : vector<8x256xf32>
      %24 = arith.truncf %23 : vector<8x256xf32> to vector<8x256xbf16>
      %c0_18 = arith.constant 0 : index
      %c0_19 = arith.constant 0 : index
      %25 = vector.load %arg8[%c0_18, %c0_19] : memref<8x256xbf16, #tpu.memory_space<vmem>>, vector<8x256xbf16>
      tpu.vector_store %arg8[%c0_18, %c0_19], %24 {strides = array<i32>} : memref<8x256xbf16, #tpu.memory_space<vmem>>, vector<8x256xbf16>,
    } else {
    }
    return
  }
  func.func @transform_0(%arg0: i32, %arg1: i32, %arg2: i32) -> (i32, i32) {
    %c0_i32 = arith.constant 0 : i32
    return %arg0, %arg2 : i32, i32
  }
  func.func @transform_1(%arg0: i32, %arg1: i32, %arg2: i32) -> (i32, i32) {
    %c0_i32 = arith.constant 0 : i32
    return %arg2, %arg1 : i32, i32
  }
  func.func @transform_2(%arg0: i32, %arg1: i32, %arg2: i32) -> (i32, i32) {
    %c0_i32 = arith.constant 0 : i32
    %c0_i32_0 = arith.constant 0 : i32
    return %c0_i32, %arg1 : i32, i32
  }
  func.func @transform_3(%arg0: i32, %arg1: i32, %arg2: i32) -> (i32, i32) {
    %c0_i32 = arith.constant 0 : i32
    %c0_i32_0 = arith.constant 0 : i32
    return %c0_i32, %arg1 : i32, i32
  }
  func.func @transform_4(%arg0: i32, %arg1: i32, %arg2: i32) -> (i32, i32) {
    %c0_i32 = arith.constant 0 : i32
    return %arg0, %arg1 : i32, i32
  }
  func.func @transform_5(%arg0: i32, %arg1: i32, %arg2: i32) -> (i32, i32) {
    %c0_i32 = arith.constant 0 : i32
    return %arg0, %arg1 : i32, i32
  }
}

module attributes {stable_mosaic.version = 11 : i64} {
  func.func @_fused_matmul_kernel(%arg0: i32, %arg1: i32, %arg2: i32, %arg3: memref<8x512xbf16, #tpu.memory_space<vmem>>, %arg4: memref<512x256xbf16, #tpu.memory_space<vmem>>, %arg5: memref<1x256xf32, #tpu.memory_space<vmem>>, %arg6: memref<1x256xf32, #tpu.memory_space<vmem>>, %arg7: memref<8x256xbf16, #tpu.memory_space<vmem>>, %arg8: memref<8x256xf32, #tpu.memory_space<vmem>>) attributes {dimension_semantics = [#tpu.dimension_semantics<parallel>, #tpu.dimension_semantics<parallel>, #tpu.dimension_semantics<arbitrary>], iteration_bounds = array<i64: 1, 1, 5>, scalar_prefetch = 0 : i64, scratch_operands = 1 : i64, tpu.core_type = #tpu.core_type<tc>, window_params = [{transform_indices = @transform_0, window_bounds = array<i64: 8, 512>}, {transform_indices = @transform_1, window_bounds = array<i64: 512, 256>}, {transform_indices = @transform_2, window_bounds = array<i64: 1, 256>}, {transform_indices = @transform_3, window_bounds = array<i64: 1, 256>}, {transform_indices = @transform_4, window_bounds = array<i64: 8, 256>}]} {
    %c0_i32 = arith.constant 0 : i32
    %0 = arith.cmpi eq, %arg2, %c0_i32 : i32
    %1 = arith.extui %0 : i1 to i32
    %c0_i32_0 = arith.constant 0 : i32
    %2 = arith.cmpi ne, %1, %c0_i32_0 : i32
    scf.if %2 {
      %cst_9 = arith.constant 0.000000e+00 : f32
      %12 = vector.broadcast %cst_9 : f32 to vector<8x256xf32>
      %c0_10 = arith.constant 0 : index
      %c0_11 = arith.constant 0 : index
      %13 = vector.load %arg8[%c0_10, %c0_11] : memref<8x256xf32, #tpu.memory_space<vmem>>, vector<8x256xf32>
      tpu.vector_store %arg8[%c0_10, %c0_11], %12 {strides = array<i32>} : memref<8x256xf32, #tpu.memory_space<vmem>>, vector<8x256xf32>,
    } else {
    }
    %c0 = arith.constant 0 : index
    %c0_1 = arith.constant 0 : index
    %3 = vector.load %arg8[%c0, %c0_1] : memref<8x256xf32, #tpu.memory_space<vmem>>, vector<8x256xf32>
    %c0_2 = arith.constant 0 : index
    %c0_3 = arith.constant 0 : index
    %4 = vector.load %arg3[%c0_2, %c0_3] : memref<8x512xbf16, #tpu.memory_space<vmem>>, vector<8x512xbf16>
    %c0_4 = arith.constant 0 : index
    %c0_5 = arith.constant 0 : index
    %5 = vector.load %arg4[%c0_4, %c0_5] : memref<512x256xbf16, #tpu.memory_space<vmem>>, vector<512x256xbf16>
    %cst = arith.constant dense<0.000000e+00> : vector<8x256xf32>
    %6 = tpu.matmul %4, %5, %cst {dimension_numbers = #tpu.dot_dimension_numbers<[1], [0], [0], [1], [0, 0, 1, 1], [], []>} : vector<8x512xbf16>, vector<512x256xbf16>, vector<8x256xf32> -> vector<8x256xf32>
    %7 = arith.addf %3, %6 : vector<8x256xf32>
    %c0_6 = arith.constant 0 : index
    %c0_7 = arith.constant 0 : index
    %8 = vector.load %arg8[%c0_6, %c0_7] : memref<8x256xf32, #tpu.memory_space<vmem>>, vector<8x256xf32>
    tpu.vector_store %arg8[%c0_6, %c0_7], %7 {strides = array<i32>} : memref<8x256xf32, #tpu.memory_space<vmem>>, vector<8x256xf32>,
    %c4_i32 = arith.constant 4 : i32
    %9 = arith.cmpi eq, %arg2, %c4_i32 : i32
    %10 = arith.extui %9 : i1 to i32
    %c0_i32_8 = arith.constant 0 : i32
    %11 = arith.cmpi ne, %10, %c0_i32_8 : i32
    scf.if %11 {
      %c0_9 = arith.constant 0 : index
      %c0_10 = arith.constant 0 : index
      %12 = vector.load %arg8[%c0_9, %c0_10] : memref<8x256xf32, #tpu.memory_space<vmem>>, vector<8x256xf32>
      %c0_11 = arith.constant 0 : index
      %c0_12 = arith.constant 0 : index
      %13 = vector.load %arg5[%c0_11, %c0_12] : memref<1x256xf32, #tpu.memory_space<vmem>>, vector<1x256xf32>
      %14 = vector.broadcast %13 : vector<1x256xf32> to vector<8x256xf32>
      %15 = arith.mulf %12, %14 : vector<8x256xf32>
      %c0_13 = arith.constant 0 : index
      %c0_14 = arith.constant 0 : index
      %16 = vector.load %arg6[%c0_13, %c0_14] : memref<1x256xf32, #tpu.memory_space<vmem>>, vector<1x256xf32>
      %17 = vector.broadcast %16 : vector<1x256xf32> to vector<8x256xf32>
      %18 = arith.addf %15, %17 : vector<8x256xf32>
      %cst_15 = arith.constant 0.000000e+00 : f32
      %19 = vector.broadcast %cst_15 : f32 to vector<8x256xf32>
      %20 = arith.maximumf %18, %19 : vector<8x256xf32>
      %21 = arith.truncf %20 : vector<8x256xf32> to vector<8x256xbf16>
      %c0_16 = arith.constant 0 : index
      %c0_17 = arith.constant 0 : index
      %22 = vector.load %arg7[%c0_16, %c0_17] : memref<8x256xbf16, #tpu.memory_space<vmem>>, vector<8x256xbf16>
      tpu.vector_store %arg7[%c0_16, %c0_17], %21 {strides = array<i32>} : memref<8x256xbf16, #tpu.memory_space<vmem>>, vector<8x256xbf16>,
    } else {
    }
    return
  }
  func.func @transform_0(%arg0: i32, %arg1: i32, %arg2: i32) -> (i32, i32) {
    %c0_i32 = arith.constant 0 : i32
    return %arg0, %arg2 : i32, i32
  }
  func.func @transform_1(%arg0: i32, %arg1: i32, %arg2: i32) -> (i32, i32) {
    %c0_i32 = arith.constant 0 : i32
    return %arg2, %arg1 : i32, i32
  }
  func.func @transform_2(%arg0: i32, %arg1: i32, %arg2: i32) -> (i32, i32) {
    %c0_i32 = arith.constant 0 : i32
    %c0_i32_0 = arith.constant 0 : i32
    return %c0_i32, %arg1 : i32, i32
  }
  func.func @transform_3(%arg0: i32, %arg1: i32, %arg2: i32) -> (i32, i32) {
    %c0_i32 = arith.constant 0 : i32
    %c0_i32_0 = arith.constant 0 : i32
    return %c0_i32, %arg1 : i32, i32
  }
  func.func @transform_4(%arg0: i32, %arg1: i32, %arg2: i32) -> (i32, i32) {
    %c0_i32 = arith.constant 0 : i32
    return %arg0, %arg1 : i32, i32
  }
}

module attributes {stable_mosaic.version = 11 : i64} {
  func.func @_fused_matmul_kernel(%arg0: i32, %arg1: i32, %arg2: i32, %arg3: memref<8x512xbf16, #tpu.memory_space<vmem>>, %arg4: memref<512x256xbf16, #tpu.memory_space<vmem>>, %arg5: memref<1x256xf32, #tpu.memory_space<vmem>>, %arg6: memref<1x256xf32, #tpu.memory_space<vmem>>, %arg7: memref<8x256xbf16, #tpu.memory_space<vmem>>, %arg8: memref<8x256xf32, #tpu.memory_space<vmem>>) attributes {dimension_semantics = [#tpu.dimension_semantics<parallel>, #tpu.dimension_semantics<parallel>, #tpu.dimension_semantics<arbitrary>], iteration_bounds = array<i64: 1, 2, 5>, scalar_prefetch = 0 : i64, scratch_operands = 1 : i64, tpu.core_type = #tpu.core_type<tc>, window_params = [{transform_indices = @transform_0, window_bounds = array<i64: 8, 512>}, {transform_indices = @transform_1, window_bounds = array<i64: 512, 256>}, {transform_indices = @transform_2, window_bounds = array<i64: 1, 256>}, {transform_indices = @transform_3, window_bounds = array<i64: 1, 256>}, {transform_indices = @transform_4, window_bounds = array<i64: 8, 256>}]} {
    %c0_i32 = arith.constant 0 : i32
    %0 = arith.cmpi eq, %arg2, %c0_i32 : i32
    %1 = arith.extui %0 : i1 to i32
    %c0_i32_0 = arith.constant 0 : i32
    %2 = arith.cmpi ne, %1, %c0_i32_0 : i32
    scf.if %2 {
      %cst_9 = arith.constant 0.000000e+00 : f32
      %12 = vector.broadcast %cst_9 : f32 to vector<8x256xf32>
      %c0_10 = arith.constant 0 : index
      %c0_11 = arith.constant 0 : index
      %13 = vector.load %arg8[%c0_10, %c0_11] : memref<8x256xf32, #tpu.memory_space<vmem>>, vector<8x256xf32>
      tpu.vector_store %arg8[%c0_10, %c0_11], %12 {strides = array<i32>} : memref<8x256xf32, #tpu.memory_space<vmem>>, vector<8x256xf32>,
    } else {
    }
    %c0 = arith.constant 0 : index
    %c0_1 = arith.constant 0 : index
    %3 = vector.load %arg8[%c0, %c0_1] : memref<8x256xf32, #tpu.memory_space<vmem>>, vector<8x256xf32>
    %c0_2 = arith.constant 0 : index
    %c0_3 = arith.constant 0 : index
    %4 = vector.load %arg3[%c0_2, %c0_3] : memref<8x512xbf16, #tpu.memory_space<vmem>>, vector<8x512xbf16>
    %c0_4 = arith.constant 0 : index
    %c0_5 = arith.constant 0 : index
    %5 = vector.load %arg4[%c0_4, %c0_5] : memref<512x256xbf16, #tpu.memory_space<vmem>>, vector<512x256xbf16>
    %cst = arith.constant dense<0.000000e+00> : vector<8x256xf32>
    %6 = tpu.matmul %4, %5, %cst {dimension_numbers = #tpu.dot_dimension_numbers<[1], [0], [0], [1], [0, 0, 1, 1], [], []>} : vector<8x512xbf16>, vector<512x256xbf16>, vector<8x256xf32> -> vector<8x256xf32>
    %7 = arith.addf %3, %6 : vector<8x256xf32>
    %c0_6 = arith.constant 0 : index
    %c0_7 = arith.constant 0 : index
    %8 = vector.load %arg8[%c0_6, %c0_7] : memref<8x256xf32, #tpu.memory_space<vmem>>, vector<8x256xf32>
    tpu.vector_store %arg8[%c0_6, %c0_7], %7 {strides = array<i32>} : memref<8x256xf32, #tpu.memory_space<vmem>>, vector<8x256xf32>,
    %c4_i32 = arith.constant 4 : i32
    %9 = arith.cmpi eq, %arg2, %c4_i32 : i32
    %10 = arith.extui %9 : i1 to i32
    %c0_i32_8 = arith.constant 0 : i32
    %11 = arith.cmpi ne, %10, %c0_i32_8 : i32
    scf.if %11 {
      %c0_9 = arith.constant 0 : index
      %c0_10 = arith.constant 0 : index
      %12 = vector.load %arg8[%c0_9, %c0_10] : memref<8x256xf32, #tpu.memory_space<vmem>>, vector<8x256xf32>
      %c0_11 = arith.constant 0 : index
      %c0_12 = arith.constant 0 : index
      %13 = vector.load %arg5[%c0_11, %c0_12] : memref<1x256xf32, #tpu.memory_space<vmem>>, vector<1x256xf32>
      %14 = vector.broadcast %13 : vector<1x256xf32> to vector<8x256xf32>
      %15 = arith.mulf %12, %14 : vector<8x256xf32>
      %c0_13 = arith.constant 0 : index
      %c0_14 = arith.constant 0 : index
      %16 = vector.load %arg6[%c0_13, %c0_14] : memref<1x256xf32, #tpu.memory_space<vmem>>, vector<1x256xf32>
      %17 = vector.broadcast %16 : vector<1x256xf32> to vector<8x256xf32>
      %18 = arith.addf %15, %17 : vector<8x256xf32>
      %cst_15 = arith.constant 0.000000e+00 : f32
      %19 = vector.broadcast %cst_15 : f32 to vector<8x256xf32>
      %20 = arith.maximumf %18, %19 : vector<8x256xf32>
      %21 = arith.truncf %20 : vector<8x256xf32> to vector<8x256xbf16>
      %c0_16 = arith.constant 0 : index
      %c0_17 = arith.constant 0 : index
      %22 = vector.load %arg7[%c0_16, %c0_17] : memref<8x256xbf16, #tpu.memory_space<vmem>>, vector<8x256xbf16>
      tpu.vector_store %arg7[%c0_16, %c0_17], %21 {strides = array<i32>} : memref<8x256xbf16, #tpu.memory_space<vmem>>, vector<8x256xbf16>,
    } else {
    }
    return
  }
  func.func @transform_0(%arg0: i32, %arg1: i32, %arg2: i32) -> (i32, i32) {
    %c0_i32 = arith.constant 0 : i32
    return %arg0, %arg2 : i32, i32
  }
  func.func @transform_1(%arg0: i32, %arg1: i32, %arg2: i32) -> (i32, i32) {
    %c0_i32 = arith.constant 0 : i32
    return %arg2, %arg1 : i32, i32
  }
  func.func @transform_2(%arg0: i32, %arg1: i32, %arg2: i32) -> (i32, i32) {
    %c0_i32 = arith.constant 0 : i32
    %c0_i32_0 = arith.constant 0 : i32
    return %c0_i32, %arg1 : i32, i32
  }
  func.func @transform_3(%arg0: i32, %arg1: i32, %arg2: i32) -> (i32, i32) {
    %c0_i32 = arith.constant 0 : i32
    %c0_i32_0 = arith.constant 0 : i32
    return %c0_i32, %arg1 : i32, i32
  }
  func.func @transform_4(%arg0: i32, %arg1: i32, %arg2: i32) -> (i32, i32) {
    %c0_i32 = arith.constant 0 : i32
    return %arg0, %arg1 : i32, i32
  }
}

module attributes {stable_mosaic.version = 11 : i64} {
  func.func @_fused_matmul_kernel(%arg0: i32, %arg1: i32, %arg2: i32, %arg3: memref<8x256xbf16, #tpu.memory_space<vmem>>, %arg4: memref<256x256xbf16, #tpu.memory_space<vmem>>, %arg5: memref<1x256xf32, #tpu.memory_space<vmem>>, %arg6: memref<1x256xf32, #tpu.memory_space<vmem>>, %arg7: memref<8x256xbf16, #tpu.memory_space<vmem>>, %arg8: memref<8x256xf32, #tpu.memory_space<vmem>>) attributes {dimension_semantics = [#tpu.dimension_semantics<parallel>, #tpu.dimension_semantics<parallel>, #tpu.dimension_semantics<arbitrary>], iteration_bounds = array<i64: 1, 2, 1>, scalar_prefetch = 0 : i64, scratch_operands = 1 : i64, tpu.core_type = #tpu.core_type<tc>, window_params = [{transform_indices = @transform_0, window_bounds = array<i64: 8, 256>}, {transform_indices = @transform_1, window_bounds = array<i64: 256, 256>}, {transform_indices = @transform_2, window_bounds = array<i64: 1, 256>}, {transform_indices = @transform_3, window_bounds = array<i64: 1, 256>}, {transform_indices = @transform_4, window_bounds = array<i64: 8, 256>}]} {
    %c0_i32 = arith.constant 0 : i32
    %0 = arith.cmpi eq, %arg2, %c0_i32 : i32
    %1 = arith.extui %0 : i1 to i32
    %c0_i32_0 = arith.constant 0 : i32
    %2 = arith.cmpi ne, %1, %c0_i32_0 : i32
    scf.if %2 {
      %cst_10 = arith.constant 0.000000e+00 : f32
      %12 = vector.broadcast %cst_10 : f32 to vector<8x256xf32>
      %c0_11 = arith.constant 0 : index
      %c0_12 = arith.constant 0 : index
      %13 = vector.load %arg8[%c0_11, %c0_12] : memref<8x256xf32, #tpu.memory_space<vmem>>, vector<8x256xf32>
      tpu.vector_store %arg8[%c0_11, %c0_12], %12 {strides = array<i32>} : memref<8x256xf32, #tpu.memory_space<vmem>>, vector<8x256xf32>,
    } else {
    }
    %c0 = arith.constant 0 : index
    %c0_1 = arith.constant 0 : index
    %3 = vector.load %arg8[%c0, %c0_1] : memref<8x256xf32, #tpu.memory_space<vmem>>, vector<8x256xf32>
    %c0_2 = arith.constant 0 : index
    %c0_3 = arith.constant 0 : index
    %4 = vector.load %arg3[%c0_2, %c0_3] : memref<8x256xbf16, #tpu.memory_space<vmem>>, vector<8x256xbf16>
    %c0_4 = arith.constant 0 : index
    %c0_5 = arith.constant 0 : index
    %5 = vector.load %arg4[%c0_4, %c0_5] : memref<256x256xbf16, #tpu.memory_space<vmem>>, vector<256x256xbf16>
    %cst = arith.constant dense<0.000000e+00> : vector<8x256xf32>
    %6 = tpu.matmul %4, %5, %cst {dimension_numbers = #tpu.dot_dimension_numbers<[1], [0], [0], [1], [0, 0, 1, 1], [], []>} : vector<8x256xbf16>, vector<256x256xbf16>, vector<8x256xf32> -> vector<8x256xf32>
    %7 = arith.addf %3, %6 : vector<8x256xf32>
    %c0_6 = arith.constant 0 : index
    %c0_7 = arith.constant 0 : index
    %8 = vector.load %arg8[%c0_6, %c0_7] : memref<8x256xf32, #tpu.memory_space<vmem>>, vector<8x256xf32>
    tpu.vector_store %arg8[%c0_6, %c0_7], %7 {strides = array<i32>} : memref<8x256xf32, #tpu.memory_space<vmem>>, vector<8x256xf32>,
    %c0_i32_8 = arith.constant 0 : i32
    %9 = arith.cmpi eq, %arg2, %c0_i32_8 : i32
    %10 = arith.extui %9 : i1 to i32
    %c0_i32_9 = arith.constant 0 : i32
    %11 = arith.cmpi ne, %10, %c0_i32_9 : i32
    scf.if %11 {
      %c0_10 = arith.constant 0 : index
      %c0_11 = arith.constant 0 : index
      %12 = vector.load %arg8[%c0_10, %c0_11] : memref<8x256xf32, #tpu.memory_space<vmem>>, vector<8x256xf32>
      %c0_12 = arith.constant 0 : index
      %c0_13 = arith.constant 0 : index
      %13 = vector.load %arg5[%c0_12, %c0_13] : memref<1x256xf32, #tpu.memory_space<vmem>>, vector<1x256xf32>
      %14 = vector.broadcast %13 : vector<1x256xf32> to vector<8x256xf32>
      %15 = arith.mulf %12, %14 : vector<8x256xf32>
      %c0_14 = arith.constant 0 : index
      %c0_15 = arith.constant 0 : index
      %16 = vector.load %arg6[%c0_14, %c0_15] : memref<1x256xf32, #tpu.memory_space<vmem>>, vector<1x256xf32>
      %17 = vector.broadcast %16 : vector<1x256xf32> to vector<8x256xf32>
      %18 = arith.addf %15, %17 : vector<8x256xf32>
      %19 = arith.truncf %18 : vector<8x256xf32> to vector<8x256xbf16>
      %c0_16 = arith.constant 0 : index
      %c0_17 = arith.constant 0 : index
      %20 = vector.load %arg7[%c0_16, %c0_17] : memref<8x256xbf16, #tpu.memory_space<vmem>>, vector<8x256xbf16>
      tpu.vector_store %arg7[%c0_16, %c0_17], %19 {strides = array<i32>} : memref<8x256xbf16, #tpu.memory_space<vmem>>, vector<8x256xbf16>,
    } else {
    }
    return
  }
  func.func @transform_0(%arg0: i32, %arg1: i32, %arg2: i32) -> (i32, i32) {
    %c0_i32 = arith.constant 0 : i32
    return %arg0, %arg2 : i32, i32
  }
  func.func @transform_1(%arg0: i32, %arg1: i32, %arg2: i32) -> (i32, i32) {
    %c0_i32 = arith.constant 0 : i32
    return %arg2, %arg1 : i32, i32
  }
  func.func @transform_2(%arg0: i32, %arg1: i32, %arg2: i32) -> (i32, i32) {
    %c0_i32 = arith.constant 0 : i32
    %c0_i32_0 = arith.constant 0 : i32
    return %c0_i32, %arg1 : i32, i32
  }
  func.func @transform_3(%arg0: i32, %arg1: i32, %arg2: i32) -> (i32, i32) {
    %c0_i32 = arith.constant 0 : i32
    %c0_i32_0 = arith.constant 0 : i32
    return %c0_i32, %arg1 : i32, i32
  }
  func.func @transform_4(%arg0: i32, %arg1: i32, %arg2: i32) -> (i32, i32) {
    %c0_i32 = arith.constant 0 : i32
    return %arg0, %arg1 : i32, i32
  }
}

module attributes {stable_mosaic.version = 11 : i64} {
  func.func @_fused_matmul_kernel(%arg0: i32, %arg1: i32, %arg2: i32, %arg3: memref<8x512xbf16, #tpu.memory_space<vmem>>, %arg4: memref<512x256xbf16, #tpu.memory_space<vmem>>, %arg5: memref<1x256xf32, #tpu.memory_space<vmem>>, %arg6: memref<1x256xf32, #tpu.memory_space<vmem>>, %arg7: memref<8x256xbf16, #tpu.memory_space<vmem>>, %arg8: memref<8x256xbf16, #tpu.memory_space<vmem>>, %arg9: memref<8x256xf32, #tpu.memory_space<vmem>>) attributes {dimension_semantics = [#tpu.dimension_semantics<parallel>, #tpu.dimension_semantics<parallel>, #tpu.dimension_semantics<arbitrary>], iteration_bounds = array<i64: 1, 2, 9>, scalar_prefetch = 0 : i64, scratch_operands = 1 : i64, tpu.core_type = #tpu.core_type<tc>, window_params = [{transform_indices = @transform_0, window_bounds = array<i64: 8, 512>}, {transform_indices = @transform_1, window_bounds = array<i64: 512, 256>}, {transform_indices = @transform_2, window_bounds = array<i64: 1, 256>}, {transform_indices = @transform_3, window_bounds = array<i64: 1, 256>}, {transform_indices = @transform_4, window_bounds = array<i64: 8, 256>}, {transform_indices = @transform_5, window_bounds = array<i64: 8, 256>}]} {
    %c0_i32 = arith.constant 0 : i32
    %0 = arith.cmpi eq, %arg2, %c0_i32 : i32
    %1 = arith.extui %0 : i1 to i32
    %c0_i32_0 = arith.constant 0 : i32
    %2 = arith.cmpi ne, %1, %c0_i32_0 : i32
    scf.if %2 {
      %cst_9 = arith.constant 0.000000e+00 : f32
      %12 = vector.broadcast %cst_9 : f32 to vector<8x256xf32>
      %c0_10 = arith.constant 0 : index
      %c0_11 = arith.constant 0 : index
      %13 = vector.load %arg9[%c0_10, %c0_11] : memref<8x256xf32, #tpu.memory_space<vmem>>, vector<8x256xf32>
      tpu.vector_store %arg9[%c0_10, %c0_11], %12 {strides = array<i32>} : memref<8x256xf32, #tpu.memory_space<vmem>>, vector<8x256xf32>,
    } else {
    }
    %c0 = arith.constant 0 : index
    %c0_1 = arith.constant 0 : index
    %3 = vector.load %arg9[%c0, %c0_1] : memref<8x256xf32, #tpu.memory_space<vmem>>, vector<8x256xf32>
    %c0_2 = arith.constant 0 : index
    %c0_3 = arith.constant 0 : index
    %4 = vector.load %arg3[%c0_2, %c0_3] : memref<8x512xbf16, #tpu.memory_space<vmem>>, vector<8x512xbf16>
    %c0_4 = arith.constant 0 : index
    %c0_5 = arith.constant 0 : index
    %5 = vector.load %arg4[%c0_4, %c0_5] : memref<512x256xbf16, #tpu.memory_space<vmem>>, vector<512x256xbf16>
    %cst = arith.constant dense<0.000000e+00> : vector<8x256xf32>
    %6 = tpu.matmul %4, %5, %cst {dimension_numbers = #tpu.dot_dimension_numbers<[1], [0], [0], [1], [0, 0, 1, 1], [], []>} : vector<8x512xbf16>, vector<512x256xbf16>, vector<8x256xf32> -> vector<8x256xf32>
    %7 = arith.addf %3, %6 : vector<8x256xf32>
    %c0_6 = arith.constant 0 : index
    %c0_7 = arith.constant 0 : index
    %8 = vector.load %arg9[%c0_6, %c0_7] : memref<8x256xf32, #tpu.memory_space<vmem>>, vector<8x256xf32>
    tpu.vector_store %arg9[%c0_6, %c0_7], %7 {strides = array<i32>} : memref<8x256xf32, #tpu.memory_space<vmem>>, vector<8x256xf32>,
    %c8_i32 = arith.constant 8 : i32
    %9 = arith.cmpi eq, %arg2, %c8_i32 : i32
    %10 = arith.extui %9 : i1 to i32
    %c0_i32_8 = arith.constant 0 : i32
    %11 = arith.cmpi ne, %10, %c0_i32_8 : i32
    scf.if %11 {
      %c0_9 = arith.constant 0 : index
      %c0_10 = arith.constant 0 : index
      %12 = vector.load %arg9[%c0_9, %c0_10] : memref<8x256xf32, #tpu.memory_space<vmem>>, vector<8x256xf32>
      %c0_11 = arith.constant 0 : index
      %c0_12 = arith.constant 0 : index
      %13 = vector.load %arg5[%c0_11, %c0_12] : memref<1x256xf32, #tpu.memory_space<vmem>>, vector<1x256xf32>
      %14 = vector.broadcast %13 : vector<1x256xf32> to vector<8x256xf32>
      %15 = arith.mulf %12, %14 : vector<8x256xf32>
      %c0_13 = arith.constant 0 : index
      %c0_14 = arith.constant 0 : index
      %16 = vector.load %arg6[%c0_13, %c0_14] : memref<1x256xf32, #tpu.memory_space<vmem>>, vector<1x256xf32>
      %17 = vector.broadcast %16 : vector<1x256xf32> to vector<8x256xf32>
      %18 = arith.addf %15, %17 : vector<8x256xf32>
      %c0_15 = arith.constant 0 : index
      %c0_16 = arith.constant 0 : index
      %19 = vector.load %arg7[%c0_15, %c0_16] : memref<8x256xbf16, #tpu.memory_space<vmem>>, vector<8x256xbf16>
      %20 = arith.extf %19 : vector<8x256xbf16> to vector<8x256xf32>
      %21 = arith.addf %18, %20 : vector<8x256xf32>
      %cst_17 = arith.constant 0.000000e+00 : f32
      %22 = vector.broadcast %cst_17 : f32 to vector<8x256xf32>
      %23 = arith.maximumf %21, %22 : vector<8x256xf32>
      %24 = arith.truncf %23 : vector<8x256xf32> to vector<8x256xbf16>
      %c0_18 = arith.constant 0 : index
      %c0_19 = arith.constant 0 : index
      %25 = vector.load %arg8[%c0_18, %c0_19] : memref<8x256xbf16, #tpu.memory_space<vmem>>, vector<8x256xbf16>
      tpu.vector_store %arg8[%c0_18, %c0_19], %24 {strides = array<i32>} : memref<8x256xbf16, #tpu.memory_space<vmem>>, vector<8x256xbf16>,
    } else {
    }
    return
  }
  func.func @transform_0(%arg0: i32, %arg1: i32, %arg2: i32) -> (i32, i32) {
    %c0_i32 = arith.constant 0 : i32
    return %arg0, %arg2 : i32, i32
  }
  func.func @transform_1(%arg0: i32, %arg1: i32, %arg2: i32) -> (i32, i32) {
    %c0_i32 = arith.constant 0 : i32
    return %arg2, %arg1 : i32, i32
  }
  func.func @transform_2(%arg0: i32, %arg1: i32, %arg2: i32) -> (i32, i32) {
    %c0_i32 = arith.constant 0 : i32
    %c0_i32_0 = arith.constant 0 : i32
    return %c0_i32, %arg1 : i32, i32
  }
  func.func @transform_3(%arg0: i32, %arg1: i32, %arg2: i32) -> (i32, i32) {
    %c0_i32 = arith.constant 0 : i32
    %c0_i32_0 = arith.constant 0 : i32
    return %c0_i32, %arg1 : i32, i32
  }
  func.func @transform_4(%arg0: i32, %arg1: i32, %arg2: i32) -> (i32, i32) {
    %c0_i32 = arith.constant 0 : i32
    return %arg0, %arg1 : i32, i32
  }
  func.func @transform_5(%arg0: i32, %arg1: i32, %arg2: i32) -> (i32, i32) {
    %c0_i32 = arith.constant 0 : i32
    return %arg0, %arg1 : i32, i32
  }
}

module attributes {stable_mosaic.version = 11 : i64} {
  func.func @_fused_matmul_kernel(%arg0: i32, %arg1: i32, %arg2: i32, %arg3: memref<8x512xbf16, #tpu.memory_space<vmem>>, %arg4: memref<512x256xbf16, #tpu.memory_space<vmem>>, %arg5: memref<1x256xf32, #tpu.memory_space<vmem>>, %arg6: memref<1x256xf32, #tpu.memory_space<vmem>>, %arg7: memref<8x256xbf16, #tpu.memory_space<vmem>>, %arg8: memref<8x256xf32, #tpu.memory_space<vmem>>) attributes {dimension_semantics = [#tpu.dimension_semantics<parallel>, #tpu.dimension_semantics<parallel>, #tpu.dimension_semantics<arbitrary>], iteration_bounds = array<i64: 1, 2, 9>, scalar_prefetch = 0 : i64, scratch_operands = 1 : i64, tpu.core_type = #tpu.core_type<tc>, window_params = [{transform_indices = @transform_0, window_bounds = array<i64: 8, 512>}, {transform_indices = @transform_1, window_bounds = array<i64: 512, 256>}, {transform_indices = @transform_2, window_bounds = array<i64: 1, 256>}, {transform_indices = @transform_3, window_bounds = array<i64: 1, 256>}, {transform_indices = @transform_4, window_bounds = array<i64: 8, 256>}]} {
    %c0_i32 = arith.constant 0 : i32
    %0 = arith.cmpi eq, %arg2, %c0_i32 : i32
    %1 = arith.extui %0 : i1 to i32
    %c0_i32_0 = arith.constant 0 : i32
    %2 = arith.cmpi ne, %1, %c0_i32_0 : i32
    scf.if %2 {
      %cst_9 = arith.constant 0.000000e+00 : f32
      %12 = vector.broadcast %cst_9 : f32 to vector<8x256xf32>
      %c0_10 = arith.constant 0 : index
      %c0_11 = arith.constant 0 : index
      %13 = vector.load %arg8[%c0_10, %c0_11] : memref<8x256xf32, #tpu.memory_space<vmem>>, vector<8x256xf32>
      tpu.vector_store %arg8[%c0_10, %c0_11], %12 {strides = array<i32>} : memref<8x256xf32, #tpu.memory_space<vmem>>, vector<8x256xf32>,
    } else {
    }
    %c0 = arith.constant 0 : index
    %c0_1 = arith.constant 0 : index
    %3 = vector.load %arg8[%c0, %c0_1] : memref<8x256xf32, #tpu.memory_space<vmem>>, vector<8x256xf32>
    %c0_2 = arith.constant 0 : index
    %c0_3 = arith.constant 0 : index
    %4 = vector.load %arg3[%c0_2, %c0_3] : memref<8x512xbf16, #tpu.memory_space<vmem>>, vector<8x512xbf16>
    %c0_4 = arith.constant 0 : index
    %c0_5 = arith.constant 0 : index
    %5 = vector.load %arg4[%c0_4, %c0_5] : memref<512x256xbf16, #tpu.memory_space<vmem>>, vector<512x256xbf16>
    %cst = arith.constant dense<0.000000e+00> : vector<8x256xf32>
    %6 = tpu.matmul %4, %5, %cst {dimension_numbers = #tpu.dot_dimension_numbers<[1], [0], [0], [1], [0, 0, 1, 1], [], []>} : vector<8x512xbf16>, vector<512x256xbf16>, vector<8x256xf32> -> vector<8x256xf32>
    %7 = arith.addf %3, %6 : vector<8x256xf32>
    %c0_6 = arith.constant 0 : index
    %c0_7 = arith.constant 0 : index
    %8 = vector.load %arg8[%c0_6, %c0_7] : memref<8x256xf32, #tpu.memory_space<vmem>>, vector<8x256xf32>
    tpu.vector_store %arg8[%c0_6, %c0_7], %7 {strides = array<i32>} : memref<8x256xf32, #tpu.memory_space<vmem>>, vector<8x256xf32>,
    %c8_i32 = arith.constant 8 : i32
    %9 = arith.cmpi eq, %arg2, %c8_i32 : i32
    %10 = arith.extui %9 : i1 to i32
    %c0_i32_8 = arith.constant 0 : i32
    %11 = arith.cmpi ne, %10, %c0_i32_8 : i32
    scf.if %11 {
      %c0_9 = arith.constant 0 : index
      %c0_10 = arith.constant 0 : index
      %12 = vector.load %arg8[%c0_9, %c0_10] : memref<8x256xf32, #tpu.memory_space<vmem>>, vector<8x256xf32>
      %c0_11 = arith.constant 0 : index
      %c0_12 = arith.constant 0 : index
      %13 = vector.load %arg5[%c0_11, %c0_12] : memref<1x256xf32, #tpu.memory_space<vmem>>, vector<1x256xf32>
      %14 = vector.broadcast %13 : vector<1x256xf32> to vector<8x256xf32>
      %15 = arith.mulf %12, %14 : vector<8x256xf32>
      %c0_13 = arith.constant 0 : index
      %c0_14 = arith.constant 0 : index
      %16 = vector.load %arg6[%c0_13, %c0_14] : memref<1x256xf32, #tpu.memory_space<vmem>>, vector<1x256xf32>
      %17 = vector.broadcast %16 : vector<1x256xf32> to vector<8x256xf32>
      %18 = arith.addf %15, %17 : vector<8x256xf32>
      %cst_15 = arith.constant 0.000000e+00 : f32
      %19 = vector.broadcast %cst_15 : f32 to vector<8x256xf32>
      %20 = arith.maximumf %18, %19 : vector<8x256xf32>
      %21 = arith.truncf %20 : vector<8x256xf32> to vector<8x256xbf16>
      %c0_16 = arith.constant 0 : index
      %c0_17 = arith.constant 0 : index
      %22 = vector.load %arg7[%c0_16, %c0_17] : memref<8x256xbf16, #tpu.memory_space<vmem>>, vector<8x256xbf16>
      tpu.vector_store %arg7[%c0_16, %c0_17], %21 {strides = array<i32>} : memref<8x256xbf16, #tpu.memory_space<vmem>>, vector<8x256xbf16>,
    } else {
    }
    return
  }
  func.func @transform_0(%arg0: i32, %arg1: i32, %arg2: i32) -> (i32, i32) {
    %c0_i32 = arith.constant 0 : i32
    return %arg0, %arg2 : i32, i32
  }
  func.func @transform_1(%arg0: i32, %arg1: i32, %arg2: i32) -> (i32, i32) {
    %c0_i32 = arith.constant 0 : i32
    return %arg2, %arg1 : i32, i32
  }
  func.func @transform_2(%arg0: i32, %arg1: i32, %arg2: i32) -> (i32, i32) {
    %c0_i32 = arith.constant 0 : i32
    %c0_i32_0 = arith.constant 0 : i32
    return %c0_i32, %arg1 : i32, i32
  }
  func.func @transform_3(%arg0: i32, %arg1: i32, %arg2: i32) -> (i32, i32) {
    %c0_i32 = arith.constant 0 : i32
    %c0_i32_0 = arith.constant 0 : i32
    return %c0_i32, %arg1 : i32, i32
  }
  func.func @transform_4(%arg0: i32, %arg1: i32, %arg2: i32) -> (i32, i32) {
    %c0_i32 = arith.constant 0 : i32
    return %arg0, %arg1 : i32, i32
  }
}

module attributes {stable_mosaic.version = 11 : i64} {
  func.func @_fused_head_kernel(%arg0: i32, %arg1: memref<2x512xf32, #tpu.memory_space<vmem>>, %arg2: memref<2x10xf32, #tpu.memory_space<vmem>>, %arg3: memref<512x256xbf16, #tpu.memory_space<vmem>>, %arg4: memref<1x256xf32, #tpu.memory_space<vmem>>, %arg5: memref<1x256xf32, #tpu.memory_space<vmem>>, %arg6: memref<256x128xbf16, #tpu.memory_space<vmem>>, %arg7: memref<1x128xf32, #tpu.memory_space<vmem>>, %arg8: memref<1x128xf32, #tpu.memory_space<vmem>>, %arg9: memref<10x128xbf16, #tpu.memory_space<vmem>>, %arg10: memref<1x128xf32, #tpu.memory_space<vmem>>, %arg11: memref<1x128xf32, #tpu.memory_space<vmem>>, %arg12: memref<128x64xbf16, #tpu.memory_space<vmem>>, %arg13: memref<1x64xf32, #tpu.memory_space<vmem>>, %arg14: memref<1x64xf32, #tpu.memory_space<vmem>>, %arg15: memref<128x128xbf16, #tpu.memory_space<vmem>>, %arg16: memref<64x128xbf16, #tpu.memory_space<vmem>>, %arg17: memref<1x128xf32, #tpu.memory_space<vmem>>, %arg18: memref<1x128xf32, #tpu.memory_space<vmem>>, %arg19: memref<128x64xbf16, #tpu.memory_space<vmem>>, %arg20: memref<1x64xf32, #tpu.memory_space<vmem>>, %arg21: memref<1x64xf32, #tpu.memory_space<vmem>>, %arg22: memref<64x32xbf16, #tpu.memory_space<vmem>>, %arg23: memref<1x32xf32, #tpu.memory_space<vmem>>, %arg24: memref<1x32xf32, #tpu.memory_space<vmem>>, %arg25: memref<32x128xbf16, #tpu.memory_space<vmem>>, %arg26: memref<1x128xf32, #tpu.memory_space<vmem>>, %arg27: memref<1x128xf32, #tpu.memory_space<vmem>>, %arg28: memref<2x128xf32, #tpu.memory_space<vmem>>) attributes {dimension_semantics = [#tpu.dimension_semantics<arbitrary>], iteration_bounds = array<i64: 1>, scalar_prefetch = 0 : i64, scratch_operands = 0 : i64, tpu.core_type = #tpu.core_type<tc>, window_params = [{pipeline_mode = #tpu.pipeline_mode<synchronous>, transform_indices = @transform_0, window_bounds = array<i64: 2, 512>}, {pipeline_mode = #tpu.pipeline_mode<synchronous>, transform_indices = @transform_1, window_bounds = array<i64: 2, 10>}, {pipeline_mode = #tpu.pipeline_mode<synchronous>, transform_indices = @transform_2, window_bounds = array<i64: 512, 256>}, {pipeline_mode = #tpu.pipeline_mode<synchronous>, transform_indices = @transform_3, window_bounds = array<i64: 1, 256>}, {pipeline_mode = #tpu.pipeline_mode<synchronous>, transform_indices = @transform_4, window_bounds = array<i64: 1, 256>}, {pipeline_mode = #tpu.pipeline_mode<synchronous>, transform_indices = @transform_5, window_bounds = array<i64: 256, 128>}, {pipeline_mode = #tpu.pipeline_mode<synchronous>, transform_indices = @transform_6, window_bounds = array<i64: 1, 128>}, {pipeline_mode = #tpu.pipeline_mode<synchronous>, transform_indices = @transform_7, window_bounds = array<i64: 1, 128>}, {pipeline_mode = #tpu.pipeline_mode<synchronous>, transform_indices = @transform_8, window_bounds = array<i64: 10, 128>}, {pipeline_mode = #tpu.pipeline_mode<synchronous>, transform_indices = @transform_9, window_bounds = array<i64: 1, 128>}, {pipeline_mode = #tpu.pipeline_mode<synchronous>, transform_indices = @transform_10, window_bounds = array<i64: 1, 128>}, {pipeline_mode = #tpu.pipeline_mode<synchronous>, transform_indices = @transform_11, window_bounds = array<i64: 128, 64>}, {pipeline_mode = #tpu.pipeline_mode<synchronous>, transform_indices = @transform_12, window_bounds = array<i64: 1, 64>}, {pipeline_mode = #tpu.pipeline_mode<synchronous>, transform_indices = @transform_13, window_bounds = array<i64: 1, 64>}, {pipeline_mode = #tpu.pipeline_mode<synchronous>, transform_indices = @transform_14, window_bounds = array<i64: 128, 128>}, {pipeline_mode = #tpu.pipeline_mode<synchronous>, transform_indices = @transform_15, window_bounds = array<i64: 64, 128>}, {pipeline_mode = #tpu.pipeline_mode<synchronous>, transform_indices = @transform_16, window_bounds = array<i64: 1, 128>}, {pipeline_mode = #tpu.pipeline_mode<synchronous>, transform_indices = @transform_17, window_bounds = array<i64: 1, 128>}, {pipeline_mode = #tpu.pipeline_mode<synchronous>, transform_indices = @transform_18, window_bounds = array<i64: 128, 64>}, {pipeline_mode = #tpu.pipeline_mode<synchronous>, transform_indices = @transform_19, window_bounds = array<i64: 1, 64>}, {pipeline_mode = #tpu.pipeline_mode<synchronous>, transform_indices = @transform_20, window_bounds = array<i64: 1, 64>}, {pipeline_mode = #tpu.pipeline_mode<synchronous>, transform_indices = @transform_21, window_bounds = array<i64: 64, 32>}, {pipeline_mode = #tpu.pipeline_mode<synchronous>, transform_indices = @transform_22, window_bounds = array<i64: 1, 32>}, {pipeline_mode = #tpu.pipeline_mode<synchronous>, transform_indices = @transform_23, window_bounds = array<i64: 1, 32>}, {pipeline_mode = #tpu.pipeline_mode<synchronous>, transform_indices = @transform_24, window_bounds = array<i64: 32, 128>}, {pipeline_mode = #tpu.pipeline_mode<synchronous>, transform_indices = @transform_25, window_bounds = array<i64: 1, 128>}, {pipeline_mode = #tpu.pipeline_mode<synchronous>, transform_indices = @transform_26, window_bounds = array<i64: 1, 128>}, {pipeline_mode = #tpu.pipeline_mode<synchronous>, transform_indices = @transform_27, window_bounds = array<i64: 2, 128>}]} {
    %c0 = arith.constant 0 : index
    %c0_0 = arith.constant 0 : index
    %0 = vector.load %arg1[%c0, %c0_0] : memref<2x512xf32, #tpu.memory_space<vmem>>, vector<2x512xf32>
    %1 = arith.truncf %0 : vector<2x512xf32> to vector<2x512xbf16>
    %c0_1 = arith.constant 0 : index
    %c0_2 = arith.constant 0 : index
    %2 = vector.load %arg3[%c0_1, %c0_2] : memref<512x256xbf16, #tpu.memory_space<vmem>>, vector<512x256xbf16>
    %cst = arith.constant dense<0.000000e+00> : vector<2x256xf32>
    %3 = tpu.matmul %1, %2, %cst {dimension_numbers = #tpu.dot_dimension_numbers<[1], [0], [0], [1], [0, 0, 1, 1], [], []>} : vector<2x512xbf16>, vector<512x256xbf16>, vector<2x256xf32> -> vector<2x256xf32>
    %c0_3 = arith.constant 0 : index
    %c0_4 = arith.constant 0 : index
    %4 = vector.load %arg4[%c0_3, %c0_4] : memref<1x256xf32, #tpu.memory_space<vmem>>, vector<1x256xf32>
    %5 = vector.broadcast %4 : vector<1x256xf32> to vector<2x256xf32>
    %6 = arith.mulf %3, %5 : vector<2x256xf32>
    %c0_5 = arith.constant 0 : index
    %c0_6 = arith.constant 0 : index
    %7 = vector.load %arg5[%c0_5, %c0_6] : memref<1x256xf32, #tpu.memory_space<vmem>>, vector<1x256xf32>
    %8 = vector.broadcast %7 : vector<1x256xf32> to vector<2x256xf32>
    %9 = arith.addf %6, %8 : vector<2x256xf32>
    %cst_7 = arith.constant 0.000000e+00 : f32
    %10 = vector.broadcast %cst_7 : f32 to vector<2x256xf32>
    %11 = arith.maximumf %9, %10 : vector<2x256xf32>
    %12 = arith.truncf %11 : vector<2x256xf32> to vector<2x256xbf16>
    %c0_8 = arith.constant 0 : index
    %c0_9 = arith.constant 0 : index
    %13 = vector.load %arg6[%c0_8, %c0_9] : memref<256x128xbf16, #tpu.memory_space<vmem>>, vector<256x128xbf16>
    %cst_10 = arith.constant dense<0.000000e+00> : vector<2x128xf32>
    %14 = tpu.matmul %12, %13, %cst_10 {dimension_numbers = #tpu.dot_dimension_numbers<[1], [0], [0], [1], [0, 0, 1, 1], [], []>} : vector<2x256xbf16>, vector<256x128xbf16>, vector<2x128xf32> -> vector<2x128xf32>
    %c0_11 = arith.constant 0 : index
    %c0_12 = arith.constant 0 : index
    %15 = vector.load %arg7[%c0_11, %c0_12] : memref<1x128xf32, #tpu.memory_space<vmem>>, vector<1x128xf32>
    %16 = vector.broadcast %15 : vector<1x128xf32> to vector<2x128xf32>
    %17 = arith.mulf %14, %16 : vector<2x128xf32>
    %c0_13 = arith.constant 0 : index
    %c0_14 = arith.constant 0 : index
    %18 = vector.load %arg8[%c0_13, %c0_14] : memref<1x128xf32, #tpu.memory_space<vmem>>, vector<1x128xf32>
    %19 = vector.broadcast %18 : vector<1x128xf32> to vector<2x128xf32>
    %20 = arith.addf %17, %19 : vector<2x128xf32>
    %cst_15 = arith.constant 0.000000e+00 : f32
    %21 = vector.broadcast %cst_15 : f32 to vector<2x128xf32>
    %22 = arith.maximumf %20, %21 : vector<2x128xf32>
    %c0_16 = arith.constant 0 : index
    %c0_17 = arith.constant 0 : index
    %23 = vector.load %arg2[%c0_16, %c0_17] : memref<2x10xf32, #tpu.memory_space<vmem>>, vector<2x10xf32>
    %24 = arith.truncf %23 : vector<2x10xf32> to vector<2x10xbf16>
    %c0_18 = arith.constant 0 : index
    %c0_19 = arith.constant 0 : index
    %25 = vector.load %arg9[%c0_18, %c0_19] : memref<10x128xbf16, #tpu.memory_space<vmem>>, vector<10x128xbf16>
    %cst_20 = arith.constant dense<0.000000e+00> : vector<2x128xf32>
    %26 = tpu.matmul %24, %25, %cst_20 {dimension_numbers = #tpu.dot_dimension_numbers<[1], [0], [0], [1], [0, 0, 1, 1], [], []>} : vector<2x10xbf16>, vector<10x128xbf16>, vector<2x128xf32> -> vector<2x128xf32>
    %c0_21 = arith.constant 0 : index
    %c0_22 = arith.constant 0 : index
    %27 = vector.load %arg10[%c0_21, %c0_22] : memref<1x128xf32, #tpu.memory_space<vmem>>, vector<1x128xf32>
    %28 = vector.broadcast %27 : vector<1x128xf32> to vector<2x128xf32>
    %29 = arith.mulf %26, %28 : vector<2x128xf32>
    %c0_23 = arith.constant 0 : index
    %c0_24 = arith.constant 0 : index
    %30 = vector.load %arg11[%c0_23, %c0_24] : memref<1x128xf32, #tpu.memory_space<vmem>>, vector<1x128xf32>
    %31 = vector.broadcast %30 : vector<1x128xf32> to vector<2x128xf32>
    %32 = arith.addf %29, %31 : vector<2x128xf32>
    %cst_25 = arith.constant 0.000000e+00 : f32
    %33 = vector.broadcast %cst_25 : f32 to vector<2x128xf32>
    %34 = arith.maximumf %32, %33 : vector<2x128xf32>
    %35 = arith.truncf %34 : vector<2x128xf32> to vector<2x128xbf16>
    %c0_26 = arith.constant 0 : index
    %c0_27 = arith.constant 0 : index
    %36 = vector.load %arg12[%c0_26, %c0_27] : memref<128x64xbf16, #tpu.memory_space<vmem>>, vector<128x64xbf16>
    %cst_28 = arith.constant dense<0.000000e+00> : vector<2x64xf32>
    %37 = tpu.matmul %35, %36, %cst_28 {dimension_numbers = #tpu.dot_dimension_numbers<[1], [0], [0], [1], [0, 0, 1, 1], [], []>} : vector<2x128xbf16>, vector<128x64xbf16>, vector<2x64xf32> -> vector<2x64xf32>
    %c0_29 = arith.constant 0 : index
    %c0_30 = arith.constant 0 : index
    %38 = vector.load %arg13[%c0_29, %c0_30] : memref<1x64xf32, #tpu.memory_space<vmem>>, vector<1x64xf32>
    %39 = vector.broadcast %38 : vector<1x64xf32> to vector<2x64xf32>
    %40 = arith.mulf %37, %39 : vector<2x64xf32>
    %c0_31 = arith.constant 0 : index
    %c0_32 = arith.constant 0 : index
    %41 = vector.load %arg14[%c0_31, %c0_32] : memref<1x64xf32, #tpu.memory_space<vmem>>, vector<1x64xf32>
    %42 = vector.broadcast %41 : vector<1x64xf32> to vector<2x64xf32>
    %43 = arith.addf %40, %42 : vector<2x64xf32>
    %cst_33 = arith.constant 0.000000e+00 : f32
    %44 = vector.broadcast %cst_33 : f32 to vector<2x64xf32>
    %45 = arith.maximumf %43, %44 : vector<2x64xf32>
    %46 = arith.truncf %22 : vector<2x128xf32> to vector<2x128xbf16>
    %c0_34 = arith.constant 0 : index
    %c0_35 = arith.constant 0 : index
    %47 = vector.load %arg15[%c0_34, %c0_35] : memref<128x128xbf16, #tpu.memory_space<vmem>>, vector<128x128xbf16>
    %cst_36 = arith.constant dense<0.000000e+00> : vector<2x128xf32>
    %48 = tpu.matmul %46, %47, %cst_36 {dimension_numbers = #tpu.dot_dimension_numbers<[1], [0], [0], [1], [0, 0, 1, 1], [], []>} : vector<2x128xbf16>, vector<128x128xbf16>, vector<2x128xf32> -> vector<2x128xf32>
    %49 = arith.truncf %45 : vector<2x64xf32> to vector<2x64xbf16>
    %c0_37 = arith.constant 0 : index
    %c0_38 = arith.constant 0 : index
    %50 = vector.load %arg16[%c0_37, %c0_38] : memref<64x128xbf16, #tpu.memory_space<vmem>>, vector<64x128xbf16>
    %cst_39 = arith.constant dense<0.000000e+00> : vector<2x128xf32>
    %51 = tpu.matmul %49, %50, %cst_39 {dimension_numbers = #tpu.dot_dimension_numbers<[1], [0], [0], [1], [0, 0, 1, 1], [], []>} : vector<2x64xbf16>, vector<64x128xbf16>, vector<2x128xf32> -> vector<2x128xf32>
    %52 = arith.addf %48, %51 : vector<2x128xf32>
    %c0_40 = arith.constant 0 : index
    %c0_41 = arith.constant 0 : index
    %53 = vector.load %arg17[%c0_40, %c0_41] : memref<1x128xf32, #tpu.memory_space<vmem>>, vector<1x128xf32>
    %54 = vector.broadcast %53 : vector<1x128xf32> to vector<2x128xf32>
    %55 = arith.mulf %52, %54 : vector<2x128xf32>
    %c0_42 = arith.constant 0 : index
    %c0_43 = arith.constant 0 : index
    %56 = vector.load %arg18[%c0_42, %c0_43] : memref<1x128xf32, #tpu.memory_space<vmem>>, vector<1x128xf32>
    %57 = vector.broadcast %56 : vector<1x128xf32> to vector<2x128xf32>
    %58 = arith.addf %55, %57 : vector<2x128xf32>
    %cst_44 = arith.constant 0.000000e+00 : f32
    %59 = vector.broadcast %cst_44 : f32 to vector<2x128xf32>
    %60 = arith.maximumf %58, %59 : vector<2x128xf32>
    %61 = arith.truncf %60 : vector<2x128xf32> to vector<2x128xbf16>
    %c0_45 = arith.constant 0 : index
    %c0_46 = arith.constant 0 : index
    %62 = vector.load %arg19[%c0_45, %c0_46] : memref<128x64xbf16, #tpu.memory_space<vmem>>, vector<128x64xbf16>
    %cst_47 = arith.constant dense<0.000000e+00> : vector<2x64xf32>
    %63 = tpu.matmul %61, %62, %cst_47 {dimension_numbers = #tpu.dot_dimension_numbers<[1], [0], [0], [1], [0, 0, 1, 1], [], []>} : vector<2x128xbf16>, vector<128x64xbf16>, vector<2x64xf32> -> vector<2x64xf32>
    %c0_48 = arith.constant 0 : index
    %c0_49 = arith.constant 0 : index
    %64 = vector.load %arg20[%c0_48, %c0_49] : memref<1x64xf32, #tpu.memory_space<vmem>>, vector<1x64xf32>
    %65 = vector.broadcast %64 : vector<1x64xf32> to vector<2x64xf32>
    %66 = arith.mulf %63, %65 : vector<2x64xf32>
    %c0_50 = arith.constant 0 : index
    %c0_51 = arith.constant 0 : index
    %67 = vector.load %arg21[%c0_50, %c0_51] : memref<1x64xf32, #tpu.memory_space<vmem>>, vector<1x64xf32>
    %68 = vector.broadcast %67 : vector<1x64xf32> to vector<2x64xf32>
    %69 = arith.addf %66, %68 : vector<2x64xf32>
    %cst_52 = arith.constant 0.000000e+00 : f32
    %70 = vector.broadcast %cst_52 : f32 to vector<2x64xf32>
    %71 = arith.maximumf %69, %70 : vector<2x64xf32>
    %72 = arith.truncf %71 : vector<2x64xf32> to vector<2x64xbf16>
    %c0_53 = arith.constant 0 : index
    %c0_54 = arith.constant 0 : index
    %73 = vector.load %arg22[%c0_53, %c0_54] : memref<64x32xbf16, #tpu.memory_space<vmem>>, vector<64x32xbf16>
    %cst_55 = arith.constant dense<0.000000e+00> : vector<2x32xf32>
    %74 = tpu.matmul %72, %73, %cst_55 {dimension_numbers = #tpu.dot_dimension_numbers<[1], [0], [0], [1], [0, 0, 1, 1], [], []>} : vector<2x64xbf16>, vector<64x32xbf16>, vector<2x32xf32> -> vector<2x32xf32>
    %c0_56 = arith.constant 0 : index
    %c0_57 = arith.constant 0 : index
    %75 = vector.load %arg23[%c0_56, %c0_57] : memref<1x32xf32, #tpu.memory_space<vmem>>, vector<1x32xf32>
    %76 = vector.broadcast %75 : vector<1x32xf32> to vector<2x32xf32>
    %77 = arith.mulf %74, %76 : vector<2x32xf32>
    %c0_58 = arith.constant 0 : index
    %c0_59 = arith.constant 0 : index
    %78 = vector.load %arg24[%c0_58, %c0_59] : memref<1x32xf32, #tpu.memory_space<vmem>>, vector<1x32xf32>
    %79 = vector.broadcast %78 : vector<1x32xf32> to vector<2x32xf32>
    %80 = arith.addf %77, %79 : vector<2x32xf32>
    %cst_60 = arith.constant 0.000000e+00 : f32
    %81 = vector.broadcast %cst_60 : f32 to vector<2x32xf32>
    %82 = arith.maximumf %80, %81 : vector<2x32xf32>
    %83 = arith.truncf %82 : vector<2x32xf32> to vector<2x32xbf16>
    %c0_61 = arith.constant 0 : index
    %c0_62 = arith.constant 0 : index
    %84 = vector.load %arg25[%c0_61, %c0_62] : memref<32x128xbf16, #tpu.memory_space<vmem>>, vector<32x128xbf16>
    %cst_63 = arith.constant dense<0.000000e+00> : vector<2x128xf32>
    %85 = tpu.matmul %83, %84, %cst_63 {dimension_numbers = #tpu.dot_dimension_numbers<[1], [0], [0], [1], [0, 0, 1, 1], [], []>} : vector<2x32xbf16>, vector<32x128xbf16>, vector<2x128xf32> -> vector<2x128xf32>
    %c0_64 = arith.constant 0 : index
    %c0_65 = arith.constant 0 : index
    %86 = vector.load %arg26[%c0_64, %c0_65] : memref<1x128xf32, #tpu.memory_space<vmem>>, vector<1x128xf32>
    %87 = vector.broadcast %86 : vector<1x128xf32> to vector<2x128xf32>
    %88 = arith.mulf %85, %87 : vector<2x128xf32>
    %c0_66 = arith.constant 0 : index
    %c0_67 = arith.constant 0 : index
    %89 = vector.load %arg27[%c0_66, %c0_67] : memref<1x128xf32, #tpu.memory_space<vmem>>, vector<1x128xf32>
    %90 = vector.broadcast %89 : vector<1x128xf32> to vector<2x128xf32>
    %91 = arith.addf %88, %90 : vector<2x128xf32>
    %c0_68 = arith.constant 0 : index
    %c0_69 = arith.constant 0 : index
    %92 = vector.load %arg28[%c0_68, %c0_69] : memref<2x128xf32, #tpu.memory_space<vmem>>, vector<2x128xf32>
    tpu.vector_store %arg28[%c0_68, %c0_69], %91 {strides = array<i32>} : memref<2x128xf32, #tpu.memory_space<vmem>>, vector<2x128xf32>,
    return
  }
  func.func @transform_0(%arg0: i32) -> (i32, i32) {
    %c0_i32 = arith.constant 0 : i32
    %c0_i32_0 = arith.constant 0 : i32
    %c0_i32_1 = arith.constant 0 : i32
    return %c0_i32, %c0_i32_0 : i32, i32
  }
  func.func @transform_1(%arg0: i32) -> (i32, i32) {
    %c0_i32 = arith.constant 0 : i32
    %c0_i32_0 = arith.constant 0 : i32
    %c0_i32_1 = arith.constant 0 : i32
    return %c0_i32, %c0_i32_0 : i32, i32
  }
  func.func @transform_2(%arg0: i32) -> (i32, i32) {
    %c0_i32 = arith.constant 0 : i32
    %c0_i32_0 = arith.constant 0 : i32
    %c0_i32_1 = arith.constant 0 : i32
    return %c0_i32, %c0_i32_0 : i32, i32
  }
  func.func @transform_3(%arg0: i32) -> (i32, i32) {
    %c0_i32 = arith.constant 0 : i32
    %c0_i32_0 = arith.constant 0 : i32
    %c0_i32_1 = arith.constant 0 : i32
    return %c0_i32, %c0_i32_0 : i32, i32
  }
  func.func @transform_4(%arg0: i32) -> (i32, i32) {
    %c0_i32 = arith.constant 0 : i32
    %c0_i32_0 = arith.constant 0 : i32
    %c0_i32_1 = arith.constant 0 : i32
    return %c0_i32, %c0_i32_0 : i32, i32
  }
  func.func @transform_5(%arg0: i32) -> (i32, i32) {
    %c0_i32 = arith.constant 0 : i32
    %c0_i32_0 = arith.constant 0 : i32
    %c0_i32_1 = arith.constant 0 : i32
    return %c0_i32, %c0_i32_0 : i32, i32
  }
  func.func @transform_6(%arg0: i32) -> (i32, i32) {
    %c0_i32 = arith.constant 0 : i32
    %c0_i32_0 = arith.constant 0 : i32
    %c0_i32_1 = arith.constant 0 : i32
    return %c0_i32, %c0_i32_0 : i32, i32
  }
  func.func @transform_7(%arg0: i32) -> (i32, i32) {
    %c0_i32 = arith.constant 0 : i32
    %c0_i32_0 = arith.constant 0 : i32
    %c0_i32_1 = arith.constant 0 : i32
    return %c0_i32, %c0_i32_0 : i32, i32
  }
  func.func @transform_8(%arg0: i32) -> (i32, i32) {
    %c0_i32 = arith.constant 0 : i32
    %c0_i32_0 = arith.constant 0 : i32
    %c0_i32_1 = arith.constant 0 : i32
    return %c0_i32, %c0_i32_0 : i32, i32
  }
  func.func @transform_9(%arg0: i32) -> (i32, i32) {
    %c0_i32 = arith.constant 0 : i32
    %c0_i32_0 = arith.constant 0 : i32
    %c0_i32_1 = arith.constant 0 : i32
    return %c0_i32, %c0_i32_0 : i32, i32
  }
  func.func @transform_10(%arg0: i32) -> (i32, i32) {
    %c0_i32 = arith.constant 0 : i32
    %c0_i32_0 = arith.constant 0 : i32
    %c0_i32_1 = arith.constant 0 : i32
    return %c0_i32, %c0_i32_0 : i32, i32
  }
  func.func @transform_11(%arg0: i32) -> (i32, i32) {
    %c0_i32 = arith.constant 0 : i32
    %c0_i32_0 = arith.constant 0 : i32
    %c0_i32_1 = arith.constant 0 : i32
    return %c0_i32, %c0_i32_0 : i32, i32
  }
  func.func @transform_12(%arg0: i32) -> (i32, i32) {
    %c0_i32 = arith.constant 0 : i32
    %c0_i32_0 = arith.constant 0 : i32
    %c0_i32_1 = arith.constant 0 : i32
    return %c0_i32, %c0_i32_0 : i32, i32
  }
  func.func @transform_13(%arg0: i32) -> (i32, i32) {
    %c0_i32 = arith.constant 0 : i32
    %c0_i32_0 = arith.constant 0 : i32
    %c0_i32_1 = arith.constant 0 : i32
    return %c0_i32, %c0_i32_0 : i32, i32
  }
  func.func @transform_14(%arg0: i32) -> (i32, i32) {
    %c0_i32 = arith.constant 0 : i32
    %c0_i32_0 = arith.constant 0 : i32
    %c0_i32_1 = arith.constant 0 : i32
    return %c0_i32, %c0_i32_0 : i32, i32
  }
  func.func @transform_15(%arg0: i32) -> (i32, i32) {
    %c0_i32 = arith.constant 0 : i32
    %c0_i32_0 = arith.constant 0 : i32
    %c0_i32_1 = arith.constant 0 : i32
    return %c0_i32, %c0_i32_0 : i32, i32
  }
  func.func @transform_16(%arg0: i32) -> (i32, i32) {
    %c0_i32 = arith.constant 0 : i32
    %c0_i32_0 = arith.constant 0 : i32
    %c0_i32_1 = arith.constant 0 : i32
    return %c0_i32, %c0_i32_0 : i32, i32
  }
  func.func @transform_17(%arg0: i32) -> (i32, i32) {
    %c0_i32 = arith.constant 0 : i32
    %c0_i32_0 = arith.constant 0 : i32
    %c0_i32_1 = arith.constant 0 : i32
    return %c0_i32, %c0_i32_0 : i32, i32
  }
  func.func @transform_18(%arg0: i32) -> (i32, i32) {
    %c0_i32 = arith.constant 0 : i32
    %c0_i32_0 = arith.constant 0 : i32
    %c0_i32_1 = arith.constant 0 : i32
    return %c0_i32, %c0_i32_0 : i32, i32
  }
  func.func @transform_19(%arg0: i32) -> (i32, i32) {
    %c0_i32 = arith.constant 0 : i32
    %c0_i32_0 = arith.constant 0 : i32
    %c0_i32_1 = arith.constant 0 : i32
    return %c0_i32, %c0_i32_0 : i32, i32
  }
  func.func @transform_20(%arg0: i32) -> (i32, i32) {
    %c0_i32 = arith.constant 0 : i32
    %c0_i32_0 = arith.constant 0 : i32
    %c0_i32_1 = arith.constant 0 : i32
    return %c0_i32, %c0_i32_0 : i32, i32
  }
  func.func @transform_21(%arg0: i32) -> (i32, i32) {
    %c0_i32 = arith.constant 0 : i32
    %c0_i32_0 = arith.constant 0 : i32
    %c0_i32_1 = arith.constant 0 : i32
    return %c0_i32, %c0_i32_0 : i32, i32
  }
  func.func @transform_22(%arg0: i32) -> (i32, i32) {
    %c0_i32 = arith.constant 0 : i32
    %c0_i32_0 = arith.constant 0 : i32
    %c0_i32_1 = arith.constant 0 : i32
    return %c0_i32, %c0_i32_0 : i32, i32
  }
  func.func @transform_23(%arg0: i32) -> (i32, i32) {
    %c0_i32 = arith.constant 0 : i32
    %c0_i32_0 = arith.constant 0 : i32
    %c0_i32_1 = arith.constant 0 : i32
    return %c0_i32, %c0_i32_0 : i32, i32
  }
  func.func @transform_24(%arg0: i32) -> (i32, i32) {
    %c0_i32 = arith.constant 0 : i32
    %c0_i32_0 = arith.constant 0 : i32
    %c0_i32_1 = arith.constant 0 : i32
    return %c0_i32, %c0_i32_0 : i32, i32
  }
  func.func @transform_25(%arg0: i32) -> (i32, i32) {
    %c0_i32 = arith.constant 0 : i32
    %c0_i32_0 = arith.constant 0 : i32
    %c0_i32_1 = arith.constant 0 : i32
    return %c0_i32, %c0_i32_0 : i32, i32
  }
  func.func @transform_26(%arg0: i32) -> (i32, i32) {
    %c0_i32 = arith.constant 0 : i32
    %c0_i32_0 = arith.constant 0 : i32
    %c0_i32_1 = arith.constant 0 : i32
    return %c0_i32, %c0_i32_0 : i32, i32
  }
  func.func @transform_27(%arg0: i32) -> (i32, i32) {
    %c0_i32 = arith.constant 0 : i32
    %c0_i32_0 = arith.constant 0 : i32
    %c0_i32_1 = arith.constant 0 : i32
    return %c0_i32, %c0_i32_0 : i32, i32
  }
}

</mosaic_0001>

<bundles_post_ra>
// kernel: _lambda_.21
= control target key start
LH: loop header
LB: loop body
LE: loop exit
PB: predicated region body
PF: predicated region fallthrough
CT: control target
= control target key end

     0   :  { %s1843_s15 = smov 0   ;;  %s1845_s16 = smov 0   ;;  %s2054_s0 = inlined_call_operand.vmem [shape: bf16[512,256], index: 0, kind: input, shape index: {}]   ;;  %s2055_s1 = inlined_call_operand.vmem [shape: bf16[256,128], index: 1, kind: input, shape index: {}]   ;;  %s2056_s2 = inlined_call_operand.vmem [shape: f32[1,128], index: 2, kind: input, shape index: {}]   ;;  %s2057_s3 = inlined_call_operand.vmem [shape: f32[1,128], index: 3, kind: input, shape index: {}]   ;;  %s2058_s4 = inlined_call_operand.vmem [shape: bf16[512,128], index: 4, kind: output, shape index: {}]  }
   0x1   :  { %s1847_s17 = smov 0  }
   0x2 LB: > { %s33_s18 = sadd.s32 1, %s1812_s16  ;;  %p1360_p0 = scmp.ge.s32.totalorder %s1816_s17, 1  ;;  %s1816_s17 = sphi %s1847_s17, %s14_s17   ;;  %s1812_s16 = sphi %s1845_s16, %s2060_s16   ;;  %s1808_s15 = sphi %s1843_s15, %s2059_s15  }
   0x3   : > { %p35_p1 = scmp.ge.s32.totalorder %s33_s18, 2  ;;  %p224_p2 = scmp.lt.s32.totalorder %s1816_s17, 3 }
   0x5   : > { %s2062_s18 = smov (%p35_p1, %s33_s18), 0  ;;  %p225_p3 = pnand %p1360_p0, %p224_p2 }
   0x6   : > { %v1730_v0 = vld [vmem:[%s2055_s1 + $0x40] sm:$0xff] (!%p225_p3)   ;;  %s1361_s21 = sshll.u32 (!%p225_p3), %s1808_s15, 5  ;;  %v1732_v2 = vld [vmem:[%s2055_s1 + $0x48] sm:$0xff] (!%p225_p3)   ;;  %v1734_v4 = vld [vmem:[%s2055_s1 + $0x50] sm:$0xff] (!%p225_p3)  }
   0x7   : > { %228 = sbr.rel (%p225_p3) target bundleno = 322 (0x142), region = 36  ;;  %v1731_v1 = vld [vmem:[%s2055_s1] sm:$0xff] (!%p225_p3)   ;;  %1578 = vmatprep.subr.bf16.mxu0 (!%p225_p3), %v1730_v0  ;;  %1690 = vmatprep.subr.bf16.mxu1 (!%p225_p3), %v1730_v0  ;;  %v1733_v3 = vld [vmem:[%s2055_s1 + $0x8] sm:$0xff] (!%p225_p3)   ;;  %p274_p4 = scmp.lt.s32.totalorder (!%p225_p3), %s1361_s21, 63  ;;  %v1735_v5 = vld [vmem:[%s2055_s1 + $0x10] sm:$0xff] (!%p225_p3)  }
   0x8   : > { %1579 = vmatpush3.bf16.msra.mxu0 (!%p225_p3), %v1731_v1  ;;  %1698 = vmatpush3.bf16.msra.mxu1 (!%p225_p3), %v1731_v1  ;;  %v1736_v6 = vld [vmem:[%s2055_s1 + $0x58] sm:$0xff] (!%p225_p3)   ;;  %v1738_v8 = vld [vmem:[%s2055_s1 + $0x60] sm:$0xff] (!%p225_p3)   ;;  %v1740_v10 = vld [vmem:[%s2055_s1 + $0x68] sm:$0xff] (!%p225_p3)  }
   0x9   : > { %1580 = vmatprep.subr.bf16.mxu0 (!%p225_p3), %v1732_v2  ;;  %1691 = vmatprep.subr.bf16.mxu1 (!%p225_p3), %v1732_v2  ;;  %v1737_v7 = vld [vmem:[%s2055_s1 + $0x18] sm:$0xff] (!%p225_p3)   ;;  %v1739_v9 = vld [vmem:[%s2055_s1 + $0x20] sm:$0xff] (!%p225_p3)   ;;  %v1741_v13 = vld [vmem:[%s2055_s1 + $0x28] sm:$0xff] (!%p225_p3)  }
   0xa   : > { %v1742_v14 = vld [vmem:[%s2055_s1 + $0x70] sm:$0xff] (!%p225_p3)   ;;  %v1744_v16 = vld [vmem:[%s2055_s1 + $0x78] sm:$0xff] (!%p225_p3)   ;;  %v1952_v51 = vld [vmem:[%s2056_s2] ss:$0 sm:$0xff] (!%p225_p3) }
   0xb   : > { %v1743_v15 = vld [vmem:[%s2055_s1 + $0x30] sm:$0xff] (!%p225_p3)   ;;  %v1745_v17 = vld [vmem:[%s2055_s1 + $0x38] sm:$0xff] (!%p225_p3)   ;;  %v1957_v57 = vld [vmem:[%s2057_s3] ss:$0 sm:$0xff] (!%p225_p3) }
   0xc   : > { %1581 = vmatpush3.bf16.msra.mxu0 (!%p225_p3), %v1733_v3  ;;  %1699 = vmatpush3.bf16.msra.mxu1 (!%p225_p3), %v1733_v3 }
   0xd   : > { %1582 = vmatprep.subr.bf16.mxu0 (!%p225_p3), %v1734_v4  ;;  %1692 = vmatprep.subr.bf16.mxu1 (!%p225_p3), %v1734_v4 }
   0xe   : > { %s2064_s21 = smov (!%p274_p4, %s1361_s21), 63 }
   0xf   : > { %s1450_s10 = sshll.u32 %s2064_s21, 3  ;;  %s1365_s12 = sshll.u32 %s2064_s21, 2 }
  0x10   : > { %1583 = vmatpush3.bf16.msra.mxu0 %v1735_v5  ;;  %1700 = vmatpush3.bf16.msra.mxu1 %v1735_v5  ;;  %s1894_s15 = scalar_lea.vmem %s2054_s0, %s1450_s10  ;;  %s1971_s21 = scalar_lea.vmem %s2058_s4, %s1365_s12 }
  0x11   : > { %1584 = vmatprep.subr.bf16.mxu0 %v1736_v6  ;;  %1693 = vmatprep.subr.bf16.mxu1 %v1736_v6  ;;  %v1748_v11 = vld [vmem:[%s1894_s15 + $0x4] ss:$8 sps:$4 sm:$0xff]   ;;  %v1746_v18 = vld [vmem:[%s1894_s15] ss:$8 sps:$4 sm:$0xff]   ;;  %v1752_v20 = vld [vmem:[%s1894_s15 + $0x14] ss:$8 sps:$4 sm:$0xff]  }
  0x12   : > { %v1751_v12 = vld [vmem:[%s1894_s15 + $0x84] ss:$8 sps:$4 sm:$0xff]   ;;  %729 = vmatprep.mubr.bf16.mxu0 %v1748_v11  ;;  %v1749_v19 = vld [vmem:[%s1894_s15 + $0x80] ss:$8 sps:$4 sm:$0xff]   ;;  %v1754_v21 = vld [vmem:[%s1894_s15 + $0x94] ss:$8 sps:$4 sm:$0xff]  }
  0x13   : > { %793 = vmatprep.mubr.bf16.mxu1 %v1751_v12  ;;  %v1756_v22 = vld [vmem:[%s1894_s15 + $0x10] ss:$8 sps:$4 sm:$0xff]   ;;  %v1758_v24 = vld [vmem:[%s1894_s15 + $0x24] ss:$8 sps:$4 sm:$0xff]   ;;  %v1762_v26 = vld [vmem:[%s1894_s15 + $0x20] ss:$8 sps:$4 sm:$0xff]  }
  0x14   : > { %1585 = vmatpush3.bf16.msra.mxu0 %v1737_v7  ;;  %1701 = vmatpush3.bf16.msra.mxu1 %v1737_v7  ;;  %v1757_v23 = vld [vmem:[%s1894_s15 + $0x90] ss:$8 sps:$4 sm:$0xff]   ;;  %v1760_v25 = vld [vmem:[%s1894_s15 + $0xa4] ss:$8 sps:$4 sm:$0xff]   ;;  %v1763_v27 = vld [vmem:[%s1894_s15 + $0xa0] ss:$8 sps:$4 sm:$0xff]  }
  0x15   : > { %1586 = vmatprep.subr.bf16.mxu0 %v1738_v8  ;;  %1694 = vmatprep.subr.bf16.mxu1 %v1738_v8  ;;  %v1764_v28 = vld [vmem:[%s1894_s15 + $0x34] ss:$8 sps:$4 sm:$0xff]   ;;  %v1768_v30 = vld [vmem:[%s1894_s15 + $0x30] ss:$8 sps:$4 sm:$0xff]   ;;  %v1770_v32 = vld [vmem:[%s1894_s15 + $0x44] ss:$8 sps:$4 sm:$0xff]  }
  0x16   : > { %v1766_v29 = vld [vmem:[%s1894_s15 + $0xb4] ss:$8 sps:$4 sm:$0xff]   ;;  %v1769_v31 = vld [vmem:[%s1894_s15 + $0xb0] ss:$8 sps:$4 sm:$0xff]   ;;  %v1772_v33 = vld [vmem:[%s1894_s15 + $0xc4] ss:$8 sps:$4 sm:$0xff]  }
  0x17   : > { %v1774_v34 = vld [vmem:[%s1894_s15 + $0x40] ss:$8 sps:$4 sm:$0xff]   ;;  %v1776_v36 = vld [vmem:[%s1894_s15 + $0x54] ss:$8 sps:$4 sm:$0xff]   ;;  %v1780_v38 = vld [vmem:[%s1894_s15 + $0x50] ss:$8 sps:$4 sm:$0xff]  }
  0x18   : > { %1587 = vmatpush3.bf16.msra.mxu0 %v1739_v9  ;;  %1702 = vmatpush3.bf16.msra.mxu1 %v1739_v9  ;;  %v1775_v35 = vld [vmem:[%s1894_s15 + $0xc0] ss:$8 sps:$4 sm:$0xff]   ;;  %v1778_v37 = vld [vmem:[%s1894_s15 + $0xd4] ss:$8 sps:$4 sm:$0xff]   ;;  %v1781_v39 = vld [vmem:[%s1894_s15 + $0xd0] ss:$8 sps:$4 sm:$0xff]  }
  0x19   : > { %1588 = vmatprep.subr.bf16.mxu0 %v1740_v10  ;;  %1695 = vmatprep.subr.bf16.mxu1 %v1740_v10  ;;  %v1782_v40 = vld [vmem:[%s1894_s15 + $0x64] ss:$8 sps:$4 sm:$0xff]   ;;  %v1786_v42 = vld [vmem:[%s1894_s15 + $0x60] ss:$8 sps:$4 sm:$0xff]   ;;  %v1788_v44 = vld [vmem:[%s1894_s15 + $0x74] ss:$8 sps:$4 sm:$0xff]  }
  0x1a   : > { %v1784_v41 = vld [vmem:[%s1894_s15 + $0xe4] ss:$8 sps:$4 sm:$0xff]   ;;  %v1787_v43 = vld [vmem:[%s1894_s15 + $0xe0] ss:$8 sps:$4 sm:$0xff]   ;;  %v1790_v45 = vld [vmem:[%s1894_s15 + $0xf4] ss:$8 sps:$4 sm:$0xff]  }
  0x1b   : > { %v1792_v46 = vld [vmem:[%s1894_s15 + $0x70] ss:$8 sps:$4 sm:$0xff]  }
  0x1c   : > { %1589 = vmatpush3.bf16.msra.mxu0 %v1741_v13  ;;  %1703 = vmatpush3.bf16.msra.mxu1 %v1741_v13  ;;  %v1793_v47 = vld [vmem:[%s1894_s15 + $0xf0] ss:$8 sps:$4 sm:$0xff]  }
  0x1d   : > { %1590 = vmatprep.subr.bf16.mxu0 %v1742_v14  ;;  %1696 = vmatprep.subr.bf16.mxu1 %v1742_v14 }
  0x20   : > { %1591 = vmatpush3.bf16.msra.mxu0 %v1743_v15  ;;  %1704 = vmatpush3.bf16.msra.mxu1 %v1743_v15 }
  0x21   : > { %1592 = vmatprep.subr.bf16.mxu0 %v1744_v16  ;;  %1697 = vmatprep.subr.bf16.mxu1 %v1744_v16 }
  0x24   : > { %1593 = vmatpush3.bf16.msra.mxu0 %v1745_v17  ;;  %1705 = vmatpush3.bf16.msra.mxu1 %v1745_v17 }
  0x27   : > { %730 = vmatmul.mubr.bf16.vlgmr.msra.gmra.mrb[0].mxu0 %v1746_v18  ;;  %794 = vmatmul.mubr.bf16.vlgmr.msra.gmra.mrb[0].mxu1 %v1749_v19 }
  0x28   : > { %737 = vmatprep.mubr.bf16.mxu0 %v1752_v20  ;;  %801 = vmatprep.mubr.bf16.mxu1 %v1754_v21 }
  0x2f   : > { %738 = vmatmul.mubr.bf16.gmra.mrb[4].mxu0 %v1756_v22  ;;  %802 = vmatmul.mubr.bf16.gmra.mrb[4].mxu1 %v1757_v23 }
  0x30   : > { %745 = vmatprep.mubr.bf16.mxu0 %v1758_v24  ;;  %809 = vmatprep.mubr.bf16.mxu1 %v1760_v25 }
  0x37   : > { %746 = vmatmul.mubr.bf16.gmra.mrb[8].mxu0 %v1762_v26  ;;  %810 = vmatmul.mubr.bf16.gmra.mrb[8].mxu1 %v1763_v27 }
  0x38   : > { %753 = vmatprep.mubr.bf16.mxu0 %v1764_v28  ;;  %817 = vmatprep.mubr.bf16.mxu1 %v1766_v29 }
  0x3f   : > { %754 = vmatmul.mubr.bf16.gmra.mrb[12].mxu0 %v1768_v30  ;;  %818 = vmatmul.mubr.bf16.gmra.mrb[12].mxu1 %v1769_v31 }
  0x40   : > { %761 = vmatprep.mubr.bf16.mxu0 %v1770_v32  ;;  %825 = vmatprep.mubr.bf16.mxu1 %v1772_v33 }
  0x47   : > { %762 = vmatmul.mubr.bf16.gmra.mrb[16].mxu0 %v1774_v34  ;;  %826 = vmatmul.mubr.bf16.gmra.mrb[16].mxu1 %v1775_v35 }
  0x48   : > { %769 = vmatprep.mubr.bf16.mxu0 %v1776_v36  ;;  %833 = vmatprep.mubr.bf16.mxu1 %v1778_v37 }
  0x4f   : > { %770 = vmatmul.mubr.bf16.gmra.mrb[20].mxu0 %v1780_v38  ;;  %834 = vmatmul.mubr.bf16.gmra.mrb[20].mxu1 %v1781_v39 }
  0x50   : > { %777 = vmatprep.mubr.bf16.mxu0 %v1782_v40  ;;  %841 = vmatprep.mubr.bf16.mxu1 %v1784_v41 }
  0x57   : > { %778 = vmatmul.mubr.bf16.gmra.mrb[24].mxu0 %v1786_v42  ;;  %842 = vmatmul.mubr.bf16.gmra.mrb[24].mxu1 %v1787_v43 }
  0x58   : > { %785 = vmatprep.mubr.bf16.mxu0 %v1788_v44  ;;  %849 = vmatprep.mubr.bf16.mxu1 %v1790_v45 }
  0x5f   : > { %786 = vmatmul.mubr.bf16.gmra.mrb[28].mxu0 %v1792_v46  ;;  %850 = vmatmul.mubr.bf16.gmra.mrb[28].mxu1 %v1793_v47 }
  0xfa   : > { %v1594_v48 = vpop.f32.mrb[0].mxu0  ;;  %v1642_v49 = vpop.f32.mrb[0].mxu1 }
  0xfb   : > { %v1595_v50 = vpop.f32.mrb[1].mxu0  ;;  %v1643_v52 = vpop.f32.mrb[1].mxu1 }
  0xfc   : > { %v1596_v53 = vadd.f32 %v1595_v50, %v1594_v48  ;;  %v1644_v54 = vadd.f32 %v1643_v52, %v1642_v49  ;;  %v1597_v55 = vpop.f32.mrb[2].mxu0  ;;  %v1645_v56 = vpop.f32.mrb[2].mxu1 }
  0xfd   : > { %v1598_v58 = vpop.f32.mrb[3].mxu0  ;;  %v1646_v59 = vpop.f32.mrb[3].mxu1 }
  0xfe   : > { %v964_v60 = vmul.f32 %v1596_v53, %v1952_v51  ;;  %v980_v61 = vmul.f32 %v1644_v54, %v1952_v51  ;;  %v1599_v62 = vadd.f32 %v1598_v58, %v1597_v55  ;;  %v1647_v63 = vadd.f32 %v1646_v59, %v1645_v56 }
 0x100   : > { %v1003_v0 = vadd.f32 %v1957_v57, %v964_v60  ;;  %v1019_v1 = vadd.f32 %v1957_v57, %v980_v61  ;;  %v965_v2 = vmul.f32 %v1599_v62, %v1952_v51  ;;  %v981_v3 = vmul.f32 %v1647_v63, %v1952_v51 }
 0x102   : > { %v1004_v4 = vadd.f32 %v1957_v57, %v965_v2  ;;  %v1020_v5 = vadd.f32 %v1957_v57, %v981_v3  ;;  %v1600_v6 = vpop.f32.mrb[4].mxu0  ;;  %v1648_v7 = vpop.f32.mrb[4].mxu1  ;;  %v1035_v8 = vmax.f32 %v1003_v0, 0.0  ;;  %v1051_v9 = vmax.f32 %v1019_v1, 0.0 }
 0x103   : > { %v1601_v10 = vpop.f32.mrb[5].mxu0  ;;  %v1649_v11 = vpop.f32.mrb[5].mxu1 }
 0x104   : > { %v1036_v12 = vmax.f32 %v1004_v4, 0.0  ;;  %v1052_v13 = vmax.f32 %v1020_v5, 0.0  ;;  %v1602_v14 = vadd.f32 %v1601_v10, %v1600_v6  ;;  %v1650_v15 = vadd.f32 %v1649_v11, %v1648_v7  ;;  %v1603_v16 = vpop.f32.mrb[6].mxu0  ;;  %v1651_v17 = vpop.f32.mrb[6].mxu1 }
 0x105   : > { %v1604_v18 = vpop.f32.mrb[7].mxu0  ;;  %v1652_v19 = vpop.f32.mrb[7].mxu1 }
 0x106   : > { %v1486_v20 = vpack.c.bf16 %v1036_v12, %v1035_v8  ;;  %v1526_v21 = vpack.c.bf16 %v1052_v13, %v1051_v9  ;;  %v966_v22 = vmul.f32 %v1602_v14, %v1952_v51  ;;  %v982_v23 = vmul.f32 %v1650_v15, %v1952_v51 }
 0x107   : > { %v1605_v24 = vadd.f32 %v1604_v18, %v1603_v16  ;;  %v1653_v25 = vadd.f32 %v1652_v19, %v1651_v17 }
 0x108   : > { %1487 = vst [vmem:[%s1971_s21] sm:$0xff] %v1486_v20   ;;  %1570 = vst [vmem:[%s1971_s21 + $0x40] sm:$0xff] %v1526_v21   ;;  %v1005_v26 = vadd.f32 %v1957_v57, %v966_v22  ;;  %v1021_v27 = vadd.f32 %v1957_v57, %v982_v23 }
 0x109   : > { %v967_v28 = vmul.f32 %v1605_v24, %v1952_v51  ;;  %v983_v29 = vmul.f32 %v1653_v25, %v1952_v51 }
 0x10a   : > { %v1606_v30 = vpop.f32.mrb[8].mxu0  ;;  %v1654_v31 = vpop.f32.mrb[8].mxu1  ;;  %v1037_v40 = vmax.f32 %v1005_v26, 0.0  ;;  %v1053_v41 = vmax.f32 %v1021_v27, 0.0 }
 0x10b   : > { %v1006_v32 = vadd.f32 %v1957_v57, %v967_v28  ;;  %v1022_v33 = vadd.f32 %v1957_v57, %v983_v29  ;;  %v1607_v34 = vpop.f32.mrb[9].mxu0  ;;  %v1655_v35 = vpop.f32.mrb[9].mxu1 }
 0x10c   : > { %v1608_v36 = vadd.f32 %v1607_v34, %v1606_v30  ;;  %v1656_v37 = vadd.f32 %v1655_v35, %v1654_v31  ;;  %v1609_v38 = vpop.f32.mrb[10].mxu0  ;;  %v1657_v39 = vpop.f32.mrb[10].mxu1 }
 0x10d   : > { %v1038_v42 = vmax.f32 %v1006_v32, 0.0  ;;  %v1054_v43 = vmax.f32 %v1022_v33, 0.0  ;;  %v1610_v44 = vpop.f32.mrb[11].mxu0  ;;  %v1658_v45 = vpop.f32.mrb[11].mxu1 }
 0x10e   : > { %v968_v46 = vmul.f32 %v1608_v36, %v1952_v51  ;;  %v984_v47 = vmul.f32 %v1656_v37, %v1952_v51  ;;  %v1611_v48 = vadd.f32 %v1610_v44, %v1609_v38  ;;  %v1659_v49 = vadd.f32 %v1658_v45, %v1657_v39 }
 0x10f   : > { %v1491_v50 = vpack.c.bf16 %v1038_v42, %v1037_v40  ;;  %v1531_v52 = vpack.c.bf16 %v1054_v43, %v1053_v41 }
 0x110   : > { %v1007_v53 = vadd.f32 %v1957_v57, %v968_v46  ;;  %v1023_v54 = vadd.f32 %v1957_v57, %v984_v47  ;;  %v969_v55 = vmul.f32 %v1611_v48, %v1952_v51  ;;  %v985_v56 = vmul.f32 %v1659_v49, %v1952_v51 }
 0x111   : > { %1563 = vst [vmem:[%s1971_s21 + $0x8] sm:$0xff] %v1491_v50   ;;  %1571 = vst [vmem:[%s1971_s21 + $0x48] sm:$0xff] %v1531_v52  }
 0x112   : > { %v1008_v58 = vadd.f32 %v1957_v57, %v969_v55  ;;  %v1024_v59 = vadd.f32 %v1957_v57, %v985_v56  ;;  %v1612_v60 = vpop.f32.mrb[12].mxu0  ;;  %v1660_v61 = vpop.f32.mrb[12].mxu1  ;;  %v1039_v62 = vmax.f32 %v1007_v53, 0.0  ;;  %v1055_v63 = vmax.f32 %v1023_v54, 0.0 }
 0x113   : > { %v1613_v0 = vpop.f32.mrb[13].mxu0  ;;  %v1661_v1 = vpop.f32.mrb[13].mxu1 }
 0x114   : > { %v1040_v2 = vmax.f32 %v1008_v58, 0.0  ;;  %v1056_v3 = vmax.f32 %v1024_v59, 0.0  ;;  %v1614_v4 = vadd.f32 %v1613_v0, %v1612_v60  ;;  %v1662_v5 = vadd.f32 %v1661_v1, %v1660_v61  ;;  %v1615_v6 = vpop.f32.mrb[14].mxu0  ;;  %v1663_v7 = vpop.f32.mrb[14].mxu1 }
 0x115   : > { %v1616_v8 = vpop.f32.mrb[15].mxu0  ;;  %v1664_v9 = vpop.f32.mrb[15].mxu1 }
 0x116   : > { %v1496_v10 = vpack.c.bf16 %v1040_v2, %v1039_v62  ;;  %v1536_v11 = vpack.c.bf16 %v1056_v3, %v1055_v63  ;;  %v970_v12 = vmul.f32 %v1614_v4, %v1952_v51  ;;  %v986_v13 = vmul.f32 %v1662_v5, %v1952_v51 }
 0x117   : > { %v1617_v14 = vadd.f32 %v1616_v8, %v1615_v6  ;;  %v1665_v15 = vadd.f32 %v1664_v9, %v1663_v7 }
 0x118   : > { %1564 = vst [vmem:[%s1971_s21 + $0x10] sm:$0xff] %v1496_v10   ;;  %1572 = vst [vmem:[%s1971_s21 + $0x50] sm:$0xff] %v1536_v11   ;;  %v1009_v16 = vadd.f32 %v1957_v57, %v970_v12  ;;  %v1025_v17 = vadd.f32 %v1957_v57, %v986_v13 }
 0x119   : > { %v971_v18 = vmul.f32 %v1617_v14, %v1952_v51  ;;  %v987_v19 = vmul.f32 %v1665_v15, %v1952_v51 }
 0x11a   : > { %v1618_v20 = vpop.f32.mrb[16].mxu0  ;;  %v1666_v21 = vpop.f32.mrb[16].mxu1  ;;  %v1041_v30 = vmax.f32 %v1009_v16, 0.0  ;;  %v1057_v31 = vmax.f32 %v1025_v17, 0.0 }
 0x11b   : > { %v1010_v22 = vadd.f32 %v1957_v57, %v971_v18  ;;  %v1026_v23 = vadd.f32 %v1957_v57, %v987_v19  ;;  %v1619_v24 = vpop.f32.mrb[17].mxu0  ;;  %v1667_v25 = vpop.f32.mrb[17].mxu1 }
 0x11c   : > { %v1620_v26 = vadd.f32 %v1619_v24, %v1618_v20  ;;  %v1668_v27 = vadd.f32 %v1667_v25, %v1666_v21  ;;  %v1621_v28 = vpop.f32.mrb[18].mxu0  ;;  %v1669_v29 = vpop.f32.mrb[18].mxu1 }
 0x11d   : > { %v1042_v32 = vmax.f32 %v1010_v22, 0.0  ;;  %v1058_v33 = vmax.f32 %v1026_v23, 0.0  ;;  %v1622_v34 = vpop.f32.mrb[19].mxu0  ;;  %v1670_v35 = vpop.f32.mrb[19].mxu1 }
 0x11e   : > { %v972_v36 = vmul.f32 %v1620_v26, %v1952_v51  ;;  %v988_v37 = vmul.f32 %v1668_v27, %v1952_v51  ;;  %v1623_v38 = vadd.f32 %v1622_v34, %v1621_v28  ;;  %v1671_v39 = vadd.f32 %v1670_v35, %v1669_v29 }
 0x11f   : > { %v1501_v40 = vpack.c.bf16 %v1042_v32, %v1041_v30  ;;  %v1541_v41 = vpack.c.bf16 %v1058_v33, %v1057_v31 }
 0x120   : > { %v1011_v42 = vadd.f32 %v1957_v57, %v972_v36  ;;  %v1027_v43 = vadd.f32 %v1957_v57, %v988_v37  ;;  %v973_v44 = vmul.f32 %v1623_v38, %v1952_v51  ;;  %v989_v45 = vmul.f32 %v1671_v39, %v1952_v51 }
 0x121   : > { %1565 = vst [vmem:[%s1971_s21 + $0x18] sm:$0xff] %v1501_v40   ;;  %1573 = vst [vmem:[%s1971_s21 + $0x58] sm:$0xff] %v1541_v41  }
 0x122   : > { %v1012_v46 = vadd.f32 %v1957_v57, %v973_v44  ;;  %v1028_v47 = vadd.f32 %v1957_v57, %v989_v45  ;;  %v1624_v48 = vpop.f32.mrb[20].mxu0  ;;  %v1672_v49 = vpop.f32.mrb[20].mxu1  ;;  %v1043_v50 = vmax.f32 %v1011_v42, 0.0  ;;  %v1059_v52 = vmax.f32 %v1027_v43, 0.0 }
 0x123   : > { %v1625_v53 = vpop.f32.mrb[21].mxu0  ;;  %v1673_v54 = vpop.f32.mrb[21].mxu1 }
 0x124   : > { %v1044_v55 = vmax.f32 %v1012_v46, 0.0  ;;  %v1060_v56 = vmax.f32 %v1028_v47, 0.0  ;;  %v1626_v58 = vadd.f32 %v1625_v53, %v1624_v48  ;;  %v1674_v59 = vadd.f32 %v1673_v54, %v1672_v49  ;;  %v1627_v60 = vpop.f32.mrb[22].mxu0  ;;  %v1675_v61 = vpop.f32.mrb[22].mxu1 }
 0x125   : > { %v1628_v62 = vpop.f32.mrb[23].mxu0  ;;  %v1676_v63 = vpop.f32.mrb[23].mxu1 }
 0x126   : > { %v1506_v0 = vpack.c.bf16 %v1044_v55, %v1043_v50  ;;  %v1546_v1 = vpack.c.bf16 %v1060_v56, %v1059_v52  ;;  %v974_v2 = vmul.f32 %v1626_v58, %v1952_v51  ;;  %v990_v3 = vmul.f32 %v1674_v59, %v1952_v51 }
 0x127   : > { %v1629_v4 = vadd.f32 %v1628_v62, %v1627_v60  ;;  %v1677_v5 = vadd.f32 %v1676_v63, %v1675_v61 }
 0x128   : > { %1566 = vst [vmem:[%s1971_s21 + $0x20] sm:$0xff] %v1506_v0   ;;  %1574 = vst [vmem:[%s1971_s21 + $0x60] sm:$0xff] %v1546_v1   ;;  %v1013_v6 = vadd.f32 %v1957_v57, %v974_v2  ;;  %v1029_v7 = vadd.f32 %v1957_v57, %v990_v3 }
 0x129   : > { %v975_v8 = vmul.f32 %v1629_v4, %v1952_v51  ;;  %v991_v9 = vmul.f32 %v1677_v5, %v1952_v51 }
 0x12a   : > { %v1630_v10 = vpop.f32.mrb[24].mxu0  ;;  %v1678_v11 = vpop.f32.mrb[24].mxu1  ;;  %v1045_v20 = vmax.f32 %v1013_v6, 0.0  ;;  %v1061_v21 = vmax.f32 %v1029_v7, 0.0 }
 0x12b   : > { %v1014_v12 = vadd.f32 %v1957_v57, %v975_v8  ;;  %v1030_v13 = vadd.f32 %v1957_v57, %v991_v9  ;;  %v1631_v14 = vpop.f32.mrb[25].mxu0  ;;  %v1679_v15 = vpop.f32.mrb[25].mxu1 }
 0x12c   : > { %v1632_v16 = vadd.f32 %v1631_v14, %v1630_v10  ;;  %v1680_v17 = vadd.f32 %v1679_v15, %v1678_v11  ;;  %v1633_v18 = vpop.f32.mrb[26].mxu0  ;;  %v1681_v19 = vpop.f32.mrb[26].mxu1 }
 0x12d   : > { %v1046_v22 = vmax.f32 %v1014_v12, 0.0  ;;  %v1062_v23 = vmax.f32 %v1030_v13, 0.0  ;;  %v1634_v24 = vpop.f32.mrb[27].mxu0  ;;  %v1682_v25 = vpop.f32.mrb[27].mxu1 }
 0x12e   : > { %v976_v26 = vmul.f32 %v1632_v16, %v1952_v51  ;;  %v992_v27 = vmul.f32 %v1680_v17, %v1952_v51  ;;  %v1635_v28 = vadd.f32 %v1634_v24, %v1633_v18  ;;  %v1683_v29 = vadd.f32 %v1682_v25, %v1681_v19 }
 0x12f   : > { %v1511_v30 = vpack.c.bf16 %v1046_v22, %v1045_v20  ;;  %v1551_v31 = vpack.c.bf16 %v1062_v23, %v1061_v21 }
 0x130   : > { %v1015_v32 = vadd.f32 %v1957_v57, %v976_v26  ;;  %v1031_v33 = vadd.f32 %v1957_v57, %v992_v27  ;;  %v977_v34 = vmul.f32 %v1635_v28, %v1952_v51  ;;  %v993_v35 = vmul.f32 %v1683_v29, %v1952_v51 }
 0x131   : > { %1567 = vst [vmem:[%s1971_s21 + $0x28] sm:$0xff] %v1511_v30   ;;  %1575 = vst [vmem:[%s1971_s21 + $0x68] sm:$0xff] %v1551_v31  }
 0x132   : > { %v1016_v36 = vadd.f32 %v1957_v57, %v977_v34  ;;  %v1032_v37 = vadd.f32 %v1957_v57, %v993_v35  ;;  %v1636_v38 = vpop.f32.mrb[28].mxu0  ;;  %v1684_v39 = vpop.f32.mrb[28].mxu1  ;;  %v1047_v40 = vmax.f32 %v1015_v32, 0.0  ;;  %v1063_v41 = vmax.f32 %v1031_v33, 0.0 }
 0x133   : > { %v1637_v42 = vpop.f32.mrb[29].mxu0  ;;  %v1685_v43 = vpop.f32.mrb[29].mxu1 }
 0x134   : > { %v1048_v44 = vmax.f32 %v1016_v36, 0.0  ;;  %v1064_v45 = vmax.f32 %v1032_v37, 0.0  ;;  %v1638_v46 = vadd.f32 %v1637_v42, %v1636_v38  ;;  %v1686_v47 = vadd.f32 %v1685_v43, %v1684_v39  ;;  %v1639_v48 = vpop.f32.mrb[30].mxu0  ;;  %v1687_v49 = vpop.f32.mrb[30].mxu1 }
 0x135   : > { %v1640_v50 = vpop.f32.mrb[31].mxu0  ;;  %v1688_v52 = vpop.f32.mrb[31].mxu1 }
 0x136   : > { %v1516_v53 = vpack.c.bf16 %v1048_v44, %v1047_v40  ;;  %v1556_v54 = vpack.c.bf16 %v1064_v45, %v1063_v41  ;;  %v978_v55 = vmul.f32 %v1638_v46, %v1952_v51  ;;  %v994_v56 = vmul.f32 %v1686_v47, %v1952_v51 }
 0x137   : > { %v1641_v58 = vadd.f32 %v1640_v50, %v1639_v48  ;;  %v1689_v59 = vadd.f32 %v1688_v52, %v1687_v49 }
 0x138   : > { %1568 = vst [vmem:[%s1971_s21 + $0x30] sm:$0xff] %v1516_v53   ;;  %1576 = vst [vmem:[%s1971_s21 + $0x70] sm:$0xff] %v1556_v54   ;;  %v1017_v60 = vadd.f32 %v1957_v57, %v978_v55  ;;  %v1033_v61 = vadd.f32 %v1957_v57, %v994_v56 }
 0x139   : > { %v979_v62 = vmul.f32 %v1641_v58, %v1952_v51  ;;  %v995_v63 = vmul.f32 %v1689_v59, %v1952_v51 }
 0x13a   : > { %v1049_v2 = vmax.f32 %v1017_v60, 0.0  ;;  %v1065_v3 = vmax.f32 %v1033_v61, 0.0 }
 0x13b   : > { %v1018_v0 = vadd.f32 %v1957_v57, %v979_v62  ;;  %v1034_v1 = vadd.f32 %v1957_v57, %v995_v63 }
 0x13d   : > { %v1050_v4 = vmax.f32 %v1018_v0, 0.0  ;;  %v1066_v5 = vmax.f32 %v1034_v1, 0.0 }
 0x13f   : > { %v1521_v6 = vpack.c.bf16 %v1050_v4, %v1049_v2  ;;  %v1561_v7 = vpack.c.bf16 %v1066_v5, %v1065_v3 }
 0x141   : > { %1569 = vst [vmem:[%s1971_s21 + $0x38] sm:$0xff] %v1521_v6   ;;  %1577 = vst [vmem:[%s1971_s21 + $0x78] sm:$0xff] %v1561_v7  }
 0x142 PF: > { %s14_s17 = sadd.s32 1, %s1816_s17   ;;  %s2059_s15 = smov %s1812_s16 }
 0x143   : > { %p11_p5 = scmp.ge.s32.totalorder %s14_s17, 4   ;;  %s2060_s16 = smov %s2062_s18 }
 0x145   :  { %13 = sbr.rel (!%p11_p5) target bundleno = 2 (0x2), region = 83 }

// kernel: _lambda_.22
= control target key start
LH: loop header
LB: loop body
LE: loop exit
PB: predicated region body
PF: predicated region fallthrough
CT: control target
= control target key end

     0   :  { %s1742_s15 = smov 0   ;;  %s1744_s16 = smov 0   ;;  %s1995_s0 = inlined_call_operand.vmem [shape: bf16[128,768], index: 0, kind: input, shape index: {}]   ;;  %s1996_s1 = inlined_call_operand.vmem [shape: bf16[768,128], index: 1, kind: input, shape index: {}]   ;;  %s1997_s2 = inlined_call_operand.vmem [shape: f32[1,128], index: 2, kind: input, shape index: {}]   ;;  %s1998_s3 = inlined_call_operand.vmem [shape: f32[1,128], index: 3, kind: input, shape index: {}]   ;;  %s1999_s4 = inlined_call_operand.vmem [shape: bf16[128,128], index: 4, kind: output, shape index: {}]  }
   0x1   :  { %s1746_s17 = smov 0   ;;  %s1748_s18 = smov 0  }
   0x2   :  { %s1750_s19 = smov 0  }
   0x3 LB: > { %s26_s20 = sadd.s32 1, %s1710_s18  ;;  %p49_p1 = scmp.ne.s32.totalorder %s1702_s16, %s1698_s15  ;;  %s1714_s19 = sphi %s1750_s19, %s14_s19   ;;  %s1710_s18 = sphi %s1748_s18, %s2003_s18   ;;  %s1706_s17 = sphi %s1746_s17, %s2002_s17   ;;  %s1702_s16 = sphi %s1744_s16, %s2001_s16   ;;  %s1698_s15 = sphi %s1742_s15, %s2000_s15  }
   0x4   : > { %p27_p0 = scmp.ge.s32.totalorder %s26_s20, 2  ;;  %p50_p2 = scmp.eq.s32.totalorder %s1714_s19, 0 }
   0x5   : > { %s42_s22 = sadd.s32 1, %s1702_s16  ;;  %p1293_p5 = scmp.ge.s32.totalorder %s1714_s19, 2 }
   0x6   : > { %s2005_s20 = smov (%p27_p0, %s26_s20), 0  ;;  %p51_p3 = por %p50_p2, %p49_p1 }
   0x7   : > { %s38_s21 = ssub.s32 %s1710_s18, %s2005_s20  ;;  %195 = sbr.rel (%p1293_p5) target bundleno = 37 (0x25), region = 24 }
   0x8   : > { %p40_p4 = scmp.eq.s32.totalorder %s38_s21, 0 }
   0xa   : > { %s1777_s23 = scalar_select %p40_p4, %s1702_s16, %s42_s22  }
   0xe   : > { %198 = sbr.rel (!%p51_p3) target bundleno = 37 (0x25), region = 28  ;;  %s200_s24 = sand.u32 (%p51_p3), 1, %s1702_s16  }
   0xf   : > { %s1401_s25 = smul.u32 (%p51_p3), 12, %s1710_s18 }
  0x10   : > { %s1577_s26 = smul.u32 (%p51_p3), 192, %s200_s24 }
  0x11   : > { %s1785_s29 = scalar_lea.vmem (%p51_p3), %s1995_s0, %s1401_s25 }
  0x12   : > { %v223_v0 = vld [vmem:[%s1785_s29] sm:$0xff] (%p51_p3)  ;;  %v225_v1 = vld [vmem:[%s1785_s29 + $0x18] sm:$0xff] (%p51_p3)  ;;  %v227_v2 = vld [vmem:[%s1785_s29 + $0x30] sm:$0xff] (%p51_p3)  ;;  %s1790_s30 = scalar_lea.vmem (%p51_p3), [#allocation3], %s1577_s26 }
  0x13   : > { %224 = vst [vmem:[%s1790_s30] sm:$0xff] (%p51_p3), %v223_v0  ;;  %226 = vst [vmem:[%s1790_s30 + $0xc] sm:$0xff] (%p51_p3), %v225_v1  ;;  %v229_v3 = vld [vmem:[%s1785_s29 + $0x48] sm:$0xff] (%p51_p3)  ;;  %v231_v4 = vld [vmem:[%s1785_s29 + $0x60] sm:$0xff] (%p51_p3) }
  0x14   : > { %228 = vst [vmem:[%s1790_s30 + $0x18] sm:$0xff] (%p51_p3), %v227_v2  ;;  %v233_v5 = vld [vmem:[%s1785_s29 + $0x78] sm:$0xff] (%p51_p3)  ;;  %230 = vst [vmem:[%s1790_s30 + $0x24] sm:$0xff] (%p51_p3), %v229_v3  ;;  %v235_v6 = vld [vmem:[%s1785_s29 + $0x90] sm:$0xff] (%p51_p3) }
  0x15   : > { %232 = vst [vmem:[%s1790_s30 + $0x30] sm:$0xff] %v231_v4  ;;  %234 = vst [vmem:[%s1790_s30 + $0x3c] sm:$0xff] %v233_v5  ;;  %v237_v7 = vld [vmem:[%s1785_s29 + $0xa8] sm:$0xff]  ;;  %v239_v8 = vld [vmem:[%s1785_s29 + $0xc0] sm:$0xff] }
  0x16   : > { %236 = vst [vmem:[%s1790_s30 + $0x48] sm:$0xff] %v235_v6  ;;  %238 = vst [vmem:[%s1790_s30 + $0x54] sm:$0xff] %v237_v7  ;;  %v241_v9 = vld [vmem:[%s1785_s29 + $0xd8] sm:$0xff]  ;;  %v243_v10 = vld [vmem:[%s1785_s29 + $0xf0] sm:$0xff] }
  0x17   : > { %240 = vst [vmem:[%s1790_s30 + $0x60] sm:$0xff] %v239_v8  ;;  %v245_v11 = vld [vmem:[%s1785_s29 + $0x108] sm:$0xff]  ;;  %242 = vst [vmem:[%s1790_s30 + $0x6c] sm:$0xff] %v241_v9  ;;  %v247_v12 = vld [vmem:[%s1785_s29 + $0x120] sm:$0xff] }
  0x18   : > { %244 = vst [vmem:[%s1790_s30 + $0x78] sm:$0xff] %v243_v10  ;;  %246 = vst [vmem:[%s1790_s30 + $0x84] sm:$0xff] %v245_v11  ;;  %v249_v13 = vld [vmem:[%s1785_s29 + $0x138] sm:$0xff]  ;;  %v251_v14 = vld [vmem:[%s1785_s29 + $0x150] sm:$0xff] }
  0x19   : > { %248 = vst [vmem:[%s1790_s30 + $0x90] sm:$0xff] %v247_v12  ;;  %250 = vst [vmem:[%s1790_s30 + $0x9c] sm:$0xff] %v249_v13  ;;  %v253_v15 = vld [vmem:[%s1785_s29 + $0x168] sm:$0xff]  ;;  %v1297_v17 = vld [vmem:[%s1785_s29 + $0x20] sm:$0xf] }
  0x1a   : > { %252 = vst [vmem:[%s1790_s30 + $0xa8] sm:$0xff] %v251_v14  ;;  %v1295_v16 = vld [vmem:[%s1785_s29 + $0x8] sm:$0xf]  ;;  %254 = vst [vmem:[%s1790_s30 + $0xb4] sm:$0xff] %v253_v15  ;;  %v1299_v18 = vld [vmem:[%s1785_s29 + $0x38] sm:$0xf] }
  0x1b   : > { %1296 = vst [vmem:[%s1790_s30 + $0x8] sm:$0xf] %v1295_v16  ;;  %1298 = vst [vmem:[%s1790_s30 + $0x14] sm:$0xf] %v1297_v17  ;;  %v1301_v19 = vld [vmem:[%s1785_s29 + $0x50] sm:$0xf] }
  0x1c   : > { %v1303_v20 = vld [vmem:[%s1785_s29 + $0x68] sm:$0xf]  ;;  %1300 = vst [vmem:[%s1790_s30 + $0x20] sm:$0xf] %v1299_v18  ;;  %1302 = vst [vmem:[%s1790_s30 + $0x2c] sm:$0xf] %v1301_v19 }
  0x1d   : > { %1304 = vst [vmem:[%s1790_s30 + $0x38] sm:$0xf] %v1303_v20  ;;  %v1305_v21 = vld [vmem:[%s1785_s29 + $0x80] sm:$0xf]  ;;  %v1307_v22 = vld [vmem:[%s1785_s29 + $0x98] sm:$0xf] }
  0x1e   : > { %v1309_v23 = vld [vmem:[%s1785_s29 + $0xb0] sm:$0xf]  ;;  %1306 = vst [vmem:[%s1790_s30 + $0x44] sm:$0xf] %v1305_v21  ;;  %1308 = vst [vmem:[%s1790_s30 + $0x50] sm:$0xf] %v1307_v22 }
  0x1f   : > { %1310 = vst [vmem:[%s1790_s30 + $0x5c] sm:$0xf] %v1309_v23  ;;  %v1311_v24 = vld [vmem:[%s1785_s29 + $0xc8] sm:$0xf]  ;;  %v1313_v25 = vld [vmem:[%s1785_s29 + $0xe0] sm:$0xf] }
  0x20   : > { %v1315_v26 = vld [vmem:[%s1785_s29 + $0xf8] sm:$0xf]  ;;  %1312 = vst [vmem:[%s1790_s30 + $0x68] sm:$0xf] %v1311_v24  ;;  %1314 = vst [vmem:[%s1790_s30 + $0x74] sm:$0xf] %v1313_v25 }
  0x21   : > { %1316 = vst [vmem:[%s1790_s30 + $0x80] sm:$0xf] %v1315_v26  ;;  %v1317_v27 = vld [vmem:[%s1785_s29 + $0x110] sm:$0xf]  ;;  %v1319_v28 = vld [vmem:[%s1785_s29 + $0x128] sm:$0xf] }
  0x22   : > { %v1321_v29 = vld [vmem:[%s1785_s29 + $0x140] sm:$0xf]  ;;  %1318 = vst [vmem:[%s1790_s30 + $0x8c] sm:$0xf] %v1317_v27  ;;  %1320 = vst [vmem:[%s1790_s30 + $0x98] sm:$0xf] %v1319_v28 }
  0x23   : > { %1322 = vst [vmem:[%s1790_s30 + $0xa4] sm:$0xf] %v1321_v29  ;;  %v1323_v30 = vld [vmem:[%s1785_s29 + $0x158] sm:$0xf]  ;;  %v1325_v31 = vld [vmem:[%s1785_s29 + $0x170] sm:$0xf] }
  0x24   : > { %1324 = vst [vmem:[%s1790_s30 + $0xb0] sm:$0xf] %v1323_v30  ;;  %1326 = vst [vmem:[%s1790_s30 + $0xbc] sm:$0xf] %v1325_v31 }
  0x25 PF: > { %p1327_p6 = scmp.ge.s32.totalorder %s1714_s19, 1  ;;  %p310_p7 = scmp.lt.s32.totalorder %s1714_s19, 3 }
  0x27   : > { %p311_p8 = pnand %p1327_p6, %p310_p7 }
  0x28   : > { %s317_s5 = sand.u32 (!%p311_p8), 1, %s1698_s15   ;;  %s361_s6 = smul.u32 (!%p311_p8), 48, %s1706_s17 }
  0x29   : > { %314 = sbr.rel (%p311_p8) target bundleno = 385 (0x181), region = 58  ;;  %p1329_p10 = scmp.ne.s32.totalorder (!%p311_p8), %s1706_s17, 0 }
  0x2a   : > { %s1578_s7 = smul.u32 (!%p311_p8), 192, %s317_s5  ;;  %p362_p9 = scmp.lt.s32.totalorder (!%p311_p8), %s361_s6, 95 }
  0x2c   : > { %s1862_s12 = scalar_lea.vmem (!%p311_p8), [#allocation3], %s1578_s7 }
  0x30   : > { %s2007_s6 = smov (!%p362_p9, %s361_s6), 95  ;;  %389 = sbr.rel (%p1329_p10) target bundleno = 58 (0x3a), region = 66 }
  0x31   : > { %s1328_s8 = sshll.u32 %s2007_s6, 2  ;;  %v1716_v32 = vmov (!%p1329_p10), 0.0  }
  0x32   : > { %s1860_s11 = scalar_lea.vmem %s1996_s1, %s1328_s8  ;;  %390 = vst [vmem:[#allocation2] sm:$0xff] (!%p1329_p10), %v1716_v32  ;;  %391 = vst [vmem:[#allocation2 + $0x8] sm:$0xff] (!%p1329_p10), %v1716_v32 }
  0x33   : > { %392 = vst [vmem:[#allocation2 + $0x10] sm:$0xff] (!%p1329_p10), %v1716_v32  ;;  %393 = vst [vmem:[#allocation2 + $0x18] sm:$0xff] (!%p1329_p10), %v1716_v32 }
  0x34   : > { %394 = vst [vmem:[#allocation2 + $0x20] sm:$0xff] (!%p1329_p10), %v1716_v32  ;;  %395 = vst [vmem:[#allocation2 + $0x28] sm:$0xff] (!%p1329_p10), %v1716_v32 }
  0x35   : > { %396 = vst [vmem:[#allocation2 + $0x30] sm:$0xff] (!%p1329_p10), %v1716_v32  ;;  %397 = vst [vmem:[#allocation2 + $0x38] sm:$0xff] (!%p1329_p10), %v1716_v32 }
  0x36   : > { %398 = vst [vmem:[#allocation2 + $0x40] sm:$0xff] (!%p1329_p10), %v1716_v32  ;;  %399 = vst [vmem:[#allocation2 + $0x48] sm:$0xff] (!%p1329_p10), %v1716_v32 }
  0x37   : > { %400 = vst [vmem:[#allocation2 + $0x50] sm:$0xff] %v1716_v32  ;;  %401 = vst [vmem:[#allocation2 + $0x58] sm:$0xff] %v1716_v32 }
  0x38   : > { %402 = vst [vmem:[#allocation2 + $0x60] sm:$0xff] %v1716_v32  ;;  %403 = vst [vmem:[#allocation2 + $0x68] sm:$0xff] %v1716_v32 }
  0x39   : > { %404 = vst [vmem:[#allocation2 + $0x70] sm:$0xff] %v1716_v32  ;;  %405 = vst [vmem:[#allocation2 + $0x78] sm:$0xff] %v1716_v32 }
  0x3a PF: > { %v1620_v33 = vld [vmem:[%s1860_s11 + $0x40] sm:$0xff]   ;;  %v1623_v36 = vld [vmem:[%s1860_s11 + $0x48] sm:$0xff]   ;;  %v1626_v39 = vld [vmem:[%s1860_s11 + $0x50] sm:$0xff]   ;;  %p1378_p11 = scmp.ne.s32.totalorder %s1706_s17, 1 }
  0x3b   : > { %v1621_v34 = vld [vmem:[%s1860_s11] sm:$0xff]   ;;  %1465 = vmatprep.subr.bf16.mxu0 %v1620_v33  ;;  %v1624_v37 = vld [vmem:[%s1860_s11 + $0x8] sm:$0xff]   ;;  %v1627_v40 = vld [vmem:[%s1860_s11 + $0x10] sm:$0xff]  }
  0x3c   : > { %v1622_v35 = vld [vmem:[%s1860_s11 + $0x80] sm:$0xff]   ;;  %1466 = vmatpush3.bf16.msra.mxu0 %v1621_v34  ;;  %v1625_v38 = vld [vmem:[%s1860_s11 + $0x88] sm:$0xff]   ;;  %v1628_v41 = vld [vmem:[%s1860_s11 + $0x90] sm:$0xff]  }
  0x3d   : > { %1545 = vmatprep.subr.bf16.mxu1 %v1622_v35  ;;  %1467 = vmatprep.subr.bf16.mxu0 %v1623_v36  ;;  %v1629_v42 = vld [vmem:[%s1860_s11 + $0x58] sm:$0xff]   ;;  %v1632_v45 = vld [vmem:[%s1860_s11 + $0x60] sm:$0xff]   ;;  %v1635_v48 = vld [vmem:[%s1860_s11 + $0x68] sm:$0xff]  }
  0x3e   : > { %1546 = vmatpush3.bf16.msra.mxu1 %v1622_v35  ;;  %v1630_v43 = vld [vmem:[%s1860_s11 + $0x18] sm:$0xff]   ;;  %v1634_v46 = vld [vmem:[%s1860_s11 + $0xa0] sm:$0xff]   ;;  %v1637_v49 = vld [vmem:[%s1860_s11 + $0xa8] sm:$0xff]  }
  0x3f   : > { %1547 = vmatprep.subr.bf16.mxu1 %v1625_v38  ;;  %v1631_v44 = vld [vmem:[%s1860_s11 + $0x98] sm:$0xff]   ;;  %v1633_v47 = vld [vmem:[%s1860_s11 + $0x20] sm:$0xff]   ;;  %v1636_v50 = vld [vmem:[%s1860_s11 + $0x28] sm:$0xff]  }
  0x40   : > { %1468 = vmatpush3.bf16.msra.mxu0 %v1624_v37  ;;  %v1638_v51 = vld [vmem:[%s1860_s11 + $0x70] sm:$0xff]   ;;  %v1641_v54 = vld [vmem:[%s1860_s11 + $0x78] sm:$0xff]   ;;  %v1644_v59 = vld [vmem:[%s1862_s12] ss:$12 sps:$4 sm:$0xff]  }
  0x41   : > { %1469 = vmatprep.subr.bf16.mxu0 %v1626_v39  ;;  %v1639_v52 = vld [vmem:[%s1860_s11 + $0x30] sm:$0xff]   ;;  %v1643_v55 = vld [vmem:[%s1860_s11 + $0xb8] sm:$0xff]   ;;  %v1648_v61 = vld [vmem:[%s1862_s12 + $0x20] ss:$12 sps:$4 sm:$0xff]  }
  0x42   : > { %1548 = vmatpush3.bf16.msra.mxu1 %v1625_v38  ;;  %v1640_v53 = vld [vmem:[%s1860_s11 + $0xb0] sm:$0xff]   ;;  %v1642_v58 = vld [vmem:[%s1860_s11 + $0x38] sm:$0xff]   ;;  %v1664_v5 = vld [vmem:[%s1862_s12 + $0x80] ss:$12 sps:$4 sm:$0xff]  }
  0x43   : > { %1549 = vmatprep.subr.bf16.mxu1 %v1628_v41  ;;  %v1646_v56 = vld [vmem:[%s1862_s12 + $0x4] ss:$12 sps:$4 sm:$0xff]   ;;  %v1647_v57 = vld [vmem:[%s1862_s12 + $0x8] ss:$12 sps:$4 sm:$0xff]   ;;  %v1657_v4 = vld [vmem:[%s1862_s12 + $0x4c] ss:$12 sps:$4 sm:$0xff]  }
  0x44   : > { %1470 = vmatpush3.bf16.msra.mxu0 %v1627_v40  ;;  %806 = vmatprep.mubr.bf16.mxu0 %v1646_v56  ;;  %v1649_v60 = vld [vmem:[%s1862_s12 + $0x1c] ss:$12 sps:$4 sm:$0xff]   ;;  %v1655_v62 = vld [vmem:[%s1862_s12 + $0x38] ss:$12 sps:$4 sm:$0xff]   ;;  %v1652_v0 = vld [vmem:[%s1862_s12 + $0x34] ss:$12 sps:$4 sm:$0xff]  }
  0x45   : > { %1471 = vmatprep.subr.bf16.mxu0 %v1629_v42  ;;  %1561 = vmatprep.mubr.bf16.mxu1 %v1647_v57  ;;  %v1651_v63 = vld [vmem:[%s1862_s12 + $0x18] ss:$12 sps:$4 sm:$0xff]   ;;  %v1656_v1 = vld [vmem:[%s1862_s12 + $0x50] ss:$12 sps:$4 sm:$0xff]   ;;  %v1663_v2 = vld [vmem:[%s1862_s12 + $0x68] ss:$12 sps:$4 sm:$0xff]  }
  0x46   : > { %1550 = vmatpush3.bf16.msra.mxu1 %v1628_v41  ;;  %v1654_v3 = vld [vmem:[%s1862_s12 + $0x30] ss:$12 sps:$4 sm:$0xff]   ;;  %v1671_v6 = vld [vmem:[%s1862_s12 + $0x98] ss:$12 sps:$4 sm:$0xff]   ;;  %v1659_v7 = vld [vmem:[%s1862_s12 + $0x48] ss:$12 sps:$4 sm:$0xff]  }
  0x47   : > { %1551 = vmatprep.subr.bf16.mxu1 %v1631_v44  ;;  %v1660_v8 = vld [vmem:[%s1862_s12 + $0x64] ss:$12 sps:$4 sm:$0xff]   ;;  %v1662_v10 = vld [vmem:[%s1862_s12 + $0x60] ss:$12 sps:$4 sm:$0xff]   ;;  %v1665_v11 = vld [vmem:[%s1862_s12 + $0x7c] ss:$12 sps:$4 sm:$0xff]  }
  0x48   : > { %1472 = vmatpush3.bf16.msra.mxu0 %v1630_v43  ;;  %v1672_v9 = vld [vmem:[%s1862_s12 + $0xb0] ss:$12 sps:$4 sm:$0xff]   ;;  %v1667_v12 = vld [vmem:[%s1862_s12 + $0x78] ss:$12 sps:$4 sm:$0xff]   ;;  %v1668_v13 = vld [vmem:[%s1862_s12 + $0x94] ss:$12 sps:$4 sm:$0xff]  }
  0x49   : > { %1473 = vmatprep.subr.bf16.mxu0 %v1632_v45  ;;  %v1670_v14 = vld [vmem:[%s1862_s12 + $0x90] ss:$12 sps:$4 sm:$0xff]   ;;  %v1673_v15 = vld [vmem:[%s1862_s12 + $0xac] ss:$12 sps:$4 sm:$0xff]   ;;  %v1675_v16 = vld [vmem:[%s1862_s12 + $0xa8] ss:$12 sps:$4 sm:$0xff]  }
  0x4a   : > { %1552 = vmatpush3.bf16.msra.mxu1 %v1631_v44  ;;  %v406_v23 = vld [vmem:[#allocation2] sm:$0xff]  ;;  %v407_v28 = vld [vmem:[#allocation2 + $0x8] sm:$0xff]  ;;  %v408_v38 = vld [vmem:[#allocation2 + $0x10] sm:$0xff] }
  0x4b   : > { %1553 = vmatprep.subr.bf16.mxu1 %v1634_v46  ;;  %v409_v44 = vld [vmem:[#allocation2 + $0x18] sm:$0xff] }
  0x4c   : > { %1474 = vmatpush3.bf16.msra.mxu0 %v1633_v47 }
  0x4d   : > { %1475 = vmatprep.subr.bf16.mxu0 %v1635_v48 }
  0x4e   : > { %1554 = vmatpush3.bf16.msra.mxu1 %v1634_v46 }
  0x4f   : > { %1555 = vmatprep.subr.bf16.mxu1 %v1637_v49 }
  0x50   : > { %1476 = vmatpush3.bf16.msra.mxu0 %v1636_v50 }
  0x51   : > { %1477 = vmatprep.subr.bf16.mxu0 %v1638_v51 }
  0x52   : > { %1556 = vmatpush3.bf16.msra.mxu1 %v1637_v49 }
  0x53   : > { %1557 = vmatprep.subr.bf16.mxu1 %v1640_v53 }
  0x54   : > { %1478 = vmatpush3.bf16.msra.mxu0 %v1639_v52 }
  0x55   : > { %1479 = vmatprep.subr.bf16.mxu0 %v1641_v54 }
  0x56   : > { %1558 = vmatpush3.bf16.msra.mxu1 %v1640_v53 }
  0x57   : > { %1559 = vmatprep.subr.bf16.mxu1 %v1643_v55 }
  0x58   : > { %1480 = vmatpush3.bf16.msra.mxu0 %v1642_v58 }
  0x5a   : > { %1560 = vmatpush3.bf16.msra.mxu1 %v1643_v55  ;;  %v410_v55 = vld [vmem:[#allocation2 + $0x20] sm:$0xff] }
  0x5b   : > { %807 = vmatmul.mubr.bf16.vlgmr.msra.gmra.mrb[0].mxu0 %v1644_v59 }
  0x5c   : > { %814 = vmatprep.mubr.bf16.mxu0 %v1649_v60  ;;  %v411_v60 = vld [vmem:[#allocation2 + $0x28] sm:$0xff] }
  0x5d   : > { %1562 = vmatmul.mubr.bf16.vlgmr.msra.gmra.mrb[0].mxu1 %v1648_v61 }
  0x5e   : > { %1565 = vmatprep.mubr.bf16.mxu1 %v1655_v62 }
  0x63   : > { %815 = vmatmul.mubr.bf16.gmra.mrb[4].mxu0 %v1651_v63 }
  0x64   : > { %822 = vmatprep.mubr.bf16.mxu0 %v1652_v0 }
  0x65   : > { %1566 = vmatmul.mubr.bf16.gmra.mrb[4].mxu1 %v1656_v1 }
  0x66   : > { %1569 = vmatprep.mubr.bf16.mxu1 %v1663_v2 }
  0x6b   : > { %823 = vmatmul.mubr.bf16.gmra.mrb[8].mxu0 %v1654_v3 }
  0x6c   : > { %830 = vmatprep.mubr.bf16.mxu0 %v1657_v4 }
  0x6d   : > { %1570 = vmatmul.mubr.bf16.gmra.mrb[8].mxu1 %v1664_v5 }
  0x6e   : > { %1573 = vmatprep.mubr.bf16.mxu1 %v1671_v6  ;;  %v412_v6 = vld [vmem:[#allocation2 + $0x30] sm:$0xff] }
  0x73   : > { %831 = vmatmul.mubr.bf16.gmra.mrb[12].mxu0 %v1659_v7 }
  0x74   : > { %838 = vmatprep.mubr.bf16.mxu0 %v1660_v8 }
  0x75   : > { %1574 = vmatmul.mubr.bf16.gmra.mrb[12].mxu1 %v1672_v9 }
  0x7b   : > { %839 = vmatmul.mubr.bf16.gmra.mrb[16].mxu0 %v1662_v10 }
  0x7c   : > { %846 = vmatprep.mubr.bf16.mxu0 %v1665_v11 }
  0x83   : > { %847 = vmatmul.mubr.bf16.gmra.mrb[20].mxu0 %v1667_v12  ;;  %v413_v12 = vld [vmem:[#allocation2 + $0x38] sm:$0xff] }
  0x84   : > { %854 = vmatprep.mubr.bf16.mxu0 %v1668_v13 }
  0x8b   : > { %855 = vmatmul.mubr.bf16.gmra.mrb[24].mxu0 %v1670_v14 }
  0x8c   : > { %862 = vmatprep.mubr.bf16.mxu0 %v1673_v15 }
  0x93   : > { %863 = vmatmul.mubr.bf16.gmra.mrb[28].mxu0 %v1675_v16 }
 0x12e   : > { %v1481_v17 = vpop.f32.mrb[0].mxu0 }
 0x12f   : > { %v1482_v18 = vpop.f32.mrb[1].mxu0 }
 0x130   : > { %v1483_v19 = vadd.f32 %v1482_v18, %v1481_v17  ;;  %v1484_v20 = vpop.f32.mrb[2].mxu0  ;;  %v1563_v21 = vpop.f32.mrb[0].mxu1 }
 0x131   : > { %v1485_v22 = vpop.f32.mrb[3].mxu0  ;;  %v905_v24 = vpop.f32.mrb[1].mxu1 }
 0x132   : > { %v1486_v25 = vadd.f32 %v1485_v22, %v1484_v20  ;;  %v906_v26 = vadd.f32 %v1483_v19, %v905_v24  ;;  %v1564_v27 = vpop.f32.mrb[2].mxu1  ;;  %v414_v22 = vld [vmem:[#allocation2 + $0x40] sm:$0xff] }
 0x133   : > { %v908_v29 = vpop.f32.mrb[3].mxu1 }
 0x134   : > { %v968_v30 = vadd.f32 %v906_v26, %v406_v23  ;;  %v909_v31 = vadd.f32 %v1486_v25, %v908_v29  ;;  %v415_v25 = vld [vmem:[#allocation2 + $0x48] sm:$0xff] }
 0x136   : > { %984 = vst [vmem:[#allocation2] sm:$0xff] %v968_v30  ;;  %v969_v32 = vadd.f32 %v909_v31, %v407_v28  ;;  %v1487_v33 = vpop.f32.mrb[4].mxu0 }
 0x137   : > { %v1488_v34 = vpop.f32.mrb[5].mxu0 }
 0x138   : > { %985 = vst [vmem:[#allocation2 + $0x8] sm:$0xff] %v969_v32  ;;  %v1489_v35 = vadd.f32 %v1488_v34, %v1487_v33  ;;  %v1490_v36 = vpop.f32.mrb[6].mxu0  ;;  %v1567_v37 = vpop.f32.mrb[4].mxu1  ;;  %v416_v33 = vld [vmem:[#allocation2 + $0x50] sm:$0xff] }
 0x139   : > { %v1491_v39 = vpop.f32.mrb[7].mxu0  ;;  %v921_v40 = vpop.f32.mrb[5].mxu1 }
 0x13a   : > { %v914_v41 = vadd.f32 %v1563_v21, %v1489_v35  ;;  %v1492_v42 = vadd.f32 %v1491_v39, %v1490_v36  ;;  %v1568_v43 = vpop.f32.mrb[6].mxu1 }
 0x13b   : > { %v924_v45 = vpop.f32.mrb[7].mxu1 }
 0x13c   : > { %v970_v46 = vadd.f32 %v914_v41, %v408_v38  ;;  %v917_v47 = vadd.f32 %v1564_v27, %v1492_v42 }
 0x13e   : > { %986 = vst [vmem:[#allocation2 + $0x10] sm:$0xff] %v970_v46  ;;  %v971_v48 = vadd.f32 %v917_v47, %v409_v44  ;;  %v1493_v49 = vpop.f32.mrb[8].mxu0  ;;  %v418_v46 = vld [vmem:[#allocation2 + $0x60] sm:$0xff] }
 0x13f   : > { %v1494_v50 = vpop.f32.mrb[9].mxu0 }
 0x140   : > { %987 = vst [vmem:[#allocation2 + $0x18] sm:$0xff] %v971_v48  ;;  %v1495_v51 = vadd.f32 %v1494_v50, %v1493_v49  ;;  %v1496_v52 = vpop.f32.mrb[10].mxu0  ;;  %v1571_v53 = vpop.f32.mrb[8].mxu1  ;;  %v419_v49 = vld [vmem:[#allocation2 + $0x68] sm:$0xff] }
 0x141   : > { %v1497_v54 = vpop.f32.mrb[11].mxu0  ;;  %v937_v56 = vpop.f32.mrb[9].mxu1 }
 0x142   : > { %v1498_v57 = vadd.f32 %v1497_v54, %v1496_v52  ;;  %v922_v58 = vadd.f32 %v1495_v51, %v921_v40  ;;  %v1572_v59 = vpop.f32.mrb[10].mxu1 }
 0x143   : > { %v940_v61 = vpop.f32.mrb[11].mxu1 }
 0x144   : > { %v972_v62 = vadd.f32 %v922_v58, %v410_v55  ;;  %v925_v63 = vadd.f32 %v1498_v57, %v924_v45  ;;  %v420_v57 = vld [vmem:[#allocation2 + $0x70] sm:$0xff] }
 0x146   : > { %988 = vst [vmem:[#allocation2 + $0x20] sm:$0xff] %v972_v62  ;;  %v973_v0 = vadd.f32 %v925_v63, %v411_v60  ;;  %v1499_v1 = vpop.f32.mrb[12].mxu0 }
 0x147   : > { %v1500_v2 = vpop.f32.mrb[13].mxu0 }
 0x148   : > { %989 = vst [vmem:[#allocation2 + $0x28] sm:$0xff] %v973_v0  ;;  %v1501_v3 = vadd.f32 %v1500_v2, %v1499_v1  ;;  %v1502_v4 = vpop.f32.mrb[14].mxu0  ;;  %v1575_v5 = vpop.f32.mrb[12].mxu1  ;;  %v1004_v1 = vld [vmem:[#allocation2] sm:$0xff] (!%p1378_p11)  ;;  %v1005_v2 = vld [vmem:[#allocation2 + $0x8] sm:$0xff] (!%p1378_p11) }
 0x149   : > { %v1503_v7 = vpop.f32.mrb[15].mxu0  ;;  %v953_v8 = vpop.f32.mrb[13].mxu1 }
 0x14a   : > { %v930_v9 = vadd.f32 %v1567_v37, %v1501_v3  ;;  %v1504_v10 = vadd.f32 %v1503_v7, %v1502_v4  ;;  %v1576_v11 = vpop.f32.mrb[14].mxu1  ;;  %v417_v37 = vld [vmem:[#allocation2 + $0x58] sm:$0xff]  ;;  %v1917_v3 = vld [vmem:[%s1997_s2] ss:$0 sm:$0xff] (!%p1378_p11)  ;;  %v1006_v7 = vld [vmem:[#allocation2 + $0x10] sm:$0xff] (!%p1378_p11) }
 0x14b   : > { %v956_v13 = vpop.f32.mrb[15].mxu1  ;;  %v1027_v4 = vmul.f32 (!%p1378_p11), %v1917_v3, %v1004_v1 }
 0x14c   : > { %v974_v14 = vadd.f32 %v930_v9, %v412_v6  ;;  %v933_v15 = vadd.f32 %v1568_v43, %v1504_v10  ;;  %v1924_v6 = vld [vmem:[%s1998_s3] ss:$0 sm:$0xff] (!%p1378_p11)  ;;  %v1029_v9 = vmul.f32 (!%p1378_p11), %v1917_v3, %v1006_v7 }
 0x14e   : > { %990 = vst [vmem:[#allocation2 + $0x30] sm:$0xff] %v974_v14  ;;  %v975_v16 = vadd.f32 %v933_v15, %v413_v12  ;;  %v1505_v17 = vpop.f32.mrb[16].mxu0  ;;  %v1050_v14 = vadd.f32 (!%p1378_p11), %v1924_v6, %v1027_v4 }
 0x14f   : > { %v1506_v18 = vpop.f32.mrb[17].mxu0  ;;  %v1009_v12 = vld [vmem:[#allocation2 + $0x28] sm:$0xff] (!%p1378_p11) }
 0x150   : > { %991 = vst [vmem:[#allocation2 + $0x38] sm:$0xff] %v975_v16  ;;  %v1507_v19 = vadd.f32 %v1506_v18, %v1505_v17  ;;  %v1508_v20 = vpop.f32.mrb[18].mxu0  ;;  %v1032_v17 = vmul.f32 (!%p1378_p11), %v1917_v3, %v1009_v12 }
 0x151   : > { %v1509_v21 = vpop.f32.mrb[19].mxu0 }
 0x152   : > { %v1510_v23 = vadd.f32 %v1509_v21, %v1508_v20  ;;  %v938_v24 = vadd.f32 %v1507_v19, %v937_v56  ;;  %v1052_v19 = vadd.f32 (!%p1378_p11), %v1924_v6, %v1029_v9 }
 0x154   : > { %v976_v26 = vadd.f32 %v938_v24, %v414_v22  ;;  %v941_v27 = vadd.f32 %v1510_v23, %v940_v61  ;;  %v421_v61 = vld [vmem:[#allocation2 + $0x78] sm:$0xff]  ;;  %v1066_v24 = vmax.f32 (!%p1378_p11), %v1050_v14, 0.0 }
 0x156   : > { %992 = vst [vmem:[#allocation2 + $0x40] sm:$0xff] %v976_v26  ;;  %v977_v28 = vadd.f32 %v941_v27, %v415_v25  ;;  %v1511_v29 = vpop.f32.mrb[20].mxu0  ;;  %v1055_v27 = vadd.f32 (!%p1378_p11), %v1924_v6, %v1032_v17 }
 0x157   : > { %v1512_v30 = vpop.f32.mrb[21].mxu0  ;;  %v1011_v18 = vld [vmem:[#allocation2 + $0x38] sm:$0xff] (!%p1378_p11) }
 0x158   : > { %993 = vst [vmem:[#allocation2 + $0x48] sm:$0xff] %v977_v28  ;;  %v1513_v31 = vadd.f32 %v1512_v30, %v1511_v29  ;;  %v1514_v32 = vpop.f32.mrb[22].mxu0  ;;  %v1034_v22 = vmul.f32 (!%p1378_p11), %v1917_v3, %v1011_v18  ;;  %v1068_v29 = vmax.f32 (!%p1378_p11), %v1052_v19, 0.0 }
 0x159   : > { %v1515_v34 = vpop.f32.mrb[23].mxu0 }
 0x15a   : > { %v946_v35 = vadd.f32 %v1571_v53, %v1513_v31  ;;  %v1516_v36 = vadd.f32 %v1515_v34, %v1514_v32  ;;  %v1057_v32 = vadd.f32 (!%p1378_p11), %v1924_v6, %v1034_v22 }
 0x15c   : > { %v978_v38 = vadd.f32 %v946_v35, %v416_v33  ;;  %v949_v39 = vadd.f32 %v1572_v59, %v1516_v36 }
 0x15d   : > { %v1012_v23 = vld [vmem:[#allocation2 + $0x40] sm:$0xff] (!%p1378_p11) }
 0x15e   : > { %994 = vst [vmem:[#allocation2 + $0x50] sm:$0xff] %v978_v38  ;;  %v979_v40 = vadd.f32 %v949_v39, %v417_v37  ;;  %v1517_v41 = vpop.f32.mrb[24].mxu0  ;;  %v1071_v37 = vmax.f32 (!%p1378_p11), %v1055_v27, 0.0  ;;  %v1035_v38 = vmul.f32 (!%p1378_p11), %v1917_v3, %v1012_v23 }
 0x15f   : > { %v1518_v42 = vpop.f32.mrb[25].mxu0  ;;  %v1013_v28 = vld [vmem:[#allocation2 + $0x48] sm:$0xff] (!%p1378_p11) }
 0x160   : > { %995 = vst [vmem:[#allocation2 + $0x58] sm:$0xff] %v979_v40  ;;  %v1519_v43 = vadd.f32 %v1518_v42, %v1517_v41  ;;  %v1520_v44 = vpop.f32.mrb[26].mxu0 }
 0x161   : > { %v1521_v45 = vpop.f32.mrb[27].mxu0 }
 0x162   : > { %v1522_v47 = vadd.f32 %v1521_v45, %v1520_v44  ;;  %v954_v48 = vadd.f32 %v1519_v43, %v953_v8  ;;  %v1007_v8 = vld [vmem:[#allocation2 + $0x18] sm:$0xff] (!%p1378_p11)  ;;  %v1073_v43 = vmax.f32 (!%p1378_p11), %v1057_v32, 0.0  ;;  %v1036_v44 = vmul.f32 (!%p1378_p11), %v1917_v3, %v1013_v28 }
 0x163   : > { %v1030_v10 = vmul.f32 (!%p1378_p11), %v1917_v3, %v1007_v8 }
 0x164   : > { %v980_v50 = vadd.f32 %v954_v48, %v418_v46  ;;  %v957_v51 = vadd.f32 %v1522_v47, %v956_v13  ;;  %v1010_v13 = vld [vmem:[#allocation2 + $0x30] sm:$0xff] (!%p1378_p11)  ;;  %v1058_v47 = vadd.f32 (!%p1378_p11), %v1924_v6, %v1035_v38 }
 0x165   : > { %v1053_v20 = vadd.f32 (!%p1378_p11), %v1924_v6, %v1030_v10  ;;  %v1033_v21 = vmul.f32 (!%p1378_p11), %v1917_v3, %v1010_v13  ;;  %v1014_v33 = vld [vmem:[#allocation2 + $0x50] sm:$0xff] (!%p1378_p11) }
 0x166   : > { %996 = vst [vmem:[#allocation2 + $0x60] sm:$0xff] %v980_v50  ;;  %v981_v52 = vadd.f32 %v957_v51, %v419_v49  ;;  %v1523_v53 = vpop.f32.mrb[28].mxu0  ;;  %v1037_v48 = vmul.f32 (!%p1378_p11), %v1917_v3, %v1014_v33 }
 0x167   : > { %v1524_v54 = vpop.f32.mrb[29].mxu0  ;;  %v1069_v30 = vmax.f32 (!%p1378_p11), %v1053_v20, 0.0  ;;  %v1056_v31 = vadd.f32 (!%p1378_p11), %v1924_v6, %v1033_v21  ;;  %v1015_v34 = vld [vmem:[#allocation2 + $0x58] sm:$0xff] (!%p1378_p11) }
 0x168   : > { %997 = vst [vmem:[#allocation2 + $0x68] sm:$0xff] %v981_v52  ;;  %v1525_v55 = vadd.f32 %v1524_v54, %v1523_v53  ;;  %v1526_v56 = vpop.f32.mrb[30].mxu0  ;;  %v1038_v49 = vmul.f32 (!%p1378_p11), %v1917_v3, %v1015_v34  ;;  %v1059_v52 = vadd.f32 (!%p1378_p11), %v1924_v6, %v1036_v44 }
 0x169   : > { %v1527_v58 = vpop.f32.mrb[31].mxu0  ;;  %v1426_v41 = vpack.c.bf16 (!%p1378_p11), %v1069_v30, %v1068_v29  ;;  %v1072_v42 = vmax.f32 (!%p1378_p11), %v1056_v31, 0.0 }
 0x16a   : > { %v962_v59 = vadd.f32 %v1575_v5, %v1525_v55  ;;  %v1528_v60 = vadd.f32 %v1527_v58, %v1526_v56  ;;  %1003 = sbr.rel (%p1378_p11) target bundleno = 385 (0x181), region = 70  ;;  %v1028_v5 = vmul.f32 (!%p1378_p11), %v1917_v3, %v1005_v2  ;;  %v1074_v55 = vmax.f32 (!%p1378_p11), %v1058_v47, 0.0 }
 0x16b   : > { %1458 = vst [vmem:[%s1999_s4 + $0x8] sm:$0xff] (!%p1378_p11), %v1426_v41   ;;  %v1436_v51 = vpack.c.bf16 (!%p1378_p11), %v1073_v43, %v1072_v42  ;;  %v1060_v56 = vadd.f32 (!%p1378_p11), %v1924_v6, %v1037_v48 }
 0x16c   : > { %v982_v62 = vadd.f32 %v962_v59, %v420_v57  ;;  %v965_v63 = vadd.f32 %v1576_v11, %v1528_v60  ;;  %v1008_v11 = vld [vmem:[#allocation2 + $0x20] sm:$0xff] (!%p1378_p11)  ;;  %v1051_v15 = vadd.f32 (!%p1378_p11), %v1924_v6, %v1028_v5  ;;  %v1061_v57 = vadd.f32 (!%p1378_p11), %v1924_v6, %v1038_v49 }
 0x16d   : > { %v1031_v16 = vmul.f32 (!%p1378_p11), %v1917_v3, %v1008_v11  ;;  %v1016_v39 = vld [vmem:[#allocation2 + $0x60] sm:$0xff] (!%p1378_p11)  ;;  %1460 = vst [vmem:[%s1999_s4 + $0x18] sm:$0xff] (!%p1378_p11), %v1436_v51   ;;  %v1075_v59 = vmax.f32 (!%p1378_p11), %v1059_v52, 0.0 }
 0x16e   : > { %998 = vst [vmem:[#allocation2 + $0x70] sm:$0xff] %v982_v62  ;;  %v983_v0 = vadd.f32 %v965_v63, %v421_v61  ;;  %v1067_v25 = vmax.f32 (!%p1378_p11), %v1051_v15, 0.0  ;;  %v1039_v53 = vmul.f32 (!%p1378_p11), %v1917_v3, %v1016_v39  ;;  %v1076_v63 = vmax.f32 (!%p1378_p11), %v1060_v56, 0.0 }
 0x16f   : > { %v1054_v26 = vadd.f32 (!%p1378_p11), %v1924_v6, %v1031_v16  ;;  %v1017_v40 = vld [vmem:[#allocation2 + $0x68] sm:$0xff] (!%p1378_p11)  ;;  %v1441_v2 = vpack.c.bf16 (!%p1378_p11), %v1075_v59, %v1074_v55 }
 0x170   : > { %999 = vst [vmem:[#allocation2 + $0x78] sm:$0xff] %v983_v0  ;;  %v1421_v35 = vpack.c.bf16 (!%p1378_p11), %v1067_v25, %v1066_v24  ;;  %v1040_v54 = vmul.f32 (!%p1378_p11), %v1917_v3, %v1017_v40  ;;  %v1062_v60 = vadd.f32 (!%p1378_p11), %v1924_v6, %v1039_v53  ;;  %v1077_v0 = vmax.f32 (!%p1378_p11), %v1061_v57, 0.0 }
 0x171   : > { %v1070_v36 = vmax.f32 %v1054_v26, 0.0  ;;  %1461 = vst [vmem:[%s1999_s4 + $0x20] sm:$0xff] %v1441_v2  }
 0x172   : > { %1422 = vst [vmem:[%s1999_s4] sm:$0xff] %v1421_v35   ;;  %v1063_v61 = vadd.f32 %v1924_v6, %v1040_v54  ;;  %v1078_v4 = vmax.f32 %v1062_v60, 0.0  ;;  %v1446_v8 = vpack.c.bf16 %v1077_v0, %v1076_v63 }
 0x173   : > { %v1431_v46 = vpack.c.bf16 %v1071_v37, %v1070_v36 }
 0x174   : > { %v1079_v5 = vmax.f32 %v1063_v61, 0.0  ;;  %1462 = vst [vmem:[%s1999_s4 + $0x28] sm:$0xff] %v1446_v8  }
 0x175   : > { %v1018_v45 = vld [vmem:[#allocation2 + $0x70] sm:$0xff]  ;;  %1459 = vst [vmem:[%s1999_s4 + $0x10] sm:$0xff] %v1431_v46  }
 0x176   : > { %v1041_v58 = vmul.f32 %v1917_v3, %v1018_v45  ;;  %v1451_v10 = vpack.c.bf16 %v1079_v5, %v1078_v4 }
 0x177   : > { %v1019_v50 = vld [vmem:[#allocation2 + $0x78] sm:$0xff] }
 0x178   : > { %v1042_v62 = vmul.f32 %v1917_v3, %v1019_v50  ;;  %v1064_v1 = vadd.f32 %v1924_v6, %v1041_v58  ;;  %1463 = vst [vmem:[%s1999_s4 + $0x30] sm:$0xff] %v1451_v10  }
 0x17a   : > { %v1065_v7 = vadd.f32 %v1924_v6, %v1042_v62  ;;  %v1080_v9 = vmax.f32 %v1064_v1, 0.0 }
 0x17c   : > { %v1081_v11 = vmax.f32 %v1065_v7, 0.0 }
 0x17e   : > { %v1456_v3 = vpack.c.bf16 %v1081_v11, %v1080_v9 }
 0x180   : > { %1464 = vst [vmem:[%s1999_s4 + $0x38] sm:$0xff] %v1456_v3  }
 0x181 PF: > { %s14_s19 = sadd.s32 1, %s1714_s19   ;;  %s2000_s15 = smov %s1702_s16 }
 0x182   : > { %p11_p12 = scmp.ge.s32.totalorder %s14_s19, 4   ;;  %s2001_s16 = smov %s1777_s23 }
 0x183   : > { %s2002_s17 = smov %s1710_s18  ;;  %s2003_s18 = smov %s2005_s20 }
 0x184   :  { %13 = sbr.rel (!%p11_p12) target bundleno = 3 (0x3), region = 120 }

// kernel: _lambda_.23
= control target key start
LH: loop header
LB: loop body
LE: loop exit
PB: predicated region body
PF: predicated region fallthrough
CT: control target
= control target key end

     0   :  { %s1913_s18 = smov 0   ;;  %s1915_s19 = smov 0   ;;  %s2190_s0 = inlined_call_operand.vmem [shape: bf16[128,768], index: 0, kind: input, shape index: {}]   ;;  %s2191_s1 = inlined_call_operand.vmem [shape: bf16[768,128], index: 1, kind: input, shape index: {}]   ;;  %s2192_s2 = inlined_call_operand.vmem [shape: f32[1,128], index: 2, kind: input, shape index: {}]   ;;  %s2193_s3 = inlined_call_operand.vmem [shape: f32[1,128], index: 3, kind: input, shape index: {}]   ;;  %s2194_s4 = inlined_call_operand.vmem [shape: bf16[128,128], index: 4, kind: input, shape index: {}]   ;;  %s2195_s5 = inlined_call_operand.vmem [shape: bf16[128,128], index: 5, kind: output, shape index: {}]  }
   0x1   :  { %s1917_s20 = smov 0   ;;  %s1919_s21 = smov 0  }
   0x2   :  { %s1921_s22 = smov 0  }
   0x3 LB: > { %s27_s23 = sadd.s32 1, %s1876_s21  ;;  %p50_p1 = scmp.ne.s32.totalorder %s1868_s19, %s1864_s18  ;;  %s1880_s22 = sphi %s1921_s22, %s15_s22   ;;  %s1876_s21 = sphi %s1919_s21, %s2199_s21   ;;  %s1872_s20 = sphi %s1917_s20, %s2198_s20   ;;  %s1868_s19 = sphi %s1915_s19, %s2197_s19   ;;  %s1864_s18 = sphi %s1913_s18, %s2196_s18  }
   0x4   : > { %p28_p0 = scmp.ge.s32.totalorder %s27_s23, 2  ;;  %p51_p2 = scmp.eq.s32.totalorder %s1880_s22, 0 }
   0x5   : > { %s43_s25 = sadd.s32 1, %s1868_s19  ;;  %p1420_p5 = scmp.ge.s32.totalorder %s1880_s22, 2 }
   0x6   : > { %s2201_s23 = smov (%p28_p0, %s27_s23), 0  ;;  %p52_p3 = por %p51_p2, %p50_p1 }
   0x7   : > { %s39_s24 = ssub.s32 %s1876_s21, %s2201_s23  ;;  %236 = sbr.rel (%p1420_p5) target bundleno = 37 (0x25), region = 28 }
   0x8   : > { %p41_p4 = scmp.eq.s32.totalorder %s39_s24, 0 }
   0xa   : > { %s1948_s26 = scalar_select %p41_p4, %s1868_s19, %s43_s25  }
   0xe   : > { %239 = sbr.rel (!%p52_p3) target bundleno = 37 (0x25), region = 32  ;;  %s241_s27 = sand.u32 (%p52_p3), 1, %s1868_s19  }
   0xf   : > { %s1528_s28 = smul.u32 (%p52_p3), 12, %s1876_s21 }
  0x10   : > { %s1743_s29 = smul.u32 (%p52_p3), 192, %s241_s27 }
  0x11   : > { %s1956_s7 = scalar_lea.vmem (%p52_p3), %s2190_s0, %s1528_s28 }
  0x12   : > { %v264_v0 = vld [vmem:[%s1956_s7] sm:$0xff] (%p52_p3)  ;;  %v266_v1 = vld [vmem:[%s1956_s7 + $0x18] sm:$0xff] (%p52_p3)  ;;  %v268_v2 = vld [vmem:[%s1956_s7 + $0x30] sm:$0xff] (%p52_p3)  ;;  %s1961_s8 = scalar_lea.vmem (%p52_p3), [#allocation3], %s1743_s29 }
  0x13   : > { %265 = vst [vmem:[%s1961_s8] sm:$0xff] (%p52_p3), %v264_v0  ;;  %267 = vst [vmem:[%s1961_s8 + $0xc] sm:$0xff] (%p52_p3), %v266_v1  ;;  %v270_v3 = vld [vmem:[%s1956_s7 + $0x48] sm:$0xff] (%p52_p3)  ;;  %v272_v4 = vld [vmem:[%s1956_s7 + $0x60] sm:$0xff] (%p52_p3) }
  0x14   : > { %269 = vst [vmem:[%s1961_s8 + $0x18] sm:$0xff] (%p52_p3), %v268_v2  ;;  %v274_v5 = vld [vmem:[%s1956_s7 + $0x78] sm:$0xff] (%p52_p3)  ;;  %271 = vst [vmem:[%s1961_s8 + $0x24] sm:$0xff] (%p52_p3), %v270_v3  ;;  %v276_v6 = vld [vmem:[%s1956_s7 + $0x90] sm:$0xff] (%p52_p3) }
  0x15   : > { %273 = vst [vmem:[%s1961_s8 + $0x30] sm:$0xff] %v272_v4  ;;  %275 = vst [vmem:[%s1961_s8 + $0x3c] sm:$0xff] %v274_v5  ;;  %v278_v7 = vld [vmem:[%s1956_s7 + $0xa8] sm:$0xff]  ;;  %v280_v8 = vld [vmem:[%s1956_s7 + $0xc0] sm:$0xff] }
  0x16   : > { %277 = vst [vmem:[%s1961_s8 + $0x48] sm:$0xff] %v276_v6  ;;  %279 = vst [vmem:[%s1961_s8 + $0x54] sm:$0xff] %v278_v7  ;;  %v282_v9 = vld [vmem:[%s1956_s7 + $0xd8] sm:$0xff]  ;;  %v284_v10 = vld [vmem:[%s1956_s7 + $0xf0] sm:$0xff] }
  0x17   : > { %281 = vst [vmem:[%s1961_s8 + $0x60] sm:$0xff] %v280_v8  ;;  %v286_v11 = vld [vmem:[%s1956_s7 + $0x108] sm:$0xff]  ;;  %283 = vst [vmem:[%s1961_s8 + $0x6c] sm:$0xff] %v282_v9  ;;  %v288_v12 = vld [vmem:[%s1956_s7 + $0x120] sm:$0xff] }
  0x18   : > { %285 = vst [vmem:[%s1961_s8 + $0x78] sm:$0xff] %v284_v10  ;;  %287 = vst [vmem:[%s1961_s8 + $0x84] sm:$0xff] %v286_v11  ;;  %v290_v13 = vld [vmem:[%s1956_s7 + $0x138] sm:$0xff]  ;;  %v292_v14 = vld [vmem:[%s1956_s7 + $0x150] sm:$0xff] }
  0x19   : > { %289 = vst [vmem:[%s1961_s8 + $0x90] sm:$0xff] %v288_v12  ;;  %291 = vst [vmem:[%s1961_s8 + $0x9c] sm:$0xff] %v290_v13  ;;  %v294_v15 = vld [vmem:[%s1956_s7 + $0x168] sm:$0xff]  ;;  %v1424_v17 = vld [vmem:[%s1956_s7 + $0x20] sm:$0xf] }
  0x1a   : > { %293 = vst [vmem:[%s1961_s8 + $0xa8] sm:$0xff] %v292_v14  ;;  %v1422_v16 = vld [vmem:[%s1956_s7 + $0x8] sm:$0xf]  ;;  %295 = vst [vmem:[%s1961_s8 + $0xb4] sm:$0xff] %v294_v15  ;;  %v1426_v18 = vld [vmem:[%s1956_s7 + $0x38] sm:$0xf] }
  0x1b   : > { %1423 = vst [vmem:[%s1961_s8 + $0x8] sm:$0xf] %v1422_v16  ;;  %1425 = vst [vmem:[%s1961_s8 + $0x14] sm:$0xf] %v1424_v17  ;;  %v1428_v19 = vld [vmem:[%s1956_s7 + $0x50] sm:$0xf] }
  0x1c   : > { %v1430_v20 = vld [vmem:[%s1956_s7 + $0x68] sm:$0xf]  ;;  %1427 = vst [vmem:[%s1961_s8 + $0x20] sm:$0xf] %v1426_v18  ;;  %1429 = vst [vmem:[%s1961_s8 + $0x2c] sm:$0xf] %v1428_v19 }
  0x1d   : > { %1431 = vst [vmem:[%s1961_s8 + $0x38] sm:$0xf] %v1430_v20  ;;  %v1432_v21 = vld [vmem:[%s1956_s7 + $0x80] sm:$0xf]  ;;  %v1434_v22 = vld [vmem:[%s1956_s7 + $0x98] sm:$0xf] }
  0x1e   : > { %v1436_v23 = vld [vmem:[%s1956_s7 + $0xb0] sm:$0xf]  ;;  %1433 = vst [vmem:[%s1961_s8 + $0x44] sm:$0xf] %v1432_v21  ;;  %1435 = vst [vmem:[%s1961_s8 + $0x50] sm:$0xf] %v1434_v22 }
  0x1f   : > { %1437 = vst [vmem:[%s1961_s8 + $0x5c] sm:$0xf] %v1436_v23  ;;  %v1438_v24 = vld [vmem:[%s1956_s7 + $0xc8] sm:$0xf]  ;;  %v1440_v25 = vld [vmem:[%s1956_s7 + $0xe0] sm:$0xf] }
  0x20   : > { %v1442_v26 = vld [vmem:[%s1956_s7 + $0xf8] sm:$0xf]  ;;  %1439 = vst [vmem:[%s1961_s8 + $0x68] sm:$0xf] %v1438_v24  ;;  %1441 = vst [vmem:[%s1961_s8 + $0x74] sm:$0xf] %v1440_v25 }
  0x21   : > { %1443 = vst [vmem:[%s1961_s8 + $0x80] sm:$0xf] %v1442_v26  ;;  %v1444_v27 = vld [vmem:[%s1956_s7 + $0x110] sm:$0xf]  ;;  %v1446_v28 = vld [vmem:[%s1956_s7 + $0x128] sm:$0xf] }
  0x22   : > { %v1448_v29 = vld [vmem:[%s1956_s7 + $0x140] sm:$0xf]  ;;  %1445 = vst [vmem:[%s1961_s8 + $0x8c] sm:$0xf] %v1444_v27  ;;  %1447 = vst [vmem:[%s1961_s8 + $0x98] sm:$0xf] %v1446_v28 }
  0x23   : > { %1449 = vst [vmem:[%s1961_s8 + $0xa4] sm:$0xf] %v1448_v29  ;;  %v1450_v30 = vld [vmem:[%s1956_s7 + $0x158] sm:$0xf]  ;;  %v1452_v31 = vld [vmem:[%s1956_s7 + $0x170] sm:$0xf] }
  0x24   : > { %1451 = vst [vmem:[%s1961_s8 + $0xb0] sm:$0xf] %v1450_v30  ;;  %1453 = vst [vmem:[%s1961_s8 + $0xbc] sm:$0xf] %v1452_v31 }
  0x25 PF: > { %p1454_p6 = scmp.ge.s32.totalorder %s1880_s22, 1  ;;  %p351_p7 = scmp.lt.s32.totalorder %s1880_s22, 3 }
  0x27   : > { %p352_p8 = pnand %p1454_p6, %p351_p7 }
  0x28   : > { %s358_s9 = sand.u32 (!%p352_p8), 1, %s1864_s18   ;;  %s412_s10 = smul.u32 (!%p352_p8), 48, %s1872_s20 }
  0x29   : > { %355 = sbr.rel (%p352_p8) target bundleno = 387 (0x183), region = 62  ;;  %p1456_p10 = scmp.ne.s32.totalorder (!%p352_p8), %s1872_s20, 0 }
  0x2a   : > { %s1744_s11 = smul.u32 (!%p352_p8), 192, %s358_s9  ;;  %p413_p9 = scmp.lt.s32.totalorder (!%p352_p8), %s412_s10, 95 }
  0x2c   : > { %s2033_s16 = scalar_lea.vmem (!%p352_p8), [#allocation3], %s1744_s11 }
  0x30   : > { %s2203_s10 = smov (!%p413_p9, %s412_s10), 95  ;;  %449 = sbr.rel (%p1456_p10) target bundleno = 58 (0x3a), region = 70 }
  0x31   : > { %s1455_s12 = sshll.u32 %s2203_s10, 2  ;;  %v1882_v32 = vmov (!%p1456_p10), 0.0  }
  0x32   : > { %s2031_s15 = scalar_lea.vmem %s2191_s1, %s1455_s12  ;;  %450 = vst [vmem:[#allocation2] sm:$0xff] (!%p1456_p10), %v1882_v32  ;;  %451 = vst [vmem:[#allocation2 + $0x8] sm:$0xff] (!%p1456_p10), %v1882_v32 }
  0x33   : > { %452 = vst [vmem:[#allocation2 + $0x10] sm:$0xff] (!%p1456_p10), %v1882_v32  ;;  %453 = vst [vmem:[#allocation2 + $0x18] sm:$0xff] (!%p1456_p10), %v1882_v32 }
  0x34   : > { %454 = vst [vmem:[#allocation2 + $0x20] sm:$0xff] (!%p1456_p10), %v1882_v32  ;;  %455 = vst [vmem:[#allocation2 + $0x28] sm:$0xff] (!%p1456_p10), %v1882_v32 }
  0x35   : > { %456 = vst [vmem:[#allocation2 + $0x30] sm:$0xff] (!%p1456_p10), %v1882_v32  ;;  %457 = vst [vmem:[#allocation2 + $0x38] sm:$0xff] (!%p1456_p10), %v1882_v32 }
  0x36   : > { %458 = vst [vmem:[#allocation2 + $0x40] sm:$0xff] (!%p1456_p10), %v1882_v32  ;;  %459 = vst [vmem:[#allocation2 + $0x48] sm:$0xff] (!%p1456_p10), %v1882_v32 }
  0x37   : > { %460 = vst [vmem:[#allocation2 + $0x50] sm:$0xff] %v1882_v32  ;;  %461 = vst [vmem:[#allocation2 + $0x58] sm:$0xff] %v1882_v32 }
  0x38   : > { %462 = vst [vmem:[#allocation2 + $0x60] sm:$0xff] %v1882_v32  ;;  %463 = vst [vmem:[#allocation2 + $0x68] sm:$0xff] %v1882_v32 }
  0x39   : > { %464 = vst [vmem:[#allocation2 + $0x70] sm:$0xff] %v1882_v32  ;;  %465 = vst [vmem:[#allocation2 + $0x78] sm:$0xff] %v1882_v32 }
  0x3a PF: > { %v1786_v33 = vld [vmem:[%s2031_s15 + $0x40] sm:$0xff]   ;;  %v1789_v36 = vld [vmem:[%s2031_s15 + $0x48] sm:$0xff]   ;;  %v1792_v39 = vld [vmem:[%s2031_s15 + $0x50] sm:$0xff]   ;;  %p1505_p11 = scmp.ne.s32.totalorder %s1872_s20, 1 }
  0x3b   : > { %v1787_v34 = vld [vmem:[%s2031_s15] sm:$0xff]   ;;  %1631 = vmatprep.subr.bf16.mxu0 %v1786_v33  ;;  %v1790_v37 = vld [vmem:[%s2031_s15 + $0x8] sm:$0xff]   ;;  %v1793_v40 = vld [vmem:[%s2031_s15 + $0x10] sm:$0xff]  }
  0x3c   : > { %v1788_v35 = vld [vmem:[%s2031_s15 + $0x80] sm:$0xff]   ;;  %1632 = vmatpush3.bf16.msra.mxu0 %v1787_v34  ;;  %v1791_v38 = vld [vmem:[%s2031_s15 + $0x88] sm:$0xff]   ;;  %v1794_v41 = vld [vmem:[%s2031_s15 + $0x90] sm:$0xff]  }
  0x3d   : > { %1711 = vmatprep.subr.bf16.mxu1 %v1788_v35  ;;  %1633 = vmatprep.subr.bf16.mxu0 %v1789_v36  ;;  %v1795_v42 = vld [vmem:[%s2031_s15 + $0x58] sm:$0xff]   ;;  %v1798_v45 = vld [vmem:[%s2031_s15 + $0x60] sm:$0xff]   ;;  %v1801_v48 = vld [vmem:[%s2031_s15 + $0x68] sm:$0xff]  }
  0x3e   : > { %1712 = vmatpush3.bf16.msra.mxu1 %v1788_v35  ;;  %v1796_v43 = vld [vmem:[%s2031_s15 + $0x18] sm:$0xff]   ;;  %v1800_v46 = vld [vmem:[%s2031_s15 + $0xa0] sm:$0xff]   ;;  %v1803_v49 = vld [vmem:[%s2031_s15 + $0xa8] sm:$0xff]  }
  0x3f   : > { %1713 = vmatprep.subr.bf16.mxu1 %v1791_v38  ;;  %v1797_v44 = vld [vmem:[%s2031_s15 + $0x98] sm:$0xff]   ;;  %v1799_v47 = vld [vmem:[%s2031_s15 + $0x20] sm:$0xff]   ;;  %v1802_v50 = vld [vmem:[%s2031_s15 + $0x28] sm:$0xff]  }
  0x40   : > { %1634 = vmatpush3.bf16.msra.mxu0 %v1790_v37  ;;  %v1804_v51 = vld [vmem:[%s2031_s15 + $0x70] sm:$0xff]   ;;  %v1807_v54 = vld [vmem:[%s2031_s15 + $0x78] sm:$0xff]   ;;  %v1810_v59 = vld [vmem:[%s2033_s16] ss:$12 sps:$4 sm:$0xff]  }
  0x41   : > { %1635 = vmatprep.subr.bf16.mxu0 %v1792_v39  ;;  %v1805_v52 = vld [vmem:[%s2031_s15 + $0x30] sm:$0xff]   ;;  %v1809_v55 = vld [vmem:[%s2031_s15 + $0xb8] sm:$0xff]   ;;  %v1814_v61 = vld [vmem:[%s2033_s16 + $0x20] ss:$12 sps:$4 sm:$0xff]  }
  0x42   : > { %1714 = vmatpush3.bf16.msra.mxu1 %v1791_v38  ;;  %v1806_v53 = vld [vmem:[%s2031_s15 + $0xb0] sm:$0xff]   ;;  %v1808_v58 = vld [vmem:[%s2031_s15 + $0x38] sm:$0xff]   ;;  %v1830_v5 = vld [vmem:[%s2033_s16 + $0x80] ss:$12 sps:$4 sm:$0xff]  }
  0x43   : > { %1715 = vmatprep.subr.bf16.mxu1 %v1794_v41  ;;  %v1812_v56 = vld [vmem:[%s2033_s16 + $0x4] ss:$12 sps:$4 sm:$0xff]   ;;  %v1813_v57 = vld [vmem:[%s2033_s16 + $0x8] ss:$12 sps:$4 sm:$0xff]   ;;  %v1823_v4 = vld [vmem:[%s2033_s16 + $0x4c] ss:$12 sps:$4 sm:$0xff]  }
  0x44   : > { %1636 = vmatpush3.bf16.msra.mxu0 %v1793_v40  ;;  %866 = vmatprep.mubr.bf16.mxu0 %v1812_v56  ;;  %v1815_v60 = vld [vmem:[%s2033_s16 + $0x1c] ss:$12 sps:$4 sm:$0xff]   ;;  %v1821_v62 = vld [vmem:[%s2033_s16 + $0x38] ss:$12 sps:$4 sm:$0xff]   ;;  %v1818_v0 = vld [vmem:[%s2033_s16 + $0x34] ss:$12 sps:$4 sm:$0xff]  }
  0x45   : > { %1637 = vmatprep.subr.bf16.mxu0 %v1795_v42  ;;  %1727 = vmatprep.mubr.bf16.mxu1 %v1813_v57  ;;  %v1817_v63 = vld [vmem:[%s2033_s16 + $0x18] ss:$12 sps:$4 sm:$0xff]   ;;  %v1822_v1 = vld [vmem:[%s2033_s16 + $0x50] ss:$12 sps:$4 sm:$0xff]   ;;  %v1829_v2 = vld [vmem:[%s2033_s16 + $0x68] ss:$12 sps:$4 sm:$0xff]  }
  0x46   : > { %1716 = vmatpush3.bf16.msra.mxu1 %v1794_v41  ;;  %v1820_v3 = vld [vmem:[%s2033_s16 + $0x30] ss:$12 sps:$4 sm:$0xff]   ;;  %v1837_v6 = vld [vmem:[%s2033_s16 + $0x98] ss:$12 sps:$4 sm:$0xff]   ;;  %v1825_v7 = vld [vmem:[%s2033_s16 + $0x48] ss:$12 sps:$4 sm:$0xff]  }
  0x47   : > { %1717 = vmatprep.subr.bf16.mxu1 %v1797_v44  ;;  %v1826_v8 = vld [vmem:[%s2033_s16 + $0x64] ss:$12 sps:$4 sm:$0xff]   ;;  %v1828_v10 = vld [vmem:[%s2033_s16 + $0x60] ss:$12 sps:$4 sm:$0xff]   ;;  %v1831_v11 = vld [vmem:[%s2033_s16 + $0x7c] ss:$12 sps:$4 sm:$0xff]  }
  0x48   : > { %1638 = vmatpush3.bf16.msra.mxu0 %v1796_v43  ;;  %v1838_v9 = vld [vmem:[%s2033_s16 + $0xb0] ss:$12 sps:$4 sm:$0xff]   ;;  %v1833_v12 = vld [vmem:[%s2033_s16 + $0x78] ss:$12 sps:$4 sm:$0xff]   ;;  %v1834_v13 = vld [vmem:[%s2033_s16 + $0x94] ss:$12 sps:$4 sm:$0xff]  }
  0x49   : > { %1639 = vmatprep.subr.bf16.mxu0 %v1798_v45  ;;  %v1836_v14 = vld [vmem:[%s2033_s16 + $0x90] ss:$12 sps:$4 sm:$0xff]   ;;  %v1839_v15 = vld [vmem:[%s2033_s16 + $0xac] ss:$12 sps:$4 sm:$0xff]   ;;  %v1841_v16 = vld [vmem:[%s2033_s16 + $0xa8] ss:$12 sps:$4 sm:$0xff]  }
  0x4a   : > { %1718 = vmatpush3.bf16.msra.mxu1 %v1797_v44  ;;  %v466_v23 = vld [vmem:[#allocation2] sm:$0xff]  ;;  %v467_v28 = vld [vmem:[#allocation2 + $0x8] sm:$0xff]  ;;  %v468_v38 = vld [vmem:[#allocation2 + $0x10] sm:$0xff] }
  0x4b   : > { %1719 = vmatprep.subr.bf16.mxu1 %v1800_v46  ;;  %v469_v44 = vld [vmem:[#allocation2 + $0x18] sm:$0xff] }
  0x4c   : > { %1640 = vmatpush3.bf16.msra.mxu0 %v1799_v47 }
  0x4d   : > { %1641 = vmatprep.subr.bf16.mxu0 %v1801_v48 }
  0x4e   : > { %1720 = vmatpush3.bf16.msra.mxu1 %v1800_v46 }
  0x4f   : > { %1721 = vmatprep.subr.bf16.mxu1 %v1803_v49 }
  0x50   : > { %1642 = vmatpush3.bf16.msra.mxu0 %v1802_v50 }
  0x51   : > { %1643 = vmatprep.subr.bf16.mxu0 %v1804_v51 }
  0x52   : > { %1722 = vmatpush3.bf16.msra.mxu1 %v1803_v49 }
  0x53   : > { %1723 = vmatprep.subr.bf16.mxu1 %v1806_v53 }
  0x54   : > { %1644 = vmatpush3.bf16.msra.mxu0 %v1805_v52 }
  0x55   : > { %1645 = vmatprep.subr.bf16.mxu0 %v1807_v54 }
  0x56   : > { %1724 = vmatpush3.bf16.msra.mxu1 %v1806_v53 }
  0x57   : > { %1725 = vmatprep.subr.bf16.mxu1 %v1809_v55 }
  0x58   : > { %1646 = vmatpush3.bf16.msra.mxu0 %v1808_v58 }
  0x5a   : > { %1726 = vmatpush3.bf16.msra.mxu1 %v1809_v55  ;;  %v470_v55 = vld [vmem:[#allocation2 + $0x20] sm:$0xff] }
  0x5b   : > { %867 = vmatmul.mubr.bf16.vlgmr.msra.gmra.mrb[0].mxu0 %v1810_v59 }
  0x5c   : > { %874 = vmatprep.mubr.bf16.mxu0 %v1815_v60  ;;  %v471_v60 = vld [vmem:[#allocation2 + $0x28] sm:$0xff] }
  0x5d   : > { %1728 = vmatmul.mubr.bf16.vlgmr.msra.gmra.mrb[0].mxu1 %v1814_v61 }
  0x5e   : > { %1731 = vmatprep.mubr.bf16.mxu1 %v1821_v62 }
  0x63   : > { %875 = vmatmul.mubr.bf16.gmra.mrb[4].mxu0 %v1817_v63 }
  0x64   : > { %882 = vmatprep.mubr.bf16.mxu0 %v1818_v0 }
  0x65   : > { %1732 = vmatmul.mubr.bf16.gmra.mrb[4].mxu1 %v1822_v1 }
  0x66   : > { %1735 = vmatprep.mubr.bf16.mxu1 %v1829_v2 }
  0x6b   : > { %883 = vmatmul.mubr.bf16.gmra.mrb[8].mxu0 %v1820_v3 }
  0x6c   : > { %890 = vmatprep.mubr.bf16.mxu0 %v1823_v4 }
  0x6d   : > { %1736 = vmatmul.mubr.bf16.gmra.mrb[8].mxu1 %v1830_v5 }
  0x6e   : > { %1739 = vmatprep.mubr.bf16.mxu1 %v1837_v6  ;;  %v472_v6 = vld [vmem:[#allocation2 + $0x30] sm:$0xff] }
  0x73   : > { %891 = vmatmul.mubr.bf16.gmra.mrb[12].mxu0 %v1825_v7 }
  0x74   : > { %898 = vmatprep.mubr.bf16.mxu0 %v1826_v8 }
  0x75   : > { %1740 = vmatmul.mubr.bf16.gmra.mrb[12].mxu1 %v1838_v9 }
  0x7b   : > { %899 = vmatmul.mubr.bf16.gmra.mrb[16].mxu0 %v1828_v10 }
  0x7c   : > { %906 = vmatprep.mubr.bf16.mxu0 %v1831_v11 }
  0x83   : > { %907 = vmatmul.mubr.bf16.gmra.mrb[20].mxu0 %v1833_v12  ;;  %v473_v12 = vld [vmem:[#allocation2 + $0x38] sm:$0xff] }
  0x84   : > { %914 = vmatprep.mubr.bf16.mxu0 %v1834_v13 }
  0x8b   : > { %915 = vmatmul.mubr.bf16.gmra.mrb[24].mxu0 %v1836_v14 }
  0x8c   : > { %922 = vmatprep.mubr.bf16.mxu0 %v1839_v15 }
  0x93   : > { %923 = vmatmul.mubr.bf16.gmra.mrb[28].mxu0 %v1841_v16 }
 0x12e   : > { %v1647_v17 = vpop.f32.mrb[0].mxu0 }
 0x12f   : > { %v1648_v18 = vpop.f32.mrb[1].mxu0 }
 0x130   : > { %v1649_v19 = vadd.f32 %v1648_v18, %v1647_v17  ;;  %v1650_v20 = vpop.f32.mrb[2].mxu0  ;;  %v1729_v21 = vpop.f32.mrb[0].mxu1 }
 0x131   : > { %v1651_v22 = vpop.f32.mrb[3].mxu0  ;;  %v965_v24 = vpop.f32.mrb[1].mxu1 }
 0x132   : > { %v1652_v25 = vadd.f32 %v1651_v22, %v1650_v20  ;;  %v966_v26 = vadd.f32 %v1649_v19, %v965_v24  ;;  %v1730_v27 = vpop.f32.mrb[2].mxu1  ;;  %v474_v22 = vld [vmem:[#allocation2 + $0x40] sm:$0xff] }
 0x133   : > { %v968_v29 = vpop.f32.mrb[3].mxu1 }
 0x134   : > { %v1028_v30 = vadd.f32 %v966_v26, %v466_v23  ;;  %v969_v31 = vadd.f32 %v1652_v25, %v968_v29  ;;  %v475_v25 = vld [vmem:[#allocation2 + $0x48] sm:$0xff] }
 0x136   : > { %1044 = vst [vmem:[#allocation2] sm:$0xff] %v1028_v30  ;;  %v1029_v32 = vadd.f32 %v969_v31, %v467_v28  ;;  %v1653_v33 = vpop.f32.mrb[4].mxu0 }
 0x137   : > { %v1654_v34 = vpop.f32.mrb[5].mxu0 }
 0x138   : > { %1045 = vst [vmem:[#allocation2 + $0x8] sm:$0xff] %v1029_v32  ;;  %v1655_v35 = vadd.f32 %v1654_v34, %v1653_v33  ;;  %v1656_v36 = vpop.f32.mrb[6].mxu0  ;;  %v1733_v37 = vpop.f32.mrb[4].mxu1  ;;  %v476_v33 = vld [vmem:[#allocation2 + $0x50] sm:$0xff] }
 0x139   : > { %v1657_v39 = vpop.f32.mrb[7].mxu0  ;;  %v981_v40 = vpop.f32.mrb[5].mxu1 }
 0x13a   : > { %v974_v41 = vadd.f32 %v1729_v21, %v1655_v35  ;;  %v1658_v42 = vadd.f32 %v1657_v39, %v1656_v36  ;;  %v1734_v43 = vpop.f32.mrb[6].mxu1 }
 0x13b   : > { %v984_v45 = vpop.f32.mrb[7].mxu1 }
 0x13c   : > { %v1030_v46 = vadd.f32 %v974_v41, %v468_v38  ;;  %v977_v47 = vadd.f32 %v1730_v27, %v1658_v42 }
 0x13e   : > { %1046 = vst [vmem:[#allocation2 + $0x10] sm:$0xff] %v1030_v46  ;;  %v1031_v48 = vadd.f32 %v977_v47, %v469_v44  ;;  %v1659_v49 = vpop.f32.mrb[8].mxu0  ;;  %v478_v46 = vld [vmem:[#allocation2 + $0x60] sm:$0xff] }
 0x13f   : > { %v1660_v50 = vpop.f32.mrb[9].mxu0 }
 0x140   : > { %1047 = vst [vmem:[#allocation2 + $0x18] sm:$0xff] %v1031_v48  ;;  %v1661_v51 = vadd.f32 %v1660_v50, %v1659_v49  ;;  %v1662_v52 = vpop.f32.mrb[10].mxu0  ;;  %v1737_v53 = vpop.f32.mrb[8].mxu1  ;;  %v479_v49 = vld [vmem:[#allocation2 + $0x68] sm:$0xff] }
 0x141   : > { %v1663_v54 = vpop.f32.mrb[11].mxu0  ;;  %v997_v56 = vpop.f32.mrb[9].mxu1 }
 0x142   : > { %v1664_v57 = vadd.f32 %v1663_v54, %v1662_v52  ;;  %v982_v58 = vadd.f32 %v1661_v51, %v981_v40  ;;  %v1738_v59 = vpop.f32.mrb[10].mxu1 }
 0x143   : > { %v1000_v61 = vpop.f32.mrb[11].mxu1 }
 0x144   : > { %v1032_v62 = vadd.f32 %v982_v58, %v470_v55  ;;  %v985_v63 = vadd.f32 %v1664_v57, %v984_v45  ;;  %v480_v57 = vld [vmem:[#allocation2 + $0x70] sm:$0xff] }
 0x146   : > { %1048 = vst [vmem:[#allocation2 + $0x20] sm:$0xff] %v1032_v62  ;;  %v1033_v0 = vadd.f32 %v985_v63, %v471_v60  ;;  %v1665_v1 = vpop.f32.mrb[12].mxu0 }
 0x147   : > { %v1666_v2 = vpop.f32.mrb[13].mxu0 }
 0x148   : > { %1049 = vst [vmem:[#allocation2 + $0x28] sm:$0xff] %v1033_v0  ;;  %v1667_v3 = vadd.f32 %v1666_v2, %v1665_v1  ;;  %v1668_v4 = vpop.f32.mrb[14].mxu0  ;;  %v1741_v5 = vpop.f32.mrb[12].mxu1  ;;  %v1064_v1 = vld [vmem:[#allocation2] sm:$0xff] (!%p1505_p11)  ;;  %v1065_v2 = vld [vmem:[#allocation2 + $0x8] sm:$0xff] (!%p1505_p11) }
 0x149   : > { %v1669_v7 = vpop.f32.mrb[15].mxu0  ;;  %v1013_v8 = vpop.f32.mrb[13].mxu1 }
 0x14a   : > { %v990_v9 = vadd.f32 %v1733_v37, %v1667_v3  ;;  %v1670_v10 = vadd.f32 %v1669_v7, %v1668_v4  ;;  %v1742_v11 = vpop.f32.mrb[14].mxu1  ;;  %v477_v37 = vld [vmem:[#allocation2 + $0x58] sm:$0xff]  ;;  %v2088_v3 = vld [vmem:[%s2192_s2] ss:$0 sm:$0xff] (!%p1505_p11) }
 0x14b   : > { %v1016_v13 = vpop.f32.mrb[15].mxu1  ;;  %v1087_v4 = vmul.f32 (!%p1505_p11), %v2088_v3, %v1064_v1  ;;  %v1546_v7 = vld [vmem:[%s2194_s4] sm:$0xff] (!%p1505_p11)  }
 0x14c   : > { %v1034_v14 = vadd.f32 %v990_v9, %v472_v6  ;;  %v993_v15 = vadd.f32 %v1734_v43, %v1670_v10  ;;  %v2095_v6 = vld [vmem:[%s2193_s3] ss:$0 sm:$0xff] (!%p1505_p11)  ;;  %v1547_v9 = vunpack.c.l.bf16 (!%p1505_p11), %v1546_v7  ;;  %v1548_v10 = vunpack.c.h.bf16 (!%p1505_p11), %v1546_v7 }
 0x14e   : > { %1050 = vst [vmem:[#allocation2 + $0x30] sm:$0xff] %v1034_v14  ;;  %v1035_v16 = vadd.f32 %v993_v15, %v473_v12  ;;  %v1671_v17 = vpop.f32.mrb[16].mxu0  ;;  %v1068_v14 = vld [vmem:[#allocation2 + $0x20] sm:$0xff] (!%p1505_p11)  ;;  %v1110_v15 = vadd.f32 (!%p1505_p11), %v2095_v6, %v1087_v4 }
 0x14f   : > { %v1672_v18 = vpop.f32.mrb[17].mxu0 }
 0x150   : > { %1051 = vst [vmem:[#allocation2 + $0x38] sm:$0xff] %v1035_v16  ;;  %v1673_v19 = vadd.f32 %v1672_v18, %v1671_v17  ;;  %v1674_v20 = vpop.f32.mrb[18].mxu0 }
 0x151   : > { %v1675_v21 = vpop.f32.mrb[19].mxu0 }
 0x152   : > { %v1676_v23 = vadd.f32 %v1675_v21, %v1674_v20  ;;  %v998_v24 = vadd.f32 %v1673_v19, %v997_v56  ;;  %v1069_v19 = vld [vmem:[#allocation2 + $0x28] sm:$0xff] (!%p1505_p11)  ;;  %v1618_v20 = vld [vmem:[%s2194_s4 + $0x10] sm:$0xff] (!%p1505_p11)  }
 0x154   : > { %v1036_v26 = vadd.f32 %v998_v24, %v474_v22  ;;  %v1001_v27 = vadd.f32 %v1676_v23, %v1000_v61  ;;  %v481_v61 = vld [vmem:[#allocation2 + $0x78] sm:$0xff]  ;;  %v1091_v23 = vmul.f32 (!%p1505_p11), %v2088_v3, %v1068_v14  ;;  %v1092_v24 = vmul.f32 (!%p1505_p11), %v2088_v3, %v1069_v19 }
 0x156   : > { %1052 = vst [vmem:[#allocation2 + $0x40] sm:$0xff] %v1036_v26  ;;  %v1037_v28 = vadd.f32 %v1001_v27, %v475_v25  ;;  %v1677_v29 = vpop.f32.mrb[20].mxu0  ;;  %v1070_v25 = vld [vmem:[#allocation2 + $0x30] sm:$0xff] (!%p1505_p11)  ;;  %v1158_v26 = vadd.f32 (!%p1505_p11), %v1547_v9, %v1110_v15 }
 0x157   : > { %v1678_v30 = vpop.f32.mrb[21].mxu0 }
 0x158   : > { %1053 = vst [vmem:[#allocation2 + $0x48] sm:$0xff] %v1037_v28  ;;  %v1679_v31 = vadd.f32 %v1678_v30, %v1677_v29  ;;  %v1680_v32 = vpop.f32.mrb[22].mxu0  ;;  %v1555_v29 = vunpack.c.l.bf16 (!%p1505_p11), %v1618_v20  ;;  %v1071_v30 = vld [vmem:[#allocation2 + $0x38] sm:$0xff] (!%p1505_p11) }
 0x159   : > { %v1681_v34 = vpop.f32.mrb[23].mxu0 }
 0x15a   : > { %v1006_v35 = vadd.f32 %v1737_v53, %v1679_v31  ;;  %v1682_v36 = vadd.f32 %v1681_v34, %v1680_v32  ;;  %v1114_v32 = vadd.f32 (!%p1505_p11), %v2095_v6, %v1091_v23  ;;  %v1556_v34 = vunpack.c.h.bf16 (!%p1505_p11), %v1618_v20 }
 0x15c   : > { %v1038_v38 = vadd.f32 %v1006_v35, %v476_v33  ;;  %v1009_v39 = vadd.f32 %v1738_v59, %v1682_v36  ;;  %v1115_v33 = vadd.f32 (!%p1505_p11), %v2095_v6, %v1092_v24  ;;  %v1619_v35 = vld [vmem:[%s2194_s4 + $0x18] sm:$0xff] (!%p1505_p11)   ;;  %v1174_v36 = vmax.f32 (!%p1505_p11), %v1158_v26, 0.0 }
 0x15e   : > { %1054 = vst [vmem:[#allocation2 + $0x50] sm:$0xff] %v1038_v38  ;;  %v1039_v40 = vadd.f32 %v1009_v39, %v477_v37  ;;  %v1683_v41 = vpop.f32.mrb[24].mxu0  ;;  %v1093_v39 = vmul.f32 (!%p1505_p11), %v2088_v3, %v1070_v25 }
 0x15f   : > { %v1684_v42 = vpop.f32.mrb[25].mxu0 }
 0x160   : > { %1055 = vst [vmem:[#allocation2 + $0x58] sm:$0xff] %v1039_v40  ;;  %v1685_v43 = vadd.f32 %v1684_v42, %v1683_v41  ;;  %v1686_v44 = vpop.f32.mrb[26].mxu0  ;;  %v1162_v41 = vadd.f32 (!%p1505_p11), %v1555_v29, %v1114_v32  ;;  %v1163_v42 = vadd.f32 (!%p1505_p11), %v1556_v34, %v1115_v33  ;;  %v1623_v29 = vld [vmem:[%s2194_s4 + $0x38] sm:$0xff] (!%p1505_p11)  }
 0x161   : > { %v1687_v45 = vpop.f32.mrb[27].mxu0 }
 0x162   : > { %v1688_v47 = vadd.f32 %v1687_v45, %v1686_v44  ;;  %v1014_v48 = vadd.f32 %v1685_v43, %v1013_v8  ;;  %v1066_v8 = vld [vmem:[#allocation2 + $0x10] sm:$0xff] (!%p1505_p11)  ;;  %v1094_v43 = vmul.f32 (!%p1505_p11), %v2088_v3, %v1071_v30  ;;  %v1072_v44 = vld [vmem:[#allocation2 + $0x40] sm:$0xff] (!%p1505_p11)  ;;  %v1073_v45 = vld [vmem:[#allocation2 + $0x48] sm:$0xff] (!%p1505_p11) }
 0x163   : > { %v1089_v12 = vmul.f32 (!%p1505_p11), %v2088_v3, %v1066_v8 }
 0x164   : > { %v1040_v50 = vadd.f32 %v1014_v48, %v478_v46  ;;  %v1017_v51 = vadd.f32 %v1688_v47, %v1016_v13  ;;  %v1617_v13 = vld [vmem:[%s2194_s4 + $0x8] sm:$0xff] (!%p1505_p11)   ;;  %v1116_v48 = vadd.f32 (!%p1505_p11), %v2095_v6, %v1093_v39 }
 0x165   : > { %v1551_v18 = vunpack.c.l.bf16 (!%p1505_p11), %v1617_v13  ;;  %v1112_v21 = vadd.f32 (!%p1505_p11), %v2095_v6, %v1089_v12  ;;  %v1552_v22 = vunpack.c.h.bf16 (!%p1505_p11), %v1617_v13 }
 0x166   : > { %1056 = vst [vmem:[#allocation2 + $0x60] sm:$0xff] %v1040_v50  ;;  %v1041_v52 = vadd.f32 %v1017_v51, %v479_v49  ;;  %v1689_v53 = vpop.f32.mrb[28].mxu0  ;;  %v1559_v49 = vunpack.c.l.bf16 (!%p1505_p11), %v1619_v35  ;;  %v1620_v50 = vld [vmem:[%s2194_s4 + $0x20] sm:$0xff] (!%p1505_p11)   ;;  %v1178_v51 = vmax.f32 (!%p1505_p11), %v1162_v41, 0.0  ;;  %v1575_v41 = vunpack.c.l.bf16 (!%p1505_p11), %v1623_v29 }
 0x167   : > { %v1690_v54 = vpop.f32.mrb[29].mxu0  ;;  %v1160_v31 = vadd.f32 (!%p1505_p11), %v1551_v18, %v1112_v21  ;;  %v1564_v1 = vunpack.c.h.bf16 (!%p1505_p11), %v1620_v50 }
 0x168   : > { %1057 = vst [vmem:[#allocation2 + $0x68] sm:$0xff] %v1041_v52  ;;  %v1691_v55 = vadd.f32 %v1690_v54, %v1689_v53  ;;  %v1692_v56 = vpop.f32.mrb[30].mxu0  ;;  %v1179_v52 = vmax.f32 (!%p1505_p11), %v1163_v42, 0.0  ;;  %v1117_v53 = vadd.f32 (!%p1505_p11), %v2095_v6, %v1094_v43  ;;  %v1560_v54 = vunpack.c.h.bf16 (!%p1505_p11), %v1619_v35 }
 0x169   : > { %v1693_v58 = vpop.f32.mrb[31].mxu0  ;;  %v1176_v40 = vmax.f32 (!%p1505_p11), %v1160_v31, 0.0 }
 0x16a   : > { %v1022_v59 = vadd.f32 %v1741_v5, %v1691_v55  ;;  %v1694_v60 = vadd.f32 %v1693_v58, %v1692_v56  ;;  %1063 = sbr.rel (%p1505_p11) target bundleno = 387 (0x183), region = 74  ;;  %v1088_v5 = vmul.f32 (!%p1505_p11), %v2088_v3, %v1065_v2  ;;  %v1074_v55 = vld [vmem:[#allocation2 + $0x50] sm:$0xff] (!%p1505_p11)  ;;  %v1095_v58 = vmul.f32 (!%p1505_p11), %v2088_v3, %v1072_v44 }
 0x16b   : > { %v1097_v8 = vmul.f32 (!%p1505_p11), %v2088_v3, %v1074_v55  ;;  %v1576_v44 = vunpack.c.h.bf16 (!%p1505_p11), %v1623_v29 }
 0x16c   : > { %v1042_v62 = vadd.f32 %v1022_v59, %v480_v57  ;;  %v1025_v63 = vadd.f32 %v1742_v11, %v1694_v60  ;;  %v1067_v11 = vld [vmem:[#allocation2 + $0x18] sm:$0xff] (!%p1505_p11)  ;;  %v1111_v16 = vadd.f32 (!%p1505_p11), %v2095_v6, %v1088_v5  ;;  %v1164_v57 = vadd.f32 (!%p1505_p11), %v1559_v49, %v1116_v48 }
 0x16d   : > { %v1090_v17 = vmul.f32 (!%p1505_p11), %v2088_v3, %v1067_v11  ;;  %v1096_v59 = vmul.f32 (!%p1505_p11), %v2088_v3, %v1073_v45  ;;  %v1075_v60 = vld [vmem:[#allocation2 + $0x58] sm:$0xff] (!%p1505_p11)  ;;  %v1076_v2 = vld [vmem:[#allocation2 + $0x60] sm:$0xff] (!%p1505_p11)  ;;  %v1118_v5 = vadd.f32 (!%p1505_p11), %v2095_v6, %v1095_v58 }
 0x16e   : > { %1058 = vst [vmem:[#allocation2 + $0x70] sm:$0xff] %v1042_v62  ;;  %v1043_v0 = vadd.f32 %v1025_v63, %v481_v61  ;;  %v1159_v27 = vadd.f32 (!%p1505_p11), %v1548_v10, %v1111_v16  ;;  %v1621_v61 = vld [vmem:[%s2194_s4 + $0x28] sm:$0xff] (!%p1505_p11)   ;;  %v1590_v62 = vpack.c.bf16 (!%p1505_p11), %v1179_v52, %v1178_v51  ;;  %v1165_v63 = vadd.f32 (!%p1505_p11), %v1560_v54, %v1117_v53  ;;  %v1622_v10 = vld [vmem:[%s2194_s4 + $0x30] sm:$0xff] (!%p1505_p11)  }
 0x16f   : > { %v1113_v28 = vadd.f32 (!%p1505_p11), %v2095_v6, %v1090_v17  ;;  %v1180_v4 = vmax.f32 (!%p1505_p11), %v1164_v57, 0.0  ;;  %v1119_v7 = vadd.f32 (!%p1505_p11), %v2095_v6, %v1096_v59  ;;  %v1077_v9 = vld [vmem:[#allocation2 + $0x68] sm:$0xff] (!%p1505_p11)  ;;  %v1098_v12 = vmul.f32 (!%p1505_p11), %v2088_v3, %v1075_v60 }
 0x170   : > { %1059 = vst [vmem:[#allocation2 + $0x78] sm:$0xff] %v1043_v0  ;;  %v1175_v37 = vmax.f32 (!%p1505_p11), %v1159_v27, 0.0  ;;  %v1563_v0 = vunpack.c.l.bf16 (!%p1505_p11), %v1620_v50  ;;  %1625 = vst [vmem:[%s2195_s5 + $0x10] sm:$0xff] (!%p1505_p11), %v1590_v62   ;;  %v1181_v11 = vmax.f32 (!%p1505_p11), %v1165_v63, 0.0  ;;  %v1567_v13 = vunpack.c.l.bf16 (!%p1505_p11), %v1621_v61 }
 0x171   : > { %v1161_v38 = vadd.f32 %v1552_v22, %v1113_v28  ;;  %v1568_v14 = vunpack.c.h.bf16 %v1621_v61  ;;  %v1167_v16 = vadd.f32 %v1564_v1, %v1119_v7  ;;  %v1120_v17 = vadd.f32 %v2095_v6, %v1097_v8 }
 0x172   : > { %v1580_v46 = vpack.c.bf16 %v1175_v37, %v1174_v36  ;;  %v1166_v15 = vadd.f32 %v1563_v0, %v1118_v5  ;;  %v1099_v18 = vmul.f32 %v2088_v3, %v1076_v2  ;;  %v1595_v20 = vpack.c.bf16 %v1181_v11, %v1180_v4 }
 0x173   : > { %v1177_v47 = vmax.f32 %v1161_v38, 0.0  ;;  %v1121_v21 = vadd.f32 %v2095_v6, %v1098_v12  ;;  %v1100_v22 = vmul.f32 %v2088_v3, %v1077_v9  ;;  %v1571_v23 = vunpack.c.l.bf16 %v1622_v10 }
 0x174   : > { %1581 = vst [vmem:[%s2195_s5] sm:$0xff] %v1580_v46   ;;  %v1182_v25 = vmax.f32 %v1166_v15, 0.0  ;;  %v1183_v26 = vmax.f32 %v1167_v16, 0.0  ;;  %v1168_v27 = vadd.f32 %v1567_v13, %v1120_v17  ;;  %v1122_v28 = vadd.f32 %v2095_v6, %v1099_v18  ;;  %1626 = vst [vmem:[%s2195_s5 + $0x18] sm:$0xff] %v1595_v20  }
 0x175   : > { %v1585_v56 = vpack.c.bf16 %v1177_v47, %v1176_v40  ;;  %v1078_v19 = vld [vmem:[#allocation2 + $0x70] sm:$0xff]  ;;  %v1169_v30 = vadd.f32 %v1568_v14, %v1121_v21  ;;  %v1123_v31 = vadd.f32 %v2095_v6, %v1100_v22  ;;  %v1572_v32 = vunpack.c.h.bf16 %v1622_v10 }
 0x176   : > { %v1101_v33 = vmul.f32 %v2088_v3, %v1078_v19  ;;  %v1600_v34 = vpack.c.bf16 %v1183_v26, %v1182_v25  ;;  %v1184_v35 = vmax.f32 %v1168_v27, 0.0  ;;  %v1170_v36 = vadd.f32 %v1571_v23, %v1122_v28 }
 0x177   : > { %1624 = vst [vmem:[%s2195_s5 + $0x8] sm:$0xff] %v1585_v56   ;;  %v1079_v24 = vld [vmem:[#allocation2 + $0x78] sm:$0xff]  ;;  %v1185_v38 = vmax.f32 %v1169_v30, 0.0  ;;  %v1171_v39 = vadd.f32 %v1572_v32, %v1123_v31 }
 0x178   : > { %v1102_v37 = vmul.f32 %v2088_v3, %v1079_v24  ;;  %v1124_v40 = vadd.f32 %v2095_v6, %v1101_v33  ;;  %1627 = vst [vmem:[%s2195_s5 + $0x20] sm:$0xff] %v1600_v34   ;;  %v1186_v42 = vmax.f32 %v1170_v36, 0.0 }
 0x179   : > { %v1605_v45 = vpack.c.bf16 %v1185_v38, %v1184_v35  ;;  %v1187_v46 = vmax.f32 %v1171_v39, 0.0 }
 0x17a   : > { %v1125_v43 = vadd.f32 %v2095_v6, %v1102_v37  ;;  %v1172_v47 = vadd.f32 %v1575_v41, %v1124_v40 }
 0x17b   : > { %1628 = vst [vmem:[%s2195_s5 + $0x28] sm:$0xff] %v1605_v45   ;;  %v1610_v3 = vpack.c.bf16 %v1187_v46, %v1186_v42 }
 0x17c   : > { %v1173_v48 = vadd.f32 %v1576_v44, %v1125_v43  ;;  %v1188_v49 = vmax.f32 %v1172_v47, 0.0 }
 0x17d   : > { %1629 = vst [vmem:[%s2195_s5 + $0x30] sm:$0xff] %v1610_v3  }
 0x17e   : > { %v1189_v50 = vmax.f32 %v1173_v48, 0.0 }
 0x180   : > { %v1615_v51 = vpack.c.bf16 %v1189_v50, %v1188_v49 }
 0x182   : > { %1630 = vst [vmem:[%s2195_s5 + $0x38] sm:$0xff] %v1615_v51  }
 0x183 PF: > { %s15_s22 = sadd.s32 1, %s1880_s22   ;;  %s2196_s18 = smov %s1868_s19 }
 0x184   : > { %p12_p12 = scmp.ge.s32.totalorder %s15_s22, 4   ;;  %s2197_s19 = smov %s1948_s26 }
 0x185   : > { %s2198_s20 = smov %s1876_s21  ;;  %s2199_s21 = smov %s2201_s23 }
 0x186   :  { %14 = sbr.rel (!%p12_p12) target bundleno = 3 (0x3), region = 127 }

// kernel: _lambda_.26
= control target key start
LH: loop header
LB: loop body
LE: loop exit
PB: predicated region body
PF: predicated region fallthrough
CT: control target
= control target key end

     0   :  { %s1142_s15 = smov 0   ;;  %s1144_s16 = smov 0   ;;  %s1255_s0 = inlined_call_operand.vmem [shape: bf16[32,768], index: 0, kind: input, shape index: {}]   ;;  %s1256_s1 = inlined_call_operand.vmem [shape: bf16[768,128], index: 1, kind: input, shape index: {}]   ;;  %s1257_s2 = inlined_call_operand.vmem [shape: f32[1,128], index: 2, kind: input, shape index: {}]   ;;  %s1258_s3 = inlined_call_operand.vmem [shape: f32[1,128], index: 3, kind: input, shape index: {}]   ;;  %s1259_s4 = inlined_call_operand.vmem [shape: bf16[32,128], index: 4, kind: output, shape index: {}]  }
   0x1   :  { %s1146_s17 = smov 0   ;;  %s1148_s18 = smov 0  }
   0x2   :  { %s1150_s19 = smov 0  }
   0x3 LB: > { %s26_s20 = sadd.s32 1, %s1110_s18  ;;  %p49_p1 = scmp.ne.s32.totalorder %s1102_s16, %s1098_s15  ;;  %s1114_s19 = sphi %s1150_s19, %s14_s19   ;;  %s1110_s18 = sphi %s1148_s18, %s1263_s18   ;;  %s1106_s17 = sphi %s1146_s17, %s1262_s17   ;;  %s1102_s16 = sphi %s1144_s16, %s1261_s16   ;;  %s1098_s15 = sphi %s1142_s15, %s1260_s15  }
   0x4   : > { %p27_p0 = scmp.ge.s32.totalorder %s26_s20, 2  ;;  %p50_p2 = scmp.eq.s32.totalorder %s1114_s19, 0 }
   0x5   : > { %s42_s22 = sadd.s32 1, %s1102_s16  ;;  %p873_p5 = scmp.ge.s32.totalorder %s1114_s19, 2 }
   0x6   : > { %s1265_s20 = smov (%p27_p0, %s26_s20), 0  ;;  %p51_p3 = por %p50_p2, %p49_p1 }
   0x7   : > { %s38_s21 = ssub.s32 %s1110_s18, %s1265_s20  ;;  %195 = sbr.rel (%p873_p5) target bundleno = 23 (0x17), region = 24 }
   0x8   : > { %p40_p4 = scmp.eq.s32.totalorder %s38_s21, 0 }
   0xa   : > { %s1177_s23 = scalar_select %p40_p4, %s1102_s16, %s42_s22  }
   0xe   : > { %198 = sbr.rel (!%p51_p3) target bundleno = 23 (0x17), region = 28  ;;  %s200_s24 = sand.u32 (%p51_p3), 1, %s1102_s16  }
   0xf   : > { %s927_s25 = smul.u32 (%p51_p3), 12, %s1110_s18 }
  0x10   : > { %s1001_s26 = smul.u32 (%p51_p3), 48, %s200_s24 }
  0x11   : > { %s208_s29 = scalar_lea.vmem (%p51_p3), %s1255_s0, %s927_s25 }
  0x12   : > { %v223_v0 = vld [vmem:[%s208_s29] sm:$0xff] (%p51_p3)  ;;  %v225_v1 = vld [vmem:[%s208_s29 + $0x18] sm:$0xff] (%p51_p3)  ;;  %v227_v2 = vld [vmem:[%s208_s29 + $0x30] sm:$0xff] (%p51_p3)  ;;  %s202_s30 = scalar_lea.vmem (%p51_p3), [#allocation3], %s1001_s26 }
  0x13   : > { %224 = vst [vmem:[%s202_s30] sm:$0xff] (%p51_p3), %v223_v0  ;;  %226 = vst [vmem:[%s202_s30 + $0xc] sm:$0xff] (%p51_p3), %v225_v1  ;;  %v229_v3 = vld [vmem:[%s208_s29 + $0x48] sm:$0xff] (%p51_p3)  ;;  %v877_v5 = vld [vmem:[%s208_s29 + $0x20] sm:$0xf] (%p51_p3) }
  0x14   : > { %228 = vst [vmem:[%s202_s30 + $0x18] sm:$0xff] (%p51_p3), %v227_v2  ;;  %v875_v4 = vld [vmem:[%s208_s29 + $0x8] sm:$0xf] (%p51_p3)  ;;  %230 = vst [vmem:[%s202_s30 + $0x24] sm:$0xff] (%p51_p3), %v229_v3  ;;  %v879_v6 = vld [vmem:[%s208_s29 + $0x38] sm:$0xf] (%p51_p3) }
  0x15   : > { %876 = vst [vmem:[%s202_s30 + $0x8] sm:$0xf] %v875_v4  ;;  %878 = vst [vmem:[%s202_s30 + $0x14] sm:$0xf] %v877_v5  ;;  %v881_v7 = vld [vmem:[%s208_s29 + $0x50] sm:$0xf] }
  0x16   : > { %880 = vst [vmem:[%s202_s30 + $0x20] sm:$0xf] %v879_v6  ;;  %882 = vst [vmem:[%s202_s30 + $0x2c] sm:$0xf] %v881_v7 }
  0x17 PF: > { %p883_p6 = scmp.ge.s32.totalorder %s1114_s19, 1  ;;  %p262_p7 = scmp.lt.s32.totalorder %s1114_s19, 3 }
  0x19   : > { %p263_p8 = pnand %p883_p6, %p262_p7 }
  0x1a   : > { %s269_s5 = sand.u32 (!%p263_p8), 1, %s1098_s15   ;;  %s313_s6 = smul.u32 (!%p263_p8), 48, %s1106_s17 }
  0x1b   : > { %266 = sbr.rel (%p263_p8) target bundleno = 320 (0x140), region = 58  ;;  %p885_p10 = scmp.ne.s32.totalorder (!%p263_p8), %s1106_s17, 0 }
  0x1c   : > { %s1002_s7 = smul.u32 (!%p263_p8), 48, %s269_s5  ;;  %p314_p9 = scmp.lt.s32.totalorder (!%p263_p8), %s313_s6, 95 }
  0x1e   : > { %s1194_s12 = scalar_lea.vmem (!%p263_p8), [#allocation3], %s1002_s7 }
  0x22   : > { %s1267_s6 = smov (!%p314_p9, %s313_s6), 95  ;;  %341 = sbr.rel (%p885_p10) target bundleno = 41 (0x29), region = 66 }
  0x23   : > { %s884_s8 = sshll.u32 %s1267_s6, 2  ;;  %v1116_v8 = vmov (!%p885_p10), 0.0  }
  0x24   : > { %s1192_s11 = scalar_lea.vmem %s1256_s1, %s884_s8  ;;  %342 = vst [vmem:[#allocation2] sm:$0xff] (!%p885_p10), %v1116_v8  ;;  %343 = vst [vmem:[#allocation2 + $0x8] sm:$0xff] (!%p885_p10), %v1116_v8 }
  0x25   : > { %344 = vst [vmem:[#allocation2 + $0x10] sm:$0xff] (!%p885_p10), %v1116_v8  ;;  %345 = vst [vmem:[#allocation2 + $0x18] sm:$0xff] (!%p885_p10), %v1116_v8 }
  0x29 PF: > { %v1044_v9 = vld [vmem:[%s1192_s11 + $0x40] sm:$0xff]   ;;  %v1047_v12 = vld [vmem:[%s1192_s11 + $0x48] sm:$0xff]   ;;  %v1050_v15 = vld [vmem:[%s1192_s11 + $0x50] sm:$0xff]   ;;  %p916_p11 = scmp.ne.s32.totalorder %s1106_s17, 1 }
  0x2a   : > { %v1045_v10 = vld [vmem:[%s1192_s11] sm:$0xff]   ;;  %943 = vmatprep.subr.bf16.mxu0 %v1044_v9  ;;  %v1048_v13 = vld [vmem:[%s1192_s11 + $0x8] sm:$0xff]   ;;  %v1051_v16 = vld [vmem:[%s1192_s11 + $0x10] sm:$0xff]  }
  0x2b   : > { %v1046_v11 = vld [vmem:[%s1192_s11 + $0x80] sm:$0xff]   ;;  %944 = vmatpush3.bf16.msra.mxu0 %v1045_v10  ;;  %v1049_v14 = vld [vmem:[%s1192_s11 + $0x88] sm:$0xff]   ;;  %v1052_v17 = vld [vmem:[%s1192_s11 + $0x90] sm:$0xff]  }
  0x2c   : > { %981 = vmatprep.subr.bf16.mxu1 %v1046_v11  ;;  %945 = vmatprep.subr.bf16.mxu0 %v1047_v12  ;;  %v1053_v18 = vld [vmem:[%s1192_s11 + $0x58] sm:$0xff]   ;;  %v1056_v21 = vld [vmem:[%s1192_s11 + $0x60] sm:$0xff]   ;;  %v1059_v24 = vld [vmem:[%s1192_s11 + $0x68] sm:$0xff]  }
  0x2d   : > { %982 = vmatpush3.bf16.msra.mxu1 %v1046_v11  ;;  %v1054_v19 = vld [vmem:[%s1192_s11 + $0x18] sm:$0xff]   ;;  %v1058_v22 = vld [vmem:[%s1192_s11 + $0xa0] sm:$0xff]   ;;  %v1061_v25 = vld [vmem:[%s1192_s11 + $0xa8] sm:$0xff]  }
  0x2e   : > { %983 = vmatprep.subr.bf16.mxu1 %v1049_v14  ;;  %v1055_v20 = vld [vmem:[%s1192_s11 + $0x98] sm:$0xff]   ;;  %v1057_v23 = vld [vmem:[%s1192_s11 + $0x20] sm:$0xff]   ;;  %v1060_v26 = vld [vmem:[%s1192_s11 + $0x28] sm:$0xff]  }
  0x2f   : > { %946 = vmatpush3.bf16.msra.mxu0 %v1048_v13  ;;  %v1062_v27 = vld [vmem:[%s1192_s11 + $0x70] sm:$0xff]   ;;  %v1065_v30 = vld [vmem:[%s1192_s11 + $0x78] sm:$0xff]   ;;  %v346_v45 = vld [vmem:[#allocation2] sm:$0xff] }
  0x30   : > { %947 = vmatprep.subr.bf16.mxu0 %v1050_v15  ;;  %v1063_v28 = vld [vmem:[%s1192_s11 + $0x30] sm:$0xff]   ;;  %v1067_v31 = vld [vmem:[%s1192_s11 + $0xb8] sm:$0xff]   ;;  %v347_v50 = vld [vmem:[#allocation2 + $0x8] sm:$0xff] }
  0x31   : > { %984 = vmatpush3.bf16.msra.mxu1 %v1049_v14  ;;  %v1064_v29 = vld [vmem:[%s1192_s11 + $0xb0] sm:$0xff]   ;;  %v1066_v34 = vld [vmem:[%s1192_s11 + $0x38] sm:$0xff]   ;;  %v917_v5 = vld [vmem:[%s1257_s2] ss:$0 sm:$0xff] (!%p916_p11) }
  0x32   : > { %985 = vmatprep.subr.bf16.mxu1 %v1052_v17  ;;  %v1070_v32 = vld [vmem:[%s1194_s12 + $0x4] ss:$12 sps:$4 sm:$0xff]   ;;  %v1071_v33 = vld [vmem:[%s1194_s12 + $0x8] ss:$12 sps:$4 sm:$0xff]   ;;  %v1068_v35 = vld [vmem:[%s1194_s12] ss:$12 sps:$4 sm:$0xff]  }
  0x33   : > { %948 = vmatpush3.bf16.msra.mxu0 %v1051_v16  ;;  %614 = vmatprep.mubr.bf16.mxu0 %v1070_v32  ;;  %v1073_v36 = vld [vmem:[%s1194_s12 + $0x1c] ss:$12 sps:$4 sm:$0xff]   ;;  %v1072_v37 = vld [vmem:[%s1194_s12 + $0x20] ss:$12 sps:$4 sm:$0xff]   ;;  %v1075_v38 = vld [vmem:[%s1194_s12 + $0x18] ss:$12 sps:$4 sm:$0xff]  }
  0x34   : > { %949 = vmatprep.subr.bf16.mxu0 %v1053_v18  ;;  %997 = vmatprep.mubr.bf16.mxu1 %v1071_v33  ;;  %v348_v59 = vld [vmem:[#allocation2 + $0x10] sm:$0xff]  ;;  %v349_v63 = vld [vmem:[#allocation2 + $0x18] sm:$0xff]  ;;  %v918_v8 = vld [vmem:[%s1258_s3] ss:$0 sm:$0xff] (!%p916_p11) }
  0x35   : > { %986 = vmatpush3.bf16.msra.mxu1 %v1052_v17 }
  0x36   : > { %987 = vmatprep.subr.bf16.mxu1 %v1055_v20 }
  0x37   : > { %950 = vmatpush3.bf16.msra.mxu0 %v1054_v19 }
  0x38   : > { %951 = vmatprep.subr.bf16.mxu0 %v1056_v21 }
  0x39   : > { %988 = vmatpush3.bf16.msra.mxu1 %v1055_v20 }
  0x3a   : > { %989 = vmatprep.subr.bf16.mxu1 %v1058_v22 }
  0x3b   : > { %952 = vmatpush3.bf16.msra.mxu0 %v1057_v23 }
  0x3c   : > { %953 = vmatprep.subr.bf16.mxu0 %v1059_v24 }
  0x3d   : > { %990 = vmatpush3.bf16.msra.mxu1 %v1058_v22 }
  0x3e   : > { %991 = vmatprep.subr.bf16.mxu1 %v1061_v25 }
  0x3f   : > { %954 = vmatpush3.bf16.msra.mxu0 %v1060_v26 }
  0x40   : > { %955 = vmatprep.subr.bf16.mxu0 %v1062_v27 }
  0x41   : > { %992 = vmatpush3.bf16.msra.mxu1 %v1061_v25 }
  0x42   : > { %993 = vmatprep.subr.bf16.mxu1 %v1064_v29 }
  0x43   : > { %956 = vmatpush3.bf16.msra.mxu0 %v1063_v28 }
  0x44   : > { %957 = vmatprep.subr.bf16.mxu0 %v1065_v30 }
  0x45   : > { %994 = vmatpush3.bf16.msra.mxu1 %v1064_v29 }
  0x46   : > { %995 = vmatprep.subr.bf16.mxu1 %v1067_v31 }
  0x47   : > { %958 = vmatpush3.bf16.msra.mxu0 %v1066_v34 }
  0x49   : > { %996 = vmatpush3.bf16.msra.mxu1 %v1067_v31 }
  0x4a   : > { %615 = vmatmul.mubr.bf16.vlgmr.msra.gmra.mrb[0].mxu0 %v1068_v35 }
  0x4b   : > { %622 = vmatprep.mubr.bf16.mxu0 %v1073_v36 }
  0x4c   : > { %998 = vmatmul.mubr.bf16.vlgmr.msra.gmra.mrb[0].mxu1 %v1072_v37 }
  0x52   : > { %623 = vmatmul.mubr.bf16.gmra.mrb[4].mxu0 %v1075_v38 }
 0x11d   : > { %v959_v39 = vpop.f32.mrb[0].mxu0 }
 0x11e   : > { %v960_v40 = vpop.f32.mrb[1].mxu0 }
 0x11f   : > { %v961_v41 = vadd.f32 %v960_v40, %v959_v39  ;;  %v962_v42 = vpop.f32.mrb[2].mxu0  ;;  %v999_v43 = vpop.f32.mrb[0].mxu1 }
 0x120   : > { %v963_v44 = vpop.f32.mrb[3].mxu0  ;;  %v665_v46 = vpop.f32.mrb[1].mxu1 }
 0x121   : > { %v964_v47 = vadd.f32 %v963_v44, %v962_v42  ;;  %v666_v48 = vadd.f32 %v961_v41, %v665_v46  ;;  %v1000_v49 = vpop.f32.mrb[2].mxu1 }
 0x122   : > { %v668_v51 = vpop.f32.mrb[3].mxu1 }
 0x123   : > { %v680_v52 = vadd.f32 %v666_v48, %v346_v45  ;;  %v669_v53 = vadd.f32 %v964_v47, %v668_v51 }
 0x125   : > { %684 = vst [vmem:[#allocation2] sm:$0xff] %v680_v52  ;;  %v681_v54 = vadd.f32 %v669_v53, %v347_v50  ;;  %v965_v55 = vpop.f32.mrb[4].mxu0 }
 0x126   : > { %v966_v56 = vpop.f32.mrb[5].mxu0 }
 0x127   : > { %685 = vst [vmem:[#allocation2 + $0x8] sm:$0xff] %v681_v54  ;;  %v967_v57 = vadd.f32 %v966_v56, %v965_v55  ;;  %v968_v58 = vpop.f32.mrb[6].mxu0 }
 0x128   : > { %v969_v60 = vpop.f32.mrb[7].mxu0 }
 0x129   : > { %v674_v61 = vadd.f32 %v999_v43, %v967_v57  ;;  %v970_v62 = vadd.f32 %v969_v60, %v968_v58  ;;  %691 = sbr.rel (%p916_p11) target bundleno = 320 (0x140), region = 70 }
 0x12b   : > { %v682_v0 = vadd.f32 %v674_v61, %v348_v59  ;;  %v677_v1 = vadd.f32 %v1000_v49, %v970_v62 }
 0x12c   : > { %v692_v3 = vld [vmem:[#allocation2] sm:$0xff] (!%p916_p11) }
 0x12d   : > { %686 = vst [vmem:[#allocation2 + $0x10] sm:$0xff] %v682_v0  ;;  %v683_v2 = vadd.f32 %v677_v1, %v349_v63  ;;  %v703_v6 = vmul.f32 (!%p916_p11), %v917_v5, %v692_v3 }
 0x12e   : > { %v693_v4 = vld [vmem:[#allocation2 + $0x8] sm:$0xff] (!%p916_p11) }
 0x12f   : > { %687 = vst [vmem:[#allocation2 + $0x18] sm:$0xff] %v683_v2  ;;  %v704_v7 = vmul.f32 (!%p916_p11), %v917_v5, %v693_v4  ;;  %v714_v13 = vadd.f32 (!%p916_p11), %v918_v8, %v703_v6 }
 0x131   : > { %v715_v14 = vadd.f32 %v918_v8, %v704_v7  ;;  %v718_v17 = vmax.f32 %v714_v13, 0.0 }
 0x133   : > { %v719_v18 = vmax.f32 %v715_v14, 0.0 }
 0x134   : > { %v694_v9 = vld [vmem:[#allocation2 + $0x10] sm:$0xff] }
 0x135   : > { %v705_v11 = vmul.f32 %v917_v5, %v694_v9  ;;  %v935_v21 = vpack.c.bf16 %v719_v18, %v718_v17 }
 0x136   : > { %v695_v10 = vld [vmem:[#allocation2 + $0x18] sm:$0xff] }
 0x137   : > { %v706_v12 = vmul.f32 %v917_v5, %v695_v10  ;;  %v716_v15 = vadd.f32 %v918_v8, %v705_v11  ;;  %936 = vst [vmem:[%s1259_s4] sm:$0xff] %v935_v21  }
 0x139   : > { %v717_v16 = vadd.f32 %v918_v8, %v706_v12  ;;  %v720_v19 = vmax.f32 %v716_v15, 0.0 }
 0x13b   : > { %v721_v20 = vmax.f32 %v717_v16, 0.0 }
 0x13d   : > { %v940_v22 = vpack.c.bf16 %v721_v20, %v720_v19 }
 0x13f   : > { %942 = vst [vmem:[%s1259_s4 + $0x8] sm:$0xff] %v940_v22  }
 0x140 PF: > { %s14_s19 = sadd.s32 1, %s1114_s19   ;;  %s1260_s15 = smov %s1102_s16 }
 0x141   : > { %p11_p12 = scmp.ge.s32.totalorder %s14_s19, 4   ;;  %s1261_s16 = smov %s1177_s23 }
 0x142   : > { %s1262_s17 = smov %s1110_s18  ;;  %s1263_s18 = smov %s1265_s20 }
 0x143   :  { %13 = sbr.rel (!%p11_p12) target bundleno = 3 (0x3), region = 120 }

// kernel: _lambda_.27
= control target key start
LH: loop header
LB: loop body
LE: loop exit
PB: predicated region body
PF: predicated region fallthrough
CT: control target
= control target key end

     0   :  { %s358_s1 = inlined_call_operand.vmem [shape: bf16[128,128], index: 1, kind: input, shape index: {}]   ;;  %s359_s0 = inlined_call_operand.vmem [shape: bf16[32,128], index: 0, kind: input, shape index: {}]   ;;  %s360_s2 = inlined_call_operand.vmem [shape: f32[1,128], index: 2, kind: input, shape index: {}]   ;;  %s361_s3 = inlined_call_operand.vmem [shape: f32[1,128], index: 3, kind: input, shape index: {}]   ;;  %s362_s4 = inlined_call_operand.vmem [shape: bf16[32,128], index: 4, kind: output, shape index: {}]  }
   0x1   :  { %v281_v0 = vld [vmem:[%s358_s1] sm:$0xff]   ;;  %v282_v1 = vld [vmem:[%s358_s1 + $0x8] sm:$0xff]   ;;  %v283_v2 = vld [vmem:[%s358_s1 + $0x10] sm:$0xff]  }
   0x2   :  { %261 = vmatprep.subr.bf16.mxu0 %v281_v0  ;;  %v284_v3 = vld [vmem:[%s358_s1 + $0x18] sm:$0xff]   ;;  %v289_v4 = vld [vmem:[%s359_s0] sm:$0xff]   ;;  %v286_v6 = vld [vmem:[%s358_s1 + $0x28] sm:$0xff]  }
   0x3   :  { %262 = vmatpush3.bf16.msra.mxu0 %v281_v0  ;;  %277 = vmatprep.mubr.bf16.mxu0 %v289_v4  ;;  %v285_v5 = vld [vmem:[%s358_s1 + $0x20] sm:$0xff]   ;;  %v287_v7 = vld [vmem:[%s358_s1 + $0x30] sm:$0xff]   ;;  %v288_v8 = vld [vmem:[%s358_s1 + $0x38] sm:$0xff]  }
   0x4   :  { %263 = vmatprep.subr.bf16.mxu0 %v282_v1  ;;  %v290_v9 = vld [vmem:[%s359_s0 + $0x8] sm:$0xff]   ;;  %v230_v10 = vld [vmem:[%s360_s2] ss:$0 sm:$0xff] }
   0x5   :  { %v231_v14 = vld [vmem:[%s361_s3] ss:$0 sm:$0xff] }
   0x7   :  { %264 = vmatpush3.bf16.msra.mxu0 %v282_v1 }
   0x8   :  { %265 = vmatprep.subr.bf16.mxu0 %v283_v2 }
   0xb   :  { %266 = vmatpush3.bf16.msra.mxu0 %v283_v2 }
   0xc   :  { %267 = vmatprep.subr.bf16.mxu0 %v284_v3 }
   0xf   :  { %268 = vmatpush3.bf16.msra.mxu0 %v284_v3 }
  0x10   :  { %269 = vmatprep.subr.bf16.mxu0 %v285_v5 }
  0x13   :  { %270 = vmatpush3.bf16.msra.mxu0 %v285_v5 }
  0x14   :  { %271 = vmatprep.subr.bf16.mxu0 %v286_v6 }
  0x17   :  { %272 = vmatpush3.bf16.msra.mxu0 %v286_v6 }
  0x18   :  { %273 = vmatprep.subr.bf16.mxu0 %v287_v7 }
  0x1b   :  { %274 = vmatpush3.bf16.msra.mxu0 %v287_v7 }
  0x1c   :  { %275 = vmatprep.subr.bf16.mxu0 %v288_v8 }
  0x1f   :  { %276 = vmatpush3.bf16.msra.mxu0 %v288_v8 }
  0x22   :  { %278 = vmatmul.mubr.bf16.vlgmr.msra.gmra.mrb[0].mxu0 %v290_v9 }
  0xf5   :  { %v279_v11 = vpop.f32.mrb[0].mxu0 }
  0xf6   :  { %v183_v12 = vmul.f32 %v279_v11, %v230_v10  ;;  %v144_v13 = vpop.f32.mrb[1].mxu0 }
  0xf7   :  { %v181_v15 = vmul.f32 %v230_v10, %v144_v13  ;;  %v280_v16 = vpop.f32.mrb[2].mxu0 }
  0xf8   :  { %v184_v17 = vmul.f32 %v280_v16, %v230_v10  ;;  %v147_v18 = vpop.f32.mrb[3].mxu0  ;;  %v194_v20 = vadd.f32 %v231_v14, %v183_v12 }
  0xf9   :  { %v182_v19 = vmul.f32 %v230_v10, %v147_v18  ;;  %v192_v22 = vadd.f32 %v231_v14, %v181_v15 }
  0xfa   :  { %v195_v21 = vadd.f32 %v231_v14, %v184_v17 }
  0xfb   :  { %v193_v23 = vadd.f32 %v231_v14, %v182_v19 }
  0xfc   :  { %v248_v24 = vpack.c.bf16 %v195_v21, %v194_v20 }
  0xfd   :  { %v243_v25 = vpack.c.bf16 %v193_v23, %v192_v22 }
  0xfe   :  { %250 = vst [vmem:[%s362_s4 + $0x8] sm:$0xff] %v248_v24  }
  0xff   :  { %244 = vst [vmem:[%s362_s4] sm:$0xff] %v243_v25  }

// kernel: _lambda_.29
= control target key start
LH: loop header
LB: loop body
LE: loop exit
PB: predicated region body
PF: predicated region fallthrough
CT: control target
= control target key end

     0   :  { %s1142_s15 = smov 0   ;;  %s1144_s16 = smov 0   ;;  %s1255_s0 = inlined_call_operand.vmem [shape: bf16[32,1152], index: 0, kind: input, shape index: {}]   ;;  %s1256_s1 = inlined_call_operand.vmem [shape: bf16[1152,128], index: 1, kind: input, shape index: {}]   ;;  %s1257_s2 = inlined_call_operand.vmem [shape: f32[1,128], index: 2, kind: input, shape index: {}]   ;;  %s1258_s3 = inlined_call_operand.vmem [shape: f32[1,128], index: 3, kind: input, shape index: {}]   ;;  %s1259_s4 = inlined_call_operand.vmem [shape: bf16[32,128], index: 4, kind: output, shape index: {}]  }
   0x1   :  { %s1146_s17 = smov 0   ;;  %s1148_s18 = smov 0  }
   0x2   :  { %s1150_s19 = smov 0  }
   0x3 LB: > { %s26_s20 = sadd.s32 1, %s1110_s18  ;;  %p49_p1 = scmp.ne.s32.totalorder %s1102_s16, %s1098_s15  ;;  %s1114_s19 = sphi %s1150_s19, %s14_s19   ;;  %s1110_s18 = sphi %s1148_s18, %s1263_s18   ;;  %s1106_s17 = sphi %s1146_s17, %s1262_s17   ;;  %s1102_s16 = sphi %s1144_s16, %s1261_s16   ;;  %s1098_s15 = sphi %s1142_s15, %s1260_s15  }
   0x4   : > { %p27_p0 = scmp.ge.s32.totalorder %s26_s20, 3  ;;  %p50_p2 = scmp.eq.s32.totalorder %s1114_s19, 0 }
   0x5   : > { %s42_s22 = sadd.s32 1, %s1102_s16  ;;  %p873_p5 = scmp.ge.s32.totalorder %s1114_s19, 3 }
   0x6   : > { %s1265_s20 = smov (%p27_p0, %s26_s20), 0  ;;  %p51_p3 = por %p50_p2, %p49_p1 }
   0x7   : > { %s38_s21 = ssub.s32 %s1110_s18, %s1265_s20  ;;  %195 = sbr.rel (%p873_p5) target bundleno = 23 (0x17), region = 24 }
   0x8   : > { %p40_p4 = scmp.eq.s32.totalorder %s38_s21, 0 }
   0xa   : > { %s1177_s23 = scalar_select %p40_p4, %s1102_s16, %s42_s22  }
   0xe   : > { %198 = sbr.rel (!%p51_p3) target bundleno = 23 (0x17), region = 28  ;;  %s200_s24 = sand.u32 (%p51_p3), 1, %s1102_s16  }
   0xf   : > { %s927_s25 = smul.u32 (%p51_p3), 12, %s1110_s18 }
  0x10   : > { %s1001_s26 = smul.u32 (%p51_p3), 48, %s200_s24 }
  0x11   : > { %s208_s29 = scalar_lea.vmem (%p51_p3), %s1255_s0, %s927_s25 }
  0x12   : > { %v223_v0 = vld [vmem:[%s208_s29] sm:$0xff] (%p51_p3)  ;;  %v227_v2 = vld [vmem:[%s208_s29 + $0x48] sm:$0xff] (%p51_p3)  ;;  %s202_s30 = scalar_lea.vmem (%p51_p3), [#allocation3], %s1001_s26  ;;  %v879_v6 = vld [vmem:[%s208_s29 + $0x50] sm:$0xf] (%p51_p3) }
  0x13   : > { %v225_v1 = vld [vmem:[%s208_s29 + $0x24] sm:$0xff] (%p51_p3)  ;;  %224 = vst [vmem:[%s202_s30] sm:$0xff] (%p51_p3), %v223_v0  ;;  %228 = vst [vmem:[%s202_s30 + $0x18] sm:$0xff] (%p51_p3), %v227_v2  ;;  %v229_v3 = vld [vmem:[%s208_s29 + $0x6c] sm:$0xff] (%p51_p3) }
  0x14   : > { %226 = vst [vmem:[%s202_s30 + $0xc] sm:$0xff] (%p51_p3), %v225_v1  ;;  %v875_v4 = vld [vmem:[%s208_s29 + $0x8] sm:$0xf] (%p51_p3)  ;;  %v877_v5 = vld [vmem:[%s208_s29 + $0x2c] sm:$0xf] (%p51_p3)  ;;  %230 = vst [vmem:[%s202_s30 + $0x24] sm:$0xff] (%p51_p3), %v229_v3 }
  0x15   : > { %876 = vst [vmem:[%s202_s30 + $0x8] sm:$0xf] %v875_v4  ;;  %878 = vst [vmem:[%s202_s30 + $0x14] sm:$0xf] %v877_v5  ;;  %v881_v7 = vld [vmem:[%s208_s29 + $0x74] sm:$0xf] }
  0x16   : > { %880 = vst [vmem:[%s202_s30 + $0x20] sm:$0xf] %v879_v6  ;;  %882 = vst [vmem:[%s202_s30 + $0x2c] sm:$0xf] %v881_v7 }
  0x17 PF: > { %p883_p6 = scmp.ge.s32.totalorder %s1114_s19, 1  ;;  %p262_p7 = scmp.lt.s32.totalorder %s1114_s19, 4 }
  0x19   : > { %p263_p8 = pnand %p883_p6, %p262_p7 }
  0x1a   : > { %s269_s5 = sand.u32 (!%p263_p8), 1, %s1098_s15   ;;  %s313_s6 = smul.u32 (!%p263_p8), 48, %s1106_s17 }
  0x1b   : > { %266 = sbr.rel (%p263_p8) target bundleno = 320 (0x140), region = 58  ;;  %p885_p10 = scmp.ne.s32.totalorder (!%p263_p8), %s1106_s17, 0 }
  0x1c   : > { %s1002_s7 = smul.u32 (!%p263_p8), 48, %s269_s5  ;;  %p314_p9 = scmp.lt.s32.totalorder (!%p263_p8), %s313_s6, 143 }
  0x1e   : > { %s1194_s12 = scalar_lea.vmem (!%p263_p8), [#allocation3], %s1002_s7 }
  0x22   : > { %s1267_s6 = smov (!%p314_p9, %s313_s6), 143  ;;  %341 = sbr.rel (%p885_p10) target bundleno = 41 (0x29), region = 66 }
  0x23   : > { %s884_s8 = sshll.u32 %s1267_s6, 2  ;;  %v1116_v8 = vmov (!%p885_p10), 0.0  }
  0x24   : > { %s1192_s11 = scalar_lea.vmem %s1256_s1, %s884_s8  ;;  %342 = vst [vmem:[#allocation2] sm:$0xff] (!%p885_p10), %v1116_v8  ;;  %343 = vst [vmem:[#allocation2 + $0x8] sm:$0xff] (!%p885_p10), %v1116_v8 }
  0x25   : > { %344 = vst [vmem:[#allocation2 + $0x10] sm:$0xff] (!%p885_p10), %v1116_v8  ;;  %345 = vst [vmem:[#allocation2 + $0x18] sm:$0xff] (!%p885_p10), %v1116_v8 }
  0x29 PF: > { %v1044_v9 = vld [vmem:[%s1192_s11 + $0x40] sm:$0xff]   ;;  %v1047_v12 = vld [vmem:[%s1192_s11 + $0x48] sm:$0xff]   ;;  %v1050_v15 = vld [vmem:[%s1192_s11 + $0x50] sm:$0xff]   ;;  %p916_p11 = scmp.ne.s32.totalorder %s1106_s17, 2 }
  0x2a   : > { %v1045_v10 = vld [vmem:[%s1192_s11] sm:$0xff]   ;;  %943 = vmatprep.subr.bf16.mxu0 %v1044_v9  ;;  %v1048_v13 = vld [vmem:[%s1192_s11 + $0x8] sm:$0xff]   ;;  %v1051_v16 = vld [vmem:[%s1192_s11 + $0x10] sm:$0xff]  }
  0x2b   : > { %v1046_v11 = vld [vmem:[%s1192_s11 + $0x80] sm:$0xff]   ;;  %944 = vmatpush3.bf16.msra.mxu0 %v1045_v10  ;;  %v1049_v14 = vld [vmem:[%s1192_s11 + $0x88] sm:$0xff]   ;;  %v1052_v17 = vld [vmem:[%s1192_s11 + $0x90] sm:$0xff]  }
  0x2c   : > { %981 = vmatprep.subr.bf16.mxu1 %v1046_v11  ;;  %945 = vmatprep.subr.bf16.mxu0 %v1047_v12  ;;  %v1053_v18 = vld [vmem:[%s1192_s11 + $0x58] sm:$0xff]   ;;  %v1056_v21 = vld [vmem:[%s1192_s11 + $0x60] sm:$0xff]   ;;  %v1059_v24 = vld [vmem:[%s1192_s11 + $0x68] sm:$0xff]  }
  0x2d   : > { %982 = vmatpush3.bf16.msra.mxu1 %v1046_v11  ;;  %v1054_v19 = vld [vmem:[%s1192_s11 + $0x18] sm:$0xff]   ;;  %v1058_v22 = vld [vmem:[%s1192_s11 + $0xa0] sm:$0xff]   ;;  %v1061_v25 = vld [vmem:[%s1192_s11 + $0xa8] sm:$0xff]  }
  0x2e   : > { %983 = vmatprep.subr.bf16.mxu1 %v1049_v14  ;;  %v1055_v20 = vld [vmem:[%s1192_s11 + $0x98] sm:$0xff]   ;;  %v1057_v23 = vld [vmem:[%s1192_s11 + $0x20] sm:$0xff]   ;;  %v1060_v26 = vld [vmem:[%s1192_s11 + $0x28] sm:$0xff]  }
  0x2f   : > { %946 = vmatpush3.bf16.msra.mxu0 %v1048_v13  ;;  %v1062_v27 = vld [vmem:[%s1192_s11 + $0x70] sm:$0xff]   ;;  %v1065_v30 = vld [vmem:[%s1192_s11 + $0x78] sm:$0xff]   ;;  %v346_v45 = vld [vmem:[#allocation2] sm:$0xff] }
  0x30   : > { %947 = vmatprep.subr.bf16.mxu0 %v1050_v15  ;;  %v1063_v28 = vld [vmem:[%s1192_s11 + $0x30] sm:$0xff]   ;;  %v1067_v31 = vld [vmem:[%s1192_s11 + $0xb8] sm:$0xff]   ;;  %v347_v50 = vld [vmem:[#allocation2 + $0x8] sm:$0xff] }
  0x31   : > { %984 = vmatpush3.bf16.msra.mxu1 %v1049_v14  ;;  %v1064_v29 = vld [vmem:[%s1192_s11 + $0xb0] sm:$0xff]   ;;  %v1066_v34 = vld [vmem:[%s1192_s11 + $0x38] sm:$0xff]   ;;  %v917_v5 = vld [vmem:[%s1257_s2] ss:$0 sm:$0xff] (!%p916_p11) }
  0x32   : > { %985 = vmatprep.subr.bf16.mxu1 %v1052_v17  ;;  %v1070_v32 = vld [vmem:[%s1194_s12 + $0x4] ss:$12 sps:$4 sm:$0xff]   ;;  %v1071_v33 = vld [vmem:[%s1194_s12 + $0x8] ss:$12 sps:$4 sm:$0xff]   ;;  %v1068_v35 = vld [vmem:[%s1194_s12] ss:$12 sps:$4 sm:$0xff]  }
  0x33   : > { %948 = vmatpush3.bf16.msra.mxu0 %v1051_v16  ;;  %614 = vmatprep.mubr.bf16.mxu0 %v1070_v32  ;;  %v1073_v36 = vld [vmem:[%s1194_s12 + $0x1c] ss:$12 sps:$4 sm:$0xff]   ;;  %v1072_v37 = vld [vmem:[%s1194_s12 + $0x20] ss:$12 sps:$4 sm:$0xff]   ;;  %v1075_v38 = vld [vmem:[%s1194_s12 + $0x18] ss:$12 sps:$4 sm:$0xff]  }
  0x34   : > { %949 = vmatprep.subr.bf16.mxu0 %v1053_v18  ;;  %997 = vmatprep.mubr.bf16.mxu1 %v1071_v33  ;;  %v348_v59 = vld [vmem:[#allocation2 + $0x10] sm:$0xff]  ;;  %v349_v63 = vld [vmem:[#allocation2 + $0x18] sm:$0xff]  ;;  %v918_v8 = vld [vmem:[%s1258_s3] ss:$0 sm:$0xff] (!%p916_p11) }
  0x35   : > { %986 = vmatpush3.bf16.msra.mxu1 %v1052_v17 }
  0x36   : > { %987 = vmatprep.subr.bf16.mxu1 %v1055_v20 }
  0x37   : > { %950 = vmatpush3.bf16.msra.mxu0 %v1054_v19 }
  0x38   : > { %951 = vmatprep.subr.bf16.mxu0 %v1056_v21 }
  0x39   : > { %988 = vmatpush3.bf16.msra.mxu1 %v1055_v20 }
  0x3a   : > { %989 = vmatprep.subr.bf16.mxu1 %v1058_v22 }
  0x3b   : > { %952 = vmatpush3.bf16.msra.mxu0 %v1057_v23 }
  0x3c   : > { %953 = vmatprep.subr.bf16.mxu0 %v1059_v24 }
  0x3d   : > { %990 = vmatpush3.bf16.msra.mxu1 %v1058_v22 }
  0x3e   : > { %991 = vmatprep.subr.bf16.mxu1 %v1061_v25 }
  0x3f   : > { %954 = vmatpush3.bf16.msra.mxu0 %v1060_v26 }
  0x40   : > { %955 = vmatprep.subr.bf16.mxu0 %v1062_v27 }
  0x41   : > { %992 = vmatpush3.bf16.msra.mxu1 %v1061_v25 }
  0x42   : > { %993 = vmatprep.subr.bf16.mxu1 %v1064_v29 }
  0x43   : > { %956 = vmatpush3.bf16.msra.mxu0 %v1063_v28 }
  0x44   : > { %957 = vmatprep.subr.bf16.mxu0 %v1065_v30 }
  0x45   : > { %994 = vmatpush3.bf16.msra.mxu1 %v1064_v29 }
  0x46   : > { %995 = vmatprep.subr.bf16.mxu1 %v1067_v31 }
  0x47   : > { %958 = vmatpush3.bf16.msra.mxu0 %v1066_v34 }
  0x49   : > { %996 = vmatpush3.bf16.msra.mxu1 %v1067_v31 }
  0x4a   : > { %615 = vmatmul.mubr.bf16.vlgmr.msra.gmra.mrb[0].mxu0 %v1068_v35 }
  0x4b   : > { %622 = vmatprep.mubr.bf16.mxu0 %v1073_v36 }
  0x4c   : > { %998 = vmatmul.mubr.bf16.vlgmr.msra.gmra.mrb[0].mxu1 %v1072_v37 }
  0x52   : > { %623 = vmatmul.mubr.bf16.gmra.mrb[4].mxu0 %v1075_v38 }
 0x11d   : > { %v959_v39 = vpop.f32.mrb[0].mxu0 }
 0x11e   : > { %v960_v40 = vpop.f32.mrb[1].mxu0 }
 0x11f   : > { %v961_v41 = vadd.f32 %v960_v40, %v959_v39  ;;  %v962_v42 = vpop.f32.mrb[2].mxu0  ;;  %v999_v43 = vpop.f32.mrb[0].mxu1 }
 0x120   : > { %v963_v44 = vpop.f32.mrb[3].mxu0  ;;  %v665_v46 = vpop.f32.mrb[1].mxu1 }
 0x121   : > { %v964_v47 = vadd.f32 %v963_v44, %v962_v42  ;;  %v666_v48 = vadd.f32 %v961_v41, %v665_v46  ;;  %v1000_v49 = vpop.f32.mrb[2].mxu1 }
 0x122   : > { %v668_v51 = vpop.f32.mrb[3].mxu1 }
 0x123   : > { %v680_v52 = vadd.f32 %v666_v48, %v346_v45  ;;  %v669_v53 = vadd.f32 %v964_v47, %v668_v51 }
 0x125   : > { %684 = vst [vmem:[#allocation2] sm:$0xff] %v680_v52  ;;  %v681_v54 = vadd.f32 %v669_v53, %v347_v50  ;;  %v965_v55 = vpop.f32.mrb[4].mxu0 }
 0x126   : > { %v966_v56 = vpop.f32.mrb[5].mxu0 }
 0x127   : > { %685 = vst [vmem:[#allocation2 + $0x8] sm:$0xff] %v681_v54  ;;  %v967_v57 = vadd.f32 %v966_v56, %v965_v55  ;;  %v968_v58 = vpop.f32.mrb[6].mxu0 }
 0x128   : > { %v969_v60 = vpop.f32.mrb[7].mxu0 }
 0x129   : > { %v674_v61 = vadd.f32 %v999_v43, %v967_v57  ;;  %v970_v62 = vadd.f32 %v969_v60, %v968_v58  ;;  %691 = sbr.rel (%p916_p11) target bundleno = 320 (0x140), region = 70 }
 0x12b   : > { %v682_v0 = vadd.f32 %v674_v61, %v348_v59  ;;  %v677_v1 = vadd.f32 %v1000_v49, %v970_v62 }
 0x12c   : > { %v692_v3 = vld [vmem:[#allocation2] sm:$0xff] (!%p916_p11) }
 0x12d   : > { %686 = vst [vmem:[#allocation2 + $0x10] sm:$0xff] %v682_v0  ;;  %v683_v2 = vadd.f32 %v677_v1, %v349_v63  ;;  %v703_v6 = vmul.f32 (!%p916_p11), %v917_v5, %v692_v3 }
 0x12e   : > { %v693_v4 = vld [vmem:[#allocation2 + $0x8] sm:$0xff] (!%p916_p11) }
 0x12f   : > { %687 = vst [vmem:[#allocation2 + $0x18] sm:$0xff] %v683_v2  ;;  %v704_v7 = vmul.f32 (!%p916_p11), %v917_v5, %v693_v4  ;;  %v714_v13 = vadd.f32 (!%p916_p11), %v918_v8, %v703_v6 }
 0x131   : > { %v715_v14 = vadd.f32 %v918_v8, %v704_v7  ;;  %v718_v17 = vmax.f32 %v714_v13, 0.0 }
 0x133   : > { %v719_v18 = vmax.f32 %v715_v14, 0.0 }
 0x134   : > { %v694_v9 = vld [vmem:[#allocation2 + $0x10] sm:$0xff] }
 0x135   : > { %v705_v11 = vmul.f32 %v917_v5, %v694_v9  ;;  %v935_v21 = vpack.c.bf16 %v719_v18, %v718_v17 }
 0x136   : > { %v695_v10 = vld [vmem:[#allocation2 + $0x18] sm:$0xff] }
 0x137   : > { %v706_v12 = vmul.f32 %v917_v5, %v695_v10  ;;  %v716_v15 = vadd.f32 %v918_v8, %v705_v11  ;;  %936 = vst [vmem:[%s1259_s4] sm:$0xff] %v935_v21  }
 0x139   : > { %v717_v16 = vadd.f32 %v918_v8, %v706_v12  ;;  %v720_v19 = vmax.f32 %v716_v15, 0.0 }
 0x13b   : > { %v721_v20 = vmax.f32 %v717_v16, 0.0 }
 0x13d   : > { %v940_v22 = vpack.c.bf16 %v721_v20, %v720_v19 }
 0x13f   : > { %942 = vst [vmem:[%s1259_s4 + $0x8] sm:$0xff] %v940_v22  }
 0x140 PF: > { %s14_s19 = sadd.s32 1, %s1114_s19   ;;  %s1260_s15 = smov %s1102_s16 }
 0x141   : > { %p11_p12 = scmp.ge.s32.totalorder %s14_s19, 5   ;;  %s1261_s16 = smov %s1177_s23 }
 0x142   : > { %s1262_s17 = smov %s1110_s18  ;;  %s1263_s18 = smov %s1265_s20 }
 0x143   :  { %13 = sbr.rel (!%p11_p12) target bundleno = 3 (0x3), region = 120 }

// kernel: _lambda_.28
= control target key start
LH: loop header
LB: loop body
LE: loop exit
PB: predicated region body
PF: predicated region fallthrough
CT: control target
= control target key end

     0   :  { %s1247_s18 = smov 0   ;;  %s1249_s19 = smov 0   ;;  %s1366_s0 = inlined_call_operand.vmem [shape: bf16[32,1152], index: 0, kind: input, shape index: {}]   ;;  %s1367_s1 = inlined_call_operand.vmem [shape: bf16[1152,128], index: 1, kind: input, shape index: {}]   ;;  %s1368_s2 = inlined_call_operand.vmem [shape: f32[1,128], index: 2, kind: input, shape index: {}]   ;;  %s1369_s3 = inlined_call_operand.vmem [shape: f32[1,128], index: 3, kind: input, shape index: {}]   ;;  %s1370_s4 = inlined_call_operand.vmem [shape: bf16[32,128], index: 4, kind: input, shape index: {}]   ;;  %s1371_s5 = inlined_call_operand.vmem [shape: bf16[32,128], index: 5, kind: output, shape index: {}]  }
   0x1   :  { %s1251_s20 = smov 0   ;;  %s1253_s21 = smov 0  }
   0x2   :  { %s1255_s22 = smov 0  }
   0x3 LB: > { %s27_s23 = sadd.s32 1, %s1210_s21  ;;  %p50_p1 = scmp.ne.s32.totalorder %s1202_s19, %s1198_s18  ;;  %s1214_s22 = sphi %s1255_s22, %s15_s22   ;;  %s1210_s21 = sphi %s1253_s21, %s1375_s21   ;;  %s1206_s20 = sphi %s1251_s20, %s1374_s20   ;;  %s1202_s19 = sphi %s1249_s19, %s1373_s19   ;;  %s1198_s18 = sphi %s1247_s18, %s1372_s18  }
   0x4   : > { %p28_p0 = scmp.ge.s32.totalorder %s27_s23, 3  ;;  %p51_p2 = scmp.eq.s32.totalorder %s1214_s22, 0 }
   0x5   : > { %s43_s25 = sadd.s32 1, %s1202_s19  ;;  %p964_p5 = scmp.ge.s32.totalorder %s1214_s22, 3 }
   0x6   : > { %s1377_s23 = smov (%p28_p0, %s27_s23), 0  ;;  %p52_p3 = por %p51_p2, %p50_p1 }
   0x7   : > { %s39_s24 = ssub.s32 %s1210_s21, %s1377_s23  ;;  %236 = sbr.rel (%p964_p5) target bundleno = 23 (0x17), region = 28 }
   0x8   : > { %p41_p4 = scmp.eq.s32.totalorder %s39_s24, 0 }
   0xa   : > { %s1282_s26 = scalar_select %p41_p4, %s1202_s19, %s43_s25  }
   0xe   : > { %239 = sbr.rel (!%p52_p3) target bundleno = 23 (0x17), region = 32  ;;  %s241_s27 = sand.u32 (%p52_p3), 1, %s1202_s19  }
   0xf   : > { %s1018_s28 = smul.u32 (%p52_p3), 12, %s1210_s21 }
  0x10   : > { %s1101_s29 = smul.u32 (%p52_p3), 48, %s241_s27 }
  0x11   : > { %s249_s7 = scalar_lea.vmem (%p52_p3), %s1366_s0, %s1018_s28 }
  0x12   : > { %v264_v0 = vld [vmem:[%s249_s7] sm:$0xff] (%p52_p3)  ;;  %v268_v2 = vld [vmem:[%s249_s7 + $0x48] sm:$0xff] (%p52_p3)  ;;  %s243_s8 = scalar_lea.vmem (%p52_p3), [#allocation3], %s1101_s29  ;;  %v970_v6 = vld [vmem:[%s249_s7 + $0x50] sm:$0xf] (%p52_p3) }
  0x13   : > { %v266_v1 = vld [vmem:[%s249_s7 + $0x24] sm:$0xff] (%p52_p3)  ;;  %265 = vst [vmem:[%s243_s8] sm:$0xff] (%p52_p3), %v264_v0  ;;  %269 = vst [vmem:[%s243_s8 + $0x18] sm:$0xff] (%p52_p3), %v268_v2  ;;  %v270_v3 = vld [vmem:[%s249_s7 + $0x6c] sm:$0xff] (%p52_p3) }
  0x14   : > { %267 = vst [vmem:[%s243_s8 + $0xc] sm:$0xff] (%p52_p3), %v266_v1  ;;  %v966_v4 = vld [vmem:[%s249_s7 + $0x8] sm:$0xf] (%p52_p3)  ;;  %v968_v5 = vld [vmem:[%s249_s7 + $0x2c] sm:$0xf] (%p52_p3)  ;;  %271 = vst [vmem:[%s243_s8 + $0x24] sm:$0xff] (%p52_p3), %v270_v3 }
  0x15   : > { %967 = vst [vmem:[%s243_s8 + $0x8] sm:$0xf] %v966_v4  ;;  %969 = vst [vmem:[%s243_s8 + $0x14] sm:$0xf] %v968_v5  ;;  %v972_v7 = vld [vmem:[%s249_s7 + $0x74] sm:$0xf] }
  0x16   : > { %971 = vst [vmem:[%s243_s8 + $0x20] sm:$0xf] %v970_v6  ;;  %973 = vst [vmem:[%s243_s8 + $0x2c] sm:$0xf] %v972_v7 }
  0x17 PF: > { %p974_p6 = scmp.ge.s32.totalorder %s1214_s22, 1  ;;  %p303_p7 = scmp.lt.s32.totalorder %s1214_s22, 4 }
  0x19   : > { %p304_p8 = pnand %p974_p6, %p303_p7 }
  0x1a   : > { %s310_s9 = sand.u32 (!%p304_p8), 1, %s1198_s18   ;;  %s364_s10 = smul.u32 (!%p304_p8), 48, %s1206_s20 }
  0x1b   : > { %307 = sbr.rel (%p304_p8) target bundleno = 322 (0x142), region = 62  ;;  %p976_p10 = scmp.ne.s32.totalorder (!%p304_p8), %s1206_s20, 0 }
  0x1c   : > { %s1102_s11 = smul.u32 (!%p304_p8), 48, %s310_s9  ;;  %p365_p9 = scmp.lt.s32.totalorder (!%p304_p8), %s364_s10, 143 }
  0x1e   : > { %s1299_s16 = scalar_lea.vmem (!%p304_p8), [#allocation3], %s1102_s11 }
  0x22   : > { %s1379_s10 = smov (!%p365_p9, %s364_s10), 143  ;;  %401 = sbr.rel (%p976_p10) target bundleno = 41 (0x29), region = 70 }
  0x23   : > { %s975_s12 = sshll.u32 %s1379_s10, 2  ;;  %v1216_v8 = vmov (!%p976_p10), 0.0  }
  0x24   : > { %s1297_s15 = scalar_lea.vmem %s1367_s1, %s975_s12  ;;  %402 = vst [vmem:[#allocation2] sm:$0xff] (!%p976_p10), %v1216_v8  ;;  %403 = vst [vmem:[#allocation2 + $0x8] sm:$0xff] (!%p976_p10), %v1216_v8 }
  0x25   : > { %404 = vst [vmem:[#allocation2 + $0x10] sm:$0xff] (!%p976_p10), %v1216_v8  ;;  %405 = vst [vmem:[#allocation2 + $0x18] sm:$0xff] (!%p976_p10), %v1216_v8 }
  0x29 PF: > { %v1144_v9 = vld [vmem:[%s1297_s15 + $0x40] sm:$0xff]   ;;  %v1147_v12 = vld [vmem:[%s1297_s15 + $0x48] sm:$0xff]   ;;  %v1150_v15 = vld [vmem:[%s1297_s15 + $0x50] sm:$0xff]   ;;  %p1007_p11 = scmp.ne.s32.totalorder %s1206_s20, 2 }
  0x2a   : > { %v1145_v10 = vld [vmem:[%s1297_s15] sm:$0xff]   ;;  %1043 = vmatprep.subr.bf16.mxu0 %v1144_v9  ;;  %v1148_v13 = vld [vmem:[%s1297_s15 + $0x8] sm:$0xff]   ;;  %v1151_v16 = vld [vmem:[%s1297_s15 + $0x10] sm:$0xff]  }
  0x2b   : > { %v1146_v11 = vld [vmem:[%s1297_s15 + $0x80] sm:$0xff]   ;;  %1044 = vmatpush3.bf16.msra.mxu0 %v1145_v10  ;;  %v1149_v14 = vld [vmem:[%s1297_s15 + $0x88] sm:$0xff]   ;;  %v1152_v17 = vld [vmem:[%s1297_s15 + $0x90] sm:$0xff]  }
  0x2c   : > { %1081 = vmatprep.subr.bf16.mxu1 %v1146_v11  ;;  %1045 = vmatprep.subr.bf16.mxu0 %v1147_v12  ;;  %v1153_v18 = vld [vmem:[%s1297_s15 + $0x58] sm:$0xff]   ;;  %v1156_v21 = vld [vmem:[%s1297_s15 + $0x60] sm:$0xff]   ;;  %v1159_v24 = vld [vmem:[%s1297_s15 + $0x68] sm:$0xff]  }
  0x2d   : > { %1082 = vmatpush3.bf16.msra.mxu1 %v1146_v11  ;;  %v1154_v19 = vld [vmem:[%s1297_s15 + $0x18] sm:$0xff]   ;;  %v1158_v22 = vld [vmem:[%s1297_s15 + $0xa0] sm:$0xff]   ;;  %v1161_v25 = vld [vmem:[%s1297_s15 + $0xa8] sm:$0xff]  }
  0x2e   : > { %1083 = vmatprep.subr.bf16.mxu1 %v1149_v14  ;;  %v1155_v20 = vld [vmem:[%s1297_s15 + $0x98] sm:$0xff]   ;;  %v1157_v23 = vld [vmem:[%s1297_s15 + $0x20] sm:$0xff]   ;;  %v1160_v26 = vld [vmem:[%s1297_s15 + $0x28] sm:$0xff]  }
  0x2f   : > { %1046 = vmatpush3.bf16.msra.mxu0 %v1148_v13  ;;  %v1162_v27 = vld [vmem:[%s1297_s15 + $0x70] sm:$0xff]   ;;  %v1165_v30 = vld [vmem:[%s1297_s15 + $0x78] sm:$0xff]   ;;  %v406_v45 = vld [vmem:[#allocation2] sm:$0xff] }
  0x30   : > { %1047 = vmatprep.subr.bf16.mxu0 %v1150_v15  ;;  %v1163_v28 = vld [vmem:[%s1297_s15 + $0x30] sm:$0xff]   ;;  %v1167_v31 = vld [vmem:[%s1297_s15 + $0xb8] sm:$0xff]   ;;  %v407_v50 = vld [vmem:[#allocation2 + $0x8] sm:$0xff] }
  0x31   : > { %1084 = vmatpush3.bf16.msra.mxu1 %v1149_v14  ;;  %v1164_v29 = vld [vmem:[%s1297_s15 + $0xb0] sm:$0xff]   ;;  %v1166_v34 = vld [vmem:[%s1297_s15 + $0x38] sm:$0xff]   ;;  %v1008_v5 = vld [vmem:[%s1368_s2] ss:$0 sm:$0xff] (!%p1007_p11) }
  0x32   : > { %1085 = vmatprep.subr.bf16.mxu1 %v1152_v17  ;;  %v1170_v32 = vld [vmem:[%s1299_s16 + $0x4] ss:$12 sps:$4 sm:$0xff]   ;;  %v1171_v33 = vld [vmem:[%s1299_s16 + $0x8] ss:$12 sps:$4 sm:$0xff]   ;;  %v1168_v35 = vld [vmem:[%s1299_s16] ss:$12 sps:$4 sm:$0xff]  }
  0x33   : > { %1048 = vmatpush3.bf16.msra.mxu0 %v1151_v16  ;;  %674 = vmatprep.mubr.bf16.mxu0 %v1170_v32  ;;  %v1173_v36 = vld [vmem:[%s1299_s16 + $0x1c] ss:$12 sps:$4 sm:$0xff]   ;;  %v1172_v37 = vld [vmem:[%s1299_s16 + $0x20] ss:$12 sps:$4 sm:$0xff]   ;;  %v1175_v38 = vld [vmem:[%s1299_s16 + $0x18] ss:$12 sps:$4 sm:$0xff]  }
  0x34   : > { %1049 = vmatprep.subr.bf16.mxu0 %v1153_v18  ;;  %1097 = vmatprep.mubr.bf16.mxu1 %v1171_v33  ;;  %v408_v59 = vld [vmem:[#allocation2 + $0x10] sm:$0xff]  ;;  %v409_v63 = vld [vmem:[#allocation2 + $0x18] sm:$0xff]  ;;  %v1009_v8 = vld [vmem:[%s1369_s3] ss:$0 sm:$0xff] (!%p1007_p11) }
  0x35   : > { %1086 = vmatpush3.bf16.msra.mxu1 %v1152_v17  ;;  %v1024_v9 = vld [vmem:[%s1370_s4] sm:$0xff] (!%p1007_p11)   ;;  %v1041_v15 = vld [vmem:[%s1370_s4 + $0x8] sm:$0xff] (!%p1007_p11)  }
  0x36   : > { %1087 = vmatprep.subr.bf16.mxu1 %v1155_v20  ;;  %v1025_v11 = vunpack.c.l.bf16 (!%p1007_p11), %v1024_v9  ;;  %v1026_v12 = vunpack.c.h.bf16 (!%p1007_p11), %v1024_v9 }
  0x37   : > { %1050 = vmatpush3.bf16.msra.mxu0 %v1154_v19  ;;  %v1029_v19 = vunpack.c.l.bf16 (!%p1007_p11), %v1041_v15 }
  0x38   : > { %1051 = vmatprep.subr.bf16.mxu0 %v1156_v21  ;;  %v1030_v21 = vunpack.c.h.bf16 (!%p1007_p11), %v1041_v15 }
  0x39   : > { %1088 = vmatpush3.bf16.msra.mxu1 %v1155_v20 }
  0x3a   : > { %1089 = vmatprep.subr.bf16.mxu1 %v1158_v22 }
  0x3b   : > { %1052 = vmatpush3.bf16.msra.mxu0 %v1157_v23 }
  0x3c   : > { %1053 = vmatprep.subr.bf16.mxu0 %v1159_v24 }
  0x3d   : > { %1090 = vmatpush3.bf16.msra.mxu1 %v1158_v22 }
  0x3e   : > { %1091 = vmatprep.subr.bf16.mxu1 %v1161_v25 }
  0x3f   : > { %1054 = vmatpush3.bf16.msra.mxu0 %v1160_v26 }
  0x40   : > { %1055 = vmatprep.subr.bf16.mxu0 %v1162_v27 }
  0x41   : > { %1092 = vmatpush3.bf16.msra.mxu1 %v1161_v25 }
  0x42   : > { %1093 = vmatprep.subr.bf16.mxu1 %v1164_v29 }
  0x43   : > { %1056 = vmatpush3.bf16.msra.mxu0 %v1163_v28 }
  0x44   : > { %1057 = vmatprep.subr.bf16.mxu0 %v1165_v30 }
  0x45   : > { %1094 = vmatpush3.bf16.msra.mxu1 %v1164_v29 }
  0x46   : > { %1095 = vmatprep.subr.bf16.mxu1 %v1167_v31 }
  0x47   : > { %1058 = vmatpush3.bf16.msra.mxu0 %v1166_v34 }
  0x49   : > { %1096 = vmatpush3.bf16.msra.mxu1 %v1167_v31 }
  0x4a   : > { %675 = vmatmul.mubr.bf16.vlgmr.msra.gmra.mrb[0].mxu0 %v1168_v35 }
  0x4b   : > { %682 = vmatprep.mubr.bf16.mxu0 %v1173_v36 }
  0x4c   : > { %1098 = vmatmul.mubr.bf16.vlgmr.msra.gmra.mrb[0].mxu1 %v1172_v37 }
  0x52   : > { %683 = vmatmul.mubr.bf16.gmra.mrb[4].mxu0 %v1175_v38 }
 0x11d   : > { %v1059_v39 = vpop.f32.mrb[0].mxu0 }
 0x11e   : > { %v1060_v40 = vpop.f32.mrb[1].mxu0 }
 0x11f   : > { %v1061_v41 = vadd.f32 %v1060_v40, %v1059_v39  ;;  %v1062_v42 = vpop.f32.mrb[2].mxu0  ;;  %v1099_v43 = vpop.f32.mrb[0].mxu1 }
 0x120   : > { %v1063_v44 = vpop.f32.mrb[3].mxu0  ;;  %v725_v46 = vpop.f32.mrb[1].mxu1 }
 0x121   : > { %v1064_v47 = vadd.f32 %v1063_v44, %v1062_v42  ;;  %v726_v48 = vadd.f32 %v1061_v41, %v725_v46  ;;  %v1100_v49 = vpop.f32.mrb[2].mxu1 }
 0x122   : > { %v728_v51 = vpop.f32.mrb[3].mxu1 }
 0x123   : > { %v740_v52 = vadd.f32 %v726_v48, %v406_v45  ;;  %v729_v53 = vadd.f32 %v1064_v47, %v728_v51 }
 0x125   : > { %744 = vst [vmem:[#allocation2] sm:$0xff] %v740_v52  ;;  %v741_v54 = vadd.f32 %v729_v53, %v407_v50  ;;  %v1065_v55 = vpop.f32.mrb[4].mxu0 }
 0x126   : > { %v1066_v56 = vpop.f32.mrb[5].mxu0 }
 0x127   : > { %745 = vst [vmem:[#allocation2 + $0x8] sm:$0xff] %v741_v54  ;;  %v1067_v57 = vadd.f32 %v1066_v56, %v1065_v55  ;;  %v1068_v58 = vpop.f32.mrb[6].mxu0 }
 0x128   : > { %v1069_v60 = vpop.f32.mrb[7].mxu0 }
 0x129   : > { %v734_v61 = vadd.f32 %v1099_v43, %v1067_v57  ;;  %v1070_v62 = vadd.f32 %v1069_v60, %v1068_v58  ;;  %751 = sbr.rel (%p1007_p11) target bundleno = 322 (0x142), region = 74 }
 0x12b   : > { %v742_v0 = vadd.f32 %v734_v61, %v408_v59  ;;  %v737_v1 = vadd.f32 %v1100_v49, %v1070_v62 }
 0x12c   : > { %v752_v3 = vld [vmem:[#allocation2] sm:$0xff] (!%p1007_p11) }
 0x12d   : > { %746 = vst [vmem:[#allocation2 + $0x10] sm:$0xff] %v742_v0  ;;  %v743_v2 = vadd.f32 %v737_v1, %v409_v63  ;;  %v763_v6 = vmul.f32 (!%p1007_p11), %v1008_v5, %v752_v3 }
 0x12e   : > { %v753_v4 = vld [vmem:[#allocation2 + $0x8] sm:$0xff] (!%p1007_p11) }
 0x12f   : > { %747 = vst [vmem:[#allocation2 + $0x18] sm:$0xff] %v743_v2  ;;  %v764_v7 = vmul.f32 (!%p1007_p11), %v1008_v5, %v753_v4  ;;  %v774_v16 = vadd.f32 (!%p1007_p11), %v1009_v8, %v763_v6 }
 0x131   : > { %v775_v17 = vadd.f32 %v1009_v8, %v764_v7  ;;  %v786_v22 = vadd.f32 %v1025_v11, %v774_v16 }
 0x133   : > { %v787_v23 = vadd.f32 %v1026_v12, %v775_v17  ;;  %v790_v26 = vmax.f32 %v786_v22, 0.0 }
 0x134   : > { %v754_v10 = vld [vmem:[#allocation2 + $0x10] sm:$0xff] }
 0x135   : > { %v765_v14 = vmul.f32 %v1008_v5, %v754_v10  ;;  %v791_v27 = vmax.f32 %v787_v23, 0.0 }
 0x136   : > { %v755_v13 = vld [vmem:[#allocation2 + $0x18] sm:$0xff] }
 0x137   : > { %v766_v18 = vmul.f32 %v1008_v5, %v755_v13  ;;  %v776_v20 = vadd.f32 %v1009_v8, %v765_v14  ;;  %v1034_v30 = vpack.c.bf16 %v791_v27, %v790_v26 }
 0x139   : > { %v777_v24 = vadd.f32 %v1009_v8, %v766_v18  ;;  %v788_v25 = vadd.f32 %v1029_v19, %v776_v20  ;;  %1035 = vst [vmem:[%s1371_s5] sm:$0xff] %v1034_v30  }
 0x13b   : > { %v789_v28 = vadd.f32 %v1030_v21, %v777_v24  ;;  %v792_v29 = vmax.f32 %v788_v25, 0.0 }
 0x13d   : > { %v793_v31 = vmax.f32 %v789_v28, 0.0 }
 0x13f   : > { %v1039_v32 = vpack.c.bf16 %v793_v31, %v792_v29 }
 0x141   : > { %1042 = vst [vmem:[%s1371_s5 + $0x8] sm:$0xff] %v1039_v32  }
 0x142 PF: > { %s15_s22 = sadd.s32 1, %s1214_s22   ;;  %s1372_s18 = smov %s1202_s19 }
 0x143   : > { %p12_p12 = scmp.ge.s32.totalorder %s15_s22, 5   ;;  %s1373_s19 = smov %s1282_s26 }
 0x144   : > { %s1374_s20 = smov %s1210_s21  ;;  %s1375_s21 = smov %s1377_s23 }
 0x145   :  { %14 = sbr.rel (!%p12_p12) target bundleno = 3 (0x3), region = 127 }

// kernel: _lambda_.31
= control target key start
LH: loop header
LB: loop body
LE: loop exit
PB: predicated region body
PF: predicated region fallthrough
CT: control target
= control target key end

     0   :  { %s1114_s15 = smov 0   ;;  %s1116_s16 = smov 0   ;;  %s1216_s0 = inlined_call_operand.vmem [shape: bf16[8,1152], index: 0, kind: input, shape index: {}]   ;;  %s1217_s1 = inlined_call_operand.vmem [shape: bf16[1152,256], index: 1, kind: input, shape index: {}]   ;;  %s1218_s2 = inlined_call_operand.vmem [shape: f32[1,256], index: 2, kind: input, shape index: {}]   ;;  %s1219_s3 = inlined_call_operand.vmem [shape: f32[1,256], index: 3, kind: input, shape index: {}]   ;;  %s1220_s4 = inlined_call_operand.vmem [shape: bf16[8,256], index: 4, kind: output, shape index: {}]  }
   0x1   :  { %s1118_s17 = smov 0  }
   0x2 LB: > { %s26_s18 = sadd.s32 1, %s1081_s16  ;;  %p898_p0 = scmp.ge.s32.totalorder %s1085_s17, 1  ;;  %s1085_s17 = sphi %s1118_s17, %s14_s17   ;;  %s1081_s16 = sphi %s1116_s16, %s1222_s16   ;;  %s1077_s15 = sphi %s1114_s15, %s1221_s15  }
   0x3   : > { %p27_p1 = scmp.ge.s32.totalorder %s26_s18, 3  ;;  %p229_p2 = scmp.lt.s32.totalorder %s1085_s17, 4 }
   0x5   : > { %s1224_s18 = smov (%p27_p1, %s26_s18), 0  ;;  %p230_p3 = pnand %p898_p0, %p229_p2 }
   0x6   : > { %s281_s19 = smul.u32 (!%p230_p3), 3, %s1077_s15  ;;  %p902_p6 = scmp.ne.s32.totalorder (!%p230_p3), %s1077_s15, 0 }
   0x7   : > { %233 = sbr.rel (%p230_p3) target bundleno = 323 (0x143), region = 36 }
   0x8   : > { %s291_s20 = smul.u32 (!%p230_p3), 48, %s1077_s15  ;;  %p284_p4 = scmp.lt.s32.totalorder (!%p230_p3), %s281_s19, 8 }
   0xa   : > { %p293_p5 = scmp.lt.s32.totalorder (!%p230_p3), %s291_s20, 143 }
   0xe   : > { %s1226_s19 = smov (!%p284_p4, %s281_s19), 8  ;;  %s1228_s20 = smov (!%p293_p5, %s291_s20), 143 }
   0xf   : > { %s899_s21 = sshll.u32 %s1226_s19, 2  ;;  %s960_s25 = sshll.u32 %s1228_s20, 3  ;;  %v1087_v0 = vmov (!%p902_p6), 0.0  }
  0x10   : > { %s1139_s24 = scalar_lea.vmem %s1216_s0, %s899_s21  ;;  %s1144_s28 = scalar_lea.vmem %s1217_s1, %s960_s25  ;;  %328 = vst [vmem:[#allocation2] sm:$0xff] (!%p902_p6), %v1087_v0  ;;  %329 = vst [vmem:[#allocation2 + $0x8] sm:$0xff] (!%p902_p6), %v1087_v0 }
  0x11   : > { %327 = sbr.rel (%p902_p6) target bundleno = 24 (0x18), region = 40 }
  0x18 PF: > { %v988_v1 = vld [vmem:[%s1144_s28 + $0x4] ss:$8 sps:$4 sm:$0xff]   ;;  %v990_v2 = vld [vmem:[%s1144_s28] ss:$8 sps:$4 sm:$0xff]   ;;  %v1088_v3 = vmov 0   ;;  %p954_p7 = scmp.ne.s32.totalorder %s1077_s15, 2 }
  0x19   : > { %706 = vmatprep.mubr.bf16.mxu1 %v1088_v3  ;;  %633 = vmatprep.subr.bf16.mxu0 %v988_v1  ;;  %v991_v4 = vld [vmem:[%s1144_s28 + $0x14] ss:$8 sps:$4 sm:$0xff]   ;;  %v993_v5 = vld [vmem:[%s1144_s28 + $0x10] ss:$8 sps:$4 sm:$0xff]   ;;  %v994_v6 = vld [vmem:[%s1144_s28 + $0x24] ss:$8 sps:$4 sm:$0xff]  }
  0x1a   : > { %634 = vmatpush1.bf16.msra.mxu0 %v990_v2  ;;  %v996_v7 = vld [vmem:[%s1144_s28 + $0x20] ss:$8 sps:$4 sm:$0xff]   ;;  %v997_v8 = vld [vmem:[%s1144_s28 + $0x34] ss:$8 sps:$4 sm:$0xff]   ;;  %v999_v9 = vld [vmem:[%s1144_s28 + $0x30] ss:$8 sps:$4 sm:$0xff]  }
  0x1b   : > { %635 = vmatprep.subr.bf16.mxu0 %v991_v4  ;;  %v1012_v10 = vld [vmem:[%s1144_s28 + $0x104] ss:$8 sps:$4 sm:$0xff]   ;;  %v1014_v11 = vld [vmem:[%s1144_s28 + $0x100] ss:$8 sps:$4 sm:$0xff]   ;;  %v1018_v13 = vld [vmem:[%s1144_s28 + $0x114] ss:$8 sps:$4 sm:$0xff]   ;;  %v727_v4 = vlaneseq (!%p954_p7) }
  0x1c   : > { %v1000_v12 = vld [vmem:[%s1144_s28 + $0x44] ss:$8 sps:$4 sm:$0xff]   ;;  %674 = vmatprep.subr.bf16.mxu1 %v1012_v10  ;;  %v1020_v14 = vld [vmem:[%s1144_s28 + $0x110] ss:$8 sps:$4 sm:$0xff]   ;;  %v1002_v15 = vld [vmem:[%s1144_s28 + $0x40] ss:$8 sps:$4 sm:$0xff]  }
  0x1d   : > { %675 = vmatpush1.bf16.msra.mxu1 %v1014_v11  ;;  %v1003_v16 = vld [vmem:[%s1144_s28 + $0x54] ss:$8 sps:$4 sm:$0xff]   ;;  %v1024_v17 = vld [vmem:[%s1144_s28 + $0x124] ss:$8 sps:$4 sm:$0xff]   ;;  %v1026_v18 = vld [vmem:[%s1144_s28 + $0x120] ss:$8 sps:$4 sm:$0xff]  }
  0x1e   : > { %636 = vmatpush1.bf16.msra.mxu0 %v993_v5  ;;  %676 = vmatprep.subr.bf16.mxu1 %v1018_v13  ;;  %v1005_v19 = vld [vmem:[%s1144_s28 + $0x50] ss:$8 sps:$4 sm:$0xff]   ;;  %v1030_v20 = vld [vmem:[%s1144_s28 + $0x134] ss:$8 sps:$4 sm:$0xff]   ;;  %v1006_v21 = vld [vmem:[%s1144_s28 + $0x64] ss:$8 sps:$4 sm:$0xff]  }
  0x1f   : > { %637 = vmatprep.subr.bf16.mxu0 %v994_v6  ;;  %v1032_v22 = vld [vmem:[%s1144_s28 + $0x130] ss:$8 sps:$4 sm:$0xff]   ;;  %v1008_v23 = vld [vmem:[%s1144_s28 + $0x60] ss:$8 sps:$4 sm:$0xff]   ;;  %v1036_v24 = vld [vmem:[%s1144_s28 + $0x144] ss:$8 sps:$4 sm:$0xff]  }
  0x20   : > { %v1009_v25 = vld [vmem:[%s1144_s28 + $0x74] ss:$8 sps:$4 sm:$0xff]   ;;  %v1038_v26 = vld [vmem:[%s1144_s28 + $0x140] ss:$8 sps:$4 sm:$0xff]   ;;  %v1011_v27 = vld [vmem:[%s1144_s28 + $0x70] ss:$8 sps:$4 sm:$0xff]  }
  0x21   : > { %677 = vmatpush1.bf16.msra.mxu1 %v1020_v14  ;;  %v1042_v28 = vld [vmem:[%s1144_s28 + $0x154] ss:$8 sps:$4 sm:$0xff]   ;;  %v1015_v29 = vld [vmem:[%s1144_s28 + $0x84] ss:$8 sps:$4 sm:$0xff]   ;;  %v1044_v30 = vld [vmem:[%s1144_s28 + $0x150] ss:$8 sps:$4 sm:$0xff]  }
  0x22   : > { %638 = vmatpush1.bf16.msra.mxu0 %v996_v7  ;;  %678 = vmatprep.subr.bf16.mxu1 %v1024_v17  ;;  %v1017_v31 = vld [vmem:[%s1144_s28 + $0x80] ss:$8 sps:$4 sm:$0xff]   ;;  %v1048_v32 = vld [vmem:[%s1144_s28 + $0x164] ss:$8 sps:$4 sm:$0xff]   ;;  %v1021_v33 = vld [vmem:[%s1144_s28 + $0x94] ss:$8 sps:$4 sm:$0xff]  }
  0x23   : > { %639 = vmatprep.subr.bf16.mxu0 %v997_v8  ;;  %v332_v34 = vld [vmem:[%s1139_s24] sm:$0xff]  ;;  %v1023_v37 = vld [vmem:[%s1144_s28 + $0x90] ss:$8 sps:$4 sm:$0xff]   ;;  %v1054_v38 = vld [vmem:[%s1144_s28 + $0x174] ss:$8 sps:$4 sm:$0xff]   ;;  %v728_v5 = vshrl.u32 (!%p954_p7), %v727_v4, 7 }
  0x24   : > { %v904_v35 = vcombine.high %v332_v34, %v332_v34  ;;  %v1050_v36 = vld [vmem:[%s1144_s28 + $0x160] ss:$8 sps:$4 sm:$0xff]   ;;  %v1027_v39 = vld [vmem:[%s1144_s28 + $0xa4] ss:$8 sps:$4 sm:$0xff]   ;;  %v1056_v40 = vld [vmem:[%s1144_s28 + $0x170] ss:$8 sps:$4 sm:$0xff]   ;;  %v903_v53 = vcombine.low %v332_v34, %v332_v34 }
  0x25   : > { %679 = vmatpush1.bf16.msra.mxu1 %v1026_v18  ;;  %v1029_v41 = vld [vmem:[%s1144_s28 + $0xa0] ss:$8 sps:$4 sm:$0xff]   ;;  %v1033_v42 = vld [vmem:[%s1144_s28 + $0xb4] ss:$8 sps:$4 sm:$0xff]   ;;  %v1035_v44 = vld [vmem:[%s1144_s28 + $0xb0] ss:$8 sps:$4 sm:$0xff]  }
  0x26   : > { %640 = vmatpush1.bf16.msra.mxu0 %v999_v9  ;;  %680 = vmatprep.subr.bf16.mxu1 %v1030_v20  ;;  %v1060_v43 = vld [vmem:[%s1139_s24 + $0x8] ss:$0 sps:$4 sm:$0xff]   ;;  %v1039_v45 = vld [vmem:[%s1144_s28 + $0xc4] ss:$8 sps:$4 sm:$0xff]   ;;  %v1045_v47 = vld [vmem:[%s1144_s28 + $0xd4] ss:$8 sps:$4 sm:$0xff]  }
  0x27   : > { %641 = vmatprep.subr.bf16.mxu0 %v1000_v12  ;;  %665 = vmatprep.mubr.bf16.mxu0 %v904_v35  ;;  %v1041_v46 = vld [vmem:[%s1144_s28 + $0xc0] ss:$8 sps:$4 sm:$0xff]   ;;  %v1047_v48 = vld [vmem:[%s1144_s28 + $0xd0] ss:$8 sps:$4 sm:$0xff]   ;;  %v1051_v49 = vld [vmem:[%s1144_s28 + $0xe4] ss:$8 sps:$4 sm:$0xff]  }
  0x28   : > { %v1053_v50 = vld [vmem:[%s1144_s28 + $0xe0] ss:$8 sps:$4 sm:$0xff]   ;;  %v1057_v51 = vld [vmem:[%s1144_s28 + $0xf4] ss:$8 sps:$4 sm:$0xff]   ;;  %v1059_v52 = vld [vmem:[%s1144_s28 + $0xf0] ss:$8 sps:$4 sm:$0xff]  }
  0x29   : > { %681 = vmatpush1.bf16.msra.mxu1 %v1032_v22  ;;  %v330_v58 = vld [vmem:[#allocation2] sm:$0xff]  ;;  %v331_v61 = vld [vmem:[#allocation2 + $0x8] sm:$0xff]  ;;  %v729_v8 = vsub.s32 (!%p954_p7), 0, %v728_v5  ;;  %v733_v9 = vsub.s32 (!%p954_p7), 1, %v728_v5 }
  0x2a   : > { %642 = vmatpush1.bf16.msra.mxu0 %v1002_v15  ;;  %682 = vmatprep.subr.bf16.mxu1 %v1036_v24  ;;  %v725_v6 = vld [vmem:[%s1218_s2] sm:$0x3] (!%p954_p7) }
  0x2b   : > { %643 = vmatprep.subr.bf16.mxu0 %v1003_v16  ;;  %v739_v7 = vld [vmem:[%s1219_s3] sm:$0x3] (!%p954_p7)  ;;  %v730_v12 = vrot.slane (!%p954_p7), %v725_v6, %v729_v8  ;;  %v734_v13 = vrot.slane (!%p954_p7), %v725_v6, %v733_v9 }
  0x2c   : > { %v744_v14 = vrot.slane (!%p954_p7), %v739_v7, %v729_v8  ;;  %v748_v15 = vrot.slane (!%p954_p7), %v739_v7, %v733_v9 }
  0x2d   : > { %683 = vmatpush1.bf16.msra.mxu1 %v1038_v26 }
  0x2e   : > { %644 = vmatpush1.bf16.msra.mxu0 %v1005_v19  ;;  %684 = vmatprep.subr.bf16.mxu1 %v1042_v28 }
  0x2f   : > { %645 = vmatprep.subr.bf16.mxu0 %v1006_v21 }
  0x31   : > { %685 = vmatpush1.bf16.msra.mxu1 %v1044_v30 }
  0x32   : > { %646 = vmatpush1.bf16.msra.mxu0 %v1008_v23  ;;  %686 = vmatprep.subr.bf16.mxu1 %v1048_v32 }
  0x33   : > { %647 = vmatprep.subr.bf16.mxu0 %v1009_v25 }
  0x35   : > { %687 = vmatpush1.bf16.msra.mxu1 %v1050_v36 }
  0x36   : > { %648 = vmatpush1.bf16.msra.mxu0 %v1011_v27  ;;  %688 = vmatprep.subr.bf16.mxu1 %v1054_v38 }
  0x37   : > { %649 = vmatprep.subr.bf16.mxu0 %v1015_v29 }
  0x39   : > { %689 = vmatpush1.bf16.msra.mxu1 %v1056_v40 }
  0x3a   : > { %650 = vmatpush1.bf16.msra.mxu0 %v1017_v31 }
  0x3b   : > { %651 = vmatprep.subr.bf16.mxu0 %v1021_v33 }
  0x3c   : > { %707 = vmatmul.mubr.bf16.vlgmr.msra.gmra.mrb[0].mxu1 %v1060_v43 }
  0x3e   : > { %652 = vmatpush1.bf16.msra.mxu0 %v1023_v37 }
  0x3f   : > { %653 = vmatprep.subr.bf16.mxu0 %v1027_v39 }
  0x42   : > { %654 = vmatpush1.bf16.msra.mxu0 %v1029_v41 }
  0x43   : > { %655 = vmatprep.subr.bf16.mxu0 %v1033_v42 }
  0x46   : > { %656 = vmatpush1.bf16.msra.mxu0 %v1035_v44 }
  0x47   : > { %657 = vmatprep.subr.bf16.mxu0 %v1039_v45 }
  0x4a   : > { %658 = vmatpush1.bf16.msra.mxu0 %v1041_v46 }
  0x4b   : > { %659 = vmatprep.subr.bf16.mxu0 %v1045_v47 }
  0x4e   : > { %660 = vmatpush1.bf16.msra.mxu0 %v1047_v48 }
  0x4f   : > { %661 = vmatprep.subr.bf16.mxu0 %v1051_v49 }
  0x52   : > { %662 = vmatpush1.bf16.msra.mxu0 %v1053_v50 }
  0x53   : > { %663 = vmatprep.subr.bf16.mxu0 %v1057_v51 }
  0x56   : > { %664 = vmatpush1.bf16.msra.mxu0 %v1059_v52 }
  0x59   : > { %666 = vmatmul.mubr.bf16.vlgmr.msra.gmra.mrb[0].mxu0 %v903_v53 }
 0x10f   : > { %v708_v54 = vpop.f32.mrb[0].mxu1 }
 0x110   : > { %v710_v55 = vpop.f32.mrb[1].mxu1 }
 0x111   : > { %v712_v56 = vpop.f32.mrb[2].mxu1 }
 0x112   : > { %v713_v57 = vpop.f32.mrb[3].mxu1 }
 0x12c   : > { %v667_v59 = vpop.f32.mrb[0].mxu0  ;;  %722 = sbr.rel (%p954_p7) target bundleno = 323 (0x143), region = 44 }
 0x12d   : > { %v709_v60 = vadd.f32 %v708_v54, %v667_v59  ;;  %v669_v62 = vpop.f32.mrb[1].mxu0 }
 0x12e   : > { %v711_v63 = vadd.f32 %v710_v55, %v669_v62  ;;  %v671_v0 = vpop.f32.mrb[2].mxu0 }
 0x12f   : > { %v715_v1 = vadd.f32 %v709_v60, %v330_v58  ;;  %v672_v2 = vpop.f32.mrb[3].mxu0 }
 0x130   : > { %v716_v3 = vadd.f32 %v711_v63, %v331_v61 }
 0x131   : > { %717 = vst [vmem:[#allocation2] sm:$0xff] %v715_v1 }
 0x132   : > { %718 = vst [vmem:[#allocation2 + $0x8] sm:$0xff] %v716_v3 }
 0x138   : > { %v723_v10 = vld [vmem:[#allocation2] sm:$0xff] }
 0x139   : > { %v724_v11 = vld [vmem:[#allocation2 + $0x8] sm:$0xff]  ;;  %v737_v16 = vmul.f32 %v730_v12, %v723_v10 }
 0x13a   : > { %v738_v17 = vmul.f32 %v734_v13, %v724_v11 }
 0x13b   : > { %v751_v18 = vadd.f32 %v744_v14, %v737_v16 }
 0x13c   : > { %v752_v19 = vadd.f32 %v748_v15, %v738_v17 }
 0x13d   : > { %v753_v20 = vmax.f32 %v751_v18, 0.0 }
 0x13e   : > { %v754_v21 = vmax.f32 %v752_v19, 0.0 }
 0x140   : > { %v961_v22 = vpack.c.bf16 %v754_v21, %v753_v20 }
 0x142   : > { %763 = vst [vmem:[%s1220_s4] sm:$0xff] %v961_v22 }
 0x143 PF: > { %s14_s17 = sadd.s32 1, %s1085_s17   ;;  %s1221_s15 = smov %s1081_s16 }
 0x144   : > { %p11_p8 = scmp.ge.s32.totalorder %s14_s17, 5   ;;  %s1222_s16 = smov %s1224_s18 }
 0x146   :  { %13 = sbr.rel (!%p11_p8) target bundleno = 2 (0x2), region = 83 }

// kernel: _lambda_.32
= control target key start
LH: loop header
LB: loop body
LE: loop exit
PB: predicated region body
PF: predicated region fallthrough
CT: control target
= control target key end

     0   :  { %v257_v1 = vmov 0   ;;  %v175_v18 = vlaneseq  ;;  %s343_s1 = inlined_call_operand.vmem [shape: bf16[128,256], index: 1, kind: input, shape index: {}]   ;;  %s344_s0 = inlined_call_operand.vmem [shape: bf16[8,128], index: 0, kind: input, shape index: {}]   ;;  %s345_s2 = inlined_call_operand.vmem [shape: f32[1,256], index: 2, kind: input, shape index: {}]   ;;  %s346_s3 = inlined_call_operand.vmem [shape: f32[1,256], index: 3, kind: input, shape index: {}]   ;;  %s347_s4 = inlined_call_operand.vmem [shape: bf16[8,256], index: 4, kind: output, shape index: {}]  }
   0x1   :  { %v233_v0 = vld [vmem:[%s343_s1 + $0x4] ss:$8 sps:$4 sm:$0xff]   ;;  %155 = vmatprep.mubr.bf16.mxu0 %v257_v1  ;;  %v235_v2 = vld [vmem:[%s343_s1] ss:$8 sps:$4 sm:$0xff]   ;;  %v236_v3 = vld [vmem:[%s343_s1 + $0x14] ss:$8 sps:$4 sm:$0xff]  }
   0x2   :  { %123 = vmatprep.subr.bf16.mxu0 %v233_v0  ;;  %v238_v4 = vld [vmem:[%s343_s1 + $0x10] ss:$8 sps:$4 sm:$0xff]   ;;  %v239_v5 = vld [vmem:[%s343_s1 + $0x24] ss:$8 sps:$4 sm:$0xff]   ;;  %v241_v6 = vld [vmem:[%s343_s1 + $0x20] ss:$8 sps:$4 sm:$0xff]  }
   0x3   :  { %124 = vmatpush1.bf16.msra.mxu0 %v235_v2  ;;  %v242_v7 = vld [vmem:[%s343_s1 + $0x34] ss:$8 sps:$4 sm:$0xff]   ;;  %v244_v8 = vld [vmem:[%s343_s1 + $0x30] ss:$8 sps:$4 sm:$0xff]   ;;  %v245_v9 = vld [vmem:[%s343_s1 + $0x44] ss:$8 sps:$4 sm:$0xff]  }
   0x4   :  { %125 = vmatprep.subr.bf16.mxu0 %v236_v3  ;;  %v247_v10 = vld [vmem:[%s343_s1 + $0x40] ss:$8 sps:$4 sm:$0xff]   ;;  %v248_v11 = vld [vmem:[%s343_s1 + $0x54] ss:$8 sps:$4 sm:$0xff]   ;;  %v250_v12 = vld [vmem:[%s343_s1 + $0x50] ss:$8 sps:$4 sm:$0xff]  }
   0x5   :  { %v251_v13 = vld [vmem:[%s343_s1 + $0x64] ss:$8 sps:$4 sm:$0xff]   ;;  %v253_v14 = vld [vmem:[%s343_s1 + $0x60] ss:$8 sps:$4 sm:$0xff]   ;;  %v254_v15 = vld [vmem:[%s343_s1 + $0x74] ss:$8 sps:$4 sm:$0xff]  }
   0x6   :  { %v256_v16 = vld [vmem:[%s343_s1 + $0x70] ss:$8 sps:$4 sm:$0xff]   ;;  %v26_v17 = vld [vmem:[%s344_s0] sm:$0xf]  ;;  %v176_v19 = vshrl.u32 %v175_v18, 7 }
   0x7   :  { %126 = vmatpush1.bf16.msra.mxu0 %v238_v4  ;;  %v173_v21 = vld [vmem:[%s345_s2] sm:$0x3] }
   0x8   :  { %127 = vmatprep.subr.bf16.mxu0 %v239_v5  ;;  %v177_v20 = vsub.s32 0, %v176_v19  ;;  %v181_v22 = vsub.s32 1, %v176_v19  ;;  %v187_v23 = vld [vmem:[%s346_s3] sm:$0x3] }
   0xa   :  { %v178_v24 = vrot.slane %v173_v21, %v177_v20  ;;  %v182_v25 = vrot.slane %v173_v21, %v181_v22  ;;  %v192_v26 = vrot.slane %v187_v23, %v177_v20  ;;  %v196_v28 = vrot.slane %v187_v23, %v181_v22 }
   0xb   :  { %128 = vmatpush1.bf16.msra.mxu0 %v241_v6 }
   0xc   :  { %129 = vmatprep.subr.bf16.mxu0 %v242_v7 }
   0xf   :  { %130 = vmatpush1.bf16.msra.mxu0 %v244_v8 }
  0x10   :  { %131 = vmatprep.subr.bf16.mxu0 %v245_v9 }
  0x13   :  { %132 = vmatpush1.bf16.msra.mxu0 %v247_v10 }
  0x14   :  { %133 = vmatprep.subr.bf16.mxu0 %v248_v11 }
  0x17   :  { %134 = vmatpush1.bf16.msra.mxu0 %v250_v12 }
  0x18   :  { %135 = vmatprep.subr.bf16.mxu0 %v251_v13 }
  0x1b   :  { %136 = vmatpush1.bf16.msra.mxu0 %v253_v14 }
  0x1c   :  { %137 = vmatprep.subr.bf16.mxu0 %v254_v15 }
  0x1f   :  { %138 = vmatpush1.bf16.msra.mxu0 %v256_v16 }
  0x22   :  { %156 = vmatmul.mubr.bf16.vlgmr.msra.gmra.mrb[0].mxu0 %v26_v17 }
  0xf5   :  { %v157_v27 = vpop.f32.mrb[0].mxu0 }
  0xf6   :  { %v185_v29 = vmul.f32 %v178_v24, %v157_v27  ;;  %v159_v30 = vpop.f32.mrb[1].mxu0 }
  0xf7   :  { %v186_v31 = vmul.f32 %v182_v25, %v159_v30  ;;  %v161_v32 = vpop.f32.mrb[2].mxu0 }
  0xf8   :  { %v199_v33 = vadd.f32 %v192_v26, %v185_v29  ;;  %v162_v34 = vpop.f32.mrb[3].mxu0 }
  0xf9   :  { %v200_v35 = vadd.f32 %v196_v28, %v186_v31 }
  0xfb   :  { %v231_v36 = vpack.c.bf16 %v200_v35, %v199_v33 }
  0xfd   :  { %209 = vst [vmem:[%s347_s4] sm:$0xff] %v231_v36 }

// kernel: _lambda_.33
= control target key start
LH: loop header
LB: loop body
LE: loop exit
PB: predicated region body
PF: predicated region fallthrough
CT: control target
= control target key end

     0   :  { %s1349_s18 = smov 0   ;;  %s1351_s19 = smov 0   ;;  %s1470_s0 = inlined_call_operand.vmem [shape: bf16[8,2560], index: 0, kind: input, shape index: {}]   ;;  %s1471_s1 = inlined_call_operand.vmem [shape: bf16[2560,256], index: 1, kind: input, shape index: {}]   ;;  %s1472_s2 = inlined_call_operand.vmem [shape: f32[1,256], index: 2, kind: input, shape index: {}]   ;;  %s1473_s3 = inlined_call_operand.vmem [shape: f32[1,256], index: 3, kind: input, shape index: {}]   ;;  %s1474_s4 = inlined_call_operand.vmem [shape: bf16[8,256], index: 4, kind: input, shape index: {}]   ;;  %s1475_s5 = inlined_call_operand.vmem [shape: bf16[8,256], index: 5, kind: output, shape index: {}]  }
   0x1   :  { %s1353_s20 = smov 0  }
   0x2 LB: > { %s27_s21 = sadd.s32 1, %s1312_s19  ;;  %p1086_p0 = scmp.ge.s32.totalorder %s1316_s20, 1  ;;  %s1316_s20 = sphi %s1353_s20, %s15_s20   ;;  %s1312_s19 = sphi %s1351_s19, %s1477_s19   ;;  %s1308_s18 = sphi %s1349_s18, %s1476_s18  }
   0x3   : > { %p28_p1 = scmp.ge.s32.totalorder %s27_s21, 5  ;;  %p271_p2 = scmp.lt.s32.totalorder %s1316_s20, 6 }
   0x5   : > { %s1479_s21 = smov (%p28_p1, %s27_s21), 0  ;;  %p272_p3 = pnand %p1086_p0, %p271_p2 }
   0x6   : > { %s1087_s22 = sshll.u32 (!%p272_p3), %s1308_s18, 2  ;;  %s1089_s23 = sshll.u32 (!%p272_p3), %s1308_s18, 6 }
   0x7   : > { %275 = sbr.rel (%p272_p3) target bundleno = 326 (0x146), region = 40  ;;  %p337_p4 = scmp.lt.s32.totalorder (!%p272_p3), %s1087_s22, 19 }
   0x8   : > { %p346_p5 = scmp.lt.s32.totalorder (!%p272_p3), %s1089_s23, 319  ;;  %p1092_p6 = scmp.ne.s32.totalorder (!%p272_p3), %s1308_s18, 0 }
   0xe   : > { %s1481_s22 = smov (!%p337_p4, %s1087_s22), 19  ;;  %s1483_s23 = smov (!%p346_p5, %s1089_s23), 319 }
   0xf   : > { %s1088_s24 = sshll.u32 %s1481_s22, 2  ;;  %s1167_s28 = sshll.u32 %s1483_s23, 3  ;;  %v1318_v0 = vmov (!%p1092_p6), 0.0  }
  0x10   : > { %s1374_s27 = scalar_lea.vmem %s1470_s0, %s1088_s24  ;;  %s1379_s6 = scalar_lea.vmem %s1471_s1, %s1167_s28  ;;  %390 = vst [vmem:[#allocation2] sm:$0xff] (!%p1092_p6), %v1318_v0  ;;  %391 = vst [vmem:[#allocation2 + $0x8] sm:$0xff] (!%p1092_p6), %v1318_v0 }
  0x11   : > { %389 = sbr.rel (%p1092_p6) target bundleno = 24 (0x18), region = 44 }
  0x18 PF: > { %v1194_v1 = vld [vmem:[%s1379_s6 + $0x4] ss:$8 sps:$4 sm:$0xff]   ;;  %v1198_v3 = vld [vmem:[%s1379_s6] ss:$8 sps:$4 sm:$0xff]   ;;  %v1200_v5 = vld [vmem:[%s1379_s6 + $0x14] ss:$8 sps:$4 sm:$0xff]  }
  0x19   : > { %v1196_v2 = vld [vmem:[%s1379_s6 + $0x104] ss:$8 sps:$4 sm:$0xff]   ;;  %794 = vmatprep.subr.bf16.mxu0 %v1194_v1  ;;  %v1199_v4 = vld [vmem:[%s1379_s6 + $0x100] ss:$8 sps:$4 sm:$0xff]   ;;  %v1202_v6 = vld [vmem:[%s1379_s6 + $0x114] ss:$8 sps:$4 sm:$0xff]  }
  0x1a   : > { %835 = vmatprep.subr.bf16.mxu1 %v1196_v2  ;;  %795 = vmatpush1.bf16.msra.mxu0 %v1198_v3  ;;  %v1204_v7 = vld [vmem:[%s1379_s6 + $0x10] ss:$8 sps:$4 sm:$0xff]   ;;  %v1206_v9 = vld [vmem:[%s1379_s6 + $0x24] ss:$8 sps:$4 sm:$0xff]   ;;  %v1210_v11 = vld [vmem:[%s1379_s6 + $0x20] ss:$8 sps:$4 sm:$0xff]  }
  0x1b   : > { %836 = vmatpush1.bf16.msra.mxu1 %v1199_v4  ;;  %796 = vmatprep.subr.bf16.mxu0 %v1200_v5  ;;  %v1205_v8 = vld [vmem:[%s1379_s6 + $0x110] ss:$8 sps:$4 sm:$0xff]   ;;  %v1208_v10 = vld [vmem:[%s1379_s6 + $0x124] ss:$8 sps:$4 sm:$0xff]   ;;  %v1211_v12 = vld [vmem:[%s1379_s6 + $0x120] ss:$8 sps:$4 sm:$0xff]  }
  0x1c   : > { %837 = vmatprep.subr.bf16.mxu1 %v1202_v6  ;;  %v1212_v13 = vld [vmem:[%s1379_s6 + $0x34] ss:$8 sps:$4 sm:$0xff]   ;;  %v1216_v15 = vld [vmem:[%s1379_s6 + $0x30] ss:$8 sps:$4 sm:$0xff]   ;;  %v1218_v17 = vld [vmem:[%s1379_s6 + $0x44] ss:$8 sps:$4 sm:$0xff]  }
  0x1d   : > { %v1214_v14 = vld [vmem:[%s1379_s6 + $0x134] ss:$8 sps:$4 sm:$0xff]   ;;  %v1217_v16 = vld [vmem:[%s1379_s6 + $0x130] ss:$8 sps:$4 sm:$0xff]   ;;  %v1220_v18 = vld [vmem:[%s1379_s6 + $0x144] ss:$8 sps:$4 sm:$0xff]  }
  0x1e   : > { %797 = vmatpush1.bf16.msra.mxu0 %v1204_v7  ;;  %v1222_v19 = vld [vmem:[%s1379_s6 + $0x40] ss:$8 sps:$4 sm:$0xff]   ;;  %v1224_v21 = vld [vmem:[%s1379_s6 + $0x54] ss:$8 sps:$4 sm:$0xff]   ;;  %v1228_v23 = vld [vmem:[%s1379_s6 + $0x50] ss:$8 sps:$4 sm:$0xff]  }
  0x1f   : > { %838 = vmatpush1.bf16.msra.mxu1 %v1205_v8  ;;  %798 = vmatprep.subr.bf16.mxu0 %v1206_v9  ;;  %v1223_v20 = vld [vmem:[%s1379_s6 + $0x140] ss:$8 sps:$4 sm:$0xff]   ;;  %v1226_v22 = vld [vmem:[%s1379_s6 + $0x154] ss:$8 sps:$4 sm:$0xff]   ;;  %v1229_v24 = vld [vmem:[%s1379_s6 + $0x150] ss:$8 sps:$4 sm:$0xff]  }
  0x20   : > { %839 = vmatprep.subr.bf16.mxu1 %v1208_v10  ;;  %v1230_v25 = vld [vmem:[%s1379_s6 + $0x64] ss:$8 sps:$4 sm:$0xff]   ;;  %v1234_v27 = vld [vmem:[%s1379_s6 + $0x60] ss:$8 sps:$4 sm:$0xff]   ;;  %v1236_v29 = vld [vmem:[%s1379_s6 + $0x74] ss:$8 sps:$4 sm:$0xff]  }
  0x21   : > { %v1232_v26 = vld [vmem:[%s1379_s6 + $0x164] ss:$8 sps:$4 sm:$0xff]   ;;  %v1235_v28 = vld [vmem:[%s1379_s6 + $0x160] ss:$8 sps:$4 sm:$0xff]   ;;  %v1238_v30 = vld [vmem:[%s1379_s6 + $0x174] ss:$8 sps:$4 sm:$0xff]  }
  0x22   : > { %799 = vmatpush1.bf16.msra.mxu0 %v1210_v11  ;;  %v1240_v31 = vld [vmem:[%s1379_s6 + $0x70] ss:$8 sps:$4 sm:$0xff]   ;;  %v1242_v33 = vld [vmem:[%s1379_s6 + $0x84] ss:$8 sps:$4 sm:$0xff]   ;;  %v1246_v35 = vld [vmem:[%s1379_s6 + $0x80] ss:$8 sps:$4 sm:$0xff]  }
  0x23   : > { %840 = vmatpush1.bf16.msra.mxu1 %v1211_v12  ;;  %800 = vmatprep.subr.bf16.mxu0 %v1212_v13  ;;  %v1241_v32 = vld [vmem:[%s1379_s6 + $0x170] ss:$8 sps:$4 sm:$0xff]   ;;  %v1244_v34 = vld [vmem:[%s1379_s6 + $0x184] ss:$8 sps:$4 sm:$0xff]   ;;  %v1247_v36 = vld [vmem:[%s1379_s6 + $0x180] ss:$8 sps:$4 sm:$0xff]  }
  0x24   : > { %841 = vmatprep.subr.bf16.mxu1 %v1214_v14  ;;  %v1248_v37 = vld [vmem:[%s1379_s6 + $0x94] ss:$8 sps:$4 sm:$0xff]   ;;  %v1252_v39 = vld [vmem:[%s1379_s6 + $0x90] ss:$8 sps:$4 sm:$0xff]   ;;  %v1254_v41 = vld [vmem:[%s1379_s6 + $0xa4] ss:$8 sps:$4 sm:$0xff]  }
  0x25   : > { %v1250_v38 = vld [vmem:[%s1379_s6 + $0x194] ss:$8 sps:$4 sm:$0xff]   ;;  %v1253_v40 = vld [vmem:[%s1379_s6 + $0x190] ss:$8 sps:$4 sm:$0xff]   ;;  %v1256_v42 = vld [vmem:[%s1379_s6 + $0x1a4] ss:$8 sps:$4 sm:$0xff]  }
  0x26   : > { %801 = vmatpush1.bf16.msra.mxu0 %v1216_v15  ;;  %v1258_v43 = vld [vmem:[%s1379_s6 + $0xa0] ss:$8 sps:$4 sm:$0xff]   ;;  %v1260_v45 = vld [vmem:[%s1379_s6 + $0xb4] ss:$8 sps:$4 sm:$0xff]   ;;  %v1264_v50 = vld [vmem:[%s1379_s6 + $0xb0] ss:$8 sps:$4 sm:$0xff]  }
  0x27   : > { %842 = vmatpush1.bf16.msra.mxu1 %v1217_v16  ;;  %802 = vmatprep.subr.bf16.mxu0 %v1218_v17  ;;  %v1259_v44 = vld [vmem:[%s1379_s6 + $0x1a0] ss:$8 sps:$4 sm:$0xff]   ;;  %v1262_v46 = vld [vmem:[%s1379_s6 + $0x1b4] ss:$8 sps:$4 sm:$0xff]   ;;  %v1265_v51 = vld [vmem:[%s1379_s6 + $0x1b0] ss:$8 sps:$4 sm:$0xff]  }
  0x28   : > { %843 = vmatprep.subr.bf16.mxu1 %v1220_v18  ;;  %v394_v47 = vld [vmem:[%s1374_s27] sm:$0xff]  ;;  %v395_v49 = vld [vmem:[%s1374_s27 + $0x8] sm:$0xff]  ;;  %v1272_v57 = vld [vmem:[%s1379_s6 + $0xd4] ss:$8 sps:$4 sm:$0xff]   ;;  %p1161_p7 = scmp.ne.s32.totalorder %s1308_s18, 4 }
  0x29   : > { %v1094_v48 = vcombine.high %v394_v47, %v394_v47  ;;  %v1096_v52 = vcombine.high %v395_v49, %v395_v49  ;;  %v1266_v53 = vld [vmem:[%s1379_s6 + $0xc4] ss:$8 sps:$4 sm:$0xff]   ;;  %v1270_v55 = vld [vmem:[%s1379_s6 + $0xc0] ss:$8 sps:$4 sm:$0xff]   ;;  %v1274_v58 = vld [vmem:[%s1379_s6 + $0x1d4] ss:$8 sps:$4 sm:$0xff]   ;;  %v1093_v5 = vcombine.low %v394_v47, %v394_v47  ;;  %v1095_v6 = vcombine.low %v395_v49, %v395_v49 }
  0x2a   : > { %803 = vmatpush1.bf16.msra.mxu0 %v1222_v19  ;;  %v1268_v54 = vld [vmem:[%s1379_s6 + $0x1c4] ss:$8 sps:$4 sm:$0xff]   ;;  %v1271_v56 = vld [vmem:[%s1379_s6 + $0x1c0] ss:$8 sps:$4 sm:$0xff]   ;;  %v1276_v59 = vld [vmem:[%s1379_s6 + $0xd0] ss:$8 sps:$4 sm:$0xff]  }
  0x2b   : > { %844 = vmatpush1.bf16.msra.mxu1 %v1223_v20  ;;  %804 = vmatprep.subr.bf16.mxu0 %v1224_v21  ;;  %v1277_v60 = vld [vmem:[%s1379_s6 + $0x1d0] ss:$8 sps:$4 sm:$0xff]   ;;  %v1278_v61 = vld [vmem:[%s1379_s6 + $0xe4] ss:$8 sps:$4 sm:$0xff]   ;;  %v1282_v63 = vld [vmem:[%s1379_s6 + $0xe0] ss:$8 sps:$4 sm:$0xff]   ;;  %v888_v21 = vlaneseq (!%p1161_p7) }
  0x2c   : > { %845 = vmatprep.subr.bf16.mxu1 %v1226_v22  ;;  %826 = vmatprep.mubr.bf16.mxu0 %v1094_v48  ;;  %v1280_v62 = vld [vmem:[%s1379_s6 + $0x1e4] ss:$8 sps:$4 sm:$0xff]   ;;  %v1283_v0 = vld [vmem:[%s1379_s6 + $0x1e0] ss:$8 sps:$4 sm:$0xff]   ;;  %v1284_v1 = vld [vmem:[%s1379_s6 + $0xf4] ss:$8 sps:$4 sm:$0xff]  }
  0x2d   : > { %867 = vmatprep.mubr.bf16.mxu1 %v1096_v52  ;;  %v1286_v2 = vld [vmem:[%s1379_s6 + $0x1f4] ss:$8 sps:$4 sm:$0xff]   ;;  %v1288_v3 = vld [vmem:[%s1379_s6 + $0xf0] ss:$8 sps:$4 sm:$0xff]   ;;  %v392_v8 = vld [vmem:[#allocation2] sm:$0xff]  ;;  %v889_v22 = vshrl.u32 (!%p1161_p7), %v888_v21, 7 }
  0x2e   : > { %805 = vmatpush1.bf16.msra.mxu0 %v1228_v23  ;;  %v1289_v4 = vld [vmem:[%s1379_s6 + $0x1f0] ss:$8 sps:$4 sm:$0xff]   ;;  %v393_v12 = vld [vmem:[#allocation2 + $0x8] sm:$0xff]  ;;  %v886_v23 = vld [vmem:[%s1472_s2] sm:$0x3] (!%p1161_p7) }
  0x2f   : > { %846 = vmatpush1.bf16.msra.mxu1 %v1229_v24  ;;  %806 = vmatprep.subr.bf16.mxu0 %v1230_v25  ;;  %v900_v24 = vld [vmem:[%s1473_s3] sm:$0x3] (!%p1161_p7)  ;;  %v890_v25 = vsub.s32 (!%p1161_p7), 0, %v889_v22 }
  0x30   : > { %847 = vmatprep.subr.bf16.mxu1 %v1232_v26  ;;  %v894_v26 = vsub.s32 (!%p1161_p7), 1, %v889_v22 }
  0x32   : > { %807 = vmatpush1.bf16.msra.mxu0 %v1234_v27 }
  0x33   : > { %848 = vmatpush1.bf16.msra.mxu1 %v1235_v28  ;;  %808 = vmatprep.subr.bf16.mxu0 %v1236_v29  ;;  %v914_v29 = vld [vmem:[%s1474_s4] sm:$0xff] (!%p1161_p7) }
  0x34   : > { %849 = vmatprep.subr.bf16.mxu1 %v1238_v30  ;;  %v891_v30 = vrot.slane (!%p1161_p7), %v886_v23, %v890_v25 }
  0x36   : > { %809 = vmatpush1.bf16.msra.mxu0 %v1240_v31  ;;  %v895_v31 = vrot.slane (!%p1161_p7), %v886_v23, %v894_v26 }
  0x37   : > { %850 = vmatpush1.bf16.msra.mxu1 %v1241_v32  ;;  %810 = vmatprep.subr.bf16.mxu0 %v1242_v33  ;;  %v905_v32 = vrot.slane (!%p1161_p7), %v900_v24, %v890_v25  ;;  %v909_v33 = vrot.slane (!%p1161_p7), %v900_v24, %v894_v26 }
  0x38   : > { %851 = vmatprep.subr.bf16.mxu1 %v1244_v34 }
  0x3a   : > { %811 = vmatpush1.bf16.msra.mxu0 %v1246_v35 }
  0x3b   : > { %852 = vmatpush1.bf16.msra.mxu1 %v1247_v36  ;;  %812 = vmatprep.subr.bf16.mxu0 %v1248_v37  ;;  %v915_v36 = vunpack.c.l.bf16 (!%p1161_p7), %v914_v29  ;;  %v916_v37 = vunpack.c.h.bf16 (!%p1161_p7), %v914_v29 }
  0x3c   : > { %853 = vmatprep.subr.bf16.mxu1 %v1250_v38 }
  0x3e   : > { %813 = vmatpush1.bf16.msra.mxu0 %v1252_v39 }
  0x3f   : > { %854 = vmatpush1.bf16.msra.mxu1 %v1253_v40  ;;  %814 = vmatprep.subr.bf16.mxu0 %v1254_v41 }
  0x40   : > { %855 = vmatprep.subr.bf16.mxu1 %v1256_v42 }
  0x42   : > { %815 = vmatpush1.bf16.msra.mxu0 %v1258_v43 }
  0x43   : > { %856 = vmatpush1.bf16.msra.mxu1 %v1259_v44  ;;  %816 = vmatprep.subr.bf16.mxu0 %v1260_v45 }
  0x44   : > { %857 = vmatprep.subr.bf16.mxu1 %v1262_v46 }
  0x46   : > { %817 = vmatpush1.bf16.msra.mxu0 %v1264_v50 }
  0x47   : > { %858 = vmatpush1.bf16.msra.mxu1 %v1265_v51  ;;  %818 = vmatprep.subr.bf16.mxu0 %v1266_v53 }
  0x48   : > { %859 = vmatprep.subr.bf16.mxu1 %v1268_v54 }
  0x4a   : > { %819 = vmatpush1.bf16.msra.mxu0 %v1270_v55 }
  0x4b   : > { %860 = vmatpush1.bf16.msra.mxu1 %v1271_v56  ;;  %820 = vmatprep.subr.bf16.mxu0 %v1272_v57 }
  0x4c   : > { %861 = vmatprep.subr.bf16.mxu1 %v1274_v58 }
  0x4e   : > { %821 = vmatpush1.bf16.msra.mxu0 %v1276_v59 }
  0x4f   : > { %862 = vmatpush1.bf16.msra.mxu1 %v1277_v60  ;;  %822 = vmatprep.subr.bf16.mxu0 %v1278_v61 }
  0x50   : > { %863 = vmatprep.subr.bf16.mxu1 %v1280_v62 }
  0x52   : > { %823 = vmatpush1.bf16.msra.mxu0 %v1282_v63 }
  0x53   : > { %864 = vmatpush1.bf16.msra.mxu1 %v1283_v0  ;;  %824 = vmatprep.subr.bf16.mxu0 %v1284_v1 }
  0x54   : > { %865 = vmatprep.subr.bf16.mxu1 %v1286_v2 }
  0x56   : > { %825 = vmatpush1.bf16.msra.mxu0 %v1288_v3 }
  0x57   : > { %866 = vmatpush1.bf16.msra.mxu1 %v1289_v4 }
  0x59   : > { %827 = vmatmul.mubr.bf16.vlgmr.msra.gmra.mrb[0].mxu0 %v1093_v5 }
  0x5a   : > { %868 = vmatmul.mubr.bf16.vlgmr.msra.gmra.mrb[0].mxu1 %v1095_v6 }
 0x12c   : > { %v828_v7 = vpop.f32.mrb[0].mxu0 }
 0x12d   : > { %v869_v9 = vpop.f32.mrb[0].mxu1  ;;  %v830_v11 = vpop.f32.mrb[1].mxu0  ;;  %883 = sbr.rel (%p1161_p7) target bundleno = 326 (0x146), region = 48 }
 0x12e   : > { %v870_v10 = vadd.f32 %v869_v9, %v828_v7  ;;  %v871_v13 = vpop.f32.mrb[1].mxu1  ;;  %v832_v15 = vpop.f32.mrb[2].mxu0 }
 0x12f   : > { %v872_v14 = vadd.f32 %v871_v13, %v830_v11  ;;  %v873_v16 = vpop.f32.mrb[2].mxu1  ;;  %v833_v18 = vpop.f32.mrb[3].mxu0 }
 0x130   : > { %v876_v17 = vadd.f32 %v870_v10, %v392_v8  ;;  %v874_v19 = vpop.f32.mrb[3].mxu1 }
 0x131   : > { %v877_v20 = vadd.f32 %v872_v14, %v393_v12 }
 0x132   : > { %878 = vst [vmem:[#allocation2] sm:$0xff] %v876_v17 }
 0x133   : > { %879 = vst [vmem:[#allocation2 + $0x8] sm:$0xff] %v877_v20 }
 0x139   : > { %v884_v27 = vld [vmem:[#allocation2] sm:$0xff] }
 0x13a   : > { %v885_v28 = vld [vmem:[#allocation2 + $0x8] sm:$0xff]  ;;  %v898_v34 = vmul.f32 %v891_v30, %v884_v27 }
 0x13b   : > { %v899_v35 = vmul.f32 %v895_v31, %v885_v28 }
 0x13c   : > { %v912_v38 = vadd.f32 %v905_v32, %v898_v34 }
 0x13d   : > { %v913_v39 = vadd.f32 %v909_v33, %v899_v35 }
 0x13e   : > { %v917_v40 = vadd.f32 %v915_v36, %v912_v38 }
 0x13f   : > { %v918_v41 = vadd.f32 %v916_v37, %v913_v39 }
 0x140   : > { %v919_v42 = vmax.f32 %v917_v40, 0.0 }
 0x141   : > { %v920_v43 = vmax.f32 %v918_v41, 0.0 }
 0x143   : > { %v1168_v44 = vpack.c.bf16 %v920_v43, %v919_v42 }
 0x145   : > { %929 = vst [vmem:[%s1475_s5] sm:$0xff] %v1168_v44 }
 0x146 PF: > { %s15_s20 = sadd.s32 1, %s1316_s20   ;;  %s1476_s18 = smov %s1312_s19 }
 0x147   : > { %p12_p8 = scmp.ge.s32.totalorder %s15_s20, 7   ;;  %s1477_s19 = smov %s1479_s21 }
 0x149   :  { %14 = sbr.rel (!%p12_p8) target bundleno = 2 (0x2), region = 90 }

// kernel: _lambda_.34
= control target key start
LH: loop header
LB: loop body
LE: loop exit
PB: predicated region body
PF: predicated region fallthrough
CT: control target
= control target key end

     0   :  { %s1254_s15 = smov 0   ;;  %s1256_s16 = smov 0   ;;  %s1372_s0 = inlined_call_operand.vmem [shape: bf16[8,2560], index: 0, kind: input, shape index: {}]   ;;  %s1373_s1 = inlined_call_operand.vmem [shape: bf16[2560,256], index: 1, kind: input, shape index: {}]   ;;  %s1374_s2 = inlined_call_operand.vmem [shape: f32[1,256], index: 2, kind: input, shape index: {}]   ;;  %s1375_s3 = inlined_call_operand.vmem [shape: f32[1,256], index: 3, kind: input, shape index: {}]   ;;  %s1376_s4 = inlined_call_operand.vmem [shape: bf16[8,256], index: 4, kind: output, shape index: {}]  }
   0x1   :  { %s1258_s17 = smov 0  }
   0x2 LB: > { %s26_s18 = sadd.s32 1, %s1222_s16  ;;  %p996_p0 = scmp.ge.s32.totalorder %s1226_s17, 1  ;;  %s1226_s17 = sphi %s1258_s17, %s14_s17   ;;  %s1222_s16 = sphi %s1256_s16, %s1378_s16   ;;  %s1218_s15 = sphi %s1254_s15, %s1377_s15  }
   0x3   : > { %p27_p1 = scmp.ge.s32.totalorder %s26_s18, 5  ;;  %p229_p2 = scmp.lt.s32.totalorder %s1226_s17, 6 }
   0x5   : > { %s1380_s18 = smov (%p27_p1, %s26_s18), 0  ;;  %p230_p3 = pnand %p996_p0, %p229_p2 }
   0x6   : > { %s997_s19 = sshll.u32 (!%p230_p3), %s1218_s15, 2  ;;  %s999_s20 = sshll.u32 (!%p230_p3), %s1218_s15, 6 }
   0x7   : > { %233 = sbr.rel (%p230_p3) target bundleno = 324 (0x144), region = 36  ;;  %p284_p4 = scmp.lt.s32.totalorder (!%p230_p3), %s997_s19, 19 }
   0x8   : > { %p293_p5 = scmp.lt.s32.totalorder (!%p230_p3), %s999_s20, 319  ;;  %p1002_p6 = scmp.ne.s32.totalorder (!%p230_p3), %s1218_s15, 0 }
   0xe   : > { %s1382_s19 = smov (!%p284_p4, %s997_s19), 19  ;;  %s1384_s20 = smov (!%p293_p5, %s999_s20), 319 }
   0xf   : > { %s998_s21 = sshll.u32 %s1382_s19, 2  ;;  %s1077_s25 = sshll.u32 %s1384_s20, 3  ;;  %v1228_v0 = vmov (!%p1002_p6), 0.0  }
  0x10   : > { %s1279_s24 = scalar_lea.vmem %s1372_s0, %s998_s21  ;;  %s1284_s28 = scalar_lea.vmem %s1373_s1, %s1077_s25  ;;  %327 = vst [vmem:[#allocation2] sm:$0xff] (!%p1002_p6), %v1228_v0  ;;  %328 = vst [vmem:[#allocation2 + $0x8] sm:$0xff] (!%p1002_p6), %v1228_v0 }
  0x11   : > { %326 = sbr.rel (%p1002_p6) target bundleno = 24 (0x18), region = 40 }
  0x18 PF: > { %v1104_v1 = vld [vmem:[%s1284_s28 + $0x4] ss:$8 sps:$4 sm:$0xff]   ;;  %v1108_v3 = vld [vmem:[%s1284_s28] ss:$8 sps:$4 sm:$0xff]   ;;  %v1110_v5 = vld [vmem:[%s1284_s28 + $0x14] ss:$8 sps:$4 sm:$0xff]  }
  0x19   : > { %v1106_v2 = vld [vmem:[%s1284_s28 + $0x104] ss:$8 sps:$4 sm:$0xff]   ;;  %731 = vmatprep.subr.bf16.mxu0 %v1104_v1  ;;  %v1109_v4 = vld [vmem:[%s1284_s28 + $0x100] ss:$8 sps:$4 sm:$0xff]   ;;  %v1112_v6 = vld [vmem:[%s1284_s28 + $0x114] ss:$8 sps:$4 sm:$0xff]  }
  0x1a   : > { %772 = vmatprep.subr.bf16.mxu1 %v1106_v2  ;;  %732 = vmatpush1.bf16.msra.mxu0 %v1108_v3  ;;  %v1114_v7 = vld [vmem:[%s1284_s28 + $0x10] ss:$8 sps:$4 sm:$0xff]   ;;  %v1116_v9 = vld [vmem:[%s1284_s28 + $0x24] ss:$8 sps:$4 sm:$0xff]   ;;  %v1120_v11 = vld [vmem:[%s1284_s28 + $0x20] ss:$8 sps:$4 sm:$0xff]  }
  0x1b   : > { %773 = vmatpush1.bf16.msra.mxu1 %v1109_v4  ;;  %733 = vmatprep.subr.bf16.mxu0 %v1110_v5  ;;  %v1115_v8 = vld [vmem:[%s1284_s28 + $0x110] ss:$8 sps:$4 sm:$0xff]   ;;  %v1118_v10 = vld [vmem:[%s1284_s28 + $0x124] ss:$8 sps:$4 sm:$0xff]   ;;  %v1121_v12 = vld [vmem:[%s1284_s28 + $0x120] ss:$8 sps:$4 sm:$0xff]  }
  0x1c   : > { %774 = vmatprep.subr.bf16.mxu1 %v1112_v6  ;;  %v1122_v13 = vld [vmem:[%s1284_s28 + $0x34] ss:$8 sps:$4 sm:$0xff]   ;;  %v1126_v15 = vld [vmem:[%s1284_s28 + $0x30] ss:$8 sps:$4 sm:$0xff]   ;;  %v1128_v17 = vld [vmem:[%s1284_s28 + $0x44] ss:$8 sps:$4 sm:$0xff]  }
  0x1d   : > { %v1124_v14 = vld [vmem:[%s1284_s28 + $0x134] ss:$8 sps:$4 sm:$0xff]   ;;  %v1127_v16 = vld [vmem:[%s1284_s28 + $0x130] ss:$8 sps:$4 sm:$0xff]   ;;  %v1130_v18 = vld [vmem:[%s1284_s28 + $0x144] ss:$8 sps:$4 sm:$0xff]  }
  0x1e   : > { %734 = vmatpush1.bf16.msra.mxu0 %v1114_v7  ;;  %v1132_v19 = vld [vmem:[%s1284_s28 + $0x40] ss:$8 sps:$4 sm:$0xff]   ;;  %v1134_v21 = vld [vmem:[%s1284_s28 + $0x54] ss:$8 sps:$4 sm:$0xff]   ;;  %v1138_v23 = vld [vmem:[%s1284_s28 + $0x50] ss:$8 sps:$4 sm:$0xff]  }
  0x1f   : > { %775 = vmatpush1.bf16.msra.mxu1 %v1115_v8  ;;  %735 = vmatprep.subr.bf16.mxu0 %v1116_v9  ;;  %v1133_v20 = vld [vmem:[%s1284_s28 + $0x140] ss:$8 sps:$4 sm:$0xff]   ;;  %v1136_v22 = vld [vmem:[%s1284_s28 + $0x154] ss:$8 sps:$4 sm:$0xff]   ;;  %v1139_v24 = vld [vmem:[%s1284_s28 + $0x150] ss:$8 sps:$4 sm:$0xff]  }
  0x20   : > { %776 = vmatprep.subr.bf16.mxu1 %v1118_v10  ;;  %v1140_v25 = vld [vmem:[%s1284_s28 + $0x64] ss:$8 sps:$4 sm:$0xff]   ;;  %v1144_v27 = vld [vmem:[%s1284_s28 + $0x60] ss:$8 sps:$4 sm:$0xff]   ;;  %v1146_v29 = vld [vmem:[%s1284_s28 + $0x74] ss:$8 sps:$4 sm:$0xff]  }
  0x21   : > { %v1142_v26 = vld [vmem:[%s1284_s28 + $0x164] ss:$8 sps:$4 sm:$0xff]   ;;  %v1145_v28 = vld [vmem:[%s1284_s28 + $0x160] ss:$8 sps:$4 sm:$0xff]   ;;  %v1148_v30 = vld [vmem:[%s1284_s28 + $0x174] ss:$8 sps:$4 sm:$0xff]  }
  0x22   : > { %736 = vmatpush1.bf16.msra.mxu0 %v1120_v11  ;;  %v1150_v31 = vld [vmem:[%s1284_s28 + $0x70] ss:$8 sps:$4 sm:$0xff]   ;;  %v1152_v33 = vld [vmem:[%s1284_s28 + $0x84] ss:$8 sps:$4 sm:$0xff]   ;;  %v1156_v35 = vld [vmem:[%s1284_s28 + $0x80] ss:$8 sps:$4 sm:$0xff]  }
  0x23   : > { %777 = vmatpush1.bf16.msra.mxu1 %v1121_v12  ;;  %737 = vmatprep.subr.bf16.mxu0 %v1122_v13  ;;  %v1151_v32 = vld [vmem:[%s1284_s28 + $0x170] ss:$8 sps:$4 sm:$0xff]   ;;  %v1154_v34 = vld [vmem:[%s1284_s28 + $0x184] ss:$8 sps:$4 sm:$0xff]   ;;  %v1157_v36 = vld [vmem:[%s1284_s28 + $0x180] ss:$8 sps:$4 sm:$0xff]  }
  0x24   : > { %778 = vmatprep.subr.bf16.mxu1 %v1124_v14  ;;  %v1158_v37 = vld [vmem:[%s1284_s28 + $0x94] ss:$8 sps:$4 sm:$0xff]   ;;  %v1162_v39 = vld [vmem:[%s1284_s28 + $0x90] ss:$8 sps:$4 sm:$0xff]   ;;  %v1164_v41 = vld [vmem:[%s1284_s28 + $0xa4] ss:$8 sps:$4 sm:$0xff]  }
  0x25   : > { %v1160_v38 = vld [vmem:[%s1284_s28 + $0x194] ss:$8 sps:$4 sm:$0xff]   ;;  %v1163_v40 = vld [vmem:[%s1284_s28 + $0x190] ss:$8 sps:$4 sm:$0xff]   ;;  %v1166_v42 = vld [vmem:[%s1284_s28 + $0x1a4] ss:$8 sps:$4 sm:$0xff]  }
  0x26   : > { %738 = vmatpush1.bf16.msra.mxu0 %v1126_v15  ;;  %v1168_v43 = vld [vmem:[%s1284_s28 + $0xa0] ss:$8 sps:$4 sm:$0xff]   ;;  %v1170_v45 = vld [vmem:[%s1284_s28 + $0xb4] ss:$8 sps:$4 sm:$0xff]   ;;  %v1174_v50 = vld [vmem:[%s1284_s28 + $0xb0] ss:$8 sps:$4 sm:$0xff]  }
  0x27   : > { %779 = vmatpush1.bf16.msra.mxu1 %v1127_v16  ;;  %739 = vmatprep.subr.bf16.mxu0 %v1128_v17  ;;  %v1169_v44 = vld [vmem:[%s1284_s28 + $0x1a0] ss:$8 sps:$4 sm:$0xff]   ;;  %v1172_v46 = vld [vmem:[%s1284_s28 + $0x1b4] ss:$8 sps:$4 sm:$0xff]   ;;  %v1175_v51 = vld [vmem:[%s1284_s28 + $0x1b0] ss:$8 sps:$4 sm:$0xff]  }
  0x28   : > { %780 = vmatprep.subr.bf16.mxu1 %v1130_v18  ;;  %v331_v47 = vld [vmem:[%s1279_s24] sm:$0xff]  ;;  %v332_v49 = vld [vmem:[%s1279_s24 + $0x8] sm:$0xff]  ;;  %v1182_v57 = vld [vmem:[%s1284_s28 + $0xd4] ss:$8 sps:$4 sm:$0xff]   ;;  %p1071_p7 = scmp.ne.s32.totalorder %s1218_s15, 4 }
  0x29   : > { %v1004_v48 = vcombine.high %v331_v47, %v331_v47  ;;  %v1006_v52 = vcombine.high %v332_v49, %v332_v49  ;;  %v1176_v53 = vld [vmem:[%s1284_s28 + $0xc4] ss:$8 sps:$4 sm:$0xff]   ;;  %v1180_v55 = vld [vmem:[%s1284_s28 + $0xc0] ss:$8 sps:$4 sm:$0xff]   ;;  %v1184_v58 = vld [vmem:[%s1284_s28 + $0x1d4] ss:$8 sps:$4 sm:$0xff]   ;;  %v1003_v5 = vcombine.low %v331_v47, %v331_v47  ;;  %v1005_v6 = vcombine.low %v332_v49, %v332_v49 }
  0x2a   : > { %740 = vmatpush1.bf16.msra.mxu0 %v1132_v19  ;;  %v1178_v54 = vld [vmem:[%s1284_s28 + $0x1c4] ss:$8 sps:$4 sm:$0xff]   ;;  %v1181_v56 = vld [vmem:[%s1284_s28 + $0x1c0] ss:$8 sps:$4 sm:$0xff]   ;;  %v1186_v59 = vld [vmem:[%s1284_s28 + $0xd0] ss:$8 sps:$4 sm:$0xff]  }
  0x2b   : > { %781 = vmatpush1.bf16.msra.mxu1 %v1133_v20  ;;  %741 = vmatprep.subr.bf16.mxu0 %v1134_v21  ;;  %v1187_v60 = vld [vmem:[%s1284_s28 + $0x1d0] ss:$8 sps:$4 sm:$0xff]   ;;  %v1188_v61 = vld [vmem:[%s1284_s28 + $0xe4] ss:$8 sps:$4 sm:$0xff]   ;;  %v1192_v63 = vld [vmem:[%s1284_s28 + $0xe0] ss:$8 sps:$4 sm:$0xff]   ;;  %v825_v21 = vlaneseq (!%p1071_p7) }
  0x2c   : > { %782 = vmatprep.subr.bf16.mxu1 %v1136_v22  ;;  %763 = vmatprep.mubr.bf16.mxu0 %v1004_v48  ;;  %v1190_v62 = vld [vmem:[%s1284_s28 + $0x1e4] ss:$8 sps:$4 sm:$0xff]   ;;  %v1193_v0 = vld [vmem:[%s1284_s28 + $0x1e0] ss:$8 sps:$4 sm:$0xff]   ;;  %v1194_v1 = vld [vmem:[%s1284_s28 + $0xf4] ss:$8 sps:$4 sm:$0xff]  }
  0x2d   : > { %804 = vmatprep.mubr.bf16.mxu1 %v1006_v52  ;;  %v1196_v2 = vld [vmem:[%s1284_s28 + $0x1f4] ss:$8 sps:$4 sm:$0xff]   ;;  %v1198_v3 = vld [vmem:[%s1284_s28 + $0xf0] ss:$8 sps:$4 sm:$0xff]   ;;  %v329_v8 = vld [vmem:[#allocation2] sm:$0xff]  ;;  %v826_v22 = vshrl.u32 (!%p1071_p7), %v825_v21, 7 }
  0x2e   : > { %742 = vmatpush1.bf16.msra.mxu0 %v1138_v23  ;;  %v1199_v4 = vld [vmem:[%s1284_s28 + $0x1f0] ss:$8 sps:$4 sm:$0xff]   ;;  %v330_v12 = vld [vmem:[#allocation2 + $0x8] sm:$0xff]  ;;  %v823_v23 = vld [vmem:[%s1374_s2] sm:$0x3] (!%p1071_p7) }
  0x2f   : > { %783 = vmatpush1.bf16.msra.mxu1 %v1139_v24  ;;  %743 = vmatprep.subr.bf16.mxu0 %v1140_v25  ;;  %v837_v24 = vld [vmem:[%s1375_s3] sm:$0x3] (!%p1071_p7)  ;;  %v827_v25 = vsub.s32 (!%p1071_p7), 0, %v826_v22 }
  0x30   : > { %784 = vmatprep.subr.bf16.mxu1 %v1142_v26  ;;  %v831_v26 = vsub.s32 (!%p1071_p7), 1, %v826_v22 }
  0x32   : > { %744 = vmatpush1.bf16.msra.mxu0 %v1144_v27 }
  0x33   : > { %785 = vmatpush1.bf16.msra.mxu1 %v1145_v28  ;;  %745 = vmatprep.subr.bf16.mxu0 %v1146_v29  ;;  %v828_v29 = vrot.slane (!%p1071_p7), %v823_v23, %v827_v25 }
  0x34   : > { %786 = vmatprep.subr.bf16.mxu1 %v1148_v30  ;;  %v832_v30 = vrot.slane (!%p1071_p7), %v823_v23, %v831_v26 }
  0x36   : > { %746 = vmatpush1.bf16.msra.mxu0 %v1150_v31  ;;  %v842_v31 = vrot.slane (!%p1071_p7), %v837_v24, %v827_v25 }
  0x37   : > { %787 = vmatpush1.bf16.msra.mxu1 %v1151_v32  ;;  %747 = vmatprep.subr.bf16.mxu0 %v1152_v33  ;;  %v846_v32 = vrot.slane (!%p1071_p7), %v837_v24, %v831_v26 }
  0x38   : > { %788 = vmatprep.subr.bf16.mxu1 %v1154_v34 }
  0x3a   : > { %748 = vmatpush1.bf16.msra.mxu0 %v1156_v35 }
  0x3b   : > { %789 = vmatpush1.bf16.msra.mxu1 %v1157_v36  ;;  %749 = vmatprep.subr.bf16.mxu0 %v1158_v37 }
  0x3c   : > { %790 = vmatprep.subr.bf16.mxu1 %v1160_v38 }
  0x3e   : > { %750 = vmatpush1.bf16.msra.mxu0 %v1162_v39 }
  0x3f   : > { %791 = vmatpush1.bf16.msra.mxu1 %v1163_v40  ;;  %751 = vmatprep.subr.bf16.mxu0 %v1164_v41 }
  0x40   : > { %792 = vmatprep.subr.bf16.mxu1 %v1166_v42 }
  0x42   : > { %752 = vmatpush1.bf16.msra.mxu0 %v1168_v43 }
  0x43   : > { %793 = vmatpush1.bf16.msra.mxu1 %v1169_v44  ;;  %753 = vmatprep.subr.bf16.mxu0 %v1170_v45 }
  0x44   : > { %794 = vmatprep.subr.bf16.mxu1 %v1172_v46 }
  0x46   : > { %754 = vmatpush1.bf16.msra.mxu0 %v1174_v50 }
  0x47   : > { %795 = vmatpush1.bf16.msra.mxu1 %v1175_v51  ;;  %755 = vmatprep.subr.bf16.mxu0 %v1176_v53 }
  0x48   : > { %796 = vmatprep.subr.bf16.mxu1 %v1178_v54 }
  0x4a   : > { %756 = vmatpush1.bf16.msra.mxu0 %v1180_v55 }
  0x4b   : > { %797 = vmatpush1.bf16.msra.mxu1 %v1181_v56  ;;  %757 = vmatprep.subr.bf16.mxu0 %v1182_v57 }
  0x4c   : > { %798 = vmatprep.subr.bf16.mxu1 %v1184_v58 }
  0x4e   : > { %758 = vmatpush1.bf16.msra.mxu0 %v1186_v59 }
  0x4f   : > { %799 = vmatpush1.bf16.msra.mxu1 %v1187_v60  ;;  %759 = vmatprep.subr.bf16.mxu0 %v1188_v61 }
  0x50   : > { %800 = vmatprep.subr.bf16.mxu1 %v1190_v62 }
  0x52   : > { %760 = vmatpush1.bf16.msra.mxu0 %v1192_v63 }
  0x53   : > { %801 = vmatpush1.bf16.msra.mxu1 %v1193_v0  ;;  %761 = vmatprep.subr.bf16.mxu0 %v1194_v1 }
  0x54   : > { %802 = vmatprep.subr.bf16.mxu1 %v1196_v2 }
  0x56   : > { %762 = vmatpush1.bf16.msra.mxu0 %v1198_v3 }
  0x57   : > { %803 = vmatpush1.bf16.msra.mxu1 %v1199_v4 }
  0x59   : > { %764 = vmatmul.mubr.bf16.vlgmr.msra.gmra.mrb[0].mxu0 %v1003_v5 }
  0x5a   : > { %805 = vmatmul.mubr.bf16.vlgmr.msra.gmra.mrb[0].mxu1 %v1005_v6 }
 0x12c   : > { %v765_v7 = vpop.f32.mrb[0].mxu0 }
 0x12d   : > { %v806_v9 = vpop.f32.mrb[0].mxu1  ;;  %v767_v11 = vpop.f32.mrb[1].mxu0  ;;  %820 = sbr.rel (%p1071_p7) target bundleno = 324 (0x144), region = 44 }
 0x12e   : > { %v807_v10 = vadd.f32 %v806_v9, %v765_v7  ;;  %v808_v13 = vpop.f32.mrb[1].mxu1  ;;  %v769_v15 = vpop.f32.mrb[2].mxu0 }
 0x12f   : > { %v809_v14 = vadd.f32 %v808_v13, %v767_v11  ;;  %v810_v16 = vpop.f32.mrb[2].mxu1  ;;  %v770_v18 = vpop.f32.mrb[3].mxu0 }
 0x130   : > { %v813_v17 = vadd.f32 %v807_v10, %v329_v8  ;;  %v811_v19 = vpop.f32.mrb[3].mxu1 }
 0x131   : > { %v814_v20 = vadd.f32 %v809_v14, %v330_v12 }
 0x132   : > { %815 = vst [vmem:[#allocation2] sm:$0xff] %v813_v17 }
 0x133   : > { %816 = vst [vmem:[#allocation2 + $0x8] sm:$0xff] %v814_v20 }
 0x139   : > { %v821_v27 = vld [vmem:[#allocation2] sm:$0xff] }
 0x13a   : > { %v822_v28 = vld [vmem:[#allocation2 + $0x8] sm:$0xff]  ;;  %v835_v33 = vmul.f32 %v828_v29, %v821_v27 }
 0x13b   : > { %v836_v34 = vmul.f32 %v832_v30, %v822_v28 }
 0x13c   : > { %v849_v35 = vadd.f32 %v842_v31, %v835_v33 }
 0x13d   : > { %v850_v36 = vadd.f32 %v846_v32, %v836_v34 }
 0x13e   : > { %v851_v37 = vmax.f32 %v849_v35, 0.0 }
 0x13f   : > { %v852_v38 = vmax.f32 %v850_v36, 0.0 }
 0x141   : > { %v1078_v39 = vpack.c.bf16 %v852_v38, %v851_v37 }
 0x143   : > { %861 = vst [vmem:[%s1376_s4] sm:$0xff] %v1078_v39 }
 0x144 PF: > { %s14_s17 = sadd.s32 1, %s1226_s17   ;;  %s1377_s15 = smov %s1222_s16 }
 0x145   : > { %p11_p8 = scmp.ge.s32.totalorder %s14_s17, 7   ;;  %s1378_s16 = smov %s1380_s18 }
 0x147   :  { %13 = sbr.rel (!%p11_p8) target bundleno = 2 (0x2), region = 83 }

// kernel: _lambda_.36
= control target key start
LH: loop header
LB: loop body
LE: loop exit
PB: predicated region body
PF: predicated region fallthrough
CT: control target
= control target key end

     0   :  { %s1598_s15 = smov 0   ;;  %s1600_s16 = smov 0   ;;  %s1918_s0 = inlined_call_operand.vmem [shape: bf16[8,2560], index: 0, kind: input, shape index: {}]   ;;  %s1919_s1 = inlined_call_operand.vmem [shape: bf16[2560,512], index: 1, kind: input, shape index: {}]   ;;  %s1920_s2 = inlined_call_operand.vmem [shape: f32[1,512], index: 2, kind: input, shape index: {}]   ;;  %s1921_s3 = inlined_call_operand.vmem [shape: f32[1,512], index: 3, kind: input, shape index: {}]   ;;  %s1922_s4 = inlined_call_operand.vmem [shape: bf16[8,512], index: 4, kind: output, shape index: {}]  }
   0x1   :  { %s1602_s17 = smov 0   ;;  %s1604_s18 = smov 0  }
   0x2   :  { %s1606_s19 = smov 0   ;;  %s1608_s20 = smov 0  }
   0x3   :  { %s1610_s21 = smov 0  }
   0x4 LB: > { %s26_s22 = sadd.s32 1, %s1562_s19  ;;  %s29_s23 = sadd.s32 1, %s1566_s20  ;;  %s1570_s21 = sphi %s1610_s21, %s14_s21   ;;  %s1566_s20 = sphi %s1608_s20, %s1928_s20   ;;  %s1562_s19 = sphi %s1606_s19, %s1927_s19   ;;  %s1558_s18 = sphi %s1604_s18, %s1926_s18   ;;  %s1554_s17 = sphi %s1602_s17, %s1925_s17   ;;  %s1550_s16 = sphi %s1600_s16, %s1924_s16   ;;  %s1546_s15 = sphi %s1598_s15, %s1923_s15  }
   0x5   : > { %p27_p0 = scmp.ge.s32.totalorder %s26_s22, 5  ;;  %p77_p1 = scmp.ne.s32.totalorder %s1550_s16, %s1546_s15 }
   0x6   : > { %p78_p2 = scmp.eq.s32.totalorder %s1570_s21, 0  ;;  %s70_s27 = sadd.s32 1, %s1550_s16 }
   0x7   : > { %s1930_s22 = smov (%p27_p0, %s26_s22), 0  ;;  %s1932_s23 = smov (!%p27_p0, %s29_s23), %s1566_s20 }
   0x8   : > { %p79_p3 = por %p78_p2, %p77_p1  ;;  %p31_p4 = scmp.ge.s32.totalorder %s1932_s23, 2 }
   0x9   : > { %s65_s24 = ssub.s32 %s1562_s19, %s1930_s22  ;;  %p1270_p6 = scmp.ge.s32.totalorder %s1570_s21, 10 }
   0xa   : > { %s1934_s23 = smov (%p31_p4, %s1932_s23), 0 }
   0xb   : > { %s66_s25 = ssub.s32 %s1566_s20, %s1934_s23  ;;  %183 = sbr.rel (%p1270_p6) target bundleno = 57 (0x39), region = 16 }
   0xc   : > { %s67_s26 = sor.u32 %s66_s25, %s65_s24 }
   0xd   : > { %p68_p5 = scmp.eq.s32.totalorder %s67_s26, 0 }
   0xf   : > { %s1649_s28 = scalar_select %p68_p5, %s1550_s16, %s70_s27  }
  0x12   : > { %199 = sbr.rel (!%p79_p3) target bundleno = 57 (0x39), region = 24  ;;  %s201_s29 = sand.u32 (%p79_p3), 1, %s1550_s16  }
  0x13   : > { %s1273_s30 = sshll.u32 (%p79_p3), %s1566_s20, 1  ;;  %s1271_s5 = sshll.u32 (%p79_p3), %s201_s29, 9 }
  0x14   : > { %s1357_s6 = sshll.u32 (%p79_p3), %s1562_s19, 8  ;;  %s1663_s12 = scalar_lea.vmem (%p79_p3), [#allocation3], %s1271_s5 }
  0x15   : > { %s207_s7 = sadd.s32 (%p79_p3), %s1357_s6, %s1273_s30 }
  0x16   : > { %s1275_s8 = sshll.u32 (%p79_p3), %s207_s7, 2 }
  0x17   : > { %s1658_s11 = scalar_lea.vmem (%p79_p3), %s1919_s1, %s1275_s8 }
  0x18   : > { %v363_v0 = vld [vmem:[%s1658_s11] sm:$0xff] (%p79_p3)  ;;  %v365_v1 = vld [vmem:[%s1658_s11 + $0x10] sm:$0xff] (%p79_p3) }
  0x19   : > { %v367_v2 = vld [vmem:[%s1658_s11 + $0x20] sm:$0xff]  ;;  %364 = vst [vmem:[%s1663_s12] sm:$0xff] %v363_v0  ;;  %366 = vst [vmem:[%s1663_s12 + $0x8] sm:$0xff] %v365_v1  ;;  %v369_v3 = vld [vmem:[%s1658_s11 + $0x30] sm:$0xff] }
  0x1a   : > { %368 = vst [vmem:[%s1663_s12 + $0x10] sm:$0xff] %v367_v2  ;;  %v371_v4 = vld [vmem:[%s1658_s11 + $0x40] sm:$0xff]  ;;  %v373_v5 = vld [vmem:[%s1658_s11 + $0x50] sm:$0xff]  ;;  %370 = vst [vmem:[%s1663_s12 + $0x18] sm:$0xff] %v369_v3 }
  0x1b   : > { %372 = vst [vmem:[%s1663_s12 + $0x20] sm:$0xff] %v371_v4  ;;  %374 = vst [vmem:[%s1663_s12 + $0x28] sm:$0xff] %v373_v5  ;;  %v375_v6 = vld [vmem:[%s1658_s11 + $0x60] sm:$0xff]  ;;  %v377_v7 = vld [vmem:[%s1658_s11 + $0x70] sm:$0xff] }
  0x1c   : > { %v379_v8 = vld [vmem:[%s1658_s11 + $0x80] sm:$0xff]  ;;  %376 = vst [vmem:[%s1663_s12 + $0x30] sm:$0xff] %v375_v6  ;;  %378 = vst [vmem:[%s1663_s12 + $0x38] sm:$0xff] %v377_v7  ;;  %v381_v9 = vld [vmem:[%s1658_s11 + $0x90] sm:$0xff] }
  0x1d   : > { %380 = vst [vmem:[%s1663_s12 + $0x40] sm:$0xff] %v379_v8  ;;  %v383_v10 = vld [vmem:[%s1658_s11 + $0xa0] sm:$0xff]  ;;  %v385_v11 = vld [vmem:[%s1658_s11 + $0xb0] sm:$0xff]  ;;  %382 = vst [vmem:[%s1663_s12 + $0x48] sm:$0xff] %v381_v9 }
  0x1e   : > { %384 = vst [vmem:[%s1663_s12 + $0x50] sm:$0xff] %v383_v10  ;;  %386 = vst [vmem:[%s1663_s12 + $0x58] sm:$0xff] %v385_v11  ;;  %v387_v12 = vld [vmem:[%s1658_s11 + $0xc0] sm:$0xff]  ;;  %v389_v13 = vld [vmem:[%s1658_s11 + $0xd0] sm:$0xff] }
  0x1f   : > { %v391_v14 = vld [vmem:[%s1658_s11 + $0xe0] sm:$0xff]  ;;  %388 = vst [vmem:[%s1663_s12 + $0x60] sm:$0xff] %v387_v12  ;;  %390 = vst [vmem:[%s1663_s12 + $0x68] sm:$0xff] %v389_v13  ;;  %v393_v15 = vld [vmem:[%s1658_s11 + $0xf0] sm:$0xff] }
  0x20   : > { %392 = vst [vmem:[%s1663_s12 + $0x70] sm:$0xff] %v391_v14  ;;  %v395_v16 = vld [vmem:[%s1658_s11 + $0x100] sm:$0xff]  ;;  %v397_v17 = vld [vmem:[%s1658_s11 + $0x110] sm:$0xff]  ;;  %394 = vst [vmem:[%s1663_s12 + $0x78] sm:$0xff] %v393_v15 }
  0x21   : > { %396 = vst [vmem:[%s1663_s12 + $0x80] sm:$0xff] %v395_v16  ;;  %398 = vst [vmem:[%s1663_s12 + $0x88] sm:$0xff] %v397_v17  ;;  %v399_v18 = vld [vmem:[%s1658_s11 + $0x120] sm:$0xff]  ;;  %v401_v19 = vld [vmem:[%s1658_s11 + $0x130] sm:$0xff] }
  0x22   : > { %v403_v20 = vld [vmem:[%s1658_s11 + $0x140] sm:$0xff]  ;;  %400 = vst [vmem:[%s1663_s12 + $0x90] sm:$0xff] %v399_v18  ;;  %402 = vst [vmem:[%s1663_s12 + $0x98] sm:$0xff] %v401_v19  ;;  %v405_v21 = vld [vmem:[%s1658_s11 + $0x150] sm:$0xff] }
  0x23   : > { %404 = vst [vmem:[%s1663_s12 + $0xa0] sm:$0xff] %v403_v20  ;;  %v407_v22 = vld [vmem:[%s1658_s11 + $0x160] sm:$0xff]  ;;  %v409_v23 = vld [vmem:[%s1658_s11 + $0x170] sm:$0xff]  ;;  %406 = vst [vmem:[%s1663_s12 + $0xa8] sm:$0xff] %v405_v21 }
  0x24   : > { %408 = vst [vmem:[%s1663_s12 + $0xb0] sm:$0xff] %v407_v22  ;;  %410 = vst [vmem:[%s1663_s12 + $0xb8] sm:$0xff] %v409_v23  ;;  %v411_v24 = vld [vmem:[%s1658_s11 + $0x180] sm:$0xff]  ;;  %v413_v25 = vld [vmem:[%s1658_s11 + $0x190] sm:$0xff] }
  0x25   : > { %v415_v26 = vld [vmem:[%s1658_s11 + $0x1a0] sm:$0xff]  ;;  %412 = vst [vmem:[%s1663_s12 + $0xc0] sm:$0xff] %v411_v24  ;;  %414 = vst [vmem:[%s1663_s12 + $0xc8] sm:$0xff] %v413_v25  ;;  %v417_v27 = vld [vmem:[%s1658_s11 + $0x1b0] sm:$0xff] }
  0x26   : > { %416 = vst [vmem:[%s1663_s12 + $0xd0] sm:$0xff] %v415_v26  ;;  %v419_v28 = vld [vmem:[%s1658_s11 + $0x1c0] sm:$0xff]  ;;  %v421_v29 = vld [vmem:[%s1658_s11 + $0x1d0] sm:$0xff]  ;;  %418 = vst [vmem:[%s1663_s12 + $0xd8] sm:$0xff] %v417_v27 }
  0x27   : > { %420 = vst [vmem:[%s1663_s12 + $0xe0] sm:$0xff] %v419_v28  ;;  %422 = vst [vmem:[%s1663_s12 + $0xe8] sm:$0xff] %v421_v29  ;;  %v423_v30 = vld [vmem:[%s1658_s11 + $0x1e0] sm:$0xff]  ;;  %v425_v31 = vld [vmem:[%s1658_s11 + $0x1f0] sm:$0xff] }
  0x28   : > { %v427_v32 = vld [vmem:[%s1658_s11 + $0x200] sm:$0xff]  ;;  %424 = vst [vmem:[%s1663_s12 + $0xf0] sm:$0xff] %v423_v30  ;;  %426 = vst [vmem:[%s1663_s12 + $0xf8] sm:$0xff] %v425_v31  ;;  %v429_v33 = vld [vmem:[%s1658_s11 + $0x210] sm:$0xff] }
  0x29   : > { %428 = vst [vmem:[%s1663_s12 + $0x100] sm:$0xff] %v427_v32  ;;  %v431_v34 = vld [vmem:[%s1658_s11 + $0x220] sm:$0xff]  ;;  %v433_v35 = vld [vmem:[%s1658_s11 + $0x230] sm:$0xff]  ;;  %430 = vst [vmem:[%s1663_s12 + $0x108] sm:$0xff] %v429_v33 }
  0x2a   : > { %432 = vst [vmem:[%s1663_s12 + $0x110] sm:$0xff] %v431_v34  ;;  %434 = vst [vmem:[%s1663_s12 + $0x118] sm:$0xff] %v433_v35  ;;  %v435_v36 = vld [vmem:[%s1658_s11 + $0x240] sm:$0xff]  ;;  %v437_v37 = vld [vmem:[%s1658_s11 + $0x250] sm:$0xff] }
  0x2b   : > { %v439_v38 = vld [vmem:[%s1658_s11 + $0x260] sm:$0xff]  ;;  %436 = vst [vmem:[%s1663_s12 + $0x120] sm:$0xff] %v435_v36  ;;  %438 = vst [vmem:[%s1663_s12 + $0x128] sm:$0xff] %v437_v37  ;;  %v441_v39 = vld [vmem:[%s1658_s11 + $0x270] sm:$0xff] }
  0x2c   : > { %440 = vst [vmem:[%s1663_s12 + $0x130] sm:$0xff] %v439_v38  ;;  %v443_v40 = vld [vmem:[%s1658_s11 + $0x280] sm:$0xff]  ;;  %v445_v41 = vld [vmem:[%s1658_s11 + $0x290] sm:$0xff]  ;;  %442 = vst [vmem:[%s1663_s12 + $0x138] sm:$0xff] %v441_v39 }
  0x2d   : > { %444 = vst [vmem:[%s1663_s12 + $0x140] sm:$0xff] %v443_v40  ;;  %446 = vst [vmem:[%s1663_s12 + $0x148] sm:$0xff] %v445_v41  ;;  %v447_v42 = vld [vmem:[%s1658_s11 + $0x2a0] sm:$0xff]  ;;  %v449_v43 = vld [vmem:[%s1658_s11 + $0x2b0] sm:$0xff] }
  0x2e   : > { %v451_v44 = vld [vmem:[%s1658_s11 + $0x2c0] sm:$0xff]  ;;  %448 = vst [vmem:[%s1663_s12 + $0x150] sm:$0xff] %v447_v42  ;;  %450 = vst [vmem:[%s1663_s12 + $0x158] sm:$0xff] %v449_v43  ;;  %v453_v45 = vld [vmem:[%s1658_s11 + $0x2d0] sm:$0xff] }
  0x2f   : > { %452 = vst [vmem:[%s1663_s12 + $0x160] sm:$0xff] %v451_v44  ;;  %v455_v46 = vld [vmem:[%s1658_s11 + $0x2e0] sm:$0xff]  ;;  %v457_v47 = vld [vmem:[%s1658_s11 + $0x2f0] sm:$0xff]  ;;  %454 = vst [vmem:[%s1663_s12 + $0x168] sm:$0xff] %v453_v45 }
  0x30   : > { %456 = vst [vmem:[%s1663_s12 + $0x170] sm:$0xff] %v455_v46  ;;  %458 = vst [vmem:[%s1663_s12 + $0x178] sm:$0xff] %v457_v47  ;;  %v459_v48 = vld [vmem:[%s1658_s11 + $0x300] sm:$0xff]  ;;  %v461_v49 = vld [vmem:[%s1658_s11 + $0x310] sm:$0xff] }
  0x31   : > { %v463_v50 = vld [vmem:[%s1658_s11 + $0x320] sm:$0xff]  ;;  %460 = vst [vmem:[%s1663_s12 + $0x180] sm:$0xff] %v459_v48  ;;  %462 = vst [vmem:[%s1663_s12 + $0x188] sm:$0xff] %v461_v49  ;;  %v465_v51 = vld [vmem:[%s1658_s11 + $0x330] sm:$0xff] }
  0x32   : > { %464 = vst [vmem:[%s1663_s12 + $0x190] sm:$0xff] %v463_v50  ;;  %v467_v52 = vld [vmem:[%s1658_s11 + $0x340] sm:$0xff]  ;;  %v469_v53 = vld [vmem:[%s1658_s11 + $0x350] sm:$0xff]  ;;  %466 = vst [vmem:[%s1663_s12 + $0x198] sm:$0xff] %v465_v51 }
  0x33   : > { %468 = vst [vmem:[%s1663_s12 + $0x1a0] sm:$0xff] %v467_v52  ;;  %470 = vst [vmem:[%s1663_s12 + $0x1a8] sm:$0xff] %v469_v53  ;;  %v471_v54 = vld [vmem:[%s1658_s11 + $0x360] sm:$0xff]  ;;  %v473_v55 = vld [vmem:[%s1658_s11 + $0x370] sm:$0xff] }
  0x34   : > { %v475_v56 = vld [vmem:[%s1658_s11 + $0x380] sm:$0xff]  ;;  %472 = vst [vmem:[%s1663_s12 + $0x1b0] sm:$0xff] %v471_v54  ;;  %474 = vst [vmem:[%s1663_s12 + $0x1b8] sm:$0xff] %v473_v55  ;;  %v477_v57 = vld [vmem:[%s1658_s11 + $0x390] sm:$0xff] }
  0x35   : > { %476 = vst [vmem:[%s1663_s12 + $0x1c0] sm:$0xff] %v475_v56  ;;  %v479_v58 = vld [vmem:[%s1658_s11 + $0x3a0] sm:$0xff]  ;;  %v481_v59 = vld [vmem:[%s1658_s11 + $0x3b0] sm:$0xff]  ;;  %478 = vst [vmem:[%s1663_s12 + $0x1c8] sm:$0xff] %v477_v57 }
  0x36   : > { %480 = vst [vmem:[%s1663_s12 + $0x1d0] sm:$0xff] %v479_v58  ;;  %482 = vst [vmem:[%s1663_s12 + $0x1d8] sm:$0xff] %v481_v59  ;;  %v483_v60 = vld [vmem:[%s1658_s11 + $0x3c0] sm:$0xff]  ;;  %v485_v61 = vld [vmem:[%s1658_s11 + $0x3d0] sm:$0xff] }
  0x37   : > { %v487_v62 = vld [vmem:[%s1658_s11 + $0x3e0] sm:$0xff]  ;;  %484 = vst [vmem:[%s1663_s12 + $0x1e0] sm:$0xff] %v483_v60  ;;  %486 = vst [vmem:[%s1663_s12 + $0x1e8] sm:$0xff] %v485_v61  ;;  %v489_v63 = vld [vmem:[%s1658_s11 + $0x3f0] sm:$0xff] }
  0x38   : > { %488 = vst [vmem:[%s1663_s12 + $0x1f0] sm:$0xff] %v487_v62  ;;  %490 = vst [vmem:[%s1663_s12 + $0x1f8] sm:$0xff] %v489_v63 }
  0x39 PF: > { %p1276_p7 = scmp.ge.s32.totalorder %s1570_s21, 1  ;;  %p511_p8 = scmp.lt.s32.totalorder %s1570_s21, 11 }
  0x3b   : > { %p512_p9 = pnand %p1276_p7, %p511_p8 }
  0x3c   : > { %s518_s13 = sand.u32 (!%p512_p9), 1, %s1546_s15   ;;  %s1278_s14 = sshll.u32 (!%p512_p9), %s1554_s17, 2 }
  0x3d   : > { %515 = sbr.rel (%p512_p9) target bundleno = 378 (0x17a), region = 70  ;;  %s1277_s24 = sshll.u32 (!%p512_p9), %s518_s13, 9 }
  0x3e   : > { %p567_p10 = scmp.lt.s32.totalorder (!%p512_p9), %s1278_s14, 19  ;;  %s1280_s25 = sshll.u32 (!%p512_p9), %s1558_s18, 1 }
  0x3f   : > { %p577_p11 = scmp.lt.s32.totalorder (!%p512_p9), %s1280_s25, 3  ;;  %s1816_s13 = scalar_lea.vmem (!%p512_p9), [#allocation3], %s1277_s24 }
  0x40   : > { %p1284_p12 = scmp.ne.s32.totalorder (!%p512_p9), %s1554_s17, 0 }
  0x44   : > { %s1936_s14 = smov (!%p567_p10, %s1278_s14), 19  ;;  %s1938_s25 = smov (!%p577_p11, %s1280_s25), 3 }
  0x45   : > { %s1279_s26 = sshll.u32 %s1936_s14, 2  ;;  %s579_s15 = scalar_lea.vmem %s1920_s2, %s1938_s25  ;;  %v1572_v0 = vmov (!%p1284_p12), 0.0  }
  0x46   : > { %s1798_s30 = scalar_lea.vmem %s1918_s0, %s1279_s26  ;;  %s584_s18 = scalar_lea.vmem %s1921_s3, %s1938_s25  ;;  %600 = vst [vmem:[#allocation2] sm:$0xff] (!%p1284_p12), %v1572_v0  ;;  %601 = vst [vmem:[#allocation2 + $0x8] sm:$0xff] (!%p1284_p12), %v1572_v0 }
  0x47   : > { %s1283_s9 = sshll.u32 %s1938_s25, 2  ;;  %599 = sbr.rel (%p1284_p12) target bundleno = 78 (0x4e), region = 78 }
  0x48   : > { %s1814_s12 = scalar_lea.vmem %s1922_s4, %s1283_s9 }
  0x4e PF: > { %v1416_v1 = vld [vmem:[%s1816_s13 + $0x4] ss:$8 sps:$4 sm:$0xff]   ;;  %v1420_v3 = vld [vmem:[%s1816_s13] ss:$8 sps:$4 sm:$0xff]   ;;  %v1422_v5 = vld [vmem:[%s1816_s13 + $0x14] ss:$8 sps:$4 sm:$0xff]  }
  0x4f   : > { %v1418_v2 = vld [vmem:[%s1816_s13 + $0x104] ss:$8 sps:$4 sm:$0xff]   ;;  %1004 = vmatprep.subr.bf16.mxu0 %v1416_v1  ;;  %v1421_v4 = vld [vmem:[%s1816_s13 + $0x100] ss:$8 sps:$4 sm:$0xff]   ;;  %v1424_v6 = vld [vmem:[%s1816_s13 + $0x114] ss:$8 sps:$4 sm:$0xff]  }
  0x50   : > { %1045 = vmatprep.subr.bf16.mxu1 %v1418_v2  ;;  %1005 = vmatpush1.bf16.msra.mxu0 %v1420_v3  ;;  %v1426_v7 = vld [vmem:[%s1816_s13 + $0x10] ss:$8 sps:$4 sm:$0xff]   ;;  %v1428_v9 = vld [vmem:[%s1816_s13 + $0x24] ss:$8 sps:$4 sm:$0xff]   ;;  %v1432_v11 = vld [vmem:[%s1816_s13 + $0x20] ss:$8 sps:$4 sm:$0xff]  }
  0x51   : > { %1046 = vmatpush1.bf16.msra.mxu1 %v1421_v4  ;;  %1006 = vmatprep.subr.bf16.mxu0 %v1422_v5  ;;  %v1427_v8 = vld [vmem:[%s1816_s13 + $0x110] ss:$8 sps:$4 sm:$0xff]   ;;  %v1430_v10 = vld [vmem:[%s1816_s13 + $0x124] ss:$8 sps:$4 sm:$0xff]   ;;  %v1433_v12 = vld [vmem:[%s1816_s13 + $0x120] ss:$8 sps:$4 sm:$0xff]  }
  0x52   : > { %1047 = vmatprep.subr.bf16.mxu1 %v1424_v6  ;;  %v1434_v13 = vld [vmem:[%s1816_s13 + $0x34] ss:$8 sps:$4 sm:$0xff]   ;;  %v1438_v15 = vld [vmem:[%s1816_s13 + $0x30] ss:$8 sps:$4 sm:$0xff]   ;;  %v1440_v17 = vld [vmem:[%s1816_s13 + $0x44] ss:$8 sps:$4 sm:$0xff]  }
  0x53   : > { %v1436_v14 = vld [vmem:[%s1816_s13 + $0x134] ss:$8 sps:$4 sm:$0xff]   ;;  %v1439_v16 = vld [vmem:[%s1816_s13 + $0x130] ss:$8 sps:$4 sm:$0xff]   ;;  %v1442_v18 = vld [vmem:[%s1816_s13 + $0x144] ss:$8 sps:$4 sm:$0xff]  }
  0x54   : > { %1007 = vmatpush1.bf16.msra.mxu0 %v1426_v7  ;;  %v1444_v19 = vld [vmem:[%s1816_s13 + $0x40] ss:$8 sps:$4 sm:$0xff]   ;;  %v1446_v21 = vld [vmem:[%s1816_s13 + $0x54] ss:$8 sps:$4 sm:$0xff]   ;;  %v1450_v23 = vld [vmem:[%s1816_s13 + $0x50] ss:$8 sps:$4 sm:$0xff]  }
  0x55   : > { %1048 = vmatpush1.bf16.msra.mxu1 %v1427_v8  ;;  %1008 = vmatprep.subr.bf16.mxu0 %v1428_v9  ;;  %v1445_v20 = vld [vmem:[%s1816_s13 + $0x140] ss:$8 sps:$4 sm:$0xff]   ;;  %v1448_v22 = vld [vmem:[%s1816_s13 + $0x154] ss:$8 sps:$4 sm:$0xff]   ;;  %v1451_v24 = vld [vmem:[%s1816_s13 + $0x150] ss:$8 sps:$4 sm:$0xff]  }
  0x56   : > { %1049 = vmatprep.subr.bf16.mxu1 %v1430_v10  ;;  %v1452_v25 = vld [vmem:[%s1816_s13 + $0x64] ss:$8 sps:$4 sm:$0xff]   ;;  %v1456_v27 = vld [vmem:[%s1816_s13 + $0x60] ss:$8 sps:$4 sm:$0xff]   ;;  %v1458_v29 = vld [vmem:[%s1816_s13 + $0x74] ss:$8 sps:$4 sm:$0xff]  }
  0x57   : > { %v1454_v26 = vld [vmem:[%s1816_s13 + $0x164] ss:$8 sps:$4 sm:$0xff]   ;;  %v1457_v28 = vld [vmem:[%s1816_s13 + $0x160] ss:$8 sps:$4 sm:$0xff]   ;;  %v1460_v30 = vld [vmem:[%s1816_s13 + $0x174] ss:$8 sps:$4 sm:$0xff]  }
  0x58   : > { %1009 = vmatpush1.bf16.msra.mxu0 %v1432_v11  ;;  %v1462_v31 = vld [vmem:[%s1816_s13 + $0x70] ss:$8 sps:$4 sm:$0xff]   ;;  %v1464_v33 = vld [vmem:[%s1816_s13 + $0x84] ss:$8 sps:$4 sm:$0xff]   ;;  %v1468_v35 = vld [vmem:[%s1816_s13 + $0x80] ss:$8 sps:$4 sm:$0xff]  }
  0x59   : > { %1050 = vmatpush1.bf16.msra.mxu1 %v1433_v12  ;;  %1010 = vmatprep.subr.bf16.mxu0 %v1434_v13  ;;  %v1463_v32 = vld [vmem:[%s1816_s13 + $0x170] ss:$8 sps:$4 sm:$0xff]   ;;  %v1466_v34 = vld [vmem:[%s1816_s13 + $0x184] ss:$8 sps:$4 sm:$0xff]   ;;  %v1469_v36 = vld [vmem:[%s1816_s13 + $0x180] ss:$8 sps:$4 sm:$0xff]  }
  0x5a   : > { %1051 = vmatprep.subr.bf16.mxu1 %v1436_v14  ;;  %v1470_v37 = vld [vmem:[%s1816_s13 + $0x94] ss:$8 sps:$4 sm:$0xff]   ;;  %v1474_v39 = vld [vmem:[%s1816_s13 + $0x90] ss:$8 sps:$4 sm:$0xff]   ;;  %v1476_v41 = vld [vmem:[%s1816_s13 + $0xa4] ss:$8 sps:$4 sm:$0xff]  }
  0x5b   : > { %v1472_v38 = vld [vmem:[%s1816_s13 + $0x194] ss:$8 sps:$4 sm:$0xff]   ;;  %v1475_v40 = vld [vmem:[%s1816_s13 + $0x190] ss:$8 sps:$4 sm:$0xff]   ;;  %v1478_v42 = vld [vmem:[%s1816_s13 + $0x1a4] ss:$8 sps:$4 sm:$0xff]  }
  0x5c   : > { %1011 = vmatpush1.bf16.msra.mxu0 %v1438_v15  ;;  %v1480_v43 = vld [vmem:[%s1816_s13 + $0xa0] ss:$8 sps:$4 sm:$0xff]   ;;  %v1482_v45 = vld [vmem:[%s1816_s13 + $0xb4] ss:$8 sps:$4 sm:$0xff]   ;;  %v1486_v50 = vld [vmem:[%s1816_s13 + $0xb0] ss:$8 sps:$4 sm:$0xff]  }
  0x5d   : > { %1052 = vmatpush1.bf16.msra.mxu1 %v1439_v16  ;;  %1012 = vmatprep.subr.bf16.mxu0 %v1440_v17  ;;  %v1481_v44 = vld [vmem:[%s1816_s13 + $0x1a0] ss:$8 sps:$4 sm:$0xff]   ;;  %v1484_v46 = vld [vmem:[%s1816_s13 + $0x1b4] ss:$8 sps:$4 sm:$0xff]   ;;  %v1487_v51 = vld [vmem:[%s1816_s13 + $0x1b0] ss:$8 sps:$4 sm:$0xff]  }
  0x5e   : > { %1053 = vmatprep.subr.bf16.mxu1 %v1442_v18  ;;  %v604_v47 = vld [vmem:[%s1798_s30] sm:$0xff]  ;;  %v605_v49 = vld [vmem:[%s1798_s30 + $0x8] sm:$0xff]  ;;  %v1488_v53 = vld [vmem:[%s1816_s13 + $0xc4] ss:$8 sps:$4 sm:$0xff]   ;;  %p1353_p13 = scmp.ne.s32.totalorder %s1554_s17, 4 }
  0x5f   : > { %v1286_v48 = vcombine.high %v604_v47, %v604_v47  ;;  %v1288_v52 = vcombine.high %v605_v49, %v605_v49  ;;  %v1490_v54 = vld [vmem:[%s1816_s13 + $0x1c4] ss:$8 sps:$4 sm:$0xff]   ;;  %v1492_v55 = vld [vmem:[%s1816_s13 + $0xc0] ss:$8 sps:$4 sm:$0xff]   ;;  %v1494_v57 = vld [vmem:[%s1816_s13 + $0xd4] ss:$8 sps:$4 sm:$0xff]   ;;  %v1285_v5 = vcombine.low %v604_v47, %v604_v47  ;;  %v1287_v6 = vcombine.low %v605_v49, %v605_v49 }
  0x60   : > { %1013 = vmatpush1.bf16.msra.mxu0 %v1444_v19  ;;  %v1493_v56 = vld [vmem:[%s1816_s13 + $0x1c0] ss:$8 sps:$4 sm:$0xff]   ;;  %v1496_v58 = vld [vmem:[%s1816_s13 + $0x1d4] ss:$8 sps:$4 sm:$0xff]   ;;  %v1498_v59 = vld [vmem:[%s1816_s13 + $0xd0] ss:$8 sps:$4 sm:$0xff]  }
  0x61   : > { %1054 = vmatpush1.bf16.msra.mxu1 %v1445_v20  ;;  %1014 = vmatprep.subr.bf16.mxu0 %v1446_v21  ;;  %v1499_v60 = vld [vmem:[%s1816_s13 + $0x1d0] ss:$8 sps:$4 sm:$0xff]   ;;  %v1500_v61 = vld [vmem:[%s1816_s13 + $0xe4] ss:$8 sps:$4 sm:$0xff]   ;;  %v1504_v63 = vld [vmem:[%s1816_s13 + $0xe0] ss:$8 sps:$4 sm:$0xff]   ;;  %v1098_v21 = vlaneseq (!%p1353_p13) }
  0x62   : > { %1055 = vmatprep.subr.bf16.mxu1 %v1448_v22  ;;  %1036 = vmatprep.mubr.bf16.mxu0 %v1286_v48  ;;  %v1502_v62 = vld [vmem:[%s1816_s13 + $0x1e4] ss:$8 sps:$4 sm:$0xff]   ;;  %v1505_v0 = vld [vmem:[%s1816_s13 + $0x1e0] ss:$8 sps:$4 sm:$0xff]   ;;  %v1506_v1 = vld [vmem:[%s1816_s13 + $0xf4] ss:$8 sps:$4 sm:$0xff]  }
  0x63   : > { %1077 = vmatprep.mubr.bf16.mxu1 %v1288_v52  ;;  %v1508_v2 = vld [vmem:[%s1816_s13 + $0x1f4] ss:$8 sps:$4 sm:$0xff]   ;;  %v1510_v3 = vld [vmem:[%s1816_s13 + $0xf0] ss:$8 sps:$4 sm:$0xff]   ;;  %v1099_v22 = vshrl.u32 (!%p1353_p13), %v1098_v21, 7 }
  0x64   : > { %1015 = vmatpush1.bf16.msra.mxu0 %v1450_v23  ;;  %v1511_v4 = vld [vmem:[%s1816_s13 + $0x1f0] ss:$8 sps:$4 sm:$0xff]  }
  0x65   : > { %1056 = vmatpush1.bf16.msra.mxu1 %v1451_v24  ;;  %1016 = vmatprep.subr.bf16.mxu0 %v1452_v25  ;;  %v602_v8 = vld [vmem:[#allocation2] sm:$0xff]  ;;  %v603_v12 = vld [vmem:[#allocation2 + $0x8] sm:$0xff]  ;;  %v1100_v25 = vsub.s32 (!%p1353_p13), 0, %v1099_v22 }
  0x66   : > { %1057 = vmatprep.subr.bf16.mxu1 %v1454_v26  ;;  %v1096_v23 = vld [vmem:[%s579_s15] sm:$0x3] (!%p1353_p13)  ;;  %v1104_v26 = vsub.s32 (!%p1353_p13), 1, %v1099_v22 }
  0x67   : > { %v1110_v24 = vld [vmem:[%s584_s18] sm:$0x3] (!%p1353_p13) }
  0x68   : > { %1017 = vmatpush1.bf16.msra.mxu0 %v1456_v27 }
  0x69   : > { %1058 = vmatpush1.bf16.msra.mxu1 %v1457_v28  ;;  %1018 = vmatprep.subr.bf16.mxu0 %v1458_v29  ;;  %v1101_v29 = vrot.slane (!%p1353_p13), %v1096_v23, %v1100_v25 }
  0x6a   : > { %1059 = vmatprep.subr.bf16.mxu1 %v1460_v30  ;;  %v1105_v30 = vrot.slane (!%p1353_p13), %v1096_v23, %v1104_v26 }
  0x6c   : > { %1019 = vmatpush1.bf16.msra.mxu0 %v1462_v31  ;;  %v1115_v31 = vrot.slane (!%p1353_p13), %v1110_v24, %v1100_v25 }
  0x6d   : > { %1060 = vmatpush1.bf16.msra.mxu1 %v1463_v32  ;;  %1020 = vmatprep.subr.bf16.mxu0 %v1464_v33  ;;  %v1119_v32 = vrot.slane (!%p1353_p13), %v1110_v24, %v1104_v26 }
  0x6e   : > { %1061 = vmatprep.subr.bf16.mxu1 %v1466_v34 }
  0x70   : > { %1021 = vmatpush1.bf16.msra.mxu0 %v1468_v35 }
  0x71   : > { %1062 = vmatpush1.bf16.msra.mxu1 %v1469_v36  ;;  %1022 = vmatprep.subr.bf16.mxu0 %v1470_v37 }
  0x72   : > { %1063 = vmatprep.subr.bf16.mxu1 %v1472_v38 }
  0x74   : > { %1023 = vmatpush1.bf16.msra.mxu0 %v1474_v39 }
  0x75   : > { %1064 = vmatpush1.bf16.msra.mxu1 %v1475_v40  ;;  %1024 = vmatprep.subr.bf16.mxu0 %v1476_v41 }
  0x76   : > { %1065 = vmatprep.subr.bf16.mxu1 %v1478_v42 }
  0x78   : > { %1025 = vmatpush1.bf16.msra.mxu0 %v1480_v43 }
  0x79   : > { %1066 = vmatpush1.bf16.msra.mxu1 %v1481_v44  ;;  %1026 = vmatprep.subr.bf16.mxu0 %v1482_v45 }
  0x7a   : > { %1067 = vmatprep.subr.bf16.mxu1 %v1484_v46 }
  0x7c   : > { %1027 = vmatpush1.bf16.msra.mxu0 %v1486_v50 }
  0x7d   : > { %1068 = vmatpush1.bf16.msra.mxu1 %v1487_v51  ;;  %1028 = vmatprep.subr.bf16.mxu0 %v1488_v53 }
  0x7e   : > { %1069 = vmatprep.subr.bf16.mxu1 %v1490_v54 }
  0x80   : > { %1029 = vmatpush1.bf16.msra.mxu0 %v1492_v55 }
  0x81   : > { %1070 = vmatpush1.bf16.msra.mxu1 %v1493_v56  ;;  %1030 = vmatprep.subr.bf16.mxu0 %v1494_v57 }
  0x82   : > { %1071 = vmatprep.subr.bf16.mxu1 %v1496_v58 }
  0x84   : > { %1031 = vmatpush1.bf16.msra.mxu0 %v1498_v59 }
  0x85   : > { %1072 = vmatpush1.bf16.msra.mxu1 %v1499_v60  ;;  %1032 = vmatprep.subr.bf16.mxu0 %v1500_v61 }
  0x86   : > { %1073 = vmatprep.subr.bf16.mxu1 %v1502_v62 }
  0x88   : > { %1033 = vmatpush1.bf16.msra.mxu0 %v1504_v63 }
  0x89   : > { %1074 = vmatpush1.bf16.msra.mxu1 %v1505_v0  ;;  %1034 = vmatprep.subr.bf16.mxu0 %v1506_v1 }
  0x8a   : > { %1075 = vmatprep.subr.bf16.mxu1 %v1508_v2 }
  0x8c   : > { %1035 = vmatpush1.bf16.msra.mxu0 %v1510_v3 }
  0x8d   : > { %1076 = vmatpush1.bf16.msra.mxu1 %v1511_v4 }
  0x8f   : > { %1037 = vmatmul.mubr.bf16.vlgmr.msra.gmra.mrb[0].mxu0 %v1285_v5 }
  0x90   : > { %1078 = vmatmul.mubr.bf16.vlgmr.msra.gmra.mrb[0].mxu1 %v1287_v6 }
 0x162   : > { %v1038_v7 = vpop.f32.mrb[0].mxu0 }
 0x163   : > { %v1079_v9 = vpop.f32.mrb[0].mxu1  ;;  %v1040_v11 = vpop.f32.mrb[1].mxu0  ;;  %1093 = sbr.rel (%p1353_p13) target bundleno = 378 (0x17a), region = 82 }
 0x164   : > { %v1080_v10 = vadd.f32 %v1079_v9, %v1038_v7  ;;  %v1081_v13 = vpop.f32.mrb[1].mxu1  ;;  %v1042_v15 = vpop.f32.mrb[2].mxu0 }
 0x165   : > { %v1082_v14 = vadd.f32 %v1081_v13, %v1040_v11  ;;  %v1083_v16 = vpop.f32.mrb[2].mxu1  ;;  %v1043_v18 = vpop.f32.mrb[3].mxu0 }
 0x166   : > { %v1086_v17 = vadd.f32 %v1080_v10, %v602_v8  ;;  %v1084_v19 = vpop.f32.mrb[3].mxu1 }
 0x167   : > { %v1087_v20 = vadd.f32 %v1082_v14, %v603_v12 }
 0x168   : > { %1088 = vst [vmem:[#allocation2] sm:$0xff] %v1086_v17 }
 0x169   : > { %1089 = vst [vmem:[#allocation2 + $0x8] sm:$0xff] %v1087_v20 }
 0x16f   : > { %v1094_v27 = vld [vmem:[#allocation2] sm:$0xff] }
 0x170   : > { %v1095_v28 = vld [vmem:[#allocation2 + $0x8] sm:$0xff]  ;;  %v1108_v33 = vmul.f32 %v1101_v29, %v1094_v27 }
 0x171   : > { %v1109_v34 = vmul.f32 %v1105_v30, %v1095_v28 }
 0x172   : > { %v1122_v35 = vadd.f32 %v1115_v31, %v1108_v33 }
 0x173   : > { %v1123_v36 = vadd.f32 %v1119_v32, %v1109_v34 }
 0x174   : > { %v1124_v37 = vmax.f32 %v1122_v35, 0.0 }
 0x175   : > { %v1125_v38 = vmax.f32 %v1123_v36, 0.0 }
 0x177   : > { %v1358_v39 = vpack.c.bf16 %v1125_v38, %v1124_v37 }
 0x179   : > { %1134 = vst [vmem:[%s1814_s12] sm:$0xff] %v1358_v39 }
 0x17a PF: > { %s14_s21 = sadd.s32 1, %s1570_s21   ;;  %s1923_s15 = smov %s1550_s16 }
 0x17b   : > { %p11_p0 = scmp.ge.s32.totalorder %s14_s21, 12   ;;  %s1924_s16 = smov %s1649_s28 }
 0x17c   : > { %s1925_s17 = smov %s1562_s19  ;;  %s1926_s18 = smov %s1566_s20 }
 0x17d   : > { %s1927_s19 = smov %s1930_s22  ;;  %s1928_s20 = smov %s1934_s23 }
 0x17e   :  { %13 = sbr.rel (!%p11_p0) target bundleno = 4 (0x4), region = 126 }

// kernel: _lambda_.37
= control target key start
LH: loop header
LB: loop body
LE: loop exit
PB: predicated region body
PF: predicated region fallthrough
CT: control target
= control target key end

     0   :  { %s1103_s15 = smov 0   ;;  %s1105_s16 = smov 0   ;;  %s1285_s0 = inlined_call_operand.vmem [shape: bf16[8,256], index: 0, kind: input, shape index: {}]   ;;  %s1286_s1 = inlined_call_operand.vmem [shape: bf16[256,512], index: 1, kind: input, shape index: {}]   ;;  %s1287_s2 = inlined_call_operand.vmem [shape: f32[1,512], index: 2, kind: input, shape index: {}]   ;;  %s1288_s3 = inlined_call_operand.vmem [shape: f32[1,512], index: 3, kind: input, shape index: {}]   ;;  %s1289_s4 = inlined_call_operand.vmem [shape: bf16[8,512], index: 4, kind: output, shape index: {}]  }
   0x1   :  { %s1107_s17 = smov 0   ;;  %s1109_s18 = smov 0  }
   0x2   :  { %s1111_s19 = smov 0  }
   0x3 LB: > { %s29_s20 = sadd.s32 1, %s1072_s18  ;;  %p77_p1 = scmp.ne.s32.totalorder %s1064_s16, %s1060_s15  ;;  %s1076_s19 = sphi %s1111_s19, %s14_s19   ;;  %s1072_s18 = sphi %s1109_s18, %s1293_s18   ;;  %s1068_s17 = sphi %s1107_s17, %s1292_s17   ;;  %s1064_s16 = sphi %s1105_s16, %s1291_s16   ;;  %s1060_s15 = sphi %s1103_s15, %s1290_s15  }
   0x4   : > { %p31_p0 = scmp.ge.s32.totalorder %s29_s20, 2  ;;  %p78_p2 = scmp.eq.s32.totalorder %s1076_s19, 0 }
   0x5   : > { %s70_s22 = sadd.s32 1, %s1064_s16  ;;  %p899_p5 = scmp.ge.s32.totalorder %s1076_s19, 2 }
   0x6   : > { %s1295_s20 = smov (%p31_p0, %s29_s20), 0  ;;  %p79_p3 = por %p78_p2, %p77_p1 }
   0x7   : > { %s66_s21 = ssub.s32 %s1072_s18, %s1295_s20  ;;  %196 = sbr.rel (%p899_p5) target bundleno = 34 (0x22), region = 20 }
   0x8   : > { %p68_p4 = scmp.eq.s32.totalorder %s66_s21, 0 }
   0xa   : > { %s1138_s23 = scalar_select %p68_p4, %s1064_s16, %s70_s22  }
   0xe   : > { %199 = sbr.rel (!%p79_p3) target bundleno = 34 (0x22), region = 24  ;;  %s201_s24 = sand.u32 (%p79_p3), 1, %s1064_s16  }
   0xf   : > { %s946_s25 = sshll.u32 (%p79_p3), %s1072_s18, 3  ;;  %s900_s26 = sshll.u32 (%p79_p3), %s201_s24, 8 }
  0x10   : > { %s1146_s29 = scalar_lea.vmem (%p79_p3), %s1286_s1, %s946_s25  ;;  %s1151_s30 = scalar_lea.vmem (%p79_p3), [#allocation3], %s900_s26 }
  0x11   : > { %v299_v0 = vld [vmem:[%s1146_s29] sm:$0xff] (%p79_p3)  ;;  %v301_v1 = vld [vmem:[%s1146_s29 + $0x10] sm:$0xff] (%p79_p3) }
  0x12   : > { %v303_v2 = vld [vmem:[%s1146_s29 + $0x20] sm:$0xff] (%p79_p3)  ;;  %300 = vst [vmem:[%s1151_s30] sm:$0xff] (%p79_p3), %v299_v0  ;;  %302 = vst [vmem:[%s1151_s30 + $0x8] sm:$0xff] (%p79_p3), %v301_v1  ;;  %v305_v3 = vld [vmem:[%s1146_s29 + $0x30] sm:$0xff] (%p79_p3) }
  0x13   : > { %304 = vst [vmem:[%s1151_s30 + $0x10] sm:$0xff] (%p79_p3), %v303_v2  ;;  %v307_v4 = vld [vmem:[%s1146_s29 + $0x40] sm:$0xff] (%p79_p3)  ;;  %v309_v5 = vld [vmem:[%s1146_s29 + $0x50] sm:$0xff] (%p79_p3)  ;;  %306 = vst [vmem:[%s1151_s30 + $0x18] sm:$0xff] (%p79_p3), %v305_v3 }
  0x14   : > { %308 = vst [vmem:[%s1151_s30 + $0x20] sm:$0xff] (%p79_p3), %v307_v4  ;;  %310 = vst [vmem:[%s1151_s30 + $0x28] sm:$0xff] (%p79_p3), %v309_v5  ;;  %v311_v6 = vld [vmem:[%s1146_s29 + $0x60] sm:$0xff] (%p79_p3)  ;;  %v313_v7 = vld [vmem:[%s1146_s29 + $0x70] sm:$0xff] (%p79_p3) }
  0x15   : > { %v315_v8 = vld [vmem:[%s1146_s29 + $0x80] sm:$0xff]  ;;  %312 = vst [vmem:[%s1151_s30 + $0x30] sm:$0xff] %v311_v6  ;;  %314 = vst [vmem:[%s1151_s30 + $0x38] sm:$0xff] %v313_v7  ;;  %v317_v9 = vld [vmem:[%s1146_s29 + $0x90] sm:$0xff] }
  0x16   : > { %316 = vst [vmem:[%s1151_s30 + $0x40] sm:$0xff] %v315_v8  ;;  %v319_v10 = vld [vmem:[%s1146_s29 + $0xa0] sm:$0xff]  ;;  %v321_v11 = vld [vmem:[%s1146_s29 + $0xb0] sm:$0xff]  ;;  %318 = vst [vmem:[%s1151_s30 + $0x48] sm:$0xff] %v317_v9 }
  0x17   : > { %320 = vst [vmem:[%s1151_s30 + $0x50] sm:$0xff] %v319_v10  ;;  %322 = vst [vmem:[%s1151_s30 + $0x58] sm:$0xff] %v321_v11  ;;  %v323_v12 = vld [vmem:[%s1146_s29 + $0xc0] sm:$0xff]  ;;  %v325_v13 = vld [vmem:[%s1146_s29 + $0xd0] sm:$0xff] }
  0x18   : > { %v327_v14 = vld [vmem:[%s1146_s29 + $0xe0] sm:$0xff]  ;;  %324 = vst [vmem:[%s1151_s30 + $0x60] sm:$0xff] %v323_v12  ;;  %326 = vst [vmem:[%s1151_s30 + $0x68] sm:$0xff] %v325_v13  ;;  %v329_v15 = vld [vmem:[%s1146_s29 + $0xf0] sm:$0xff] }
  0x19   : > { %328 = vst [vmem:[%s1151_s30 + $0x70] sm:$0xff] %v327_v14  ;;  %v331_v16 = vld [vmem:[%s1146_s29 + $0x100] sm:$0xff]  ;;  %v333_v17 = vld [vmem:[%s1146_s29 + $0x110] sm:$0xff]  ;;  %330 = vst [vmem:[%s1151_s30 + $0x78] sm:$0xff] %v329_v15 }
  0x1a   : > { %332 = vst [vmem:[%s1151_s30 + $0x80] sm:$0xff] %v331_v16  ;;  %334 = vst [vmem:[%s1151_s30 + $0x88] sm:$0xff] %v333_v17  ;;  %v335_v18 = vld [vmem:[%s1146_s29 + $0x120] sm:$0xff]  ;;  %v337_v19 = vld [vmem:[%s1146_s29 + $0x130] sm:$0xff] }
  0x1b   : > { %v339_v20 = vld [vmem:[%s1146_s29 + $0x140] sm:$0xff]  ;;  %336 = vst [vmem:[%s1151_s30 + $0x90] sm:$0xff] %v335_v18  ;;  %338 = vst [vmem:[%s1151_s30 + $0x98] sm:$0xff] %v337_v19  ;;  %v341_v21 = vld [vmem:[%s1146_s29 + $0x150] sm:$0xff] }
  0x1c   : > { %340 = vst [vmem:[%s1151_s30 + $0xa0] sm:$0xff] %v339_v20  ;;  %v343_v22 = vld [vmem:[%s1146_s29 + $0x160] sm:$0xff]  ;;  %v345_v23 = vld [vmem:[%s1146_s29 + $0x170] sm:$0xff]  ;;  %342 = vst [vmem:[%s1151_s30 + $0xa8] sm:$0xff] %v341_v21 }
  0x1d   : > { %344 = vst [vmem:[%s1151_s30 + $0xb0] sm:$0xff] %v343_v22  ;;  %346 = vst [vmem:[%s1151_s30 + $0xb8] sm:$0xff] %v345_v23  ;;  %v347_v24 = vld [vmem:[%s1146_s29 + $0x180] sm:$0xff]  ;;  %v349_v25 = vld [vmem:[%s1146_s29 + $0x190] sm:$0xff] }
  0x1e   : > { %v351_v26 = vld [vmem:[%s1146_s29 + $0x1a0] sm:$0xff]  ;;  %348 = vst [vmem:[%s1151_s30 + $0xc0] sm:$0xff] %v347_v24  ;;  %350 = vst [vmem:[%s1151_s30 + $0xc8] sm:$0xff] %v349_v25  ;;  %v353_v27 = vld [vmem:[%s1146_s29 + $0x1b0] sm:$0xff] }
  0x1f   : > { %352 = vst [vmem:[%s1151_s30 + $0xd0] sm:$0xff] %v351_v26  ;;  %v355_v28 = vld [vmem:[%s1146_s29 + $0x1c0] sm:$0xff]  ;;  %v357_v29 = vld [vmem:[%s1146_s29 + $0x1d0] sm:$0xff]  ;;  %354 = vst [vmem:[%s1151_s30 + $0xd8] sm:$0xff] %v353_v27 }
  0x20   : > { %356 = vst [vmem:[%s1151_s30 + $0xe0] sm:$0xff] %v355_v28  ;;  %358 = vst [vmem:[%s1151_s30 + $0xe8] sm:$0xff] %v357_v29  ;;  %v359_v30 = vld [vmem:[%s1146_s29 + $0x1e0] sm:$0xff]  ;;  %v361_v31 = vld [vmem:[%s1146_s29 + $0x1f0] sm:$0xff] }
  0x21   : > { %360 = vst [vmem:[%s1151_s30 + $0xf0] sm:$0xff] %v359_v30  ;;  %362 = vst [vmem:[%s1151_s30 + $0xf8] sm:$0xff] %v361_v31 }
  0x22 PF: > { %p903_p6 = scmp.ge.s32.totalorder %s1076_s19, 1  ;;  %p383_p7 = scmp.lt.s32.totalorder %s1076_s19, 3 }
  0x24   : > { %p384_p8 = pnand %p903_p6, %p383_p7 }
  0x25   : > { %s390_s5 = sand.u32 (!%p384_p8), 1, %s1060_s15   ;;  %v1220_v32 = vld [vmem:[%s1285_s0] sm:$0xff] (!%p384_p8)  ;;  %s905_s10 = sshll.u32 (!%p384_p8), %s1068_s17, 1  ;;  %v728_v3 = vlaneseq (!%p384_p8) }
  0x26   : > { %387 = sbr.rel (%p384_p8) target bundleno = 325 (0x145), region = 70  ;;  %s904_s8 = sshll.u32 (!%p384_p8), %s390_s5, 8  ;;  %v910_v33 = vcombine.high (!%p384_p8), %v1220_v32, %v1220_v32  ;;  %v909_v2 = vcombine.low (!%p384_p8), %v1220_v32, %v1220_v32 }
  0x27   : > { %s1224_s9 = scalar_lea.vmem (!%p384_p8), [#allocation3], %s904_s8  ;;  %p449_p9 = scmp.lt.s32.totalorder (!%p384_p8), %s905_s10, 3  ;;  %v729_v4 = vshrl.u32 (!%p384_p8), %v728_v3, 7 }
  0x28   : > { %v988_v34 = vld [vmem:[%s1224_s9 + $0x4] ss:$8 sps:$4 sm:$0xff] (!%p384_p8)   ;;  %708 = vmatprep.mubr.bf16.mxu0 (!%p384_p8), %v910_v33  ;;  %v990_v35 = vld [vmem:[%s1224_s9] ss:$8 sps:$4 sm:$0xff] (!%p384_p8)   ;;  %v991_v36 = vld [vmem:[%s1224_s9 + $0x14] ss:$8 sps:$4 sm:$0xff] (!%p384_p8)  }
  0x29   : > { %676 = vmatprep.subr.bf16.mxu0 (!%p384_p8), %v988_v34  ;;  %v993_v37 = vld [vmem:[%s1224_s9 + $0x10] ss:$8 sps:$4 sm:$0xff] (!%p384_p8)   ;;  %v994_v38 = vld [vmem:[%s1224_s9 + $0x24] ss:$8 sps:$4 sm:$0xff] (!%p384_p8)   ;;  %v996_v39 = vld [vmem:[%s1224_s9 + $0x20] ss:$8 sps:$4 sm:$0xff] (!%p384_p8)  }
  0x2a   : > { %677 = vmatpush1.bf16.msra.mxu0 (!%p384_p8), %v990_v35  ;;  %v997_v40 = vld [vmem:[%s1224_s9 + $0x34] ss:$8 sps:$4 sm:$0xff] (!%p384_p8)   ;;  %v999_v41 = vld [vmem:[%s1224_s9 + $0x30] ss:$8 sps:$4 sm:$0xff] (!%p384_p8)   ;;  %v1000_v42 = vld [vmem:[%s1224_s9 + $0x44] ss:$8 sps:$4 sm:$0xff] (!%p384_p8)  }
  0x2b   : > { %678 = vmatprep.subr.bf16.mxu0 (!%p384_p8), %v991_v36  ;;  %v1002_v43 = vld [vmem:[%s1224_s9 + $0x40] ss:$8 sps:$4 sm:$0xff] (!%p384_p8)   ;;  %v1003_v44 = vld [vmem:[%s1224_s9 + $0x54] ss:$8 sps:$4 sm:$0xff] (!%p384_p8)   ;;  %v1005_v45 = vld [vmem:[%s1224_s9 + $0x50] ss:$8 sps:$4 sm:$0xff] (!%p384_p8)  }
  0x2c   : > { %v1006_v46 = vld [vmem:[%s1224_s9 + $0x64] ss:$8 sps:$4 sm:$0xff] (!%p384_p8)   ;;  %v1008_v47 = vld [vmem:[%s1224_s9 + $0x60] ss:$8 sps:$4 sm:$0xff] (!%p384_p8)   ;;  %v1009_v48 = vld [vmem:[%s1224_s9 + $0x74] ss:$8 sps:$4 sm:$0xff] (!%p384_p8)  }
  0x2d   : > { %v1011_v49 = vld [vmem:[%s1224_s9 + $0x70] ss:$8 sps:$4 sm:$0xff]   ;;  %v1012_v50 = vld [vmem:[%s1224_s9 + $0x84] ss:$8 sps:$4 sm:$0xff]   ;;  %v1014_v51 = vld [vmem:[%s1224_s9 + $0x80] ss:$8 sps:$4 sm:$0xff]  }
  0x2e   : > { %679 = vmatpush1.bf16.msra.mxu0 %v993_v37  ;;  %v1015_v52 = vld [vmem:[%s1224_s9 + $0x94] ss:$8 sps:$4 sm:$0xff]   ;;  %v1017_v53 = vld [vmem:[%s1224_s9 + $0x90] ss:$8 sps:$4 sm:$0xff]   ;;  %v1018_v54 = vld [vmem:[%s1224_s9 + $0xa4] ss:$8 sps:$4 sm:$0xff]  }
  0x2f   : > { %680 = vmatprep.subr.bf16.mxu0 %v994_v38  ;;  %v1020_v55 = vld [vmem:[%s1224_s9 + $0xa0] ss:$8 sps:$4 sm:$0xff]   ;;  %v1021_v56 = vld [vmem:[%s1224_s9 + $0xb4] ss:$8 sps:$4 sm:$0xff]   ;;  %v1023_v57 = vld [vmem:[%s1224_s9 + $0xb0] ss:$8 sps:$4 sm:$0xff]  }
  0x30   : > { %v1024_v58 = vld [vmem:[%s1224_s9 + $0xc4] ss:$8 sps:$4 sm:$0xff]   ;;  %v1026_v59 = vld [vmem:[%s1224_s9 + $0xc0] ss:$8 sps:$4 sm:$0xff]   ;;  %v1027_v60 = vld [vmem:[%s1224_s9 + $0xd4] ss:$8 sps:$4 sm:$0xff]  }
  0x31   : > { %v1029_v61 = vld [vmem:[%s1224_s9 + $0xd0] ss:$8 sps:$4 sm:$0xff]   ;;  %v1030_v62 = vld [vmem:[%s1224_s9 + $0xe4] ss:$8 sps:$4 sm:$0xff]   ;;  %v1032_v63 = vld [vmem:[%s1224_s9 + $0xe0] ss:$8 sps:$4 sm:$0xff]  }
  0x32   : > { %681 = vmatpush1.bf16.msra.mxu0 %v996_v39  ;;  %v1033_v0 = vld [vmem:[%s1224_s9 + $0xf4] ss:$8 sps:$4 sm:$0xff]   ;;  %v1035_v1 = vld [vmem:[%s1224_s9 + $0xf0] ss:$8 sps:$4 sm:$0xff]   ;;  %s1297_s10 = smov (!%p449_p9, %s905_s10), 3  ;;  %v730_v5 = vsub.s32 0, %v729_v4 }
  0x33   : > { %682 = vmatprep.subr.bf16.mxu0 %v997_v40  ;;  %s451_s13 = scalar_lea.vmem %s1287_s2, %s1297_s10  ;;  %s456_s21 = scalar_lea.vmem %s1288_s3, %s1297_s10  ;;  %v734_v7 = vsub.s32 1, %v729_v4 }
  0x34   : > { %v726_v6 = vld [vmem:[%s451_s13] sm:$0x3]  ;;  %s908_s17 = sshll.u32 %s1297_s10, 2 }
  0x35   : > { %v740_v8 = vld [vmem:[%s456_s21] sm:$0x3]  ;;  %v731_v9 = vrot.slane %v726_v6, %v730_v5  ;;  %v735_v10 = vrot.slane %v726_v6, %v734_v7  ;;  %s466_s25 = scalar_lea.vmem %s1289_s4, %s908_s17 }
  0x36   : > { %683 = vmatpush1.bf16.msra.mxu0 %v999_v41  ;;  %v745_v11 = vrot.slane %v740_v8, %v730_v5  ;;  %v749_v13 = vrot.slane %v740_v8, %v734_v7 }
  0x37   : > { %684 = vmatprep.subr.bf16.mxu0 %v1000_v42 }
  0x3a   : > { %685 = vmatpush1.bf16.msra.mxu0 %v1002_v43 }
  0x3b   : > { %686 = vmatprep.subr.bf16.mxu0 %v1003_v44 }
  0x3e   : > { %687 = vmatpush1.bf16.msra.mxu0 %v1005_v45 }
  0x3f   : > { %688 = vmatprep.subr.bf16.mxu0 %v1006_v46 }
  0x42   : > { %689 = vmatpush1.bf16.msra.mxu0 %v1008_v47 }
  0x43   : > { %690 = vmatprep.subr.bf16.mxu0 %v1009_v48 }
  0x46   : > { %691 = vmatpush1.bf16.msra.mxu0 %v1011_v49 }
  0x47   : > { %692 = vmatprep.subr.bf16.mxu0 %v1012_v50 }
  0x4a   : > { %693 = vmatpush1.bf16.msra.mxu0 %v1014_v51 }
  0x4b   : > { %694 = vmatprep.subr.bf16.mxu0 %v1015_v52 }
  0x4e   : > { %695 = vmatpush1.bf16.msra.mxu0 %v1017_v53 }
  0x4f   : > { %696 = vmatprep.subr.bf16.mxu0 %v1018_v54 }
  0x52   : > { %697 = vmatpush1.bf16.msra.mxu0 %v1020_v55 }
  0x53   : > { %698 = vmatprep.subr.bf16.mxu0 %v1021_v56 }
  0x56   : > { %699 = vmatpush1.bf16.msra.mxu0 %v1023_v57 }
  0x57   : > { %700 = vmatprep.subr.bf16.mxu0 %v1024_v58 }
  0x5a   : > { %701 = vmatpush1.bf16.msra.mxu0 %v1026_v59 }
  0x5b   : > { %702 = vmatprep.subr.bf16.mxu0 %v1027_v60 }
  0x5e   : > { %703 = vmatpush1.bf16.msra.mxu0 %v1029_v61 }
  0x5f   : > { %704 = vmatprep.subr.bf16.mxu0 %v1030_v62 }
  0x62   : > { %705 = vmatpush1.bf16.msra.mxu0 %v1032_v63 }
  0x63   : > { %706 = vmatprep.subr.bf16.mxu0 %v1033_v0 }
  0x66   : > { %707 = vmatpush1.bf16.msra.mxu0 %v1035_v1 }
  0x69   : > { %709 = vmatmul.mubr.bf16.vlgmr.msra.gmra.mrb[0].mxu0 %v909_v2 }
 0x13c   : > { %v710_v12 = vpop.f32.mrb[0].mxu0 }
 0x13d   : > { %v738_v14 = vmul.f32 %v731_v9, %v710_v12  ;;  %v712_v15 = vpop.f32.mrb[1].mxu0 }
 0x13e   : > { %v739_v16 = vmul.f32 %v735_v10, %v712_v15  ;;  %v714_v17 = vpop.f32.mrb[2].mxu0 }
 0x13f   : > { %v752_v18 = vadd.f32 %v745_v11, %v738_v14  ;;  %v715_v19 = vpop.f32.mrb[3].mxu0 }
 0x140   : > { %v753_v20 = vadd.f32 %v749_v13, %v739_v16 }
 0x142   : > { %v947_v21 = vpack.c.bf16 %v753_v20, %v752_v18 }
 0x144   : > { %762 = vst [vmem:[%s466_s25] sm:$0xff] %v947_v21 }
 0x145 PF: > { %s14_s19 = sadd.s32 1, %s1076_s19   ;;  %s1290_s15 = smov %s1064_s16 }
 0x146   : > { %p11_p10 = scmp.ge.s32.totalorder %s14_s19, 4   ;;  %s1291_s16 = smov %s1138_s23 }
 0x147   : > { %s1292_s17 = smov %s1072_s18  ;;  %s1293_s18 = smov %s1295_s20 }
 0x148   :  { %13 = sbr.rel (!%p11_p10) target bundleno = 3 (0x3), region = 126 }

// kernel: _lambda_.38
= control target key start
LH: loop header
LB: loop body
LE: loop exit
PB: predicated region body
PF: predicated region fallthrough
CT: control target
= control target key end

     0   :  { %s1691_s18 = smov 0   ;;  %s1693_s19 = smov 0   ;;  %s2017_s0 = inlined_call_operand.vmem [shape: bf16[8,4608], index: 0, kind: input, shape index: {}]   ;;  %s2018_s1 = inlined_call_operand.vmem [shape: bf16[4608,512], index: 1, kind: input, shape index: {}]   ;;  %s2019_s2 = inlined_call_operand.vmem [shape: f32[1,512], index: 2, kind: input, shape index: {}]   ;;  %s2020_s3 = inlined_call_operand.vmem [shape: f32[1,512], index: 3, kind: input, shape index: {}]   ;;  %s2021_s4 = inlined_call_operand.vmem [shape: bf16[8,512], index: 4, kind: input, shape index: {}]   ;;  %s2022_s5 = inlined_call_operand.vmem [shape: bf16[8,512], index: 5, kind: output, shape index: {}]  }
   0x1   :  { %s1695_s20 = smov 0   ;;  %s1697_s21 = smov 0  }
   0x2   :  { %s1699_s22 = smov 0   ;;  %s1701_s23 = smov 0  }
   0x3   :  { %s1703_s24 = smov 0  }
   0x4 LB: > { %s27_s25 = sadd.s32 1, %s1650_s22  ;;  %s30_s26 = sadd.s32 1, %s1654_s23  ;;  %s1658_s24 = sphi %s1703_s24, %s15_s24   ;;  %s1654_s23 = sphi %s1701_s23, %s2028_s23   ;;  %s1650_s22 = sphi %s1699_s22, %s2027_s22   ;;  %s1646_s21 = sphi %s1697_s21, %s2026_s21   ;;  %s1642_s20 = sphi %s1695_s20, %s2025_s20   ;;  %s1638_s19 = sphi %s1693_s19, %s2024_s19   ;;  %s1634_s18 = sphi %s1691_s18, %s2023_s18  }
   0x5   : > { %p28_p0 = scmp.ge.s32.totalorder %s27_s25, 9  ;;  %p78_p1 = scmp.ne.s32.totalorder %s1638_s19, %s1634_s18 }
   0x6   : > { %p79_p2 = scmp.eq.s32.totalorder %s1658_s24, 0  ;;  %s71_s30 = sadd.s32 1, %s1638_s19 }
   0x7   : > { %s2030_s25 = smov (%p28_p0, %s27_s25), 0  ;;  %s2032_s26 = smov (!%p28_p0, %s30_s26), %s1654_s23 }
   0x8   : > { %p80_p3 = por %p79_p2, %p78_p1  ;;  %p32_p4 = scmp.ge.s32.totalorder %s2032_s26, 2 }
   0x9   : > { %s66_s27 = ssub.s32 %s1650_s22, %s2030_s25  ;;  %p1356_p6 = scmp.ge.s32.totalorder %s1658_s24, 18 }
   0xa   : > { %s2034_s26 = smov (%p32_p4, %s2032_s26), 0 }
   0xb   : > { %s67_s28 = ssub.s32 %s1654_s23, %s2034_s26  ;;  %212 = sbr.rel (%p1356_p6) target bundleno = 57 (0x39), region = 16 }
   0xc   : > { %s68_s29 = sor.u32 %s67_s28, %s66_s27 }
   0xd   : > { %p69_p5 = scmp.eq.s32.totalorder %s68_s29, 0 }
   0xf   : > { %s1742_s6 = scalar_select %p69_p5, %s1638_s19, %s71_s30  }
  0x12   : > { %228 = sbr.rel (!%p80_p3) target bundleno = 57 (0x39), region = 24  ;;  %s230_s7 = sand.u32 (%p80_p3), 1, %s1638_s19  }
  0x13   : > { %s1359_s8 = sshll.u32 (%p80_p3), %s1654_s23, 1  ;;  %s1357_s9 = sshll.u32 (%p80_p3), %s230_s7, 9 }
  0x14   : > { %s1445_s10 = sshll.u32 (%p80_p3), %s1650_s22, 8  ;;  %s1756_s16 = scalar_lea.vmem (%p80_p3), [#allocation3], %s1357_s9 }
  0x15   : > { %s236_s11 = sadd.s32 (%p80_p3), %s1445_s10, %s1359_s8 }
  0x16   : > { %s1361_s12 = sshll.u32 (%p80_p3), %s236_s11, 2 }
  0x17   : > { %s1751_s15 = scalar_lea.vmem (%p80_p3), %s2018_s1, %s1361_s12 }
  0x18   : > { %v392_v0 = vld [vmem:[%s1751_s15] sm:$0xff] (%p80_p3)  ;;  %v394_v1 = vld [vmem:[%s1751_s15 + $0x10] sm:$0xff] (%p80_p3) }
  0x19   : > { %v396_v2 = vld [vmem:[%s1751_s15 + $0x20] sm:$0xff]  ;;  %393 = vst [vmem:[%s1756_s16] sm:$0xff] %v392_v0  ;;  %395 = vst [vmem:[%s1756_s16 + $0x8] sm:$0xff] %v394_v1  ;;  %v398_v3 = vld [vmem:[%s1751_s15 + $0x30] sm:$0xff] }
  0x1a   : > { %397 = vst [vmem:[%s1756_s16 + $0x10] sm:$0xff] %v396_v2  ;;  %v400_v4 = vld [vmem:[%s1751_s15 + $0x40] sm:$0xff]  ;;  %v402_v5 = vld [vmem:[%s1751_s15 + $0x50] sm:$0xff]  ;;  %399 = vst [vmem:[%s1756_s16 + $0x18] sm:$0xff] %v398_v3 }
  0x1b   : > { %401 = vst [vmem:[%s1756_s16 + $0x20] sm:$0xff] %v400_v4  ;;  %403 = vst [vmem:[%s1756_s16 + $0x28] sm:$0xff] %v402_v5  ;;  %v404_v6 = vld [vmem:[%s1751_s15 + $0x60] sm:$0xff]  ;;  %v406_v7 = vld [vmem:[%s1751_s15 + $0x70] sm:$0xff] }
  0x1c   : > { %v408_v8 = vld [vmem:[%s1751_s15 + $0x80] sm:$0xff]  ;;  %405 = vst [vmem:[%s1756_s16 + $0x30] sm:$0xff] %v404_v6  ;;  %407 = vst [vmem:[%s1756_s16 + $0x38] sm:$0xff] %v406_v7  ;;  %v410_v9 = vld [vmem:[%s1751_s15 + $0x90] sm:$0xff] }
  0x1d   : > { %409 = vst [vmem:[%s1756_s16 + $0x40] sm:$0xff] %v408_v8  ;;  %v412_v10 = vld [vmem:[%s1751_s15 + $0xa0] sm:$0xff]  ;;  %v414_v11 = vld [vmem:[%s1751_s15 + $0xb0] sm:$0xff]  ;;  %411 = vst [vmem:[%s1756_s16 + $0x48] sm:$0xff] %v410_v9 }
  0x1e   : > { %413 = vst [vmem:[%s1756_s16 + $0x50] sm:$0xff] %v412_v10  ;;  %415 = vst [vmem:[%s1756_s16 + $0x58] sm:$0xff] %v414_v11  ;;  %v416_v12 = vld [vmem:[%s1751_s15 + $0xc0] sm:$0xff]  ;;  %v418_v13 = vld [vmem:[%s1751_s15 + $0xd0] sm:$0xff] }
  0x1f   : > { %v420_v14 = vld [vmem:[%s1751_s15 + $0xe0] sm:$0xff]  ;;  %417 = vst [vmem:[%s1756_s16 + $0x60] sm:$0xff] %v416_v12  ;;  %419 = vst [vmem:[%s1756_s16 + $0x68] sm:$0xff] %v418_v13  ;;  %v422_v15 = vld [vmem:[%s1751_s15 + $0xf0] sm:$0xff] }
  0x20   : > { %421 = vst [vmem:[%s1756_s16 + $0x70] sm:$0xff] %v420_v14  ;;  %v424_v16 = vld [vmem:[%s1751_s15 + $0x100] sm:$0xff]  ;;  %v426_v17 = vld [vmem:[%s1751_s15 + $0x110] sm:$0xff]  ;;  %423 = vst [vmem:[%s1756_s16 + $0x78] sm:$0xff] %v422_v15 }
  0x21   : > { %425 = vst [vmem:[%s1756_s16 + $0x80] sm:$0xff] %v424_v16  ;;  %427 = vst [vmem:[%s1756_s16 + $0x88] sm:$0xff] %v426_v17  ;;  %v428_v18 = vld [vmem:[%s1751_s15 + $0x120] sm:$0xff]  ;;  %v430_v19 = vld [vmem:[%s1751_s15 + $0x130] sm:$0xff] }
  0x22   : > { %v432_v20 = vld [vmem:[%s1751_s15 + $0x140] sm:$0xff]  ;;  %429 = vst [vmem:[%s1756_s16 + $0x90] sm:$0xff] %v428_v18  ;;  %431 = vst [vmem:[%s1756_s16 + $0x98] sm:$0xff] %v430_v19  ;;  %v434_v21 = vld [vmem:[%s1751_s15 + $0x150] sm:$0xff] }
  0x23   : > { %433 = vst [vmem:[%s1756_s16 + $0xa0] sm:$0xff] %v432_v20  ;;  %v436_v22 = vld [vmem:[%s1751_s15 + $0x160] sm:$0xff]  ;;  %v438_v23 = vld [vmem:[%s1751_s15 + $0x170] sm:$0xff]  ;;  %435 = vst [vmem:[%s1756_s16 + $0xa8] sm:$0xff] %v434_v21 }
  0x24   : > { %437 = vst [vmem:[%s1756_s16 + $0xb0] sm:$0xff] %v436_v22  ;;  %439 = vst [vmem:[%s1756_s16 + $0xb8] sm:$0xff] %v438_v23  ;;  %v440_v24 = vld [vmem:[%s1751_s15 + $0x180] sm:$0xff]  ;;  %v442_v25 = vld [vmem:[%s1751_s15 + $0x190] sm:$0xff] }
  0x25   : > { %v444_v26 = vld [vmem:[%s1751_s15 + $0x1a0] sm:$0xff]  ;;  %441 = vst [vmem:[%s1756_s16 + $0xc0] sm:$0xff] %v440_v24  ;;  %443 = vst [vmem:[%s1756_s16 + $0xc8] sm:$0xff] %v442_v25  ;;  %v446_v27 = vld [vmem:[%s1751_s15 + $0x1b0] sm:$0xff] }
  0x26   : > { %445 = vst [vmem:[%s1756_s16 + $0xd0] sm:$0xff] %v444_v26  ;;  %v448_v28 = vld [vmem:[%s1751_s15 + $0x1c0] sm:$0xff]  ;;  %v450_v29 = vld [vmem:[%s1751_s15 + $0x1d0] sm:$0xff]  ;;  %447 = vst [vmem:[%s1756_s16 + $0xd8] sm:$0xff] %v446_v27 }
  0x27   : > { %449 = vst [vmem:[%s1756_s16 + $0xe0] sm:$0xff] %v448_v28  ;;  %451 = vst [vmem:[%s1756_s16 + $0xe8] sm:$0xff] %v450_v29  ;;  %v452_v30 = vld [vmem:[%s1751_s15 + $0x1e0] sm:$0xff]  ;;  %v454_v31 = vld [vmem:[%s1751_s15 + $0x1f0] sm:$0xff] }
  0x28   : > { %v456_v32 = vld [vmem:[%s1751_s15 + $0x200] sm:$0xff]  ;;  %453 = vst [vmem:[%s1756_s16 + $0xf0] sm:$0xff] %v452_v30  ;;  %455 = vst [vmem:[%s1756_s16 + $0xf8] sm:$0xff] %v454_v31  ;;  %v458_v33 = vld [vmem:[%s1751_s15 + $0x210] sm:$0xff] }
  0x29   : > { %457 = vst [vmem:[%s1756_s16 + $0x100] sm:$0xff] %v456_v32  ;;  %v460_v34 = vld [vmem:[%s1751_s15 + $0x220] sm:$0xff]  ;;  %v462_v35 = vld [vmem:[%s1751_s15 + $0x230] sm:$0xff]  ;;  %459 = vst [vmem:[%s1756_s16 + $0x108] sm:$0xff] %v458_v33 }
  0x2a   : > { %461 = vst [vmem:[%s1756_s16 + $0x110] sm:$0xff] %v460_v34  ;;  %463 = vst [vmem:[%s1756_s16 + $0x118] sm:$0xff] %v462_v35  ;;  %v464_v36 = vld [vmem:[%s1751_s15 + $0x240] sm:$0xff]  ;;  %v466_v37 = vld [vmem:[%s1751_s15 + $0x250] sm:$0xff] }
  0x2b   : > { %v468_v38 = vld [vmem:[%s1751_s15 + $0x260] sm:$0xff]  ;;  %465 = vst [vmem:[%s1756_s16 + $0x120] sm:$0xff] %v464_v36  ;;  %467 = vst [vmem:[%s1756_s16 + $0x128] sm:$0xff] %v466_v37  ;;  %v470_v39 = vld [vmem:[%s1751_s15 + $0x270] sm:$0xff] }
  0x2c   : > { %469 = vst [vmem:[%s1756_s16 + $0x130] sm:$0xff] %v468_v38  ;;  %v472_v40 = vld [vmem:[%s1751_s15 + $0x280] sm:$0xff]  ;;  %v474_v41 = vld [vmem:[%s1751_s15 + $0x290] sm:$0xff]  ;;  %471 = vst [vmem:[%s1756_s16 + $0x138] sm:$0xff] %v470_v39 }
  0x2d   : > { %473 = vst [vmem:[%s1756_s16 + $0x140] sm:$0xff] %v472_v40  ;;  %475 = vst [vmem:[%s1756_s16 + $0x148] sm:$0xff] %v474_v41  ;;  %v476_v42 = vld [vmem:[%s1751_s15 + $0x2a0] sm:$0xff]  ;;  %v478_v43 = vld [vmem:[%s1751_s15 + $0x2b0] sm:$0xff] }
  0x2e   : > { %v480_v44 = vld [vmem:[%s1751_s15 + $0x2c0] sm:$0xff]  ;;  %477 = vst [vmem:[%s1756_s16 + $0x150] sm:$0xff] %v476_v42  ;;  %479 = vst [vmem:[%s1756_s16 + $0x158] sm:$0xff] %v478_v43  ;;  %v482_v45 = vld [vmem:[%s1751_s15 + $0x2d0] sm:$0xff] }
  0x2f   : > { %481 = vst [vmem:[%s1756_s16 + $0x160] sm:$0xff] %v480_v44  ;;  %v484_v46 = vld [vmem:[%s1751_s15 + $0x2e0] sm:$0xff]  ;;  %v486_v47 = vld [vmem:[%s1751_s15 + $0x2f0] sm:$0xff]  ;;  %483 = vst [vmem:[%s1756_s16 + $0x168] sm:$0xff] %v482_v45 }
  0x30   : > { %485 = vst [vmem:[%s1756_s16 + $0x170] sm:$0xff] %v484_v46  ;;  %487 = vst [vmem:[%s1756_s16 + $0x178] sm:$0xff] %v486_v47  ;;  %v488_v48 = vld [vmem:[%s1751_s15 + $0x300] sm:$0xff]  ;;  %v490_v49 = vld [vmem:[%s1751_s15 + $0x310] sm:$0xff] }
  0x31   : > { %v492_v50 = vld [vmem:[%s1751_s15 + $0x320] sm:$0xff]  ;;  %489 = vst [vmem:[%s1756_s16 + $0x180] sm:$0xff] %v488_v48  ;;  %491 = vst [vmem:[%s1756_s16 + $0x188] sm:$0xff] %v490_v49  ;;  %v494_v51 = vld [vmem:[%s1751_s15 + $0x330] sm:$0xff] }
  0x32   : > { %493 = vst [vmem:[%s1756_s16 + $0x190] sm:$0xff] %v492_v50  ;;  %v496_v52 = vld [vmem:[%s1751_s15 + $0x340] sm:$0xff]  ;;  %v498_v53 = vld [vmem:[%s1751_s15 + $0x350] sm:$0xff]  ;;  %495 = vst [vmem:[%s1756_s16 + $0x198] sm:$0xff] %v494_v51 }
  0x33   : > { %497 = vst [vmem:[%s1756_s16 + $0x1a0] sm:$0xff] %v496_v52  ;;  %499 = vst [vmem:[%s1756_s16 + $0x1a8] sm:$0xff] %v498_v53  ;;  %v500_v54 = vld [vmem:[%s1751_s15 + $0x360] sm:$0xff]  ;;  %v502_v55 = vld [vmem:[%s1751_s15 + $0x370] sm:$0xff] }
  0x34   : > { %v504_v56 = vld [vmem:[%s1751_s15 + $0x380] sm:$0xff]  ;;  %501 = vst [vmem:[%s1756_s16 + $0x1b0] sm:$0xff] %v500_v54  ;;  %503 = vst [vmem:[%s1756_s16 + $0x1b8] sm:$0xff] %v502_v55  ;;  %v506_v57 = vld [vmem:[%s1751_s15 + $0x390] sm:$0xff] }
  0x35   : > { %505 = vst [vmem:[%s1756_s16 + $0x1c0] sm:$0xff] %v504_v56  ;;  %v508_v58 = vld [vmem:[%s1751_s15 + $0x3a0] sm:$0xff]  ;;  %v510_v59 = vld [vmem:[%s1751_s15 + $0x3b0] sm:$0xff]  ;;  %507 = vst [vmem:[%s1756_s16 + $0x1c8] sm:$0xff] %v506_v57 }
  0x36   : > { %509 = vst [vmem:[%s1756_s16 + $0x1d0] sm:$0xff] %v508_v58  ;;  %511 = vst [vmem:[%s1756_s16 + $0x1d8] sm:$0xff] %v510_v59  ;;  %v512_v60 = vld [vmem:[%s1751_s15 + $0x3c0] sm:$0xff]  ;;  %v514_v61 = vld [vmem:[%s1751_s15 + $0x3d0] sm:$0xff] }
  0x37   : > { %v516_v62 = vld [vmem:[%s1751_s15 + $0x3e0] sm:$0xff]  ;;  %513 = vst [vmem:[%s1756_s16 + $0x1e0] sm:$0xff] %v512_v60  ;;  %515 = vst [vmem:[%s1756_s16 + $0x1e8] sm:$0xff] %v514_v61  ;;  %v518_v63 = vld [vmem:[%s1751_s15 + $0x3f0] sm:$0xff] }
  0x38   : > { %517 = vst [vmem:[%s1756_s16 + $0x1f0] sm:$0xff] %v516_v62  ;;  %519 = vst [vmem:[%s1756_s16 + $0x1f8] sm:$0xff] %v518_v63 }
  0x39 PF: > { %p1362_p7 = scmp.ge.s32.totalorder %s1658_s24, 1  ;;  %p553_p8 = scmp.lt.s32.totalorder %s1658_s24, 19 }
  0x3b   : > { %p554_p9 = pnand %p1362_p7, %p553_p8 }
  0x3c   : > { %s560_s17 = sand.u32 (!%p554_p9), 1, %s1634_s18   ;;  %s1364_s27 = sshll.u32 (!%p554_p9), %s1642_s20, 2 }
  0x3d   : > { %557 = sbr.rel (%p554_p9) target bundleno = 380 (0x17c), region = 74  ;;  %s1363_s28 = sshll.u32 (!%p554_p9), %s560_s17, 9 }
  0x3e   : > { %p620_p10 = scmp.lt.s32.totalorder (!%p554_p9), %s1364_s27, 35  ;;  %s1366_s29 = sshll.u32 (!%p554_p9), %s1646_s21, 1 }
  0x3f   : > { %p630_p11 = scmp.lt.s32.totalorder (!%p554_p9), %s1366_s29, 3  ;;  %s1914_s8 = scalar_lea.vmem (!%p554_p9), [#allocation3], %s1363_s28 }
  0x40   : > { %p1372_p12 = scmp.ne.s32.totalorder (!%p554_p9), %s1642_s20, 0 }
  0x44   : > { %s2036_s27 = smov (!%p620_p10, %s1364_s27), 35  ;;  %s2038_s29 = smov (!%p630_p11, %s1366_s29), 3 }
  0x45   : > { %s1365_s30 = sshll.u32 %s2036_s27, 2  ;;  %s632_s18 = scalar_lea.vmem %s2019_s2, %s2038_s29  ;;  %v1660_v0 = vmov (!%p1372_p12), 0.0  }
  0x46   : > { %s1891_s9 = scalar_lea.vmem %s2017_s0, %s1365_s30  ;;  %s637_s21 = scalar_lea.vmem %s2020_s3, %s2038_s29  ;;  %663 = vst [vmem:[#allocation2] sm:$0xff] (!%p1372_p12), %v1660_v0  ;;  %664 = vst [vmem:[#allocation2 + $0x8] sm:$0xff] (!%p1372_p12), %v1660_v0 }
  0x47   : > { %s1369_s14 = sshll.u32 %s2038_s29, 2  ;;  %662 = sbr.rel (%p1372_p12) target bundleno = 78 (0x4e), region = 82 }
  0x48   : > { %s1907_s17 = scalar_lea.vmem %s2021_s4, %s1369_s14  ;;  %s1912_s7 = scalar_lea.vmem %s2022_s5, %s1369_s14 }
  0x4e PF: > { %v1504_v1 = vld [vmem:[%s1914_s8 + $0x4] ss:$8 sps:$4 sm:$0xff]   ;;  %v1508_v3 = vld [vmem:[%s1914_s8] ss:$8 sps:$4 sm:$0xff]   ;;  %v1510_v5 = vld [vmem:[%s1914_s8 + $0x14] ss:$8 sps:$4 sm:$0xff]  }
  0x4f   : > { %v1506_v2 = vld [vmem:[%s1914_s8 + $0x104] ss:$8 sps:$4 sm:$0xff]   ;;  %1067 = vmatprep.subr.bf16.mxu0 %v1504_v1  ;;  %v1509_v4 = vld [vmem:[%s1914_s8 + $0x100] ss:$8 sps:$4 sm:$0xff]   ;;  %v1512_v6 = vld [vmem:[%s1914_s8 + $0x114] ss:$8 sps:$4 sm:$0xff]  }
  0x50   : > { %1108 = vmatprep.subr.bf16.mxu1 %v1506_v2  ;;  %1068 = vmatpush1.bf16.msra.mxu0 %v1508_v3  ;;  %v1514_v7 = vld [vmem:[%s1914_s8 + $0x10] ss:$8 sps:$4 sm:$0xff]   ;;  %v1516_v9 = vld [vmem:[%s1914_s8 + $0x24] ss:$8 sps:$4 sm:$0xff]   ;;  %v1520_v11 = vld [vmem:[%s1914_s8 + $0x20] ss:$8 sps:$4 sm:$0xff]  }
  0x51   : > { %1109 = vmatpush1.bf16.msra.mxu1 %v1509_v4  ;;  %1069 = vmatprep.subr.bf16.mxu0 %v1510_v5  ;;  %v1515_v8 = vld [vmem:[%s1914_s8 + $0x110] ss:$8 sps:$4 sm:$0xff]   ;;  %v1518_v10 = vld [vmem:[%s1914_s8 + $0x124] ss:$8 sps:$4 sm:$0xff]   ;;  %v1521_v12 = vld [vmem:[%s1914_s8 + $0x120] ss:$8 sps:$4 sm:$0xff]  }
  0x52   : > { %1110 = vmatprep.subr.bf16.mxu1 %v1512_v6  ;;  %v1522_v13 = vld [vmem:[%s1914_s8 + $0x34] ss:$8 sps:$4 sm:$0xff]   ;;  %v1526_v15 = vld [vmem:[%s1914_s8 + $0x30] ss:$8 sps:$4 sm:$0xff]   ;;  %v1528_v17 = vld [vmem:[%s1914_s8 + $0x44] ss:$8 sps:$4 sm:$0xff]  }
  0x53   : > { %v1524_v14 = vld [vmem:[%s1914_s8 + $0x134] ss:$8 sps:$4 sm:$0xff]   ;;  %v1527_v16 = vld [vmem:[%s1914_s8 + $0x130] ss:$8 sps:$4 sm:$0xff]   ;;  %v1530_v18 = vld [vmem:[%s1914_s8 + $0x144] ss:$8 sps:$4 sm:$0xff]  }
  0x54   : > { %1070 = vmatpush1.bf16.msra.mxu0 %v1514_v7  ;;  %v1532_v19 = vld [vmem:[%s1914_s8 + $0x40] ss:$8 sps:$4 sm:$0xff]   ;;  %v1534_v21 = vld [vmem:[%s1914_s8 + $0x54] ss:$8 sps:$4 sm:$0xff]   ;;  %v1538_v23 = vld [vmem:[%s1914_s8 + $0x50] ss:$8 sps:$4 sm:$0xff]  }
  0x55   : > { %1111 = vmatpush1.bf16.msra.mxu1 %v1515_v8  ;;  %1071 = vmatprep.subr.bf16.mxu0 %v1516_v9  ;;  %v1533_v20 = vld [vmem:[%s1914_s8 + $0x140] ss:$8 sps:$4 sm:$0xff]   ;;  %v1536_v22 = vld [vmem:[%s1914_s8 + $0x154] ss:$8 sps:$4 sm:$0xff]   ;;  %v1539_v24 = vld [vmem:[%s1914_s8 + $0x150] ss:$8 sps:$4 sm:$0xff]  }
  0x56   : > { %1112 = vmatprep.subr.bf16.mxu1 %v1518_v10  ;;  %v1540_v25 = vld [vmem:[%s1914_s8 + $0x64] ss:$8 sps:$4 sm:$0xff]   ;;  %v1544_v27 = vld [vmem:[%s1914_s8 + $0x60] ss:$8 sps:$4 sm:$0xff]   ;;  %v1546_v29 = vld [vmem:[%s1914_s8 + $0x74] ss:$8 sps:$4 sm:$0xff]  }
  0x57   : > { %v1542_v26 = vld [vmem:[%s1914_s8 + $0x164] ss:$8 sps:$4 sm:$0xff]   ;;  %v1545_v28 = vld [vmem:[%s1914_s8 + $0x160] ss:$8 sps:$4 sm:$0xff]   ;;  %v1548_v30 = vld [vmem:[%s1914_s8 + $0x174] ss:$8 sps:$4 sm:$0xff]  }
  0x58   : > { %1072 = vmatpush1.bf16.msra.mxu0 %v1520_v11  ;;  %v1550_v31 = vld [vmem:[%s1914_s8 + $0x70] ss:$8 sps:$4 sm:$0xff]   ;;  %v1552_v33 = vld [vmem:[%s1914_s8 + $0x84] ss:$8 sps:$4 sm:$0xff]   ;;  %v1556_v35 = vld [vmem:[%s1914_s8 + $0x80] ss:$8 sps:$4 sm:$0xff]  }
  0x59   : > { %1113 = vmatpush1.bf16.msra.mxu1 %v1521_v12  ;;  %1073 = vmatprep.subr.bf16.mxu0 %v1522_v13  ;;  %v1551_v32 = vld [vmem:[%s1914_s8 + $0x170] ss:$8 sps:$4 sm:$0xff]   ;;  %v1554_v34 = vld [vmem:[%s1914_s8 + $0x184] ss:$8 sps:$4 sm:$0xff]   ;;  %v1557_v36 = vld [vmem:[%s1914_s8 + $0x180] ss:$8 sps:$4 sm:$0xff]  }
  0x5a   : > { %1114 = vmatprep.subr.bf16.mxu1 %v1524_v14  ;;  %v1558_v37 = vld [vmem:[%s1914_s8 + $0x94] ss:$8 sps:$4 sm:$0xff]   ;;  %v1562_v39 = vld [vmem:[%s1914_s8 + $0x90] ss:$8 sps:$4 sm:$0xff]   ;;  %v1564_v41 = vld [vmem:[%s1914_s8 + $0xa4] ss:$8 sps:$4 sm:$0xff]  }
  0x5b   : > { %v1560_v38 = vld [vmem:[%s1914_s8 + $0x194] ss:$8 sps:$4 sm:$0xff]   ;;  %v1563_v40 = vld [vmem:[%s1914_s8 + $0x190] ss:$8 sps:$4 sm:$0xff]   ;;  %v1566_v42 = vld [vmem:[%s1914_s8 + $0x1a4] ss:$8 sps:$4 sm:$0xff]  }
  0x5c   : > { %1074 = vmatpush1.bf16.msra.mxu0 %v1526_v15  ;;  %v1568_v43 = vld [vmem:[%s1914_s8 + $0xa0] ss:$8 sps:$4 sm:$0xff]   ;;  %v1570_v45 = vld [vmem:[%s1914_s8 + $0xb4] ss:$8 sps:$4 sm:$0xff]   ;;  %v1574_v50 = vld [vmem:[%s1914_s8 + $0xb0] ss:$8 sps:$4 sm:$0xff]  }
  0x5d   : > { %1115 = vmatpush1.bf16.msra.mxu1 %v1527_v16  ;;  %1075 = vmatprep.subr.bf16.mxu0 %v1528_v17  ;;  %v1569_v44 = vld [vmem:[%s1914_s8 + $0x1a0] ss:$8 sps:$4 sm:$0xff]   ;;  %v1572_v46 = vld [vmem:[%s1914_s8 + $0x1b4] ss:$8 sps:$4 sm:$0xff]   ;;  %v1575_v51 = vld [vmem:[%s1914_s8 + $0x1b0] ss:$8 sps:$4 sm:$0xff]  }
  0x5e   : > { %1116 = vmatprep.subr.bf16.mxu1 %v1530_v18  ;;  %v667_v47 = vld [vmem:[%s1891_s9] sm:$0xff]  ;;  %v668_v49 = vld [vmem:[%s1891_s9 + $0x8] sm:$0xff]  ;;  %v1576_v53 = vld [vmem:[%s1914_s8 + $0xc4] ss:$8 sps:$4 sm:$0xff]   ;;  %p1441_p13 = scmp.ne.s32.totalorder %s1642_s20, 8 }
  0x5f   : > { %v1374_v48 = vcombine.high %v667_v47, %v667_v47  ;;  %v1376_v52 = vcombine.high %v668_v49, %v668_v49  ;;  %v1578_v54 = vld [vmem:[%s1914_s8 + $0x1c4] ss:$8 sps:$4 sm:$0xff]   ;;  %v1580_v55 = vld [vmem:[%s1914_s8 + $0xc0] ss:$8 sps:$4 sm:$0xff]   ;;  %v1582_v57 = vld [vmem:[%s1914_s8 + $0xd4] ss:$8 sps:$4 sm:$0xff]   ;;  %v1373_v5 = vcombine.low %v667_v47, %v667_v47  ;;  %v1375_v6 = vcombine.low %v668_v49, %v668_v49 }
  0x60   : > { %1076 = vmatpush1.bf16.msra.mxu0 %v1532_v19  ;;  %v1581_v56 = vld [vmem:[%s1914_s8 + $0x1c0] ss:$8 sps:$4 sm:$0xff]   ;;  %v1584_v58 = vld [vmem:[%s1914_s8 + $0x1d4] ss:$8 sps:$4 sm:$0xff]   ;;  %v1586_v59 = vld [vmem:[%s1914_s8 + $0xd0] ss:$8 sps:$4 sm:$0xff]  }
  0x61   : > { %1117 = vmatpush1.bf16.msra.mxu1 %v1533_v20  ;;  %1077 = vmatprep.subr.bf16.mxu0 %v1534_v21  ;;  %v1587_v60 = vld [vmem:[%s1914_s8 + $0x1d0] ss:$8 sps:$4 sm:$0xff]   ;;  %v1588_v61 = vld [vmem:[%s1914_s8 + $0xe4] ss:$8 sps:$4 sm:$0xff]   ;;  %v1592_v63 = vld [vmem:[%s1914_s8 + $0xe0] ss:$8 sps:$4 sm:$0xff]   ;;  %v1161_v21 = vlaneseq (!%p1441_p13) }
  0x62   : > { %1118 = vmatprep.subr.bf16.mxu1 %v1536_v22  ;;  %1099 = vmatprep.mubr.bf16.mxu0 %v1374_v48  ;;  %v1590_v62 = vld [vmem:[%s1914_s8 + $0x1e4] ss:$8 sps:$4 sm:$0xff]   ;;  %v1593_v0 = vld [vmem:[%s1914_s8 + $0x1e0] ss:$8 sps:$4 sm:$0xff]   ;;  %v1594_v1 = vld [vmem:[%s1914_s8 + $0xf4] ss:$8 sps:$4 sm:$0xff]  }
  0x63   : > { %1140 = vmatprep.mubr.bf16.mxu1 %v1376_v52  ;;  %v1596_v2 = vld [vmem:[%s1914_s8 + $0x1f4] ss:$8 sps:$4 sm:$0xff]   ;;  %v1598_v3 = vld [vmem:[%s1914_s8 + $0xf0] ss:$8 sps:$4 sm:$0xff]   ;;  %v1162_v22 = vshrl.u32 (!%p1441_p13), %v1161_v21, 7 }
  0x64   : > { %1078 = vmatpush1.bf16.msra.mxu0 %v1538_v23  ;;  %v1599_v4 = vld [vmem:[%s1914_s8 + $0x1f0] ss:$8 sps:$4 sm:$0xff]  }
  0x65   : > { %1119 = vmatpush1.bf16.msra.mxu1 %v1539_v24  ;;  %1079 = vmatprep.subr.bf16.mxu0 %v1540_v25  ;;  %v665_v8 = vld [vmem:[#allocation2] sm:$0xff]  ;;  %v666_v12 = vld [vmem:[#allocation2 + $0x8] sm:$0xff]  ;;  %v1163_v25 = vsub.s32 (!%p1441_p13), 0, %v1162_v22 }
  0x66   : > { %1120 = vmatprep.subr.bf16.mxu1 %v1542_v26  ;;  %v1159_v23 = vld [vmem:[%s632_s18] sm:$0x3] (!%p1441_p13)  ;;  %v1167_v26 = vsub.s32 (!%p1441_p13), 1, %v1162_v22 }
  0x67   : > { %v1173_v24 = vld [vmem:[%s637_s21] sm:$0x3] (!%p1441_p13) }
  0x68   : > { %1080 = vmatpush1.bf16.msra.mxu0 %v1544_v27 }
  0x69   : > { %1121 = vmatpush1.bf16.msra.mxu1 %v1545_v28  ;;  %1081 = vmatprep.subr.bf16.mxu0 %v1546_v29  ;;  %v1187_v29 = vld [vmem:[%s1907_s17] sm:$0xff] (!%p1441_p13) }
  0x6a   : > { %1122 = vmatprep.subr.bf16.mxu1 %v1548_v30  ;;  %v1164_v30 = vrot.slane (!%p1441_p13), %v1159_v23, %v1163_v25 }
  0x6c   : > { %1082 = vmatpush1.bf16.msra.mxu0 %v1550_v31  ;;  %v1168_v31 = vrot.slane (!%p1441_p13), %v1159_v23, %v1167_v26 }
  0x6d   : > { %1123 = vmatpush1.bf16.msra.mxu1 %v1551_v32  ;;  %1083 = vmatprep.subr.bf16.mxu0 %v1552_v33  ;;  %v1178_v32 = vrot.slane (!%p1441_p13), %v1173_v24, %v1163_v25  ;;  %v1182_v33 = vrot.slane (!%p1441_p13), %v1173_v24, %v1167_v26 }
  0x6e   : > { %1124 = vmatprep.subr.bf16.mxu1 %v1554_v34 }
  0x70   : > { %1084 = vmatpush1.bf16.msra.mxu0 %v1556_v35 }
  0x71   : > { %1125 = vmatpush1.bf16.msra.mxu1 %v1557_v36  ;;  %1085 = vmatprep.subr.bf16.mxu0 %v1558_v37  ;;  %v1188_v36 = vunpack.c.l.bf16 (!%p1441_p13), %v1187_v29  ;;  %v1189_v37 = vunpack.c.h.bf16 (!%p1441_p13), %v1187_v29 }
  0x72   : > { %1126 = vmatprep.subr.bf16.mxu1 %v1560_v38 }
  0x74   : > { %1086 = vmatpush1.bf16.msra.mxu0 %v1562_v39 }
  0x75   : > { %1127 = vmatpush1.bf16.msra.mxu1 %v1563_v40  ;;  %1087 = vmatprep.subr.bf16.mxu0 %v1564_v41 }
  0x76   : > { %1128 = vmatprep.subr.bf16.mxu1 %v1566_v42 }
  0x78   : > { %1088 = vmatpush1.bf16.msra.mxu0 %v1568_v43 }
  0x79   : > { %1129 = vmatpush1.bf16.msra.mxu1 %v1569_v44  ;;  %1089 = vmatprep.subr.bf16.mxu0 %v1570_v45 }
  0x7a   : > { %1130 = vmatprep.subr.bf16.mxu1 %v1572_v46 }
  0x7c   : > { %1090 = vmatpush1.bf16.msra.mxu0 %v1574_v50 }
  0x7d   : > { %1131 = vmatpush1.bf16.msra.mxu1 %v1575_v51  ;;  %1091 = vmatprep.subr.bf16.mxu0 %v1576_v53 }
  0x7e   : > { %1132 = vmatprep.subr.bf16.mxu1 %v1578_v54 }
  0x80   : > { %1092 = vmatpush1.bf16.msra.mxu0 %v1580_v55 }
  0x81   : > { %1133 = vmatpush1.bf16.msra.mxu1 %v1581_v56  ;;  %1093 = vmatprep.subr.bf16.mxu0 %v1582_v57 }
  0x82   : > { %1134 = vmatprep.subr.bf16.mxu1 %v1584_v58 }
  0x84   : > { %1094 = vmatpush1.bf16.msra.mxu0 %v1586_v59 }
  0x85   : > { %1135 = vmatpush1.bf16.msra.mxu1 %v1587_v60  ;;  %1095 = vmatprep.subr.bf16.mxu0 %v1588_v61 }
  0x86   : > { %1136 = vmatprep.subr.bf16.mxu1 %v1590_v62 }
  0x88   : > { %1096 = vmatpush1.bf16.msra.mxu0 %v1592_v63 }
  0x89   : > { %1137 = vmatpush1.bf16.msra.mxu1 %v1593_v0  ;;  %1097 = vmatprep.subr.bf16.mxu0 %v1594_v1 }
  0x8a   : > { %1138 = vmatprep.subr.bf16.mxu1 %v1596_v2 }
  0x8c   : > { %1098 = vmatpush1.bf16.msra.mxu0 %v1598_v3 }
  0x8d   : > { %1139 = vmatpush1.bf16.msra.mxu1 %v1599_v4 }
  0x8f   : > { %1100 = vmatmul.mubr.bf16.vlgmr.msra.gmra.mrb[0].mxu0 %v1373_v5 }
  0x90   : > { %1141 = vmatmul.mubr.bf16.vlgmr.msra.gmra.mrb[0].mxu1 %v1375_v6 }
 0x162   : > { %v1101_v7 = vpop.f32.mrb[0].mxu0 }
 0x163   : > { %v1142_v9 = vpop.f32.mrb[0].mxu1  ;;  %v1103_v11 = vpop.f32.mrb[1].mxu0  ;;  %1156 = sbr.rel (%p1441_p13) target bundleno = 380 (0x17c), region = 86 }
 0x164   : > { %v1143_v10 = vadd.f32 %v1142_v9, %v1101_v7  ;;  %v1144_v13 = vpop.f32.mrb[1].mxu1  ;;  %v1105_v15 = vpop.f32.mrb[2].mxu0 }
 0x165   : > { %v1145_v14 = vadd.f32 %v1144_v13, %v1103_v11  ;;  %v1146_v16 = vpop.f32.mrb[2].mxu1  ;;  %v1106_v18 = vpop.f32.mrb[3].mxu0 }
 0x166   : > { %v1149_v17 = vadd.f32 %v1143_v10, %v665_v8  ;;  %v1147_v19 = vpop.f32.mrb[3].mxu1 }
 0x167   : > { %v1150_v20 = vadd.f32 %v1145_v14, %v666_v12 }
 0x168   : > { %1151 = vst [vmem:[#allocation2] sm:$0xff] %v1149_v17 }
 0x169   : > { %1152 = vst [vmem:[#allocation2 + $0x8] sm:$0xff] %v1150_v20 }
 0x16f   : > { %v1157_v27 = vld [vmem:[#allocation2] sm:$0xff] }
 0x170   : > { %v1158_v28 = vld [vmem:[#allocation2 + $0x8] sm:$0xff]  ;;  %v1171_v34 = vmul.f32 %v1164_v30, %v1157_v27 }
 0x171   : > { %v1172_v35 = vmul.f32 %v1168_v31, %v1158_v28 }
 0x172   : > { %v1185_v38 = vadd.f32 %v1178_v32, %v1171_v34 }
 0x173   : > { %v1186_v39 = vadd.f32 %v1182_v33, %v1172_v35 }
 0x174   : > { %v1190_v40 = vadd.f32 %v1188_v36, %v1185_v38 }
 0x175   : > { %v1191_v41 = vadd.f32 %v1189_v37, %v1186_v39 }
 0x176   : > { %v1192_v42 = vmax.f32 %v1190_v40, 0.0 }
 0x177   : > { %v1193_v43 = vmax.f32 %v1191_v41, 0.0 }
 0x179   : > { %v1446_v44 = vpack.c.bf16 %v1193_v43, %v1192_v42 }
 0x17b   : > { %1202 = vst [vmem:[%s1912_s7] sm:$0xff] %v1446_v44 }
 0x17c PF: > { %s15_s24 = sadd.s32 1, %s1658_s24   ;;  %s2023_s18 = smov %s1638_s19 }
 0x17d   : > { %p12_p0 = scmp.ge.s32.totalorder %s15_s24, 20   ;;  %s2024_s19 = smov %s1742_s6 }
 0x17e   : > { %s2025_s20 = smov %s1650_s22  ;;  %s2026_s21 = smov %s1654_s23 }
 0x17f   : > { %s2027_s22 = smov %s2030_s25  ;;  %s2028_s23 = smov %s2034_s26 }
 0x180   :  { %14 = sbr.rel (!%p12_p0) target bundleno = 4 (0x4), region = 133 }

// kernel: _lambda_.39
= control target key start
LH: loop header
LB: loop body
LE: loop exit
PB: predicated region body
PF: predicated region fallthrough
CT: control target
= control target key end

     0   :  { %s1598_s15 = smov 0   ;;  %s1600_s16 = smov 0   ;;  %s1918_s0 = inlined_call_operand.vmem [shape: bf16[8,4608], index: 0, kind: input, shape index: {}]   ;;  %s1919_s1 = inlined_call_operand.vmem [shape: bf16[4608,512], index: 1, kind: input, shape index: {}]   ;;  %s1920_s2 = inlined_call_operand.vmem [shape: f32[1,512], index: 2, kind: input, shape index: {}]   ;;  %s1921_s3 = inlined_call_operand.vmem [shape: f32[1,512], index: 3, kind: input, shape index: {}]   ;;  %s1922_s4 = inlined_call_operand.vmem [shape: bf16[8,512], index: 4, kind: output, shape index: {}]  }
   0x1   :  { %s1602_s17 = smov 0   ;;  %s1604_s18 = smov 0  }
   0x2   :  { %s1606_s19 = smov 0   ;;  %s1608_s20 = smov 0  }
   0x3   :  { %s1610_s21 = smov 0  }
   0x4 LB: > { %s26_s22 = sadd.s32 1, %s1562_s19  ;;  %s29_s23 = sadd.s32 1, %s1566_s20  ;;  %s1570_s21 = sphi %s1610_s21, %s14_s21   ;;  %s1566_s20 = sphi %s1608_s20, %s1928_s20   ;;  %s1562_s19 = sphi %s1606_s19, %s1927_s19   ;;  %s1558_s18 = sphi %s1604_s18, %s1926_s18   ;;  %s1554_s17 = sphi %s1602_s17, %s1925_s17   ;;  %s1550_s16 = sphi %s1600_s16, %s1924_s16   ;;  %s1546_s15 = sphi %s1598_s15, %s1923_s15  }
   0x5   : > { %p27_p0 = scmp.ge.s32.totalorder %s26_s22, 9  ;;  %p77_p1 = scmp.ne.s32.totalorder %s1550_s16, %s1546_s15 }
   0x6   : > { %p78_p2 = scmp.eq.s32.totalorder %s1570_s21, 0  ;;  %s70_s27 = sadd.s32 1, %s1550_s16 }
   0x7   : > { %s1930_s22 = smov (%p27_p0, %s26_s22), 0  ;;  %s1932_s23 = smov (!%p27_p0, %s29_s23), %s1566_s20 }
   0x8   : > { %p79_p3 = por %p78_p2, %p77_p1  ;;  %p31_p4 = scmp.ge.s32.totalorder %s1932_s23, 2 }
   0x9   : > { %s65_s24 = ssub.s32 %s1562_s19, %s1930_s22  ;;  %p1270_p6 = scmp.ge.s32.totalorder %s1570_s21, 18 }
   0xa   : > { %s1934_s23 = smov (%p31_p4, %s1932_s23), 0 }
   0xb   : > { %s66_s25 = ssub.s32 %s1566_s20, %s1934_s23  ;;  %183 = sbr.rel (%p1270_p6) target bundleno = 57 (0x39), region = 16 }
   0xc   : > { %s67_s26 = sor.u32 %s66_s25, %s65_s24 }
   0xd   : > { %p68_p5 = scmp.eq.s32.totalorder %s67_s26, 0 }
   0xf   : > { %s1649_s28 = scalar_select %p68_p5, %s1550_s16, %s70_s27  }
  0x12   : > { %199 = sbr.rel (!%p79_p3) target bundleno = 57 (0x39), region = 24  ;;  %s201_s29 = sand.u32 (%p79_p3), 1, %s1550_s16  }
  0x13   : > { %s1273_s30 = sshll.u32 (%p79_p3), %s1566_s20, 1  ;;  %s1271_s5 = sshll.u32 (%p79_p3), %s201_s29, 9 }
  0x14   : > { %s1357_s6 = sshll.u32 (%p79_p3), %s1562_s19, 8  ;;  %s1663_s12 = scalar_lea.vmem (%p79_p3), [#allocation3], %s1271_s5 }
  0x15   : > { %s207_s7 = sadd.s32 (%p79_p3), %s1357_s6, %s1273_s30 }
  0x16   : > { %s1275_s8 = sshll.u32 (%p79_p3), %s207_s7, 2 }
  0x17   : > { %s1658_s11 = scalar_lea.vmem (%p79_p3), %s1919_s1, %s1275_s8 }
  0x18   : > { %v363_v0 = vld [vmem:[%s1658_s11] sm:$0xff] (%p79_p3)  ;;  %v365_v1 = vld [vmem:[%s1658_s11 + $0x10] sm:$0xff] (%p79_p3) }
  0x19   : > { %v367_v2 = vld [vmem:[%s1658_s11 + $0x20] sm:$0xff]  ;;  %364 = vst [vmem:[%s1663_s12] sm:$0xff] %v363_v0  ;;  %366 = vst [vmem:[%s1663_s12 + $0x8] sm:$0xff] %v365_v1  ;;  %v369_v3 = vld [vmem:[%s1658_s11 + $0x30] sm:$0xff] }
  0x1a   : > { %368 = vst [vmem:[%s1663_s12 + $0x10] sm:$0xff] %v367_v2  ;;  %v371_v4 = vld [vmem:[%s1658_s11 + $0x40] sm:$0xff]  ;;  %v373_v5 = vld [vmem:[%s1658_s11 + $0x50] sm:$0xff]  ;;  %370 = vst [vmem:[%s1663_s12 + $0x18] sm:$0xff] %v369_v3 }
  0x1b   : > { %372 = vst [vmem:[%s1663_s12 + $0x20] sm:$0xff] %v371_v4  ;;  %374 = vst [vmem:[%s1663_s12 + $0x28] sm:$0xff] %v373_v5  ;;  %v375_v6 = vld [vmem:[%s1658_s11 + $0x60] sm:$0xff]  ;;  %v377_v7 = vld [vmem:[%s1658_s11 + $0x70] sm:$0xff] }
  0x1c   : > { %v379_v8 = vld [vmem:[%s1658_s11 + $0x80] sm:$0xff]  ;;  %376 = vst [vmem:[%s1663_s12 + $0x30] sm:$0xff] %v375_v6  ;;  %378 = vst [vmem:[%s1663_s12 + $0x38] sm:$0xff] %v377_v7  ;;  %v381_v9 = vld [vmem:[%s1658_s11 + $0x90] sm:$0xff] }
  0x1d   : > { %380 = vst [vmem:[%s1663_s12 + $0x40] sm:$0xff] %v379_v8  ;;  %v383_v10 = vld [vmem:[%s1658_s11 + $0xa0] sm:$0xff]  ;;  %v385_v11 = vld [vmem:[%s1658_s11 + $0xb0] sm:$0xff]  ;;  %382 = vst [vmem:[%s1663_s12 + $0x48] sm:$0xff] %v381_v9 }
  0x1e   : > { %384 = vst [vmem:[%s1663_s12 + $0x50] sm:$0xff] %v383_v10  ;;  %386 = vst [vmem:[%s1663_s12 + $0x58] sm:$0xff] %v385_v11  ;;  %v387_v12 = vld [vmem:[%s1658_s11 + $0xc0] sm:$0xff]  ;;  %v389_v13 = vld [vmem:[%s1658_s11 + $0xd0] sm:$0xff] }
  0x1f   : > { %v391_v14 = vld [vmem:[%s1658_s11 + $0xe0] sm:$0xff]  ;;  %388 = vst [vmem:[%s1663_s12 + $0x60] sm:$0xff] %v387_v12  ;;  %390 = vst [vmem:[%s1663_s12 + $0x68] sm:$0xff] %v389_v13  ;;  %v393_v15 = vld [vmem:[%s1658_s11 + $0xf0] sm:$0xff] }
  0x20   : > { %392 = vst [vmem:[%s1663_s12 + $0x70] sm:$0xff] %v391_v14  ;;  %v395_v16 = vld [vmem:[%s1658_s11 + $0x100] sm:$0xff]  ;;  %v397_v17 = vld [vmem:[%s1658_s11 + $0x110] sm:$0xff]  ;;  %394 = vst [vmem:[%s1663_s12 + $0x78] sm:$0xff] %v393_v15 }
  0x21   : > { %396 = vst [vmem:[%s1663_s12 + $0x80] sm:$0xff] %v395_v16  ;;  %398 = vst [vmem:[%s1663_s12 + $0x88] sm:$0xff] %v397_v17  ;;  %v399_v18 = vld [vmem:[%s1658_s11 + $0x120] sm:$0xff]  ;;  %v401_v19 = vld [vmem:[%s1658_s11 + $0x130] sm:$0xff] }
  0x22   : > { %v403_v20 = vld [vmem:[%s1658_s11 + $0x140] sm:$0xff]  ;;  %400 = vst [vmem:[%s1663_s12 + $0x90] sm:$0xff] %v399_v18  ;;  %402 = vst [vmem:[%s1663_s12 + $0x98] sm:$0xff] %v401_v19  ;;  %v405_v21 = vld [vmem:[%s1658_s11 + $0x150] sm:$0xff] }
  0x23   : > { %404 = vst [vmem:[%s1663_s12 + $0xa0] sm:$0xff] %v403_v20  ;;  %v407_v22 = vld [vmem:[%s1658_s11 + $0x160] sm:$0xff]  ;;  %v409_v23 = vld [vmem:[%s1658_s11 + $0x170] sm:$0xff]  ;;  %406 = vst [vmem:[%s1663_s12 + $0xa8] sm:$0xff] %v405_v21 }
  0x24   : > { %408 = vst [vmem:[%s1663_s12 + $0xb0] sm:$0xff] %v407_v22  ;;  %410 = vst [vmem:[%s1663_s12 + $0xb8] sm:$0xff] %v409_v23  ;;  %v411_v24 = vld [vmem:[%s1658_s11 + $0x180] sm:$0xff]  ;;  %v413_v25 = vld [vmem:[%s1658_s11 + $0x190] sm:$0xff] }
  0x25   : > { %v415_v26 = vld [vmem:[%s1658_s11 + $0x1a0] sm:$0xff]  ;;  %412 = vst [vmem:[%s1663_s12 + $0xc0] sm:$0xff] %v411_v24  ;;  %414 = vst [vmem:[%s1663_s12 + $0xc8] sm:$0xff] %v413_v25  ;;  %v417_v27 = vld [vmem:[%s1658_s11 + $0x1b0] sm:$0xff] }
  0x26   : > { %416 = vst [vmem:[%s1663_s12 + $0xd0] sm:$0xff] %v415_v26  ;;  %v419_v28 = vld [vmem:[%s1658_s11 + $0x1c0] sm:$0xff]  ;;  %v421_v29 = vld [vmem:[%s1658_s11 + $0x1d0] sm:$0xff]  ;;  %418 = vst [vmem:[%s1663_s12 + $0xd8] sm:$0xff] %v417_v27 }
  0x27   : > { %420 = vst [vmem:[%s1663_s12 + $0xe0] sm:$0xff] %v419_v28  ;;  %422 = vst [vmem:[%s1663_s12 + $0xe8] sm:$0xff] %v421_v29  ;;  %v423_v30 = vld [vmem:[%s1658_s11 + $0x1e0] sm:$0xff]  ;;  %v425_v31 = vld [vmem:[%s1658_s11 + $0x1f0] sm:$0xff] }
  0x28   : > { %v427_v32 = vld [vmem:[%s1658_s11 + $0x200] sm:$0xff]  ;;  %424 = vst [vmem:[%s1663_s12 + $0xf0] sm:$0xff] %v423_v30  ;;  %426 = vst [vmem:[%s1663_s12 + $0xf8] sm:$0xff] %v425_v31  ;;  %v429_v33 = vld [vmem:[%s1658_s11 + $0x210] sm:$0xff] }
  0x29   : > { %428 = vst [vmem:[%s1663_s12 + $0x100] sm:$0xff] %v427_v32  ;;  %v431_v34 = vld [vmem:[%s1658_s11 + $0x220] sm:$0xff]  ;;  %v433_v35 = vld [vmem:[%s1658_s11 + $0x230] sm:$0xff]  ;;  %430 = vst [vmem:[%s1663_s12 + $0x108] sm:$0xff] %v429_v33 }
  0x2a   : > { %432 = vst [vmem:[%s1663_s12 + $0x110] sm:$0xff] %v431_v34  ;;  %434 = vst [vmem:[%s1663_s12 + $0x118] sm:$0xff] %v433_v35  ;;  %v435_v36 = vld [vmem:[%s1658_s11 + $0x240] sm:$0xff]  ;;  %v437_v37 = vld [vmem:[%s1658_s11 + $0x250] sm:$0xff] }
  0x2b   : > { %v439_v38 = vld [vmem:[%s1658_s11 + $0x260] sm:$0xff]  ;;  %436 = vst [vmem:[%s1663_s12 + $0x120] sm:$0xff] %v435_v36  ;;  %438 = vst [vmem:[%s1663_s12 + $0x128] sm:$0xff] %v437_v37  ;;  %v441_v39 = vld [vmem:[%s1658_s11 + $0x270] sm:$0xff] }
  0x2c   : > { %440 = vst [vmem:[%s1663_s12 + $0x130] sm:$0xff] %v439_v38  ;;  %v443_v40 = vld [vmem:[%s1658_s11 + $0x280] sm:$0xff]  ;;  %v445_v41 = vld [vmem:[%s1658_s11 + $0x290] sm:$0xff]  ;;  %442 = vst [vmem:[%s1663_s12 + $0x138] sm:$0xff] %v441_v39 }
  0x2d   : > { %444 = vst [vmem:[%s1663_s12 + $0x140] sm:$0xff] %v443_v40  ;;  %446 = vst [vmem:[%s1663_s12 + $0x148] sm:$0xff] %v445_v41  ;;  %v447_v42 = vld [vmem:[%s1658_s11 + $0x2a0] sm:$0xff]  ;;  %v449_v43 = vld [vmem:[%s1658_s11 + $0x2b0] sm:$0xff] }
  0x2e   : > { %v451_v44 = vld [vmem:[%s1658_s11 + $0x2c0] sm:$0xff]  ;;  %448 = vst [vmem:[%s1663_s12 + $0x150] sm:$0xff] %v447_v42  ;;  %450 = vst [vmem:[%s1663_s12 + $0x158] sm:$0xff] %v449_v43  ;;  %v453_v45 = vld [vmem:[%s1658_s11 + $0x2d0] sm:$0xff] }
  0x2f   : > { %452 = vst [vmem:[%s1663_s12 + $0x160] sm:$0xff] %v451_v44  ;;  %v455_v46 = vld [vmem:[%s1658_s11 + $0x2e0] sm:$0xff]  ;;  %v457_v47 = vld [vmem:[%s1658_s11 + $0x2f0] sm:$0xff]  ;;  %454 = vst [vmem:[%s1663_s12 + $0x168] sm:$0xff] %v453_v45 }
  0x30   : > { %456 = vst [vmem:[%s1663_s12 + $0x170] sm:$0xff] %v455_v46  ;;  %458 = vst [vmem:[%s1663_s12 + $0x178] sm:$0xff] %v457_v47  ;;  %v459_v48 = vld [vmem:[%s1658_s11 + $0x300] sm:$0xff]  ;;  %v461_v49 = vld [vmem:[%s1658_s11 + $0x310] sm:$0xff] }
  0x31   : > { %v463_v50 = vld [vmem:[%s1658_s11 + $0x320] sm:$0xff]  ;;  %460 = vst [vmem:[%s1663_s12 + $0x180] sm:$0xff] %v459_v48  ;;  %462 = vst [vmem:[%s1663_s12 + $0x188] sm:$0xff] %v461_v49  ;;  %v465_v51 = vld [vmem:[%s1658_s11 + $0x330] sm:$0xff] }
  0x32   : > { %464 = vst [vmem:[%s1663_s12 + $0x190] sm:$0xff] %v463_v50  ;;  %v467_v52 = vld [vmem:[%s1658_s11 + $0x340] sm:$0xff]  ;;  %v469_v53 = vld [vmem:[%s1658_s11 + $0x350] sm:$0xff]  ;;  %466 = vst [vmem:[%s1663_s12 + $0x198] sm:$0xff] %v465_v51 }
  0x33   : > { %468 = vst [vmem:[%s1663_s12 + $0x1a0] sm:$0xff] %v467_v52  ;;  %470 = vst [vmem:[%s1663_s12 + $0x1a8] sm:$0xff] %v469_v53  ;;  %v471_v54 = vld [vmem:[%s1658_s11 + $0x360] sm:$0xff]  ;;  %v473_v55 = vld [vmem:[%s1658_s11 + $0x370] sm:$0xff] }
  0x34   : > { %v475_v56 = vld [vmem:[%s1658_s11 + $0x380] sm:$0xff]  ;;  %472 = vst [vmem:[%s1663_s12 + $0x1b0] sm:$0xff] %v471_v54  ;;  %474 = vst [vmem:[%s1663_s12 + $0x1b8] sm:$0xff] %v473_v55  ;;  %v477_v57 = vld [vmem:[%s1658_s11 + $0x390] sm:$0xff] }
  0x35   : > { %476 = vst [vmem:[%s1663_s12 + $0x1c0] sm:$0xff] %v475_v56  ;;  %v479_v58 = vld [vmem:[%s1658_s11 + $0x3a0] sm:$0xff]  ;;  %v481_v59 = vld [vmem:[%s1658_s11 + $0x3b0] sm:$0xff]  ;;  %478 = vst [vmem:[%s1663_s12 + $0x1c8] sm:$0xff] %v477_v57 }
  0x36   : > { %480 = vst [vmem:[%s1663_s12 + $0x1d0] sm:$0xff] %v479_v58  ;;  %482 = vst [vmem:[%s1663_s12 + $0x1d8] sm:$0xff] %v481_v59  ;;  %v483_v60 = vld [vmem:[%s1658_s11 + $0x3c0] sm:$0xff]  ;;  %v485_v61 = vld [vmem:[%s1658_s11 + $0x3d0] sm:$0xff] }
  0x37   : > { %v487_v62 = vld [vmem:[%s1658_s11 + $0x3e0] sm:$0xff]  ;;  %484 = vst [vmem:[%s1663_s12 + $0x1e0] sm:$0xff] %v483_v60  ;;  %486 = vst [vmem:[%s1663_s12 + $0x1e8] sm:$0xff] %v485_v61  ;;  %v489_v63 = vld [vmem:[%s1658_s11 + $0x3f0] sm:$0xff] }
  0x38   : > { %488 = vst [vmem:[%s1663_s12 + $0x1f0] sm:$0xff] %v487_v62  ;;  %490 = vst [vmem:[%s1663_s12 + $0x1f8] sm:$0xff] %v489_v63 }
  0x39 PF: > { %p1276_p7 = scmp.ge.s32.totalorder %s1570_s21, 1  ;;  %p511_p8 = scmp.lt.s32.totalorder %s1570_s21, 19 }
  0x3b   : > { %p512_p9 = pnand %p1276_p7, %p511_p8 }
  0x3c   : > { %s518_s13 = sand.u32 (!%p512_p9), 1, %s1546_s15   ;;  %s1278_s14 = sshll.u32 (!%p512_p9), %s1554_s17, 2 }
  0x3d   : > { %515 = sbr.rel (%p512_p9) target bundleno = 378 (0x17a), region = 70  ;;  %s1277_s24 = sshll.u32 (!%p512_p9), %s518_s13, 9 }
  0x3e   : > { %p567_p10 = scmp.lt.s32.totalorder (!%p512_p9), %s1278_s14, 35  ;;  %s1280_s25 = sshll.u32 (!%p512_p9), %s1558_s18, 1 }
  0x3f   : > { %p577_p11 = scmp.lt.s32.totalorder (!%p512_p9), %s1280_s25, 3  ;;  %s1816_s13 = scalar_lea.vmem (!%p512_p9), [#allocation3], %s1277_s24 }
  0x40   : > { %p1284_p12 = scmp.ne.s32.totalorder (!%p512_p9), %s1554_s17, 0 }
  0x44   : > { %s1936_s14 = smov (!%p567_p10, %s1278_s14), 35  ;;  %s1938_s25 = smov (!%p577_p11, %s1280_s25), 3 }
  0x45   : > { %s1279_s26 = sshll.u32 %s1936_s14, 2  ;;  %s579_s15 = scalar_lea.vmem %s1920_s2, %s1938_s25  ;;  %v1572_v0 = vmov (!%p1284_p12), 0.0  }
  0x46   : > { %s1798_s30 = scalar_lea.vmem %s1918_s0, %s1279_s26  ;;  %s584_s18 = scalar_lea.vmem %s1921_s3, %s1938_s25  ;;  %600 = vst [vmem:[#allocation2] sm:$0xff] (!%p1284_p12), %v1572_v0  ;;  %601 = vst [vmem:[#allocation2 + $0x8] sm:$0xff] (!%p1284_p12), %v1572_v0 }
  0x47   : > { %s1283_s9 = sshll.u32 %s1938_s25, 2  ;;  %599 = sbr.rel (%p1284_p12) target bundleno = 78 (0x4e), region = 78 }
  0x48   : > { %s1814_s12 = scalar_lea.vmem %s1922_s4, %s1283_s9 }
  0x4e PF: > { %v1416_v1 = vld [vmem:[%s1816_s13 + $0x4] ss:$8 sps:$4 sm:$0xff]   ;;  %v1420_v3 = vld [vmem:[%s1816_s13] ss:$8 sps:$4 sm:$0xff]   ;;  %v1422_v5 = vld [vmem:[%s1816_s13 + $0x14] ss:$8 sps:$4 sm:$0xff]  }
  0x4f   : > { %v1418_v2 = vld [vmem:[%s1816_s13 + $0x104] ss:$8 sps:$4 sm:$0xff]   ;;  %1004 = vmatprep.subr.bf16.mxu0 %v1416_v1  ;;  %v1421_v4 = vld [vmem:[%s1816_s13 + $0x100] ss:$8 sps:$4 sm:$0xff]   ;;  %v1424_v6 = vld [vmem:[%s1816_s13 + $0x114] ss:$8 sps:$4 sm:$0xff]  }
  0x50   : > { %1045 = vmatprep.subr.bf16.mxu1 %v1418_v2  ;;  %1005 = vmatpush1.bf16.msra.mxu0 %v1420_v3  ;;  %v1426_v7 = vld [vmem:[%s1816_s13 + $0x10] ss:$8 sps:$4 sm:$0xff]   ;;  %v1428_v9 = vld [vmem:[%s1816_s13 + $0x24] ss:$8 sps:$4 sm:$0xff]   ;;  %v1432_v11 = vld [vmem:[%s1816_s13 + $0x20] ss:$8 sps:$4 sm:$0xff]  }
  0x51   : > { %1046 = vmatpush1.bf16.msra.mxu1 %v1421_v4  ;;  %1006 = vmatprep.subr.bf16.mxu0 %v1422_v5  ;;  %v1427_v8 = vld [vmem:[%s1816_s13 + $0x110] ss:$8 sps:$4 sm:$0xff]   ;;  %v1430_v10 = vld [vmem:[%s1816_s13 + $0x124] ss:$8 sps:$4 sm:$0xff]   ;;  %v1433_v12 = vld [vmem:[%s1816_s13 + $0x120] ss:$8 sps:$4 sm:$0xff]  }
  0x52   : > { %1047 = vmatprep.subr.bf16.mxu1 %v1424_v6  ;;  %v1434_v13 = vld [vmem:[%s1816_s13 + $0x34] ss:$8 sps:$4 sm:$0xff]   ;;  %v1438_v15 = vld [vmem:[%s1816_s13 + $0x30] ss:$8 sps:$4 sm:$0xff]   ;;  %v1440_v17 = vld [vmem:[%s1816_s13 + $0x44] ss:$8 sps:$4 sm:$0xff]  }
  0x53   : > { %v1436_v14 = vld [vmem:[%s1816_s13 + $0x134] ss:$8 sps:$4 sm:$0xff]   ;;  %v1439_v16 = vld [vmem:[%s1816_s13 + $0x130] ss:$8 sps:$4 sm:$0xff]   ;;  %v1442_v18 = vld [vmem:[%s1816_s13 + $0x144] ss:$8 sps:$4 sm:$0xff]  }
  0x54   : > { %1007 = vmatpush1.bf16.msra.mxu0 %v1426_v7  ;;  %v1444_v19 = vld [vmem:[%s1816_s13 + $0x40] ss:$8 sps:$4 sm:$0xff]   ;;  %v1446_v21 = vld [vmem:[%s1816_s13 + $0x54] ss:$8 sps:$4 sm:$0xff]   ;;  %v1450_v23 = vld [vmem:[%s1816_s13 + $0x50] ss:$8 sps:$4 sm:$0xff]  }
  0x55   : > { %1048 = vmatpush1.bf16.msra.mxu1 %v1427_v8  ;;  %1008 = vmatprep.subr.bf16.mxu0 %v1428_v9  ;;  %v1445_v20 = vld [vmem:[%s1816_s13 + $0x140] ss:$8 sps:$4 sm:$0xff]   ;;  %v1448_v22 = vld [vmem:[%s1816_s13 + $0x154] ss:$8 sps:$4 sm:$0xff]   ;;  %v1451_v24 = vld [vmem:[%s1816_s13 + $0x150] ss:$8 sps:$4 sm:$0xff]  }
  0x56   : > { %1049 = vmatprep.subr.bf16.mxu1 %v1430_v10  ;;  %v1452_v25 = vld [vmem:[%s1816_s13 + $0x64] ss:$8 sps:$4 sm:$0xff]   ;;  %v1456_v27 = vld [vmem:[%s1816_s13 + $0x60] ss:$8 sps:$4 sm:$0xff]   ;;  %v1458_v29 = vld [vmem:[%s1816_s13 + $0x74] ss:$8 sps:$4 sm:$0xff]  }
  0x57   : > { %v1454_v26 = vld [vmem:[%s1816_s13 + $0x164] ss:$8 sps:$4 sm:$0xff]   ;;  %v1457_v28 = vld [vmem:[%s1816_s13 + $0x160] ss:$8 sps:$4 sm:$0xff]   ;;  %v1460_v30 = vld [vmem:[%s1816_s13 + $0x174] ss:$8 sps:$4 sm:$0xff]  }
  0x58   : > { %1009 = vmatpush1.bf16.msra.mxu0 %v1432_v11  ;;  %v1462_v31 = vld [vmem:[%s1816_s13 + $0x70] ss:$8 sps:$4 sm:$0xff]   ;;  %v1464_v33 = vld [vmem:[%s1816_s13 + $0x84] ss:$8 sps:$4 sm:$0xff]   ;;  %v1468_v35 = vld [vmem:[%s1816_s13 + $0x80] ss:$8 sps:$4 sm:$0xff]  }
  0x59   : > { %1050 = vmatpush1.bf16.msra.mxu1 %v1433_v12  ;;  %1010 = vmatprep.subr.bf16.mxu0 %v1434_v13  ;;  %v1463_v32 = vld [vmem:[%s1816_s13 + $0x170] ss:$8 sps:$4 sm:$0xff]   ;;  %v1466_v34 = vld [vmem:[%s1816_s13 + $0x184] ss:$8 sps:$4 sm:$0xff]   ;;  %v1469_v36 = vld [vmem:[%s1816_s13 + $0x180] ss:$8 sps:$4 sm:$0xff]  }
  0x5a   : > { %1051 = vmatprep.subr.bf16.mxu1 %v1436_v14  ;;  %v1470_v37 = vld [vmem:[%s1816_s13 + $0x94] ss:$8 sps:$4 sm:$0xff]   ;;  %v1474_v39 = vld [vmem:[%s1816_s13 + $0x90] ss:$8 sps:$4 sm:$0xff]   ;;  %v1476_v41 = vld [vmem:[%s1816_s13 + $0xa4] ss:$8 sps:$4 sm:$0xff]  }
  0x5b   : > { %v1472_v38 = vld [vmem:[%s1816_s13 + $0x194] ss:$8 sps:$4 sm:$0xff]   ;;  %v1475_v40 = vld [vmem:[%s1816_s13 + $0x190] ss:$8 sps:$4 sm:$0xff]   ;;  %v1478_v42 = vld [vmem:[%s1816_s13 + $0x1a4] ss:$8 sps:$4 sm:$0xff]  }
  0x5c   : > { %1011 = vmatpush1.bf16.msra.mxu0 %v1438_v15  ;;  %v1480_v43 = vld [vmem:[%s1816_s13 + $0xa0] ss:$8 sps:$4 sm:$0xff]   ;;  %v1482_v45 = vld [vmem:[%s1816_s13 + $0xb4] ss:$8 sps:$4 sm:$0xff]   ;;  %v1486_v50 = vld [vmem:[%s1816_s13 + $0xb0] ss:$8 sps:$4 sm:$0xff]  }
  0x5d   : > { %1052 = vmatpush1.bf16.msra.mxu1 %v1439_v16  ;;  %1012 = vmatprep.subr.bf16.mxu0 %v1440_v17  ;;  %v1481_v44 = vld [vmem:[%s1816_s13 + $0x1a0] ss:$8 sps:$4 sm:$0xff]   ;;  %v1484_v46 = vld [vmem:[%s1816_s13 + $0x1b4] ss:$8 sps:$4 sm:$0xff]   ;;  %v1487_v51 = vld [vmem:[%s1816_s13 + $0x1b0] ss:$8 sps:$4 sm:$0xff]  }
  0x5e   : > { %1053 = vmatprep.subr.bf16.mxu1 %v1442_v18  ;;  %v604_v47 = vld [vmem:[%s1798_s30] sm:$0xff]  ;;  %v605_v49 = vld [vmem:[%s1798_s30 + $0x8] sm:$0xff]  ;;  %v1488_v53 = vld [vmem:[%s1816_s13 + $0xc4] ss:$8 sps:$4 sm:$0xff]   ;;  %p1353_p13 = scmp.ne.s32.totalorder %s1554_s17, 8 }
  0x5f   : > { %v1286_v48 = vcombine.high %v604_v47, %v604_v47  ;;  %v1288_v52 = vcombine.high %v605_v49, %v605_v49  ;;  %v1490_v54 = vld [vmem:[%s1816_s13 + $0x1c4] ss:$8 sps:$4 sm:$0xff]   ;;  %v1492_v55 = vld [vmem:[%s1816_s13 + $0xc0] ss:$8 sps:$4 sm:$0xff]   ;;  %v1494_v57 = vld [vmem:[%s1816_s13 + $0xd4] ss:$8 sps:$4 sm:$0xff]   ;;  %v1285_v5 = vcombine.low %v604_v47, %v604_v47  ;;  %v1287_v6 = vcombine.low %v605_v49, %v605_v49 }
  0x60   : > { %1013 = vmatpush1.bf16.msra.mxu0 %v1444_v19  ;;  %v1493_v56 = vld [vmem:[%s1816_s13 + $0x1c0] ss:$8 sps:$4 sm:$0xff]   ;;  %v1496_v58 = vld [vmem:[%s1816_s13 + $0x1d4] ss:$8 sps:$4 sm:$0xff]   ;;  %v1498_v59 = vld [vmem:[%s1816_s13 + $0xd0] ss:$8 sps:$4 sm:$0xff]  }
  0x61   : > { %1054 = vmatpush1.bf16.msra.mxu1 %v1445_v20  ;;  %1014 = vmatprep.subr.bf16.mxu0 %v1446_v21  ;;  %v1499_v60 = vld [vmem:[%s1816_s13 + $0x1d0] ss:$8 sps:$4 sm:$0xff]   ;;  %v1500_v61 = vld [vmem:[%s1816_s13 + $0xe4] ss:$8 sps:$4 sm:$0xff]   ;;  %v1504_v63 = vld [vmem:[%s1816_s13 + $0xe0] ss:$8 sps:$4 sm:$0xff]   ;;  %v1098_v21 = vlaneseq (!%p1353_p13) }
  0x62   : > { %1055 = vmatprep.subr.bf16.mxu1 %v1448_v22  ;;  %1036 = vmatprep.mubr.bf16.mxu0 %v1286_v48  ;;  %v1502_v62 = vld [vmem:[%s1816_s13 + $0x1e4] ss:$8 sps:$4 sm:$0xff]   ;;  %v1505_v0 = vld [vmem:[%s1816_s13 + $0x1e0] ss:$8 sps:$4 sm:$0xff]   ;;  %v1506_v1 = vld [vmem:[%s1816_s13 + $0xf4] ss:$8 sps:$4 sm:$0xff]  }
  0x63   : > { %1077 = vmatprep.mubr.bf16.mxu1 %v1288_v52  ;;  %v1508_v2 = vld [vmem:[%s1816_s13 + $0x1f4] ss:$8 sps:$4 sm:$0xff]   ;;  %v1510_v3 = vld [vmem:[%s1816_s13 + $0xf0] ss:$8 sps:$4 sm:$0xff]   ;;  %v1099_v22 = vshrl.u32 (!%p1353_p13), %v1098_v21, 7 }
  0x64   : > { %1015 = vmatpush1.bf16.msra.mxu0 %v1450_v23  ;;  %v1511_v4 = vld [vmem:[%s1816_s13 + $0x1f0] ss:$8 sps:$4 sm:$0xff]  }
  0x65   : > { %1056 = vmatpush1.bf16.msra.mxu1 %v1451_v24  ;;  %1016 = vmatprep.subr.bf16.mxu0 %v1452_v25  ;;  %v602_v8 = vld [vmem:[#allocation2] sm:$0xff]  ;;  %v603_v12 = vld [vmem:[#allocation2 + $0x8] sm:$0xff]  ;;  %v1100_v25 = vsub.s32 (!%p1353_p13), 0, %v1099_v22 }
  0x66   : > { %1057 = vmatprep.subr.bf16.mxu1 %v1454_v26  ;;  %v1096_v23 = vld [vmem:[%s579_s15] sm:$0x3] (!%p1353_p13)  ;;  %v1104_v26 = vsub.s32 (!%p1353_p13), 1, %v1099_v22 }
  0x67   : > { %v1110_v24 = vld [vmem:[%s584_s18] sm:$0x3] (!%p1353_p13) }
  0x68   : > { %1017 = vmatpush1.bf16.msra.mxu0 %v1456_v27 }
  0x69   : > { %1058 = vmatpush1.bf16.msra.mxu1 %v1457_v28  ;;  %1018 = vmatprep.subr.bf16.mxu0 %v1458_v29  ;;  %v1101_v29 = vrot.slane (!%p1353_p13), %v1096_v23, %v1100_v25 }
  0x6a   : > { %1059 = vmatprep.subr.bf16.mxu1 %v1460_v30  ;;  %v1105_v30 = vrot.slane (!%p1353_p13), %v1096_v23, %v1104_v26 }
  0x6c   : > { %1019 = vmatpush1.bf16.msra.mxu0 %v1462_v31  ;;  %v1115_v31 = vrot.slane (!%p1353_p13), %v1110_v24, %v1100_v25 }
  0x6d   : > { %1060 = vmatpush1.bf16.msra.mxu1 %v1463_v32  ;;  %1020 = vmatprep.subr.bf16.mxu0 %v1464_v33  ;;  %v1119_v32 = vrot.slane (!%p1353_p13), %v1110_v24, %v1104_v26 }
  0x6e   : > { %1061 = vmatprep.subr.bf16.mxu1 %v1466_v34 }
  0x70   : > { %1021 = vmatpush1.bf16.msra.mxu0 %v1468_v35 }
  0x71   : > { %1062 = vmatpush1.bf16.msra.mxu1 %v1469_v36  ;;  %1022 = vmatprep.subr.bf16.mxu0 %v1470_v37 }
  0x72   : > { %1063 = vmatprep.subr.bf16.mxu1 %v1472_v38 }
  0x74   : > { %1023 = vmatpush1.bf16.msra.mxu0 %v1474_v39 }
  0x75   : > { %1064 = vmatpush1.bf16.msra.mxu1 %v1475_v40  ;;  %1024 = vmatprep.subr.bf16.mxu0 %v1476_v41 }
  0x76   : > { %1065 = vmatprep.subr.bf16.mxu1 %v1478_v42 }
  0x78   : > { %1025 = vmatpush1.bf16.msra.mxu0 %v1480_v43 }
  0x79   : > { %1066 = vmatpush1.bf16.msra.mxu1 %v1481_v44  ;;  %1026 = vmatprep.subr.bf16.mxu0 %v1482_v45 }
  0x7a   : > { %1067 = vmatprep.subr.bf16.mxu1 %v1484_v46 }
  0x7c   : > { %1027 = vmatpush1.bf16.msra.mxu0 %v1486_v50 }
  0x7d   : > { %1068 = vmatpush1.bf16.msra.mxu1 %v1487_v51  ;;  %1028 = vmatprep.subr.bf16.mxu0 %v1488_v53 }
  0x7e   : > { %1069 = vmatprep.subr.bf16.mxu1 %v1490_v54 }
  0x80   : > { %1029 = vmatpush1.bf16.msra.mxu0 %v1492_v55 }
  0x81   : > { %1070 = vmatpush1.bf16.msra.mxu1 %v1493_v56  ;;  %1030 = vmatprep.subr.bf16.mxu0 %v1494_v57 }
  0x82   : > { %1071 = vmatprep.subr.bf16.mxu1 %v1496_v58 }
  0x84   : > { %1031 = vmatpush1.bf16.msra.mxu0 %v1498_v59 }
  0x85   : > { %1072 = vmatpush1.bf16.msra.mxu1 %v1499_v60  ;;  %1032 = vmatprep.subr.bf16.mxu0 %v1500_v61 }
  0x86   : > { %1073 = vmatprep.subr.bf16.mxu1 %v1502_v62 }
  0x88   : > { %1033 = vmatpush1.bf16.msra.mxu0 %v1504_v63 }
  0x89   : > { %1074 = vmatpush1.bf16.msra.mxu1 %v1505_v0  ;;  %1034 = vmatprep.subr.bf16.mxu0 %v1506_v1 }
  0x8a   : > { %1075 = vmatprep.subr.bf16.mxu1 %v1508_v2 }
  0x8c   : > { %1035 = vmatpush1.bf16.msra.mxu0 %v1510_v3 }
  0x8d   : > { %1076 = vmatpush1.bf16.msra.mxu1 %v1511_v4 }
  0x8f   : > { %1037 = vmatmul.mubr.bf16.vlgmr.msra.gmra.mrb[0].mxu0 %v1285_v5 }
  0x90   : > { %1078 = vmatmul.mubr.bf16.vlgmr.msra.gmra.mrb[0].mxu1 %v1287_v6 }
 0x162   : > { %v1038_v7 = vpop.f32.mrb[0].mxu0 }
 0x163   : > { %v1079_v9 = vpop.f32.mrb[0].mxu1  ;;  %v1040_v11 = vpop.f32.mrb[1].mxu0  ;;  %1093 = sbr.rel (%p1353_p13) target bundleno = 378 (0x17a), region = 82 }
 0x164   : > { %v1080_v10 = vadd.f32 %v1079_v9, %v1038_v7  ;;  %v1081_v13 = vpop.f32.mrb[1].mxu1  ;;  %v1042_v15 = vpop.f32.mrb[2].mxu0 }
 0x165   : > { %v1082_v14 = vadd.f32 %v1081_v13, %v1040_v11  ;;  %v1083_v16 = vpop.f32.mrb[2].mxu1  ;;  %v1043_v18 = vpop.f32.mrb[3].mxu0 }
 0x166   : > { %v1086_v17 = vadd.f32 %v1080_v10, %v602_v8  ;;  %v1084_v19 = vpop.f32.mrb[3].mxu1 }
 0x167   : > { %v1087_v20 = vadd.f32 %v1082_v14, %v603_v12 }
 0x168   : > { %1088 = vst [vmem:[#allocation2] sm:$0xff] %v1086_v17 }
 0x169   : > { %1089 = vst [vmem:[#allocation2 + $0x8] sm:$0xff] %v1087_v20 }
 0x16f   : > { %v1094_v27 = vld [vmem:[#allocation2] sm:$0xff] }
 0x170   : > { %v1095_v28 = vld [vmem:[#allocation2 + $0x8] sm:$0xff]  ;;  %v1108_v33 = vmul.f32 %v1101_v29, %v1094_v27 }
 0x171   : > { %v1109_v34 = vmul.f32 %v1105_v30, %v1095_v28 }
 0x172   : > { %v1122_v35 = vadd.f32 %v1115_v31, %v1108_v33 }
 0x173   : > { %v1123_v36 = vadd.f32 %v1119_v32, %v1109_v34 }
 0x174   : > { %v1124_v37 = vmax.f32 %v1122_v35, 0.0 }
 0x175   : > { %v1125_v38 = vmax.f32 %v1123_v36, 0.0 }
 0x177   : > { %v1358_v39 = vpack.c.bf16 %v1125_v38, %v1124_v37 }
 0x179   : > { %1134 = vst [vmem:[%s1814_s12] sm:$0xff] %v1358_v39 }
 0x17a PF: > { %s14_s21 = sadd.s32 1, %s1570_s21   ;;  %s1923_s15 = smov %s1550_s16 }
 0x17b   : > { %p11_p0 = scmp.ge.s32.totalorder %s14_s21, 20   ;;  %s1924_s16 = smov %s1649_s28 }
 0x17c   : > { %s1925_s17 = smov %s1562_s19  ;;  %s1926_s18 = smov %s1566_s20 }
 0x17d   : > { %s1927_s19 = smov %s1930_s22  ;;  %s1928_s20 = smov %s1934_s23 }
 0x17e   :  { %13 = sbr.rel (!%p11_p0) target bundleno = 4 (0x4), region = 126 }

// kernel: _lambda_.41
= control target key start
LH: loop header
LB: loop body
LE: loop exit
PB: predicated region body
PF: predicated region fallthrough
CT: control target
= control target key end

     0   :  { %v1943_v7 = vmov 1983009808   ;;  %v93_v9 = vlaneseq  ;;  %vm1945_vm0 = vmmov 0   ;;  %vm810_vm1 = vcmask 1044480   ;;  %s2559_s2 = inlined_call_operand.vmem [shape: bf16[512,256], index: 2, kind: input, shape index: {}]   ;;  %s2560_s0 = inlined_call_operand.vmem [shape: f32[2,512], index: 0, kind: input, shape index: {}]   ;;  %s2561_s5 = inlined_call_operand.vmem [shape: bf16[256,128], index: 5, kind: input, shape index: {}]   ;;  %s2562_s8 = inlined_call_operand.vmem [shape: bf16[10,128], index: 8, kind: input, shape index: {}]   ;;  %s2563_s11 = inlined_call_operand.vmem [shape: bf16[128,64], index: 11, kind: input, shape index: {}]   ;;  %s2564_s3 = inlined_call_operand.vmem [shape: f32[1,256], index: 3, kind: input, shape index: {}]   ;;  %s2565_s4 = inlined_call_operand.vmem [shape: f32[1,256], index: 4, kind: input, shape index: {}]   ;;  %s2566_s1 = inlined_call_operand.vmem [shape: f32[2,10], index: 1, kind: input, shape index: {}]   ;;  %s2567_s15 = inlined_call_operand.vmem [shape: bf16[64,128], index: 15, kind: input, shape index: {}]   ;;  %s2568_s9 = inlined_call_operand.vmem [shape: f32[1,128], index: 9, kind: input, shape index: {}]   ;;  %s2569_s10 = inlined_call_operand.vmem [shape: f32[1,128], index: 10, kind: input, shape index: {}]   ;;  %s2570_s14 = inlined_call_operand.vmem [shape: bf16[128,128], index: 14, kind: input, shape index: {}]   ;;  %s2571_s18 = inlined_call_operand.vmem [shape: bf16[128,64], index: 18, kind: input, shape index: {}]   ;;  %s2572_s12 = inlined_call_operand.vmem [shape: f32[1,64], index: 12, kind: input, shape index: {}]   ;;  %s2573_s13 = inlined_call_operand.vmem [shape: f32[1,64], index: 13, kind: input, shape index: {}]   ;;  %s2574_s6 = inlined_call_operand.vmem [shape: f32[1,128], index: 6, kind: input, shape index: {}]   ;;  %s2575_s7 = inlined_call_operand.vmem [shape: f32[1,128], index: 7, kind: input, shape index: {}]   ;;  %s2576_s21 = inlined_call_operand.vmem [shape: bf16[64,32], index: 21, kind: input, shape index: {}]   ;;  %s2577_s16 = inlined_call_operand.vmem [shape: f32[1,128], index: 16, kind: input, shape index: {}]   ;;  %s2578_s17 = inlined_call_operand.vmem [shape: f32[1,128], index: 17, kind: input, shape index: {}]   ;;  %s2579_s19 = inlined_call_operand.vmem [shape: f32[1,64], index: 19, kind: input, shape index: {}]   ;;  %s2580_s20 = inlined_call_operand.vmem [shape: f32[1,64], index: 20, kind: input, shape index: {}]   ;;  %s2581_s24 = inlined_call_operand.vmem [shape: bf16[32,128], index: 24, kind: input, shape index: {}]   ;;  %s2582_s22 = inlined_call_operand.vmem [shape: f32[1,32], index: 22, kind: input, shape index: {}]   ;;  %s2583_s23 = inlined_call_operand.vmem [shape: f32[1,32], index: 23, kind: input, shape index: {}]   ;;  %s2584_s25 = inlined_call_operand.vmem [shape: f32[1,128], index: 25, kind: input, shape index: {}]   ;;  %s2585_s26 = inlined_call_operand.vmem [shape: f32[1,128], index: 26, kind: input, shape index: {}]   ;;  %s2586_s27 = inlined_call_operand.vmem [shape: f32[2,128], index: 27, kind: output, shape index: {}]  }
   0x1   :  { %2592 = sst [smem:[#allocation2_spill]] %s2559_s2  ;;  %v91_v8 = vunpack.c.l.s4 %v1943_v7  ;;  %vm806_vm2 = vcmask 80896   ;;  %vm1043_vm3 = vcmask 523264   ;;  %vm1424_vm4 = vcmask 261120  }
   0x2   :  { %2593 = sst [smem:[#allocation3_spill]] %s2560_s0  ;;  %v2113_v13 = vshrl.u32 %v93_v9, 7 }
   0x3   :  { %2594 = sst [smem:[#allocation4_spill]] %s2561_s5  ;;  %v92_v12 = vunpack.c.0.s8 %v91_v8 }
   0x4   :  { %2595 = sst [smem:[#allocation5_spill]] %s2562_s8  ;;  %s2605_s8 = sld [smem:[#allocation3_spill]] }
   0x5   :  { %2596 = sst [smem:[#allocation6_spill]] %s2563_s11  ;;  %v95_v16 = vsub.s32 %v92_v12, %v2113_v13  ;;  %s2606_s5 = sld [smem:[#allocation4_spill]] }
   0x6   :  { %2597 = sst [smem:[#allocation7_spill]] %s2564_s3  ;;  %s2611_s30 = sld [smem:[#allocation6_spill]] }
   0x7   :  { %2598 = sst [smem:[#allocation8_spill]] %s2565_s4  ;;  %s2607_s28 = sld [smem:[#allocation7_spill]] }
   0x8   :  { %2599 = sst [smem:[#allocation9_spill]] %s2566_s1  ;;  %s2609_s4 = sld [smem:[#allocation5_spill]] }
   0x9   :  { %2600 = sst [smem:[#allocation10_spill]] %s2567_s15 }
   0xa   :  { %2601 = sst [smem:[#allocation11_spill]] %s2568_s9  ;;  %s2604_s15 = sld [smem:[#allocation2_spill]]  ;;  %v87_v19 = vld [vmem:[%s2605_s8] sm:$0xff] }
   0xb   :  { %2602 = sst [smem:[#allocation12_spill]] %s2569_s10  ;;  %v2131_v20 = vrot.slane %v87_v19, %v95_v16  ;;  %v1892_v35 = vld [vmem:[%s2606_s5 + $0x40] sm:$0xff]   ;;  %v1894_v38 = vld [vmem:[%s2606_s5 + $0x48] sm:$0xff]   ;;  %v1896_v40 = vld [vmem:[%s2606_s5 + $0x50] sm:$0xff]   ;;  %v89_v44 = vcombine.high %v87_v19, %v87_v19  ;;  %s2608_s10 = sld [smem:[#allocation8_spill]] }
   0xc   :  { %2603 = sst [smem:[#allocation13_spill]] %s2570_s14  ;;  %v1893_v36 = vld [vmem:[%s2606_s5] sm:$0xff]   ;;  %1622 = vmatprep.subr.bf16.mxu1 %v1892_v35  ;;  %v1895_v39 = vld [vmem:[%s2606_s5 + $0x8] sm:$0xff]   ;;  %v1897_v43 = vld [vmem:[%s2606_s5 + $0x10] sm:$0xff]   ;;  %s2610_s8 = sld [smem:[#allocation9_spill]] }
   0xd   :  { %v104_v23 = vcombine.high %v2131_v20, %v2131_v20  ;;  %1623 = vmatpush3.bf16.msra.mxu1 %v1893_v36  ;;  %v1898_v45 = vld [vmem:[%s2606_s5 + $0x58] sm:$0xff]   ;;  %v1900_v50 = vld [vmem:[%s2606_s5 + $0x60] sm:$0xff]   ;;  %v2216_v51 = vrot.slane %v89_v44, %v95_v16  ;;  %v1902_v55 = vld [vmem:[%s2606_s5 + $0x68] sm:$0xff]   ;;  %v110_v57 = vpack.c.bf16 %v2131_v20, %v2131_v20  ;;  %v588_v36 = vsub.s32 1, %v2113_v13  ;;  %s2614_s2 = sld [smem:[#allocation10_spill]] }
   0xe   :  { %1624 = vmatprep.subr.bf16.mxu1 %v1894_v38  ;;  %v1899_v48 = vld [vmem:[%s2606_s5 + $0x18] sm:$0xff]   ;;  %v1901_v52 = vld [vmem:[%s2606_s5 + $0x20] sm:$0xff]   ;;  %v1903_v58 = vld [vmem:[%s2606_s5 + $0x28] sm:$0xff]  }
   0xf   :  { %v111_v24 = vpack.c.bf16 %v104_v23, %v104_v23  ;;  %v105_v54 = vcombine.high %v2216_v51, %v2216_v51  ;;  %v580_v35 = vld [vmem:[%s2607_s28] sm:$0x3]  ;;  %s2612_s28 = sld [smem:[#allocation11_spill]] }
  0x10   :  { %v1795_v0 = vld [vmem:[%s2604_s15 + $0x4] ss:$8 sps:$4 sm:$0xff]   ;;  %v1797_v1 = vld [vmem:[%s2604_s15] ss:$8 sps:$4 sm:$0xff]   ;;  %v1798_v2 = vld [vmem:[%s2604_s15 + $0x14] ss:$8 sps:$4 sm:$0xff]  }
  0x11   :  { %498 = vmatprep.subr.bf16.mxu0 %v1795_v0  ;;  %v1800_v3 = vld [vmem:[%s2604_s15 + $0x10] ss:$8 sps:$4 sm:$0xff]   ;;  %v1801_v4 = vld [vmem:[%s2604_s15 + $0x24] ss:$8 sps:$4 sm:$0xff]   ;;  %v1803_v5 = vld [vmem:[%s2604_s15 + $0x20] ss:$8 sps:$4 sm:$0xff]   ;;  %530 = vmatprep.mubr.bf16.mxu0 %v111_v24  ;;  %v113_v60 = vpack.c.bf16 %v105_v54, %v105_v54 }
  0x12   :  { %499 = vmatpush1.bf16.msra.mxu0 %v1797_v1  ;;  %v1804_v6 = vld [vmem:[%s2604_s15 + $0x34] ss:$8 sps:$4 sm:$0xff]   ;;  %v1806_v10 = vld [vmem:[%s2604_s15 + $0x30] ss:$8 sps:$4 sm:$0xff]   ;;  %v1807_v11 = vld [vmem:[%s2604_s15 + $0x44] ss:$8 sps:$4 sm:$0xff]   ;;  %1625 = vmatpush3.bf16.msra.mxu1 %v1895_v39  ;;  %v589_v39 = vrot.slane %v580_v35, %v588_v36 }
  0x13   :  { %500 = vmatprep.subr.bf16.mxu0 %v1798_v2  ;;  %v1809_v14 = vld [vmem:[%s2604_s15 + $0x40] ss:$8 sps:$4 sm:$0xff]   ;;  %v1810_v15 = vld [vmem:[%s2604_s15 + $0x54] ss:$8 sps:$4 sm:$0xff]   ;;  %v1812_v17 = vld [vmem:[%s2604_s15 + $0x50] ss:$8 sps:$4 sm:$0xff]   ;;  %1626 = vmatprep.subr.bf16.mxu1 %v1896_v40 }
  0x14   :  { %v1813_v18 = vld [vmem:[%s2604_s15 + $0x64] ss:$8 sps:$4 sm:$0xff]   ;;  %v1815_v21 = vld [vmem:[%s2604_s15 + $0x60] ss:$8 sps:$4 sm:$0xff]   ;;  %v1816_v22 = vld [vmem:[%s2604_s15 + $0x74] ss:$8 sps:$4 sm:$0xff]  }
  0x15   :  { %v1818_v25 = vld [vmem:[%s2604_s15 + $0x70] ss:$8 sps:$4 sm:$0xff]   ;;  %v1819_v26 = vld [vmem:[%s2604_s15 + $0x84] ss:$8 sps:$4 sm:$0xff]   ;;  %v1821_v27 = vld [vmem:[%s2604_s15 + $0x80] ss:$8 sps:$4 sm:$0xff]  }
  0x16   :  { %501 = vmatpush1.bf16.msra.mxu0 %v1800_v3  ;;  %v1822_v28 = vld [vmem:[%s2604_s15 + $0x94] ss:$8 sps:$4 sm:$0xff]   ;;  %v1824_v29 = vld [vmem:[%s2604_s15 + $0x90] ss:$8 sps:$4 sm:$0xff]   ;;  %v1825_v30 = vld [vmem:[%s2604_s15 + $0xa4] ss:$8 sps:$4 sm:$0xff]   ;;  %1627 = vmatpush3.bf16.msra.mxu1 %v1897_v43 }
  0x17   :  { %502 = vmatprep.subr.bf16.mxu0 %v1801_v4  ;;  %v1827_v31 = vld [vmem:[%s2604_s15 + $0xa0] ss:$8 sps:$4 sm:$0xff]   ;;  %v1828_v32 = vld [vmem:[%s2604_s15 + $0xb4] ss:$8 sps:$4 sm:$0xff]   ;;  %v1830_v33 = vld [vmem:[%s2604_s15 + $0xb0] ss:$8 sps:$4 sm:$0xff]   ;;  %1628 = vmatprep.subr.bf16.mxu1 %v1898_v45 }
  0x18   :  { %v1831_v34 = vld [vmem:[%s2604_s15 + $0xc4] ss:$8 sps:$4 sm:$0xff]   ;;  %v1833_v37 = vld [vmem:[%s2604_s15 + $0xc0] ss:$8 sps:$4 sm:$0xff]   ;;  %v1834_v41 = vld [vmem:[%s2604_s15 + $0xd4] ss:$8 sps:$4 sm:$0xff]  }
  0x19   :  { %v1836_v42 = vld [vmem:[%s2604_s15 + $0xd0] ss:$8 sps:$4 sm:$0xff]   ;;  %v1837_v46 = vld [vmem:[%s2604_s15 + $0xe4] ss:$8 sps:$4 sm:$0xff]   ;;  %v1839_v47 = vld [vmem:[%s2604_s15 + $0xe0] ss:$8 sps:$4 sm:$0xff]  }
  0x1a   :  { %503 = vmatpush1.bf16.msra.mxu0 %v1803_v5  ;;  %v1840_v49 = vld [vmem:[%s2604_s15 + $0xf4] ss:$8 sps:$4 sm:$0xff]   ;;  %1629 = vmatpush3.bf16.msra.mxu1 %v1899_v48  ;;  %v1842_v53 = vld [vmem:[%s2604_s15 + $0xf0] ss:$8 sps:$4 sm:$0xff]   ;;  %v1846_v56 = vld [vmem:[%s2604_s15 + $0x104] ss:$8 sps:$4 sm:$0xff]  }
  0x1b   :  { %504 = vmatprep.subr.bf16.mxu0 %v1804_v6  ;;  %1630 = vmatprep.subr.bf16.mxu1 %v1900_v50  ;;  %v1844_v59 = vld [vmem:[%s2604_s15 + $0x100] ss:$8 sps:$4 sm:$0xff]   ;;  %v1849_v61 = vld [vmem:[%s2604_s15 + $0x114] ss:$8 sps:$4 sm:$0xff]   ;;  %v1847_v62 = vld [vmem:[%s2604_s15 + $0x110] ss:$8 sps:$4 sm:$0xff]  }
  0x1c   :  { %v1852_v63 = vld [vmem:[%s2604_s15 + $0x124] ss:$8 sps:$4 sm:$0xff]   ;;  %v1850_v0 = vld [vmem:[%s2604_s15 + $0x120] ss:$8 sps:$4 sm:$0xff]   ;;  %v1855_v1 = vld [vmem:[%s2604_s15 + $0x134] ss:$8 sps:$4 sm:$0xff]  }
  0x1d   :  { %v1853_v2 = vld [vmem:[%s2604_s15 + $0x130] ss:$8 sps:$4 sm:$0xff]   ;;  %v1858_v3 = vld [vmem:[%s2604_s15 + $0x144] ss:$8 sps:$4 sm:$0xff]   ;;  %v1856_v4 = vld [vmem:[%s2604_s15 + $0x140] ss:$8 sps:$4 sm:$0xff]  }
  0x1e   :  { %505 = vmatpush1.bf16.msra.mxu0 %v1806_v10  ;;  %1631 = vmatpush3.bf16.msra.mxu1 %v1901_v52  ;;  %v1861_v5 = vld [vmem:[%s2604_s15 + $0x154] ss:$8 sps:$4 sm:$0xff]   ;;  %v1859_v6 = vld [vmem:[%s2604_s15 + $0x150] ss:$8 sps:$4 sm:$0xff]   ;;  %v1864_v7 = vld [vmem:[%s2604_s15 + $0x164] ss:$8 sps:$4 sm:$0xff]  }
  0x1f   :  { %506 = vmatprep.subr.bf16.mxu0 %v1807_v11  ;;  %1632 = vmatprep.subr.bf16.mxu1 %v1902_v55  ;;  %v1862_v8 = vld [vmem:[%s2604_s15 + $0x160] ss:$8 sps:$4 sm:$0xff]   ;;  %v1867_v9 = vld [vmem:[%s2604_s15 + $0x174] ss:$8 sps:$4 sm:$0xff]   ;;  %v1865_v10 = vld [vmem:[%s2604_s15 + $0x170] ss:$8 sps:$4 sm:$0xff]  }
  0x20   :  { %v1870_v11 = vld [vmem:[%s2604_s15 + $0x184] ss:$8 sps:$4 sm:$0xff]   ;;  %v1868_v12 = vld [vmem:[%s2604_s15 + $0x180] ss:$8 sps:$4 sm:$0xff]   ;;  %v1877_v19 = vld [vmem:[%s2604_s15 + $0x1b0] ss:$8 sps:$4 sm:$0xff]  }
  0x21   :  { %v1876_v16 = vld [vmem:[%s2604_s15 + $0x1a4] ss:$8 sps:$4 sm:$0xff]   ;;  %v1883_v23 = vld [vmem:[%s2604_s15 + $0x1d0] ss:$8 sps:$4 sm:$0xff]   ;;  %v797_v55 = vld [vmem:[%s2610_s8] sm:$0x3] }
  0x22   :  { %507 = vmatpush1.bf16.msra.mxu0 %v1809_v14  ;;  %1633 = vmatpush3.bf16.msra.mxu1 %v1903_v58  ;;  %v1873_v14 = vld [vmem:[%s2604_s15 + $0x194] ss:$8 sps:$4 sm:$0xff]   ;;  %v1882_v20 = vld [vmem:[%s2604_s15 + $0x1c4] ss:$8 sps:$4 sm:$0xff]  }
  0x23   :  { %508 = vmatprep.subr.bf16.mxu0 %v1810_v15  ;;  %v1871_v15 = vld [vmem:[%s2604_s15 + $0x190] ss:$8 sps:$4 sm:$0xff]   ;;  %v1888_v24 = vld [vmem:[%s2604_s15 + $0x1e4] ss:$8 sps:$4 sm:$0xff]  }
  0x24   :  { %v1910_v58 = vld [vmem:[%s2611_s30 + $0x8] sm:$0xff]  }
  0x26   :  { %509 = vmatpush1.bf16.msra.mxu0 %v1812_v17  ;;  %v1874_v17 = vld [vmem:[%s2604_s15 + $0x1a0] ss:$8 sps:$4 sm:$0xff]  }
  0x27   :  { %510 = vmatprep.subr.bf16.mxu0 %v1813_v18  ;;  %v1879_v18 = vld [vmem:[%s2604_s15 + $0x1b4] ss:$8 sps:$4 sm:$0xff]  }
  0x2a   :  { %511 = vmatpush1.bf16.msra.mxu0 %v1815_v21  ;;  %v1880_v21 = vld [vmem:[%s2604_s15 + $0x1c0] ss:$8 sps:$4 sm:$0xff]  }
  0x2b   :  { %512 = vmatprep.subr.bf16.mxu0 %v1816_v22  ;;  %v1885_v22 = vld [vmem:[%s2604_s15 + $0x1d4] ss:$8 sps:$4 sm:$0xff]  }
  0x2e   :  { %513 = vmatpush1.bf16.msra.mxu0 %v1818_v25  ;;  %v1886_v25 = vld [vmem:[%s2604_s15 + $0x1e0] ss:$8 sps:$4 sm:$0xff]  }
  0x2f   :  { %514 = vmatprep.subr.bf16.mxu0 %v1819_v26  ;;  %v1891_v26 = vld [vmem:[%s2604_s15 + $0x1f4] ss:$8 sps:$4 sm:$0xff]  }
  0x32   :  { %515 = vmatpush1.bf16.msra.mxu0 %v1821_v27  ;;  %v1889_v27 = vld [vmem:[%s2604_s15 + $0x1f0] ss:$8 sps:$4 sm:$0xff]  }
  0x33   :  { %516 = vmatprep.subr.bf16.mxu0 %v1822_v28  ;;  %v112_v28 = vpack.c.bf16 %v2216_v51, %v2216_v51 }
  0x36   :  { %517 = vmatpush1.bf16.msra.mxu0 %v1824_v29  ;;  %v1904_v29 = vld [vmem:[%s2606_s5 + $0x70] sm:$0xff]  }
  0x37   :  { %518 = vmatprep.subr.bf16.mxu0 %v1825_v30  ;;  %v1905_v30 = vld [vmem:[%s2606_s5 + $0x30] sm:$0xff]   ;;  %1634 = vmatprep.subr.bf16.mxu1 %v1904_v29 }
  0x38   :  { %1635 = vmatpush3.bf16.msra.mxu1 %v1905_v30 }
  0x3a   :  { %519 = vmatpush1.bf16.msra.mxu0 %v1827_v31  ;;  %v1906_v31 = vld [vmem:[%s2606_s5 + $0x78] sm:$0xff]  }
  0x3b   :  { %520 = vmatprep.subr.bf16.mxu0 %v1828_v32  ;;  %v1907_v32 = vld [vmem:[%s2606_s5 + $0x38] sm:$0xff]   ;;  %1636 = vmatprep.subr.bf16.mxu1 %v1906_v31 }
  0x3c   :  { %1637 = vmatpush3.bf16.msra.mxu1 %v1907_v32 }
  0x3e   :  { %521 = vmatpush1.bf16.msra.mxu0 %v1830_v33  ;;  %v1944_v33 = vmov 0.0  }
  0x3f   :  { %522 = vmatprep.subr.bf16.mxu0 %v1831_v34  ;;  %1686 = vmatprep.subr.bf16.mxu1 %v1944_v33  ;;  %v584_v34 = vsub.s32 0, %v2113_v13  ;;  %v1908_v13 = vld [vmem:[%s2609_s4] sm:$0x1f]  }
  0x40   :  { %v812_v54 = vsel %vm810_vm1, %v1908_v13, 0  ;;  %v1934_v13 = vld [vmem:[%s2571_s18 + $0x28] sm:$0xff]  }
  0x41   :  { %v585_v38 = vrot.slane %v580_v35, %v584_v34 }
  0x42   :  { %523 = vmatpush1.bf16.msra.mxu0 %v1833_v37  ;;  %v594_v37 = vld [vmem:[%s2608_s10] sm:$0x3]  ;;  %s2613_s10 = sld [smem:[#allocation12_spill]] }
  0x43   :  { %524 = vmatprep.subr.bf16.mxu0 %v1834_v41  ;;  %v599_v40 = vrot.slane %v594_v37, %v584_v34 }
  0x46   :  { %525 = vmatpush1.bf16.msra.mxu0 %v1836_v42  ;;  %v603_v42 = vrot.slane %v594_v37, %v588_v36  ;;  %v1569_v37 = vld [vmem:[%s2574_s6] ss:$0 sm:$0xff] }
  0x47   :  { %526 = vmatprep.subr.bf16.mxu0 %v1837_v46 }
  0x4a   :  { %527 = vmatpush1.bf16.msra.mxu0 %v1839_v47 }
  0x4b   :  { %528 = vmatprep.subr.bf16.mxu0 %v1840_v49 }
  0x4e   :  { %529 = vmatpush1.bf16.msra.mxu0 %v1842_v53 }
  0x4f   :  { %539 = vmatprep.subr.bf16.mxu0 %v1846_v56  ;;  %v798_v56 = vpack.c.bf16 %v797_v55, %v797_v55  ;;  %v1598_v55 = vld [vmem:[%s2577_s16] ss:$0 sm:$0xff] }
  0x51   :  { %531 = vmatmul.mubr.bf16.vlgmr.msra.gmra.mrb[0].mxu0 %v110_v57  ;;  %v1909_v57 = vld [vmem:[%s2611_s30] sm:$0xff]  }
  0x52   :  { %540 = vmatpush1.bf16.msra.mxu0 %v1844_v59  ;;  %571 = vmatprep.mubr.bf16.mxu0 %v113_v60  ;;  %v1911_v59 = vld [vmem:[%s2611_s30 + $0x10] sm:$0xff]   ;;  %v1912_v60 = vld [vmem:[%s2611_s30 + $0x18] sm:$0xff]  }
  0x53   :  { %541 = vmatprep.subr.bf16.mxu0 %v1849_v61  ;;  %v1913_v61 = vld [vmem:[%s2611_s30 + $0x20] sm:$0xff]  }
  0x56   :  { %542 = vmatpush1.bf16.msra.mxu0 %v1847_v62  ;;  %v1914_v62 = vld [vmem:[%s2611_s30 + $0x28] sm:$0xff]  }
  0x57   :  { %543 = vmatprep.subr.bf16.mxu0 %v1852_v63  ;;  %v1915_v63 = vld [vmem:[%s2611_s30 + $0x30] sm:$0xff]  }
  0x5a   :  { %544 = vmatpush1.bf16.msra.mxu0 %v1850_v0  ;;  %v1916_v0 = vld [vmem:[%s2611_s30 + $0x38] sm:$0xff]   ;;  %s2615_s30 = sld [smem:[#allocation13_spill]] }
  0x5b   :  { %545 = vmatprep.subr.bf16.mxu0 %v1855_v1 }
  0x5e   :  { %546 = vmatpush1.bf16.msra.mxu0 %v1853_v2 }
  0x5f   :  { %547 = vmatprep.subr.bf16.mxu0 %v1858_v3 }
  0x60   :  { %v1921_v30 = vld [vmem:[%s2615_s30] sm:$0xff]   ;;  %v1922_v32 = vld [vmem:[%s2615_s30 + $0x8] sm:$0xff]   ;;  %v1923_v34 = vld [vmem:[%s2615_s30 + $0x10] sm:$0xff]  }
  0x61   :  { %v1924_v35 = vld [vmem:[%s2615_s30 + $0x18] sm:$0xff]   ;;  %v1925_v36 = vld [vmem:[%s2615_s30 + $0x20] sm:$0xff]  }
  0x62   :  { %548 = vmatpush1.bf16.msra.mxu0 %v1856_v4 }
  0x63   :  { %549 = vmatprep.subr.bf16.mxu0 %v1861_v5 }
  0x66   :  { %550 = vmatpush1.bf16.msra.mxu0 %v1859_v6  ;;  %v1573_v6 = vld [vmem:[%s2612_s28] ss:$0 sm:$0xff] }
  0x67   :  { %551 = vmatprep.subr.bf16.mxu0 %v1864_v7 }
  0x6a   :  { %552 = vmatpush1.bf16.msra.mxu0 %v1862_v8  ;;  %v1574_v8 = vld [vmem:[%s2613_s10] ss:$0 sm:$0xff] }
  0x6b   :  { %553 = vmatprep.subr.bf16.mxu0 %v1867_v9 }
  0x6e   :  { %554 = vmatpush1.bf16.msra.mxu0 %v1865_v10 }
  0x6f   :  { %555 = vmatprep.subr.bf16.mxu0 %v1870_v11 }
  0x72   :  { %556 = vmatpush1.bf16.msra.mxu0 %v1868_v12 }
  0x73   :  { %557 = vmatprep.subr.bf16.mxu0 %v1873_v14 }
  0x76   :  { %558 = vmatpush1.bf16.msra.mxu0 %v1871_v15 }
  0x77   :  { %559 = vmatprep.subr.bf16.mxu0 %v1876_v16  ;;  %v1917_v16 = vld [vmem:[%s2614_s2] sm:$0xff]  }
  0x7a   :  { %560 = vmatpush1.bf16.msra.mxu0 %v1874_v17 }
  0x7b   :  { %561 = vmatprep.subr.bf16.mxu0 %v1879_v18  ;;  %v1918_v18 = vld [vmem:[%s2614_s2 + $0x8] sm:$0xff]  }
  0x7e   :  { %562 = vmatpush1.bf16.msra.mxu0 %v1877_v19  ;;  %v1919_v19 = vld [vmem:[%s2614_s2 + $0x10] sm:$0xff]  }
  0x7f   :  { %563 = vmatprep.subr.bf16.mxu0 %v1882_v20  ;;  %v1920_v20 = vld [vmem:[%s2614_s2 + $0x18] sm:$0xff]  }
  0x82   :  { %564 = vmatpush1.bf16.msra.mxu0 %v1880_v21  ;;  %v1583_v21 = vld [vmem:[%s2572_s12] ss:$0 sm:$0xff] }
  0x83   :  { %565 = vmatprep.subr.bf16.mxu0 %v1885_v22 }
  0x86   :  { %566 = vmatpush1.bf16.msra.mxu0 %v1883_v23  ;;  %v1584_v23 = vld [vmem:[%s2573_s13] ss:$0 sm:$0xff] }
  0x87   :  { %567 = vmatprep.subr.bf16.mxu0 %v1888_v24 }
  0x8a   :  { %568 = vmatpush1.bf16.msra.mxu0 %v1886_v25 }
  0x8b   :  { %569 = vmatprep.subr.bf16.mxu0 %v1891_v26 }
  0x8e   :  { %570 = vmatpush1.bf16.msra.mxu0 %v1889_v27 }
  0x8f   :  { %1764 = vmatprep.subr.bf16.mxu0 %v1944_v33 }
  0x91   :  { %572 = vmatmul.mubr.bf16.vlgmr.msra.gmra.mrb[0].mxu0 %v112_v28 }
  0x92   :  { %1772 = vmatprep.mubr.msk.bf16.mxu0 %vm1945_vm0, %v1944_v33 }
 0x164   :  { %v573_v41 = vpop.f32.mrb[0].mxu0 }
 0x165   :  { %v592_v43 = vmul.f32 %v585_v38, %v573_v41  ;;  %v575_v44 = vpop.f32.mrb[1].mxu0  ;;  %v1926_v38 = vld [vmem:[%s2615_s30 + $0x28] sm:$0xff]   ;;  %v1927_v41 = vld [vmem:[%s2615_s30 + $0x30] sm:$0xff]  }
 0x166   :  { %v593_v45 = vmul.f32 %v589_v39, %v575_v44  ;;  %v577_v46 = vpop.f32.mrb[2].mxu0 }
 0x167   :  { %v606_v47 = vadd.f32 %v599_v40, %v592_v43  ;;  %v578_v48 = vpop.f32.mrb[3].mxu0  ;;  %v1570_v40 = vld [vmem:[%s2575_s7] ss:$0 sm:$0xff]  ;;  %v1928_v43 = vld [vmem:[%s2615_s30 + $0x38] sm:$0xff]  }
 0x168   :  { %v607_v49 = vadd.f32 %v603_v42, %v593_v45  ;;  %v1929_v45 = vld [vmem:[%s2571_s18] sm:$0xff]   ;;  %v1931_v48 = vld [vmem:[%s2571_s18 + $0x10] sm:$0xff]  }
 0x169   :  { %v608_v50 = vmax.f32 %v606_v47, 0.0  ;;  %v1930_v47 = vld [vmem:[%s2571_s18 + $0x8] sm:$0xff]  }
 0x16a   :  { %v609_v51 = vmax.f32 %v607_v49, 0.0  ;;  %v1932_v49 = vld [vmem:[%s2571_s18 + $0x18] sm:$0xff]  }
 0x16b   :  { %v610_v53 = vpack.c.bf16 %v608_v50, %v608_v50  ;;  %v1933_v50 = vld [vmem:[%s2571_s18 + $0x20] sm:$0xff]  }
 0x16c   :  { %v611_v52 = vpack.c.bf16 %v609_v51, %v609_v51  ;;  %v1935_v51 = vld [vmem:[%s2571_s18 + $0x30] sm:$0xff]  }
 0x16e   :  { %772 = vmatprep.mubr.bf16.mxu1 %v611_v52  ;;  %v1936_v52 = vld [vmem:[%s2571_s18 + $0x38] sm:$0xff]  }
 0x16f   :  { %773 = vmatmul.mubr.bf16.vlgmr.msra.gmra.mrb[0].mxu1 %v610_v53  ;;  %v1937_v53 = vld [vmem:[%s2576_s21] sm:$0xff]  }
 0x170   :  { %1687 = vmatpush3.bf16.msra.mxu1 %v812_v54  ;;  %1688 = vmatprep.mubr.msk.bf16.mxu1 %vm1945_vm0, %v1944_v33  ;;  %v1938_v54 = vld [vmem:[%s2576_s21 + $0x8] sm:$0xff]  }
 0x171   :  { %1692 = vmatprep.subr.bf16.mxu1 %v1944_v33  ;;  %1765 = vmatpush3.bf16.msra.mxu0 %v1937_v53 }
 0x172   :  { %1766 = vmatprep.subr.bf16.mxu0 %v1944_v33 }
 0x175   :  { %1767 = vmatpush3.bf16.msra.mxu0 %v1938_v54 }
 0x176   :  { %1768 = vmatprep.subr.bf16.mxu0 %v1944_v33 }
 0x177   :  { %1689 = vmatmul.mubr.msk.bf16.vlgmr.msra.gmra.mrb[4].mxu1 %vm806_vm2, %v798_v56 }
 0x178   :  { %1693 = vmatpush3.bf16.msra.mxu1 %v1909_v57  ;;  %1708 = vmatprep.mubr.msk.bf16.mxu1 %vm1945_vm0, %v1944_v33  ;;  %v1599_v57 = vld [vmem:[%s2578_s17] ss:$0 sm:$0xff] }
 0x179   :  { %1694 = vmatprep.subr.bf16.mxu1 %v1944_v33 }
 0x17c   :  { %1695 = vmatpush3.bf16.msra.mxu1 %v1910_v58 }
 0x17d   :  { %1696 = vmatprep.subr.bf16.mxu1 %v1944_v33 }
 0x180   :  { %1697 = vmatpush3.bf16.msra.mxu1 %v1911_v59 }
 0x181   :  { %1698 = vmatprep.subr.bf16.mxu1 %v1944_v33 }
 0x184   :  { %1699 = vmatpush3.bf16.msra.mxu1 %v1912_v60 }
 0x185   :  { %1700 = vmatprep.subr.bf16.mxu1 %v1944_v33 }
 0x188   :  { %1701 = vmatpush3.bf16.msra.mxu1 %v1913_v61 }
 0x189   :  { %1702 = vmatprep.subr.bf16.mxu1 %v1944_v33 }
 0x18c   :  { %1703 = vmatpush3.bf16.msra.mxu1 %v1914_v62 }
 0x18d   :  { %1704 = vmatprep.subr.bf16.mxu1 %v1944_v33 }
 0x190   :  { %1705 = vmatpush3.bf16.msra.mxu1 %v1915_v63 }
 0x191   :  { %1706 = vmatprep.subr.bf16.mxu1 %v1944_v33 }
 0x194   :  { %1707 = vmatpush3.bf16.msra.mxu1 %v1916_v0 }
 0x195   :  { %1712 = vmatprep.subr.bf16.mxu1 %v1944_v33 }
 0x242   :  { %v1638_v1 = vpop.f32.mrb[0].mxu1 }
 0x243   :  { %v1639_v2 = vpop.f32.mrb[1].mxu1 }
 0x244   :  { %v2399_v3 = vadd.f32 %v1639_v2, %v1638_v1  ;;  %v1641_v4 = vpop.f32.mrb[2].mxu1  ;;  %v1939_v1 = vld [vmem:[%s2576_s21 + $0x10] sm:$0xff]   ;;  %v1940_v2 = vld [vmem:[%s2576_s21 + $0x18] sm:$0xff]  }
 0x245   :  { %v1642_v5 = vpop.f32.mrb[3].mxu1  ;;  %1769 = vmatpush3.bf16.msra.mxu0 %v1939_v1 }
 0x246   :  { %v787_v39 = vmul.f32 %v2399_v3, %v1569_v37  ;;  %1770 = vmatprep.subr.bf16.mxu0 %v1944_v33  ;;  %v1608_v3 = vld [vmem:[%s2579_s19] ss:$0 sm:$0xff] }
 0x247   :  { %v1609_v5 = vld [vmem:[%s2580_s20] ss:$0 sm:$0xff] }
 0x248   :  { %v795_v42 = vadd.f32 %v1570_v40, %v787_v39 }
 0x249   :  { %1771 = vmatpush3.bf16.msra.mxu0 %v1940_v2 }
 0x24a   :  { %v848_v7 = vpop.f32.mrb[4].mxu1  ;;  %v796_v44 = vmax.f32 %v795_v42, 0.0  ;;  %1776 = vmatprep.subr.bf16.mxu0 %v1944_v33 }
 0x24b   :  { %v861_v9 = vmul.f32 %v1573_v6, %v848_v7  ;;  %v1690_v10 = vpop.f32.mrb[5].mxu1 }
 0x24c   :  { %v851_v11 = vpop.f32.mrb[6].mxu1  ;;  %v993_v46 = vpack.c.bf16 %v796_v44, %v796_v44 }
 0x24d   :  { %v869_v12 = vadd.f32 %v1574_v8, %v861_v9  ;;  %v1691_v14 = vpop.f32.mrb[7].mxu1 }
 0x24e   :  { %v1941_v14 = vld [vmem:[%s2581_s24] sm:$0xff]  }
 0x24f   :  { %v870_v15 = vmax.f32 %v869_v12, 0.0 }
 0x251   :  { %v871_v17 = vpack.c.bf16 %v870_v15, %v870_v15  ;;  %v1942_v15 = vld [vmem:[%s2581_s24 + $0x8] sm:$0xff]  }
 0x253   :  { %1709 = vmatmul.mubr.bf16.vlgmr.msra.gmra.mrb[8].mxu1 %v871_v17 }
 0x254   :  { %1713 = vmatpush3.bf16.msra.mxu1 %v1917_v16  ;;  %1720 = vmatprep.mubr.msk.bf16.mxu1 %vm1945_vm0, %v1944_v33  ;;  %v1615_v16 = vld [vmem:[%s2582_s22] ss:$0 sm:$0xff] }
 0x255   :  { %1714 = vmatprep.subr.bf16.mxu1 %v1944_v33 }
 0x258   :  { %1715 = vmatpush3.bf16.msra.mxu1 %v1918_v18  ;;  %v1616_v18 = vld [vmem:[%s2583_s23] ss:$0 sm:$0xff] }
 0x259   :  { %1716 = vmatprep.subr.bf16.mxu1 %v1944_v33 }
 0x25c   :  { %1717 = vmatpush3.bf16.msra.mxu1 %v1919_v19 }
 0x25d   :  { %1718 = vmatprep.subr.bf16.mxu1 %v1944_v33 }
 0x260   :  { %1719 = vmatpush3.bf16.msra.mxu1 %v1920_v20 }
 0x261   :  { %1724 = vmatprep.subr.bf16.mxu1 %v1944_v33 }
 0x326   :  { %v970_v22 = vpop.f32.mrb[8].mxu1 }
 0x327   :  { %v983_v24 = vmul.f32 %v1583_v21, %v970_v22  ;;  %v1710_v25 = vpop.f32.mrb[9].mxu1 }
 0x328   :  { %v973_v26 = vpop.f32.mrb[10].mxu1  ;;  %v1620_v25 = vld [vmem:[%s2584_s25] ss:$0 sm:$0xff] }
 0x329   :  { %v991_v27 = vadd.f32 %v1584_v23, %v983_v24  ;;  %v1711_v28 = vpop.f32.mrb[11].mxu1 }
 0x32b   :  { %v992_v29 = vmax.f32 %v991_v27, 0.0  ;;  %v1621_v27 = vld [vmem:[%s2585_s26] ss:$0 sm:$0xff] }
 0x32d   :  { %v1010_v31 = vpack.c.bf16 %v992_v29, %v992_v29 }
 0x32f   :  { %1721 = vmatmul.mubr.msk.bf16.vlgmr.msra.gmra.mrb[12].mxu1 %vm1043_vm3, %v1010_v31 }
 0x330   :  { %1725 = vmatpush3.bf16.msra.mxu1 %v1921_v30  ;;  %1740 = vmatprep.mubr.msk.bf16.mxu1 %vm1945_vm0, %v1944_v33 }
 0x331   :  { %1726 = vmatprep.subr.bf16.mxu1 %v1944_v33 }
 0x334   :  { %1727 = vmatpush3.bf16.msra.mxu1 %v1922_v32 }
 0x335   :  { %1728 = vmatprep.subr.bf16.mxu1 %v1944_v33 }
 0x338   :  { %1729 = vmatpush3.bf16.msra.mxu1 %v1923_v34 }
 0x339   :  { %1730 = vmatprep.subr.bf16.mxu1 %v1944_v33 }
 0x33c   :  { %1731 = vmatpush3.bf16.msra.mxu1 %v1924_v35 }
 0x33d   :  { %1732 = vmatprep.subr.bf16.mxu1 %v1944_v33 }
 0x340   :  { %1733 = vmatpush3.bf16.msra.mxu1 %v1925_v36 }
 0x341   :  { %1734 = vmatprep.subr.bf16.mxu1 %v1944_v33 }
 0x344   :  { %1735 = vmatpush3.bf16.msra.mxu1 %v1926_v38 }
 0x345   :  { %1736 = vmatprep.subr.bf16.mxu1 %v1944_v33 }
 0x348   :  { %1737 = vmatpush3.bf16.msra.mxu1 %v1927_v41 }
 0x349   :  { %1738 = vmatprep.subr.bf16.mxu1 %v1944_v33 }
 0x34c   :  { %1739 = vmatpush3.bf16.msra.mxu1 %v1928_v43 }
 0x34d   :  { %1744 = vmatprep.subr.bf16.mxu1 %v1944_v33 }
 0x34f   :  { %1741 = vmatmul.mubr.bf16.vlgmr.msra.gmra.mrb[12].mxu1 %v993_v46 }
 0x350   :  { %1745 = vmatpush3.bf16.msra.mxu1 %v1929_v45  ;;  %1760 = vmatprep.mubr.msk.bf16.mxu1 %vm1945_vm0, %v1944_v33 }
 0x351   :  { %1746 = vmatprep.subr.bf16.mxu1 %v1944_v33 }
 0x354   :  { %1747 = vmatpush3.bf16.msra.mxu1 %v1930_v47 }
 0x355   :  { %1748 = vmatprep.subr.bf16.mxu1 %v1944_v33 }
 0x358   :  { %1749 = vmatpush3.bf16.msra.mxu1 %v1931_v48 }
 0x359   :  { %1750 = vmatprep.subr.bf16.mxu1 %v1944_v33 }
 0x35c   :  { %1751 = vmatpush3.bf16.msra.mxu1 %v1932_v49 }
 0x35d   :  { %1752 = vmatprep.subr.bf16.mxu1 %v1944_v33 }
 0x360   :  { %1753 = vmatpush3.bf16.msra.mxu1 %v1933_v50 }
 0x361   :  { %1754 = vmatprep.subr.bf16.mxu1 %v1944_v33 }
 0x364   :  { %1755 = vmatpush3.bf16.msra.mxu1 %v1934_v13 }
 0x365   :  { %1756 = vmatprep.subr.bf16.mxu1 %v1944_v33 }
 0x368   :  { %1757 = vmatpush3.bf16.msra.mxu1 %v1935_v51 }
 0x369   :  { %1758 = vmatprep.subr.bf16.mxu1 %v1944_v33 }
 0x36c   :  { %1759 = vmatpush3.bf16.msra.mxu1 %v1936_v52 }
 0x422   :  { %v1169_v56 = vpop.f32.mrb[12].mxu1 }
 0x423   :  { %v1182_v58 = vmul.f32 %v1598_v55, %v1169_v56  ;;  %v1742_v59 = vpop.f32.mrb[13].mxu1 }
 0x424   :  { %v1172_v60 = vpop.f32.mrb[14].mxu1 }
 0x425   :  { %v1190_v61 = vadd.f32 %v1599_v57, %v1182_v58  ;;  %v1743_v62 = vpop.f32.mrb[15].mxu1 }
 0x427   :  { %v1191_v63 = vmax.f32 %v1190_v61, 0.0 }
 0x429   :  { %v1192_v0 = vpack.c.bf16 %v1191_v63, %v1191_v63 }
 0x42b   :  { %1761 = vmatmul.mubr.bf16.vlgmr.msra.gmra.mrb[16].mxu1 %v1192_v0 }
 0x4fe   :  { %v1291_v4 = vpop.f32.mrb[16].mxu1 }
 0x4ff   :  { %v1304_v6 = vmul.f32 %v1608_v3, %v1291_v4  ;;  %v1762_v7 = vpop.f32.mrb[17].mxu1 }
 0x500   :  { %v1294_v8 = vpop.f32.mrb[18].mxu1 }
 0x501   :  { %v1312_v9 = vadd.f32 %v1609_v5, %v1304_v6  ;;  %v1763_v10 = vpop.f32.mrb[19].mxu1 }
 0x503   :  { %v1313_v11 = vmax.f32 %v1312_v9, 0.0 }
 0x505   :  { %v1314_v12 = vpack.c.bf16 %v1313_v11, %v1313_v11 }
 0x507   :  { %1773 = vmatmul.mubr.msk.bf16.vlgmr.msra.gmra.mrb[4].mxu0 %vm1043_vm3, %v1314_v12 }
 0x508   :  { %1780 = vmatprep.mubr.msk.bf16.mxu0 %vm1945_vm0, %v1944_v33  ;;  %1777 = vmatpush3.bf16.msra.mxu0 %v1941_v14 }
 0x509   :  { %1778 = vmatprep.subr.bf16.mxu0 %v1944_v33 }
 0x50c   :  { %1779 = vmatpush3.bf16.msra.mxu0 %v1942_v15 }
 0x5da   :  { %v1384_v17 = vpop.f32.mrb[4].mxu0 }
 0x5db   :  { %v1397_v19 = vmul.f32 %v1615_v16, %v1384_v17  ;;  %v1774_v20 = vpop.f32.mrb[5].mxu0 }
 0x5dc   :  { %v1387_v21 = vpop.f32.mrb[6].mxu0 }
 0x5dd   :  { %v1405_v22 = vadd.f32 %v1616_v18, %v1397_v19  ;;  %v1775_v23 = vpop.f32.mrb[7].mxu0 }
 0x5df   :  { %v1406_v33 = vmax.f32 %v1405_v22, 0.0 }
 0x5e1   :  { %v1407_v24 = vpack.c.bf16 %v1406_v33, %v1406_v33 }
 0x5e3   :  { %1781 = vmatmul.mubr.msk.bf16.vlgmr.msra.gmra.mrb[8].mxu0 %vm1424_vm4, %v1407_v24 }
 0x6b6   :  { %v1462_v26 = vpop.f32.mrb[8].mxu0 }
 0x6b7   :  { %v1475_v28 = vmul.f32 %v1620_v25, %v1462_v26  ;;  %v1782_v29 = vpop.f32.mrb[9].mxu0 }
 0x6b8   :  { %v1465_v30 = vpop.f32.mrb[10].mxu0 }
 0x6b9   :  { %v1483_v31 = vadd.f32 %v1621_v27, %v1475_v28  ;;  %v1783_v32 = vpop.f32.mrb[11].mxu0 }
 0x6bb   :  { %1484 = vst [vmem:[%s2586_s27] sm:$0x3] %v1483_v31 }

</bundles_post_ra>
